<compile_context>
chip_gen: v5e
topology: v5e:2x2
jax: 0.10.0
libtpu: 0.0.40
codegen_flags: <defaults>
</compile_context>

<pallas_src>
import functools

import numpy as np

import jax
import jax.numpy as jnp
from jax.experimental import pallas as pl
from jax.experimental.pallas import tpu as pltpu

LANE = 128          # TPU lane width: last dim of every kernel operand
_EPS = 1e-5         # nn.BatchNorm2d default
_NEG_SLOPE = 0.2    # nn.LeakyReLU(0.2)


def _round_up(x, m):
    return (x + m - 1) // m * m


# -----------------------------------------------------------------------------
# Fused whole-encoder kernel.
# -----------------------------------------------------------------------------
def _encoder_kernel(a1_ref, w1_ref,
                    w2_ref, g2_ref, b2_ref,
                    s3_ref, w3_ref, g3_ref, b3_ref,
                    s4_ref, w4_ref, g4_ref, b4_ref,
                    s5_ref, w5_ref, g5_ref, b5_ref,
                    w6_ref,
                    o_ref, act1_ref, *, bn_valid, l2_geom):
    m2, m3, m4, m5 = bn_valid
    n_batch, k2, oh2, ow2 = l2_geom
    n_slabs, ph, pw, lane = act1_ref.shape
    slab = ph * pw

    def leaky(y):
        return jnp.maximum(y, _NEG_SLOPE * y)        # single VALU op

    def batchnorm(y, g_ref, b_ref, m):
        # Training-mode batch statistics (biased variance), two-pass centered
        # form in f32.  Rows >= m are zero padding: they add 0 to the mean sum
        # but must be excluded from the centered variance (only when m < rows).
        mean = jnp.sum(y, axis=0, keepdims=True) * (1.0 / m)
        if m == y.shape[0]:
            d = y - mean
        else:
            ridx = jax.lax.broadcasted_iota(jnp.int32, y.shape, 0)
            d = jnp.where(ridx < m, y - mean, 0.0)
        var = jnp.sum(d * d, axis=0, keepdims=True) * (1.0 / m)
        return g_ref[...] * (y - mean) * jax.lax.rsqrt(var + _EPS) + b_ref[...]

    def sconv(act, s_ref, w_ref):
        # Conv via (pruned) per-tap MXU row gather S_t @ act, then that tap's
        # (Cin, Cout) weight matmul.  Static Python loop -> fully unrolled.
        nt, rows_out, _ = s_ref.shape
        acc = jnp.zeros((rows_out, w_ref.shape[-1]), jnp.float32)
        for t in range(nt):
            patch = jnp.dot(s_ref[t], act, preferred_element_type=jnp.float32)
            acc = acc + jnp.dot(patch.astype(jnp.bfloat16), w_ref[t],
                                preferred_element_type=jnp.float32)
        return acc

    # ---- layer 1: conv (host im2col rows already in the parity-plane padded
    #      layout layer 2 needs) + LeakyReLU, staged slab-by-slab into VMEM ------
    for q in range(n_slabs):
        y = jnp.dot(a1_ref[pl.ds(q * slab, slab), :], w1_ref[...],
                    preferred_element_type=jnp.float32)
        act1_ref[q] = leaky(y).reshape(ph, pw, lane)

    # ---- layer 2: conv read as ALIGNED slices of the padded activation
    #      (no gather matrices): tap (i, j) of the 4x4/stride-2 conv lives in
    #      parity plane (i%2, j%2) at offset (i//2, j//2). -----------------------
    rows2 = n_batch * oh2 * ow2
    acc2 = jnp.zeros((rows2, w2_ref.shape[-1]), jnp.float32)
    for i in range(k2):
        for j in range(k2):
            plane = (i % 2) * 2 + (j % 2)
            a, b = i // 2, j // 2
            patch = act1_ref[pl.ds(plane * n_batch, n_batch),
                             pl.ds(a, oh2), pl.ds(b, ow2), :]
            patch = patch.reshape(rows2, lane).astype(jnp.bfloat16)
            acc2 = acc2 + jnp.dot(patch, w2_ref[i * k2 + j],
                                  preferred_element_type=jnp.float32)
    act2 = leaky(batchnorm(acc2, g2_ref, b2_ref, m2)).astype(jnp.bfloat16)

    # ---- layers 3..5: pruned-tap gather-by-matmul with 8-row (not 128-row)
    #      output padding + BatchNorm (batch stats) + LeakyReLU ------------------
    act3 = leaky(batchnorm(sconv(act2, s3_ref, w3_ref),
                           g3_ref, b3_ref, m3)).astype(jnp.bfloat16)
    act4 = leaky(batchnorm(sconv(act3, s4_ref, w4_ref),
                           g4_ref, b4_ref, m4)).astype(jnp.bfloat16)
    act5 = leaky(batchnorm(sconv(act4, s5_ref, w5_ref),
                           g5_ref, b5_ref, m5)).astype(jnp.bfloat16)

    # ---- layer 6: 1x1 spatial input, 3x3 kernel, pad 1 -> only the centre tap
    #      touches real data: one matmul, no gather, (8, 128) output. ------------
    o_ref[...] = jnp.dot(act5, w6_ref[...], preferred_element_type=jnp.float32)


# -----------------------------------------------------------------------------
# Host-side constant builders (run once at model construction, not per call).
# -----------------------------------------------------------------------------
def _im2col_nchw(x, k, s, p):
    """(N, C, H, W) -> (N*OH*OW, C*k*k) patches, K ordered as (C, kh, kw)."""
    N, C, H, W = x.shape
    OH = (H + 2 * p - k) // s + 1
    OW = (W + 2 * p - k) // s + 1
    xp = jnp.pad(x, ((0, 0), (0, 0), (p, p), (p, p)))
    cols = [xp[:, :, i:i + s * OH:s, j:j + s * OW:s]
            for i in range(k) for j in range(k)]
    pt = jnp.stack(cols, axis=2)              # (N, C, k*k, OH, OW)
    pt = pt.transpose(0, 3, 4, 1, 2)          # (N, OH, OW, C, k*k)
    return pt.reshape(N * OH * OW, C * k * k)


def _gather_matrices(N, H, W, k, s, p, rows_out, rows_in):
    """S[t, m_out, m_in] = 1 iff output row m_out reads input row m_in at tap t.
    OOB taps / rows stay 0 (conv zero padding).  All-zero taps are pruned."""
    OH = (H + 2 * p - k) // s + 1
    OW = (W + 2 * p - k) // s + 1
    S = np.zeros((k * k, rows_out, rows_in), np.float32)
    for n in range(N):
        for oh in range(OH):
            for ow in range(OW):
                mo = (n * OH + oh) * OW + ow
                for i in range(k):
                    ih = s * oh + i - p
                    if not 0 <= ih < H:
                        continue
                    for j in range(k):
                        iw = s * ow + j - p
                        if 0 <= iw < W:
                            S[i * k + j, mo, (n * H + ih) * W + iw] = 1.0
    valid = [t for t in range(k * k) if S[t].any()]
    return S[valid], valid


def _stack_weights(w, taps, cin_pad, cout_pad):
    """(Cout, Cin, k, k) -> (len(taps), cin_pad, cout_pad); [t,:Cin,:Cout]=w[..].T"""
    w = np.asarray(w)
    cout, cin, k, _ = w.shape
    out = np.zeros((len(taps), cin_pad, cout_pad), np.float32)
    for n, t in enumerate(taps):
        i, j = t // k, t % k
        out[n, :cin, :cout] = w[:, :, i, j].T
    return out


def _pad_row(v, fill):
    out = np.full((1, LANE), fill, np.float32)
    v = np.asarray(v)
    out[0, :v.shape[0]] = v
    return jnp.asarray(out)


# -----------------------------------------------------------------------------
# Model construction: PyTorch-equivalent init + fused-kernel operand packing.
# -----------------------------------------------------------------------------
def build_encoder(key, x_shape, z_size=2, channel=3, num_filters=8):
    """Returns (pallas_forward, reference_forward)."""
    N, C_in, H0, W0 = x_shape
    assert C_in == channel
    nf = num_filters
    # (Cin, Cout, kernel, stride, pad, use_bn, use_leaky_relu) -- nn.Sequential
    cfg = [
        (channel, nf,     4, 2, 1, False, True),
        (nf,      nf * 2, 4, 2, 1, True,  True),
        (nf * 2,  nf * 4, 4, 2, 1, True,  True),
        (nf * 4,  nf * 8, 4, 2, 1, True,  True),
        (nf * 8,  nf * 8, 3, 2, 1, True,  True),
        (nf * 8,  z_size, 3, 1, 1, False, False),
    ]

    # --- PyTorch-equivalent init: xavier_normal_ convs, BN weight ~ N(1, 0.02) --
    weights, gammas, betas = [], [], []
    for cin, cout, k, s, p, use_bn, _ in cfg:
        key, wk, gk = jax.random.split(key, 3)
        std = (2.0 / (cin * k * k + cout * k * k)) ** 0.5
        weights.append(std * jax.random.normal(wk, (cout, cin, k, k), jnp.float32))
        gammas.append(1.0 + 0.02 * jax.random.normal(gk, (cout,), jnp.float32)
                      if use_bn else None)
        betas.append(jnp.zeros((cout,), jnp.float32) if use_bn else None)

    # --- per-layer spatial sizes and valid row counts ---------------------------
    spat, hw = [], (H0, W0)
    for cin, cout, k, s, p, _, _ in cfg:
        oh = (hw[0] + 2 * p - k) // s + 1
        ow = (hw[1] + 2 * p - k) // s + 1
        spat.append((hw[0], hw[1], oh, ow))
        hw = (oh, ow)
    m_valid = tuple(N * oh * ow for (_, _, oh, ow) in spat)
    rows = [_round_up(m, 8) for m in m_valid]      # 128-row floor dropped

    # --- layer-1 / layer-2 parity-plane packing ---------------------------------
    k1, s1, p1 = cfg[0][2:5]
    k2, s2, p2 = cfg[1][2:5]
    OH1, OW1 = spat[0][2], spat[0][3]
    OH2, OW2 = spat[1][2], spat[1][3]
    assert k2 == 4 and s2 == 2 and p2 == 1          # parity decomposition assumes this
    PH = (OH1 + 2 * p2 + 1) // 2                    # parity-plane height (9)
    PW = (OW1 + 2 * p2 + 1) // 2
    PWpad = _round_up(PW, 8)                        # sublane-pad plane width (16)
    assert (k2 - 1) // 2 + OH2 <= PH and (k2 - 1) // 2 + OW2 <= PW
    rows1 = 4 * N * PH * PWpad                      # layer-1 rows, parity layout

    # destination-row permutation: (plane, n, hh, ww); unset rows -> zero patch
    src = np.full((rows1,), N * OH1 * OW1, np.int32)
    for n in range(N):
        for h1 in range(OH1):
            for w1 in range(OW1):
                hp, wp = h1 + p2, w1 + p2
                plane = (hp % 2) * 2 + (wp % 2)
                dst = ((plane * N + n) * PH + hp // 2) * PWpad + wp // 2
                src[dst] = (n * OH1 + h1) * OW1 + w1
    src_rows = jnp.asarray(src)

    K1 = channel * k1 * k1
    K1p = max(_round_up(K1, LANE), LANE)
    c1_out = cfg[0][1]
    w1m = np.zeros((K1p, LANE), np.float32)
    w1m[:K1, :c1_out] = np.asarray(weights[0]).reshape(c1_out, K1).T

    # --- operand packing ---------------------------------------------------------
    operands = [jnp.asarray(w1m, jnp.bfloat16)]
    # layer 2: per-tap weights only (gather done by slicing the padded activation)
    operands.append(jnp.asarray(
        _stack_weights(weights[1], list(range(k2 * k2)), LANE, LANE), jnp.bfloat16))
    operands.append(_pad_row(gammas[1], 1.0))
    operands.append(_pad_row(betas[1], 0.0))
    # layers 3..5: pruned-tap gather matrices + stacked weights + BN params
    for l in (2, 3, 4):
        cin, cout, k, s, p, use_bn, _ = cfg[l]
        Hin, Win = spat[l][0], spat[l][1]
        S, taps = _gather_matrices(N, Hin, Win, k, s, p, rows[l], rows[l - 1])
        operands.append(jnp.asarray(S, jnp.bfloat16))
        operands.append(jnp.asarray(_stack_weights(weights[l], taps, LANE, LANE),
                                    jnp.bfloat16))
        operands.append(_pad_row(gammas[l], 1.0))
        operands.append(_pad_row(betas[l], 0.0))
    # layer 6: only the centre tap of the 3x3/pad-1 conv can read the 1x1 input
    k6 = cfg[5][2]
    w6c = np.zeros((LANE, LANE), np.float32)
    w6c[:cfg[5][0], :z_size] = np.asarray(weights[5])[:, :, k6 // 2, k6 // 2].T
    operands.append(jnp.asarray(w6c, jnp.bfloat16))

    kernel = functools.partial(
        _encoder_kernel,
        bn_valid=(m_valid[1], m_valid[2], m_valid[3], m_valid[4]),
        l2_geom=(N, k2, OH2, OW2))

    n_inputs = 1 + len(operands)
    # No grid: training-mode BatchNorm needs full-batch statistics, so the batch
    # cannot be sharded across TensorCores; the whole problem is one VMEM tile.
    fused_call = pl.pallas_call(
        kernel,
        out_shape=jax.ShapeDtypeStruct((rows[5], LANE), jnp.float32),
        in_specs=[pl.BlockSpec(memory_space=pltpu.MemorySpace.VMEM)] * n_inputs,
        out_specs=pl.BlockSpec(memory_space=pltpu.MemorySpace.VMEM),
        scratch_shapes=[pltpu.VMEM((4 * N, PH, PWpad, LANE), jnp.float32)],
        compiler_params=pltpu.CompilerParams(vmem_limit_bytes=32 * 1024 * 1024),
    )

    OH6, OW6 = spat[5][2], spat[5][3]
    zero_row = jnp.zeros((1, K1), jnp.float32)

    def forward(x):
        # Boundary-only layout work: im2col of the input, reorder rows into the
        # parity-plane padded layout, bf16 cast, pad K to 128 lanes.
        patches = _im2col_nchw(x.astype(jnp.float32), k1, s1, p1)
        patches = jnp.concatenate([patches, zero_row], axis=0)
        a1 = jnp.take(patches, src_rows, axis=0)
        a1 = jnp.pad(a1, ((0, 0), (0, K1p - K1))).astype(jnp.bfloat16)
        out = fused_call(a1, *operands)
        z = out[:m_valid[5], :z_size].reshape(N, OH6, OW6, z_size)
        return z.transpose(0, 3, 1, 2)        # back to NCHW only at the boundary

    def reference(x):
        # Pure-JAX reference with identical numerics (bf16 matmul inputs,
        # f32 accumulation / epilogue) for a correctness check.
        h = x
        for w, g, b, (cin, cout, k, s, p, use_bn, use_act) in zip(
                weights, gammas, betas, cfg):
            y = jax.lax.conv_general_dilated(
                h.astype(jnp.bfloat16), w.astype(jnp.bfloat16),
                window_strides=(s, s), padding=[(p, p), (p, p)],
                dimension_numbers=("NCHW", "OIHW", "NCHW"),
                preferred_element_type=jnp.float32)
            if use_bn:
                mean = jnp.mean(y, axis=(0, 2, 3), keepdims=True)
                var = jnp.mean((y - mean) ** 2, axis=(0, 2, 3), keepdims=True)
                y = (g.reshape(1, -1, 1, 1) * (y - mean)
                     * jax.lax.rsqrt(var + _EPS) + b.reshape(1, -1, 1, 1))
            if use_act:
                y = jnp.maximum(y, _NEG_SLOPE * y)
            h = y
        return h

    return jax.jit(forward), jax.jit(reference)


if __name__ == "__main__":
    key = jax.random.PRNGKey(0)
    pkey, xkey = jax.random.split(key)

    # 32x32 input: five stride-2 convs (32->16->8->4->2->1) + final stride-1 -> 1x1.
    x = jax.random.normal(xkey, (2, 3, 32, 32), jnp.float32)
    forward, reference = build_encoder(pkey, x.shape, z_size=2, channel=3,
                                       num_filters=8)

    z = jax.block_until_ready(forward(x))
    assert z.shape == (2, 2, 1, 1), z.shape
    assert bool(jnp.all(jnp.isfinite(z)))

    z_ref = jax.block_until_ready(reference(x))
    assert bool(jnp.allclose(z, z_ref, atol=5e-2, rtol=5e-2)), \
        float(jnp.max(jnp.abs(z - z_ref)))

    # TODO(synk): BatchNorm running_mean/running_var side-effect updates of the
    # PyTorch .train() module are not emitted (forward output is unaffected).
    print("KERNEL_OK")
</pallas_src>

<mosaic_0001>
module attributes {stable_mosaic.version = 11 : i64} {
  func.func @_encoder_kernel(%arg0: memref<1152x128xbf16, #tpu.memory_space<vmem>>, %arg1: memref<128x128xbf16, #tpu.memory_space<vmem>>, %arg2: memref<16x128x128xbf16, #tpu.memory_space<vmem>>, %arg3: memref<1x128xf32, #tpu.memory_space<vmem>>, %arg4: memref<1x128xf32, #tpu.memory_space<vmem>>, %arg5: memref<16x32x128xbf16, #tpu.memory_space<vmem>>, %arg6: memref<16x128x128xbf16, #tpu.memory_space<vmem>>, %arg7: memref<1x128xf32, #tpu.memory_space<vmem>>, %arg8: memref<1x128xf32, #tpu.memory_space<vmem>>, %arg9: memref<16x8x32xbf16, #tpu.memory_space<vmem>>, %arg10: memref<16x128x128xbf16, #tpu.memory_space<vmem>>, %arg11: memref<1x128xf32, #tpu.memory_space<vmem>>, %arg12: memref<1x128xf32, #tpu.memory_space<vmem>>, %arg13: memref<4x8x8xbf16, #tpu.memory_space<vmem>>, %arg14: memref<4x128x128xbf16, #tpu.memory_space<vmem>>, %arg15: memref<1x128xf32, #tpu.memory_space<vmem>>, %arg16: memref<1x128xf32, #tpu.memory_space<vmem>>, %arg17: memref<128x128xbf16, #tpu.memory_space<vmem>>, %arg18: memref<8x128xf32, #tpu.memory_space<vmem>>, %arg19: memref<8x9x16x128xf32, #tpu.memory_space<vmem>>) attributes {dimension_semantics = [], scalar_prefetch = 0 : i64, scratch_operands = 1 : i64, tpu.core_type = #tpu.core_type<tc>} {
    %c0 = arith.constant 0 : index
    %c0_0 = arith.constant 0 : index
    %0 = vector.load %arg0[%c0, %c0_0] : memref<1152x128xbf16, #tpu.memory_space<vmem>>, vector<144x128xbf16>
    %c0_1 = arith.constant 0 : index
    %c0_2 = arith.constant 0 : index
    %1 = vector.load %arg1[%c0_1, %c0_2] : memref<128x128xbf16, #tpu.memory_space<vmem>>, vector<128x128xbf16>
    %cst = arith.constant dense<0.000000e+00> : vector<144x128xf32>
    %2 = tpu.matmul %0, %1, %cst {dimension_numbers = #tpu.dot_dimension_numbers<[1], [0], [0], [1], [0, 0, 1, 1], [], []>} : vector<144x128xbf16>, vector<128x128xbf16>, vector<144x128xf32> -> vector<144x128xf32>
    %cst_3 = arith.constant 2.000000e-01 : f32
    %3 = vector.broadcast %cst_3 : f32 to vector<144x128xf32>
    %4 = arith.mulf %3, %2 : vector<144x128xf32>
    %5 = arith.maximumf %2, %4 : vector<144x128xf32>
    %6 = vector.shape_cast %5 : vector<144x128xf32> to vector<9x16x128xf32>
    %c0_4 = arith.constant 0 : index
    %c0_5 = arith.constant 0 : index
    %c0_6 = arith.constant 0 : index
    %c0_7 = arith.constant 0 : index
    %7 = vector.load %arg19[%c0_4, %c0_5, %c0_6, %c0_7] : memref<8x9x16x128xf32, #tpu.memory_space<vmem>>, vector<1x9x16x128xf32>
    %8 = vector.shape_cast %7 : vector<1x9x16x128xf32> to vector<9x16x128xf32>
    %9 = vector.shape_cast %6 : vector<9x16x128xf32> to vector<1x9x16x128xf32>
    tpu.vector_store %arg19[%c0_4, %c0_5, %c0_6, %c0_7], %9 {strides = array<i32>} : memref<8x9x16x128xf32, #tpu.memory_space<vmem>>, vector<1x9x16x128xf32>,
    %c144 = arith.constant 144 : index
    %c0_8 = arith.constant 0 : index
    %10 = vector.load %arg0[%c144, %c0_8] : memref<1152x128xbf16, #tpu.memory_space<vmem>>, vector<144x128xbf16>
    %c0_9 = arith.constant 0 : index
    %c0_10 = arith.constant 0 : index
    %11 = vector.load %arg1[%c0_9, %c0_10] : memref<128x128xbf16, #tpu.memory_space<vmem>>, vector<128x128xbf16>
    %cst_11 = arith.constant dense<0.000000e+00> : vector<144x128xf32>
    %12 = tpu.matmul %10, %11, %cst_11 {dimension_numbers = #tpu.dot_dimension_numbers<[1], [0], [0], [1], [0, 0, 1, 1], [], []>} : vector<144x128xbf16>, vector<128x128xbf16>, vector<144x128xf32> -> vector<144x128xf32>
    %cst_12 = arith.constant 2.000000e-01 : f32
    %13 = vector.broadcast %cst_12 : f32 to vector<144x128xf32>
    %14 = arith.mulf %13, %12 : vector<144x128xf32>
    %15 = arith.maximumf %12, %14 : vector<144x128xf32>
    %16 = vector.shape_cast %15 : vector<144x128xf32> to vector<9x16x128xf32>
    %c1 = arith.constant 1 : index
    %c0_13 = arith.constant 0 : index
    %c0_14 = arith.constant 0 : index
    %c0_15 = arith.constant 0 : index
    %17 = vector.load %arg19[%c1, %c0_13, %c0_14, %c0_15] : memref<8x9x16x128xf32, #tpu.memory_space<vmem>>, vector<1x9x16x128xf32>
    %18 = vector.shape_cast %17 : vector<1x9x16x128xf32> to vector<9x16x128xf32>
    %19 = vector.shape_cast %16 : vector<9x16x128xf32> to vector<1x9x16x128xf32>
    tpu.vector_store %arg19[%c1, %c0_13, %c0_14, %c0_15], %19 {strides = array<i32>} : memref<8x9x16x128xf32, #tpu.memory_space<vmem>>, vector<1x9x16x128xf32>,
    %c288 = arith.constant 288 : index
    %c0_16 = arith.constant 0 : index
    %20 = vector.load %arg0[%c288, %c0_16] : memref<1152x128xbf16, #tpu.memory_space<vmem>>, vector<144x128xbf16>
    %c0_17 = arith.constant 0 : index
    %c0_18 = arith.constant 0 : index
    %21 = vector.load %arg1[%c0_17, %c0_18] : memref<128x128xbf16, #tpu.memory_space<vmem>>, vector<128x128xbf16>
    %cst_19 = arith.constant dense<0.000000e+00> : vector<144x128xf32>
    %22 = tpu.matmul %20, %21, %cst_19 {dimension_numbers = #tpu.dot_dimension_numbers<[1], [0], [0], [1], [0, 0, 1, 1], [], []>} : vector<144x128xbf16>, vector<128x128xbf16>, vector<144x128xf32> -> vector<144x128xf32>
    %cst_20 = arith.constant 2.000000e-01 : f32
    %23 = vector.broadcast %cst_20 : f32 to vector<144x128xf32>
    %24 = arith.mulf %23, %22 : vector<144x128xf32>
    %25 = arith.maximumf %22, %24 : vector<144x128xf32>
    %26 = vector.shape_cast %25 : vector<144x128xf32> to vector<9x16x128xf32>
    %c2 = arith.constant 2 : index
    %c0_21 = arith.constant 0 : index
    %c0_22 = arith.constant 0 : index
    %c0_23 = arith.constant 0 : index
    %27 = vector.load %arg19[%c2, %c0_21, %c0_22, %c0_23] : memref<8x9x16x128xf32, #tpu.memory_space<vmem>>, vector<1x9x16x128xf32>
    %28 = vector.shape_cast %27 : vector<1x9x16x128xf32> to vector<9x16x128xf32>
    %29 = vector.shape_cast %26 : vector<9x16x128xf32> to vector<1x9x16x128xf32>
    tpu.vector_store %arg19[%c2, %c0_21, %c0_22, %c0_23], %29 {strides = array<i32>} : memref<8x9x16x128xf32, #tpu.memory_space<vmem>>, vector<1x9x16x128xf32>,
    %c432 = arith.constant 432 : index
    %c0_24 = arith.constant 0 : index
    %30 = vector.load %arg0[%c432, %c0_24] : memref<1152x128xbf16, #tpu.memory_space<vmem>>, vector<144x128xbf16>
    %c0_25 = arith.constant 0 : index
    %c0_26 = arith.constant 0 : index
    %31 = vector.load %arg1[%c0_25, %c0_26] : memref<128x128xbf16, #tpu.memory_space<vmem>>, vector<128x128xbf16>
    %cst_27 = arith.constant dense<0.000000e+00> : vector<144x128xf32>
    %32 = tpu.matmul %30, %31, %cst_27 {dimension_numbers = #tpu.dot_dimension_numbers<[1], [0], [0], [1], [0, 0, 1, 1], [], []>} : vector<144x128xbf16>, vector<128x128xbf16>, vector<144x128xf32> -> vector<144x128xf32>
    %cst_28 = arith.constant 2.000000e-01 : f32
    %33 = vector.broadcast %cst_28 : f32 to vector<144x128xf32>
    %34 = arith.mulf %33, %32 : vector<144x128xf32>
    %35 = arith.maximumf %32, %34 : vector<144x128xf32>
    %36 = vector.shape_cast %35 : vector<144x128xf32> to vector<9x16x128xf32>
    %c3 = arith.constant 3 : index
    %c0_29 = arith.constant 0 : index
    %c0_30 = arith.constant 0 : index
    %c0_31 = arith.constant 0 : index
    %37 = vector.load %arg19[%c3, %c0_29, %c0_30, %c0_31] : memref<8x9x16x128xf32, #tpu.memory_space<vmem>>, vector<1x9x16x128xf32>
    %38 = vector.shape_cast %37 : vector<1x9x16x128xf32> to vector<9x16x128xf32>
    %39 = vector.shape_cast %36 : vector<9x16x128xf32> to vector<1x9x16x128xf32>
    tpu.vector_store %arg19[%c3, %c0_29, %c0_30, %c0_31], %39 {strides = array<i32>} : memref<8x9x16x128xf32, #tpu.memory_space<vmem>>, vector<1x9x16x128xf32>,
    %c576 = arith.constant 576 : index
    %c0_32 = arith.constant 0 : index
    %40 = vector.load %arg0[%c576, %c0_32] : memref<1152x128xbf16, #tpu.memory_space<vmem>>, vector<144x128xbf16>
    %c0_33 = arith.constant 0 : index
    %c0_34 = arith.constant 0 : index
    %41 = vector.load %arg1[%c0_33, %c0_34] : memref<128x128xbf16, #tpu.memory_space<vmem>>, vector<128x128xbf16>
    %cst_35 = arith.constant dense<0.000000e+00> : vector<144x128xf32>
    %42 = tpu.matmul %40, %41, %cst_35 {dimension_numbers = #tpu.dot_dimension_numbers<[1], [0], [0], [1], [0, 0, 1, 1], [], []>} : vector<144x128xbf16>, vector<128x128xbf16>, vector<144x128xf32> -> vector<144x128xf32>
    %cst_36 = arith.constant 2.000000e-01 : f32
    %43 = vector.broadcast %cst_36 : f32 to vector<144x128xf32>
    %44 = arith.mulf %43, %42 : vector<144x128xf32>
    %45 = arith.maximumf %42, %44 : vector<144x128xf32>
    %46 = vector.shape_cast %45 : vector<144x128xf32> to vector<9x16x128xf32>
    %c4 = arith.constant 4 : index
    %c0_37 = arith.constant 0 : index
    %c0_38 = arith.constant 0 : index
    %c0_39 = arith.constant 0 : index
    %47 = vector.load %arg19[%c4, %c0_37, %c0_38, %c0_39] : memref<8x9x16x128xf32, #tpu.memory_space<vmem>>, vector<1x9x16x128xf32>
    %48 = vector.shape_cast %47 : vector<1x9x16x128xf32> to vector<9x16x128xf32>
    %49 = vector.shape_cast %46 : vector<9x16x128xf32> to vector<1x9x16x128xf32>
    tpu.vector_store %arg19[%c4, %c0_37, %c0_38, %c0_39], %49 {strides = array<i32>} : memref<8x9x16x128xf32, #tpu.memory_space<vmem>>, vector<1x9x16x128xf32>,
    %c720 = arith.constant 720 : index
    %c0_40 = arith.constant 0 : index
    %50 = vector.load %arg0[%c720, %c0_40] : memref<1152x128xbf16, #tpu.memory_space<vmem>>, vector<144x128xbf16>
    %c0_41 = arith.constant 0 : index
    %c0_42 = arith.constant 0 : index
    %51 = vector.load %arg1[%c0_41, %c0_42] : memref<128x128xbf16, #tpu.memory_space<vmem>>, vector<128x128xbf16>
    %cst_43 = arith.constant dense<0.000000e+00> : vector<144x128xf32>
    %52 = tpu.matmul %50, %51, %cst_43 {dimension_numbers = #tpu.dot_dimension_numbers<[1], [0], [0], [1], [0, 0, 1, 1], [], []>} : vector<144x128xbf16>, vector<128x128xbf16>, vector<144x128xf32> -> vector<144x128xf32>
    %cst_44 = arith.constant 2.000000e-01 : f32
    %53 = vector.broadcast %cst_44 : f32 to vector<144x128xf32>
    %54 = arith.mulf %53, %52 : vector<144x128xf32>
    %55 = arith.maximumf %52, %54 : vector<144x128xf32>
    %56 = vector.shape_cast %55 : vector<144x128xf32> to vector<9x16x128xf32>
    %c5 = arith.constant 5 : index
    %c0_45 = arith.constant 0 : index
    %c0_46 = arith.constant 0 : index
    %c0_47 = arith.constant 0 : index
    %57 = vector.load %arg19[%c5, %c0_45, %c0_46, %c0_47] : memref<8x9x16x128xf32, #tpu.memory_space<vmem>>, vector<1x9x16x128xf32>
    %58 = vector.shape_cast %57 : vector<1x9x16x128xf32> to vector<9x16x128xf32>
    %59 = vector.shape_cast %56 : vector<9x16x128xf32> to vector<1x9x16x128xf32>
    tpu.vector_store %arg19[%c5, %c0_45, %c0_46, %c0_47], %59 {strides = array<i32>} : memref<8x9x16x128xf32, #tpu.memory_space<vmem>>, vector<1x9x16x128xf32>,
    %c864 = arith.constant 864 : index
    %c0_48 = arith.constant 0 : index
    %60 = vector.load %arg0[%c864, %c0_48] : memref<1152x128xbf16, #tpu.memory_space<vmem>>, vector<144x128xbf16>
    %c0_49 = arith.constant 0 : index
    %c0_50 = arith.constant 0 : index
    %61 = vector.load %arg1[%c0_49, %c0_50] : memref<128x128xbf16, #tpu.memory_space<vmem>>, vector<128x128xbf16>
    %cst_51 = arith.constant dense<0.000000e+00> : vector<144x128xf32>
    %62 = tpu.matmul %60, %61, %cst_51 {dimension_numbers = #tpu.dot_dimension_numbers<[1], [0], [0], [1], [0, 0, 1, 1], [], []>} : vector<144x128xbf16>, vector<128x128xbf16>, vector<144x128xf32> -> vector<144x128xf32>
    %cst_52 = arith.constant 2.000000e-01 : f32
    %63 = vector.broadcast %cst_52 : f32 to vector<144x128xf32>
    %64 = arith.mulf %63, %62 : vector<144x128xf32>
    %65 = arith.maximumf %62, %64 : vector<144x128xf32>
    %66 = vector.shape_cast %65 : vector<144x128xf32> to vector<9x16x128xf32>
    %c6 = arith.constant 6 : index
    %c0_53 = arith.constant 0 : index
    %c0_54 = arith.constant 0 : index
    %c0_55 = arith.constant 0 : index
    %67 = vector.load %arg19[%c6, %c0_53, %c0_54, %c0_55] : memref<8x9x16x128xf32, #tpu.memory_space<vmem>>, vector<1x9x16x128xf32>
    %68 = vector.shape_cast %67 : vector<1x9x16x128xf32> to vector<9x16x128xf32>
    %69 = vector.shape_cast %66 : vector<9x16x128xf32> to vector<1x9x16x128xf32>
    tpu.vector_store %arg19[%c6, %c0_53, %c0_54, %c0_55], %69 {strides = array<i32>} : memref<8x9x16x128xf32, #tpu.memory_space<vmem>>, vector<1x9x16x128xf32>,
    %c1008 = arith.constant 1008 : index
    %c0_56 = arith.constant 0 : index
    %70 = vector.load %arg0[%c1008, %c0_56] : memref<1152x128xbf16, #tpu.memory_space<vmem>>, vector<144x128xbf16>
    %c0_57 = arith.constant 0 : index
    %c0_58 = arith.constant 0 : index
    %71 = vector.load %arg1[%c0_57, %c0_58] : memref<128x128xbf16, #tpu.memory_space<vmem>>, vector<128x128xbf16>
    %cst_59 = arith.constant dense<0.000000e+00> : vector<144x128xf32>
    %72 = tpu.matmul %70, %71, %cst_59 {dimension_numbers = #tpu.dot_dimension_numbers<[1], [0], [0], [1], [0, 0, 1, 1], [], []>} : vector<144x128xbf16>, vector<128x128xbf16>, vector<144x128xf32> -> vector<144x128xf32>
    %cst_60 = arith.constant 2.000000e-01 : f32
    %73 = vector.broadcast %cst_60 : f32 to vector<144x128xf32>
    %74 = arith.mulf %73, %72 : vector<144x128xf32>
    %75 = arith.maximumf %72, %74 : vector<144x128xf32>
    %76 = vector.shape_cast %75 : vector<144x128xf32> to vector<9x16x128xf32>
    %c7 = arith.constant 7 : index
    %c0_61 = arith.constant 0 : index
    %c0_62 = arith.constant 0 : index
    %c0_63 = arith.constant 0 : index
    %77 = vector.load %arg19[%c7, %c0_61, %c0_62, %c0_63] : memref<8x9x16x128xf32, #tpu.memory_space<vmem>>, vector<1x9x16x128xf32>
    %78 = vector.shape_cast %77 : vector<1x9x16x128xf32> to vector<9x16x128xf32>
    %79 = vector.shape_cast %76 : vector<9x16x128xf32> to vector<1x9x16x128xf32>
    tpu.vector_store %arg19[%c7, %c0_61, %c0_62, %c0_63], %79 {strides = array<i32>} : memref<8x9x16x128xf32, #tpu.memory_space<vmem>>, vector<1x9x16x128xf32>,
    %cst_64 = arith.constant 0.000000e+00 : f32
    %80 = vector.broadcast %cst_64 : f32 to vector<128x128xf32>
    %c0_65 = arith.constant 0 : index
    %c0_66 = arith.constant 0 : index
    %c0_67 = arith.constant 0 : index
    %c0_68 = arith.constant 0 : index
    %81 = vector.load %arg19[%c0_65, %c0_66, %c0_67, %c0_68] : memref<8x9x16x128xf32, #tpu.memory_space<vmem>>, vector<2x8x8x128xf32>
    %82 = vector.shape_cast %81 : vector<2x8x8x128xf32> to vector<128x128xf32>
    %83 = arith.truncf %82 : vector<128x128xf32> to vector<128x128xbf16>
    %c0_69 = arith.constant 0 : index
    %c0_70 = arith.constant 0 : index
    %c0_71 = arith.constant 0 : index
    %84 = vector.load %arg2[%c0_69, %c0_70, %c0_71] : memref<16x128x128xbf16, #tpu.memory_space<vmem>>, vector<1x128x128xbf16>
    %85 = vector.shape_cast %84 : vector<1x128x128xbf16> to vector<128x128xbf16>
    %cst_72 = arith.constant dense<0.000000e+00> : vector<128x128xf32>
    %86 = tpu.matmul %83, %85, %cst_72 {dimension_numbers = #tpu.dot_dimension_numbers<[1], [0], [0], [1], [0, 0, 1, 1], [], []>} : vector<128x128xbf16>, vector<128x128xbf16>, vector<128x128xf32> -> vector<128x128xf32>
    %87 = arith.addf %80, %86 : vector<128x128xf32>
    %c2_73 = arith.constant 2 : index
    %c0_74 = arith.constant 0 : index
    %c0_75 = arith.constant 0 : index
    %c0_76 = arith.constant 0 : index
    %88 = vector.load %arg19[%c2_73, %c0_74, %c0_75, %c0_76] : memref<8x9x16x128xf32, #tpu.memory_space<vmem>>, vector<2x8x8x128xf32>
    %89 = vector.shape_cast %88 : vector<2x8x8x128xf32> to vector<128x128xf32>
    %90 = arith.truncf %89 : vector<128x128xf32> to vector<128x128xbf16>
    %c1_77 = arith.constant 1 : index
    %c0_78 = arith.constant 0 : index
    %c0_79 = arith.constant 0 : index
    %91 = vector.load %arg2[%c1_77, %c0_78, %c0_79] : memref<16x128x128xbf16, #tpu.memory_space<vmem>>, vector<1x128x128xbf16>
    %92 = vector.shape_cast %91 : vector<1x128x128xbf16> to vector<128x128xbf16>
    %cst_80 = arith.constant dense<0.000000e+00> : vector<128x128xf32>
    %93 = tpu.matmul %90, %92, %cst_80 {dimension_numbers = #tpu.dot_dimension_numbers<[1], [0], [0], [1], [0, 0, 1, 1], [], []>} : vector<128x128xbf16>, vector<128x128xbf16>, vector<128x128xf32> -> vector<128x128xf32>
    %94 = arith.addf %87, %93 : vector<128x128xf32>
    %c0_81 = arith.constant 0 : index
    %c0_82 = arith.constant 0 : index
    %c1_83 = arith.constant 1 : index
    %c0_84 = arith.constant 0 : index
    %95 = vector.load %arg19[%c0_81, %c0_82, %c1_83, %c0_84] : memref<8x9x16x128xf32, #tpu.memory_space<vmem>>, vector<2x8x8x128xf32>
    %96 = vector.shape_cast %95 : vector<2x8x8x128xf32> to vector<128x128xf32>
    %97 = arith.truncf %96 : vector<128x128xf32> to vector<128x128xbf16>
    %c2_85 = arith.constant 2 : index
    %c0_86 = arith.constant 0 : index
    %c0_87 = arith.constant 0 : index
    %98 = vector.load %arg2[%c2_85, %c0_86, %c0_87] : memref<16x128x128xbf16, #tpu.memory_space<vmem>>, vector<1x128x128xbf16>
    %99 = vector.shape_cast %98 : vector<1x128x128xbf16> to vector<128x128xbf16>
    %cst_88 = arith.constant dense<0.000000e+00> : vector<128x128xf32>
    %100 = tpu.matmul %97, %99, %cst_88 {dimension_numbers = #tpu.dot_dimension_numbers<[1], [0], [0], [1], [0, 0, 1, 1], [], []>} : vector<128x128xbf16>, vector<128x128xbf16>, vector<128x128xf32> -> vector<128x128xf32>
    %101 = arith.addf %94, %100 : vector<128x128xf32>
    %c2_89 = arith.constant 2 : index
    %c0_90 = arith.constant 0 : index
    %c1_91 = arith.constant 1 : index
    %c0_92 = arith.constant 0 : index
    %102 = vector.load %arg19[%c2_89, %c0_90, %c1_91, %c0_92] : memref<8x9x16x128xf32, #tpu.memory_space<vmem>>, vector<2x8x8x128xf32>
    %103 = vector.shape_cast %102 : vector<2x8x8x128xf32> to vector<128x128xf32>
    %104 = arith.truncf %103 : vector<128x128xf32> to vector<128x128xbf16>
    %c3_93 = arith.constant 3 : index
    %c0_94 = arith.constant 0 : index
    %c0_95 = arith.constant 0 : index
    %105 = vector.load %arg2[%c3_93, %c0_94, %c0_95] : memref<16x128x128xbf16, #tpu.memory_space<vmem>>, vector<1x128x128xbf16>
    %106 = vector.shape_cast %105 : vector<1x128x128xbf16> to vector<128x128xbf16>
    %cst_96 = arith.constant dense<0.000000e+00> : vector<128x128xf32>
    %107 = tpu.matmul %104, %106, %cst_96 {dimension_numbers = #tpu.dot_dimension_numbers<[1], [0], [0], [1], [0, 0, 1, 1], [], []>} : vector<128x128xbf16>, vector<128x128xbf16>, vector<128x128xf32> -> vector<128x128xf32>
    %108 = arith.addf %101, %107 : vector<128x128xf32>
    %c4_97 = arith.constant 4 : index
    %c0_98 = arith.constant 0 : index
    %c0_99 = arith.constant 0 : index
    %c0_100 = arith.constant 0 : index
    %109 = vector.load %arg19[%c4_97, %c0_98, %c0_99, %c0_100] : memref<8x9x16x128xf32, #tpu.memory_space<vmem>>, vector<2x8x8x128xf32>
    %110 = vector.shape_cast %109 : vector<2x8x8x128xf32> to vector<128x128xf32>
    %111 = arith.truncf %110 : vector<128x128xf32> to vector<128x128xbf16>
    %c4_101 = arith.constant 4 : index
    %c0_102 = arith.constant 0 : index
    %c0_103 = arith.constant 0 : index
    %112 = vector.load %arg2[%c4_101, %c0_102, %c0_103] : memref<16x128x128xbf16, #tpu.memory_space<vmem>>, vector<1x128x128xbf16>
    %113 = vector.shape_cast %112 : vector<1x128x128xbf16> to vector<128x128xbf16>
    %cst_104 = arith.constant dense<0.000000e+00> : vector<128x128xf32>
    %114 = tpu.matmul %111, %113, %cst_104 {dimension_numbers = #tpu.dot_dimension_numbers<[1], [0], [0], [1], [0, 0, 1, 1], [], []>} : vector<128x128xbf16>, vector<128x128xbf16>, vector<128x128xf32> -> vector<128x128xf32>
    %115 = arith.addf %108, %114 : vector<128x128xf32>
    %c6_105 = arith.constant 6 : index
    %c0_106 = arith.constant 0 : index
    %c0_107 = arith.constant 0 : index
    %c0_108 = arith.constant 0 : index
    %116 = vector.load %arg19[%c6_105, %c0_106, %c0_107, %c0_108] : memref<8x9x16x128xf32, #tpu.memory_space<vmem>>, vector<2x8x8x128xf32>
    %117 = vector.shape_cast %116 : vector<2x8x8x128xf32> to vector<128x128xf32>
    %118 = arith.truncf %117 : vector<128x128xf32> to vector<128x128xbf16>
    %c5_109 = arith.constant 5 : index
    %c0_110 = arith.constant 0 : index
    %c0_111 = arith.constant 0 : index
    %119 = vector.load %arg2[%c5_109, %c0_110, %c0_111] : memref<16x128x128xbf16, #tpu.memory_space<vmem>>, vector<1x128x128xbf16>
    %120 = vector.shape_cast %119 : vector<1x128x128xbf16> to vector<128x128xbf16>
    %cst_112 = arith.constant dense<0.000000e+00> : vector<128x128xf32>
    %121 = tpu.matmul %118, %120, %cst_112 {dimension_numbers = #tpu.dot_dimension_numbers<[1], [0], [0], [1], [0, 0, 1, 1], [], []>} : vector<128x128xbf16>, vector<128x128xbf16>, vector<128x128xf32> -> vector<128x128xf32>
    %122 = arith.addf %115, %121 : vector<128x128xf32>
    %c4_113 = arith.constant 4 : index
    %c0_114 = arith.constant 0 : index
    %c1_115 = arith.constant 1 : index
    %c0_116 = arith.constant 0 : index
    %123 = vector.load %arg19[%c4_113, %c0_114, %c1_115, %c0_116] : memref<8x9x16x128xf32, #tpu.memory_space<vmem>>, vector<2x8x8x128xf32>
    %124 = vector.shape_cast %123 : vector<2x8x8x128xf32> to vector<128x128xf32>
    %125 = arith.truncf %124 : vector<128x128xf32> to vector<128x128xbf16>
    %c6_117 = arith.constant 6 : index
    %c0_118 = arith.constant 0 : index
    %c0_119 = arith.constant 0 : index
    %126 = vector.load %arg2[%c6_117, %c0_118, %c0_119] : memref<16x128x128xbf16, #tpu.memory_space<vmem>>, vector<1x128x128xbf16>
    %127 = vector.shape_cast %126 : vector<1x128x128xbf16> to vector<128x128xbf16>
    %cst_120 = arith.constant dense<0.000000e+00> : vector<128x128xf32>
    %128 = tpu.matmul %125, %127, %cst_120 {dimension_numbers = #tpu.dot_dimension_numbers<[1], [0], [0], [1], [0, 0, 1, 1], [], []>} : vector<128x128xbf16>, vector<128x128xbf16>, vector<128x128xf32> -> vector<128x128xf32>
    %129 = arith.addf %122, %128 : vector<128x128xf32>
    %c6_121 = arith.constant 6 : index
    %c0_122 = arith.constant 0 : index
    %c1_123 = arith.constant 1 : index
    %c0_124 = arith.constant 0 : index
    %130 = vector.load %arg19[%c6_121, %c0_122, %c1_123, %c0_124] : memref<8x9x16x128xf32, #tpu.memory_space<vmem>>, vector<2x8x8x128xf32>
    %131 = vector.shape_cast %130 : vector<2x8x8x128xf32> to vector<128x128xf32>
    %132 = arith.truncf %131 : vector<128x128xf32> to vector<128x128xbf16>
    %c7_125 = arith.constant 7 : index
    %c0_126 = arith.constant 0 : index
    %c0_127 = arith.constant 0 : index
    %133 = vector.load %arg2[%c7_125, %c0_126, %c0_127] : memref<16x128x128xbf16, #tpu.memory_space<vmem>>, vector<1x128x128xbf16>
    %134 = vector.shape_cast %133 : vector<1x128x128xbf16> to vector<128x128xbf16>
    %cst_128 = arith.constant dense<0.000000e+00> : vector<128x128xf32>
    %135 = tpu.matmul %132, %134, %cst_128 {dimension_numbers = #tpu.dot_dimension_numbers<[1], [0], [0], [1], [0, 0, 1, 1], [], []>} : vector<128x128xbf16>, vector<128x128xbf16>, vector<128x128xf32> -> vector<128x128xf32>
    %136 = arith.addf %129, %135 : vector<128x128xf32>
    %c0_129 = arith.constant 0 : index
    %c1_130 = arith.constant 1 : index
    %c0_131 = arith.constant 0 : index
    %c0_132 = arith.constant 0 : index
    %137 = vector.load %arg19[%c0_129, %c1_130, %c0_131, %c0_132] : memref<8x9x16x128xf32, #tpu.memory_space<vmem>>, vector<2x8x8x128xf32>
    %138 = vector.shape_cast %137 : vector<2x8x8x128xf32> to vector<128x128xf32>
    %139 = arith.truncf %138 : vector<128x128xf32> to vector<128x128xbf16>
    %c8 = arith.constant 8 : index
    %c0_133 = arith.constant 0 : index
    %c0_134 = arith.constant 0 : index
    %140 = vector.load %arg2[%c8, %c0_133, %c0_134] : memref<16x128x128xbf16, #tpu.memory_space<vmem>>, vector<1x128x128xbf16>
    %141 = vector.shape_cast %140 : vector<1x128x128xbf16> to vector<128x128xbf16>
    %cst_135 = arith.constant dense<0.000000e+00> : vector<128x128xf32>
    %142 = tpu.matmul %139, %141, %cst_135 {dimension_numbers = #tpu.dot_dimension_numbers<[1], [0], [0], [1], [0, 0, 1, 1], [], []>} : vector<128x128xbf16>, vector<128x128xbf16>, vector<128x128xf32> -> vector<128x128xf32>
    %143 = arith.addf %136, %142 : vector<128x128xf32>
    %c2_136 = arith.constant 2 : index
    %c1_137 = arith.constant 1 : index
    %c0_138 = arith.constant 0 : index
    %c0_139 = arith.constant 0 : index
    %144 = vector.load %arg19[%c2_136, %c1_137, %c0_138, %c0_139] : memref<8x9x16x128xf32, #tpu.memory_space<vmem>>, vector<2x8x8x128xf32>
    %145 = vector.shape_cast %144 : vector<2x8x8x128xf32> to vector<128x128xf32>
    %146 = arith.truncf %145 : vector<128x128xf32> to vector<128x128xbf16>
    %c9 = arith.constant 9 : index
    %c0_140 = arith.constant 0 : index
    %c0_141 = arith.constant 0 : index
    %147 = vector.load %arg2[%c9, %c0_140, %c0_141] : memref<16x128x128xbf16, #tpu.memory_space<vmem>>, vector<1x128x128xbf16>
    %148 = vector.shape_cast %147 : vector<1x128x128xbf16> to vector<128x128xbf16>
    %cst_142 = arith.constant dense<0.000000e+00> : vector<128x128xf32>
    %149 = tpu.matmul %146, %148, %cst_142 {dimension_numbers = #tpu.dot_dimension_numbers<[1], [0], [0], [1], [0, 0, 1, 1], [], []>} : vector<128x128xbf16>, vector<128x128xbf16>, vector<128x128xf32> -> vector<128x128xf32>
    %150 = arith.addf %143, %149 : vector<128x128xf32>
    %c0_143 = arith.constant 0 : index
    %c1_144 = arith.constant 1 : index
    %c1_145 = arith.constant 1 : index
    %c0_146 = arith.constant 0 : index
    %151 = vector.load %arg19[%c0_143, %c1_144, %c1_145, %c0_146] : memref<8x9x16x128xf32, #tpu.memory_space<vmem>>, vector<2x8x8x128xf32>
    %152 = vector.shape_cast %151 : vector<2x8x8x128xf32> to vector<128x128xf32>
    %153 = arith.truncf %152 : vector<128x128xf32> to vector<128x128xbf16>
    %c10 = arith.constant 10 : index
    %c0_147 = arith.constant 0 : index
    %c0_148 = arith.constant 0 : index
    %154 = vector.load %arg2[%c10, %c0_147, %c0_148] : memref<16x128x128xbf16, #tpu.memory_space<vmem>>, vector<1x128x128xbf16>
    %155 = vector.shape_cast %154 : vector<1x128x128xbf16> to vector<128x128xbf16>
    %cst_149 = arith.constant dense<0.000000e+00> : vector<128x128xf32>
    %156 = tpu.matmul %153, %155, %cst_149 {dimension_numbers = #tpu.dot_dimension_numbers<[1], [0], [0], [1], [0, 0, 1, 1], [], []>} : vector<128x128xbf16>, vector<128x128xbf16>, vector<128x128xf32> -> vector<128x128xf32>
    %157 = arith.addf %150, %156 : vector<128x128xf32>
    %c2_150 = arith.constant 2 : index
    %c1_151 = arith.constant 1 : index
    %c1_152 = arith.constant 1 : index
    %c0_153 = arith.constant 0 : index
    %158 = vector.load %arg19[%c2_150, %c1_151, %c1_152, %c0_153] : memref<8x9x16x128xf32, #tpu.memory_space<vmem>>, vector<2x8x8x128xf32>
    %159 = vector.shape_cast %158 : vector<2x8x8x128xf32> to vector<128x128xf32>
    %160 = arith.truncf %159 : vector<128x128xf32> to vector<128x128xbf16>
    %c11 = arith.constant 11 : index
    %c0_154 = arith.constant 0 : index
    %c0_155 = arith.constant 0 : index
    %161 = vector.load %arg2[%c11, %c0_154, %c0_155] : memref<16x128x128xbf16, #tpu.memory_space<vmem>>, vector<1x128x128xbf16>
    %162 = vector.shape_cast %161 : vector<1x128x128xbf16> to vector<128x128xbf16>
    %cst_156 = arith.constant dense<0.000000e+00> : vector<128x128xf32>
    %163 = tpu.matmul %160, %162, %cst_156 {dimension_numbers = #tpu.dot_dimension_numbers<[1], [0], [0], [1], [0, 0, 1, 1], [], []>} : vector<128x128xbf16>, vector<128x128xbf16>, vector<128x128xf32> -> vector<128x128xf32>
    %164 = arith.addf %157, %163 : vector<128x128xf32>
    %c4_157 = arith.constant 4 : index
    %c1_158 = arith.constant 1 : index
    %c0_159 = arith.constant 0 : index
    %c0_160 = arith.constant 0 : index
    %165 = vector.load %arg19[%c4_157, %c1_158, %c0_159, %c0_160] : memref<8x9x16x128xf32, #tpu.memory_space<vmem>>, vector<2x8x8x128xf32>
    %166 = vector.shape_cast %165 : vector<2x8x8x128xf32> to vector<128x128xf32>
    %167 = arith.truncf %166 : vector<128x128xf32> to vector<128x128xbf16>
    %c12 = arith.constant 12 : index
    %c0_161 = arith.constant 0 : index
    %c0_162 = arith.constant 0 : index
    %168 = vector.load %arg2[%c12, %c0_161, %c0_162] : memref<16x128x128xbf16, #tpu.memory_space<vmem>>, vector<1x128x128xbf16>
    %169 = vector.shape_cast %168 : vector<1x128x128xbf16> to vector<128x128xbf16>
    %cst_163 = arith.constant dense<0.000000e+00> : vector<128x128xf32>
    %170 = tpu.matmul %167, %169, %cst_163 {dimension_numbers = #tpu.dot_dimension_numbers<[1], [0], [0], [1], [0, 0, 1, 1], [], []>} : vector<128x128xbf16>, vector<128x128xbf16>, vector<128x128xf32> -> vector<128x128xf32>
    %171 = arith.addf %164, %170 : vector<128x128xf32>
    %c6_164 = arith.constant 6 : index
    %c1_165 = arith.constant 1 : index
    %c0_166 = arith.constant 0 : index
    %c0_167 = arith.constant 0 : index
    %172 = vector.load %arg19[%c6_164, %c1_165, %c0_166, %c0_167] : memref<8x9x16x128xf32, #tpu.memory_space<vmem>>, vector<2x8x8x128xf32>
    %173 = vector.shape_cast %172 : vector<2x8x8x128xf32> to vector<128x128xf32>
    %174 = arith.truncf %173 : vector<128x128xf32> to vector<128x128xbf16>
    %c13 = arith.constant 13 : index
    %c0_168 = arith.constant 0 : index
    %c0_169 = arith.constant 0 : index
    %175 = vector.load %arg2[%c13, %c0_168, %c0_169] : memref<16x128x128xbf16, #tpu.memory_space<vmem>>, vector<1x128x128xbf16>
    %176 = vector.shape_cast %175 : vector<1x128x128xbf16> to vector<128x128xbf16>
    %cst_170 = arith.constant dense<0.000000e+00> : vector<128x128xf32>
    %177 = tpu.matmul %174, %176, %cst_170 {dimension_numbers = #tpu.dot_dimension_numbers<[1], [0], [0], [1], [0, 0, 1, 1], [], []>} : vector<128x128xbf16>, vector<128x128xbf16>, vector<128x128xf32> -> vector<128x128xf32>
    %178 = arith.addf %171, %177 : vector<128x128xf32>
    %c4_171 = arith.constant 4 : index
    %c1_172 = arith.constant 1 : index
    %c1_173 = arith.constant 1 : index
    %c0_174 = arith.constant 0 : index
    %179 = vector.load %arg19[%c4_171, %c1_172, %c1_173, %c0_174] : memref<8x9x16x128xf32, #tpu.memory_space<vmem>>, vector<2x8x8x128xf32>
    %180 = vector.shape_cast %179 : vector<2x8x8x128xf32> to vector<128x128xf32>
    %181 = arith.truncf %180 : vector<128x128xf32> to vector<128x128xbf16>
    %c14 = arith.constant 14 : index
    %c0_175 = arith.constant 0 : index
    %c0_176 = arith.constant 0 : index
    %182 = vector.load %arg2[%c14, %c0_175, %c0_176] : memref<16x128x128xbf16, #tpu.memory_space<vmem>>, vector<1x128x128xbf16>
    %183 = vector.shape_cast %182 : vector<1x128x128xbf16> to vector<128x128xbf16>
    %cst_177 = arith.constant dense<0.000000e+00> : vector<128x128xf32>
    %184 = tpu.matmul %181, %183, %cst_177 {dimension_numbers = #tpu.dot_dimension_numbers<[1], [0], [0], [1], [0, 0, 1, 1], [], []>} : vector<128x128xbf16>, vector<128x128xbf16>, vector<128x128xf32> -> vector<128x128xf32>
    %185 = arith.addf %178, %184 : vector<128x128xf32>
    %c6_178 = arith.constant 6 : index
    %c1_179 = arith.constant 1 : index
    %c1_180 = arith.constant 1 : index
    %c0_181 = arith.constant 0 : index
    %186 = vector.load %arg19[%c6_178, %c1_179, %c1_180, %c0_181] : memref<8x9x16x128xf32, #tpu.memory_space<vmem>>, vector<2x8x8x128xf32>
    %187 = vector.shape_cast %186 : vector<2x8x8x128xf32> to vector<128x128xf32>
    %188 = arith.truncf %187 : vector<128x128xf32> to vector<128x128xbf16>
    %c15 = arith.constant 15 : index
    %c0_182 = arith.constant 0 : index
    %c0_183 = arith.constant 0 : index
    %189 = vector.load %arg2[%c15, %c0_182, %c0_183] : memref<16x128x128xbf16, #tpu.memory_space<vmem>>, vector<1x128x128xbf16>
    %190 = vector.shape_cast %189 : vector<1x128x128xbf16> to vector<128x128xbf16>
    %cst_184 = arith.constant dense<0.000000e+00> : vector<128x128xf32>
    %191 = tpu.matmul %188, %190, %cst_184 {dimension_numbers = #tpu.dot_dimension_numbers<[1], [0], [0], [1], [0, 0, 1, 1], [], []>} : vector<128x128xbf16>, vector<128x128xbf16>, vector<128x128xf32> -> vector<128x128xf32>
    %192 = arith.addf %185, %191 : vector<128x128xf32>
    %cst_185 = arith.constant dense<0.000000e+00> : vector<128xf32>
    %193 = vector.multi_reduction <add>, %192, %cst_185 [0] : vector<128x128xf32> to vector<128xf32>
    %194 = vector.shape_cast %193 : vector<128xf32> to vector<1x128xf32>
    %cst_186 = arith.constant 7.812500e-03 : f32
    %195 = vector.broadcast %cst_186 : f32 to vector<1x128xf32>
    %196 = arith.mulf %194, %195 : vector<1x128xf32>
    %197 = vector.broadcast %196 : vector<1x128xf32> to vector<128x128xf32>
    %198 = arith.subf %192, %197 : vector<128x128xf32>
    %199 = arith.mulf %198, %198 : vector<128x128xf32>
    %cst_187 = arith.constant dense<0.000000e+00> : vector<128xf32>
    %200 = vector.multi_reduction <add>, %199, %cst_187 [0] : vector<128x128xf32> to vector<128xf32>
    %201 = vector.shape_cast %200 : vector<128xf32> to vector<1x128xf32>
    %cst_188 = arith.constant 7.812500e-03 : f32
    %202 = vector.broadcast %cst_188 : f32 to vector<1x128xf32>
    %203 = arith.mulf %201, %202 : vector<1x128xf32>
    %c0_189 = arith.constant 0 : index
    %c0_190 = arith.constant 0 : index
    %204 = vector.load %arg3[%c0_189, %c0_190] : memref<1x128xf32, #tpu.memory_space<vmem>>, vector<1x128xf32>
    %205 = vector.broadcast %196 : vector<1x128xf32> to vector<128x128xf32>
    %206 = arith.subf %192, %205 : vector<128x128xf32>
    %207 = vector.broadcast %204 : vector<1x128xf32> to vector<128x128xf32>
    %208 = arith.mulf %207, %206 : vector<128x128xf32>
    %cst_191 = arith.constant 9.99999974E-6 : f32
    %209 = vector.broadcast %cst_191 : f32 to vector<1x128xf32>
    %210 = arith.addf %203, %209 : vector<1x128xf32>
    %211 = math.rsqrt %210 : vector<1x128xf32>
    %212 = vector.broadcast %211 : vector<1x128xf32> to vector<128x128xf32>
    %213 = arith.mulf %208, %212 : vector<128x128xf32>
    %c0_192 = arith.constant 0 : index
    %c0_193 = arith.constant 0 : index
    %214 = vector.load %arg4[%c0_192, %c0_193] : memref<1x128xf32, #tpu.memory_space<vmem>>, vector<1x128xf32>
    %215 = vector.broadcast %214 : vector<1x128xf32> to vector<128x128xf32>
    %216 = arith.addf %213, %215 : vector<128x128xf32>
    %cst_194 = arith.constant 2.000000e-01 : f32
    %217 = vector.broadcast %cst_194 : f32 to vector<128x128xf32>
    %218 = arith.mulf %217, %216 : vector<128x128xf32>
    %219 = arith.maximumf %216, %218 : vector<128x128xf32>
    %220 = arith.truncf %219 : vector<128x128xf32> to vector<128x128xbf16>
    %cst_195 = arith.constant 0.000000e+00 : f32
    %221 = vector.broadcast %cst_195 : f32 to vector<32x128xf32>
    %c0_196 = arith.constant 0 : index
    %c0_197 = arith.constant 0 : index
    %c0_198 = arith.constant 0 : index
    %222 = vector.load %arg5[%c0_196, %c0_197, %c0_198] : memref<16x32x128xbf16, #tpu.memory_space<vmem>>, vector<1x32x128xbf16>
    %223 = vector.shape_cast %222 : vector<1x32x128xbf16> to vector<32x128xbf16>
    %cst_199 = arith.constant dense<0.000000e+00> : vector<32x128xf32>
    %224 = tpu.matmul %223, %220, %cst_199 {dimension_numbers = #tpu.dot_dimension_numbers<[1], [0], [0], [1], [0, 0, 1, 1], [], []>} : vector<32x128xbf16>, vector<128x128xbf16>, vector<32x128xf32> -> vector<32x128xf32>
    %225 = arith.truncf %224 : vector<32x128xf32> to vector<32x128xbf16>
    %c0_200 = arith.constant 0 : index
    %c0_201 = arith.constant 0 : index
    %c0_202 = arith.constant 0 : index
    %226 = vector.load %arg6[%c0_200, %c0_201, %c0_202] : memref<16x128x128xbf16, #tpu.memory_space<vmem>>, vector<1x128x128xbf16>
    %227 = vector.shape_cast %226 : vector<1x128x128xbf16> to vector<128x128xbf16>
    %cst_203 = arith.constant dense<0.000000e+00> : vector<32x128xf32>
    %228 = tpu.matmul %225, %227, %cst_203 {dimension_numbers = #tpu.dot_dimension_numbers<[1], [0], [0], [1], [0, 0, 1, 1], [], []>} : vector<32x128xbf16>, vector<128x128xbf16>, vector<32x128xf32> -> vector<32x128xf32>
    %229 = arith.addf %221, %228 : vector<32x128xf32>
    %c1_204 = arith.constant 1 : index
    %c0_205 = arith.constant 0 : index
    %c0_206 = arith.constant 0 : index
    %230 = vector.load %arg5[%c1_204, %c0_205, %c0_206] : memref<16x32x128xbf16, #tpu.memory_space<vmem>>, vector<1x32x128xbf16>
    %231 = vector.shape_cast %230 : vector<1x32x128xbf16> to vector<32x128xbf16>
    %cst_207 = arith.constant dense<0.000000e+00> : vector<32x128xf32>
    %232 = tpu.matmul %231, %220, %cst_207 {dimension_numbers = #tpu.dot_dimension_numbers<[1], [0], [0], [1], [0, 0, 1, 1], [], []>} : vector<32x128xbf16>, vector<128x128xbf16>, vector<32x128xf32> -> vector<32x128xf32>
    %233 = arith.truncf %232 : vector<32x128xf32> to vector<32x128xbf16>
    %c1_208 = arith.constant 1 : index
    %c0_209 = arith.constant 0 : index
    %c0_210 = arith.constant 0 : index
    %234 = vector.load %arg6[%c1_208, %c0_209, %c0_210] : memref<16x128x128xbf16, #tpu.memory_space<vmem>>, vector<1x128x128xbf16>
    %235 = vector.shape_cast %234 : vector<1x128x128xbf16> to vector<128x128xbf16>
    %cst_211 = arith.constant dense<0.000000e+00> : vector<32x128xf32>
    %236 = tpu.matmul %233, %235, %cst_211 {dimension_numbers = #tpu.dot_dimension_numbers<[1], [0], [0], [1], [0, 0, 1, 1], [], []>} : vector<32x128xbf16>, vector<128x128xbf16>, vector<32x128xf32> -> vector<32x128xf32>
    %237 = arith.addf %229, %236 : vector<32x128xf32>
    %c2_212 = arith.constant 2 : index
    %c0_213 = arith.constant 0 : index
    %c0_214 = arith.constant 0 : index
    %238 = vector.load %arg5[%c2_212, %c0_213, %c0_214] : memref<16x32x128xbf16, #tpu.memory_space<vmem>>, vector<1x32x128xbf16>
    %239 = vector.shape_cast %238 : vector<1x32x128xbf16> to vector<32x128xbf16>
    %cst_215 = arith.constant dense<0.000000e+00> : vector<32x128xf32>
    %240 = tpu.matmul %239, %220, %cst_215 {dimension_numbers = #tpu.dot_dimension_numbers<[1], [0], [0], [1], [0, 0, 1, 1], [], []>} : vector<32x128xbf16>, vector<128x128xbf16>, vector<32x128xf32> -> vector<32x128xf32>
    %241 = arith.truncf %240 : vector<32x128xf32> to vector<32x128xbf16>
    %c2_216 = arith.constant 2 : index
    %c0_217 = arith.constant 0 : index
    %c0_218 = arith.constant 0 : index
    %242 = vector.load %arg6[%c2_216, %c0_217, %c0_218] : memref<16x128x128xbf16, #tpu.memory_space<vmem>>, vector<1x128x128xbf16>
    %243 = vector.shape_cast %242 : vector<1x128x128xbf16> to vector<128x128xbf16>
    %cst_219 = arith.constant dense<0.000000e+00> : vector<32x128xf32>
    %244 = tpu.matmul %241, %243, %cst_219 {dimension_numbers = #tpu.dot_dimension_numbers<[1], [0], [0], [1], [0, 0, 1, 1], [], []>} : vector<32x128xbf16>, vector<128x128xbf16>, vector<32x128xf32> -> vector<32x128xf32>
    %245 = arith.addf %237, %244 : vector<32x128xf32>
    %c3_220 = arith.constant 3 : index
    %c0_221 = arith.constant 0 : index
    %c0_222 = arith.constant 0 : index
    %246 = vector.load %arg5[%c3_220, %c0_221, %c0_222] : memref<16x32x128xbf16, #tpu.memory_space<vmem>>, vector<1x32x128xbf16>
    %247 = vector.shape_cast %246 : vector<1x32x128xbf16> to vector<32x128xbf16>
    %cst_223 = arith.constant dense<0.000000e+00> : vector<32x128xf32>
    %248 = tpu.matmul %247, %220, %cst_223 {dimension_numbers = #tpu.dot_dimension_numbers<[1], [0], [0], [1], [0, 0, 1, 1], [], []>} : vector<32x128xbf16>, vector<128x128xbf16>, vector<32x128xf32> -> vector<32x128xf32>
    %249 = arith.truncf %248 : vector<32x128xf32> to vector<32x128xbf16>
    %c3_224 = arith.constant 3 : index
    %c0_225 = arith.constant 0 : index
    %c0_226 = arith.constant 0 : index
    %250 = vector.load %arg6[%c3_224, %c0_225, %c0_226] : memref<16x128x128xbf16, #tpu.memory_space<vmem>>, vector<1x128x128xbf16>
    %251 = vector.shape_cast %250 : vector<1x128x128xbf16> to vector<128x128xbf16>
    %cst_227 = arith.constant dense<0.000000e+00> : vector<32x128xf32>
    %252 = tpu.matmul %249, %251, %cst_227 {dimension_numbers = #tpu.dot_dimension_numbers<[1], [0], [0], [1], [0, 0, 1, 1], [], []>} : vector<32x128xbf16>, vector<128x128xbf16>, vector<32x128xf32> -> vector<32x128xf32>
    %253 = arith.addf %245, %252 : vector<32x128xf32>
    %c4_228 = arith.constant 4 : index
    %c0_229 = arith.constant 0 : index
    %c0_230 = arith.constant 0 : index
    %254 = vector.load %arg5[%c4_228, %c0_229, %c0_230] : memref<16x32x128xbf16, #tpu.memory_space<vmem>>, vector<1x32x128xbf16>
    %255 = vector.shape_cast %254 : vector<1x32x128xbf16> to vector<32x128xbf16>
    %cst_231 = arith.constant dense<0.000000e+00> : vector<32x128xf32>
    %256 = tpu.matmul %255, %220, %cst_231 {dimension_numbers = #tpu.dot_dimension_numbers<[1], [0], [0], [1], [0, 0, 1, 1], [], []>} : vector<32x128xbf16>, vector<128x128xbf16>, vector<32x128xf32> -> vector<32x128xf32>
    %257 = arith.truncf %256 : vector<32x128xf32> to vector<32x128xbf16>
    %c4_232 = arith.constant 4 : index
    %c0_233 = arith.constant 0 : index
    %c0_234 = arith.constant 0 : index
    %258 = vector.load %arg6[%c4_232, %c0_233, %c0_234] : memref<16x128x128xbf16, #tpu.memory_space<vmem>>, vector<1x128x128xbf16>
    %259 = vector.shape_cast %258 : vector<1x128x128xbf16> to vector<128x128xbf16>
    %cst_235 = arith.constant dense<0.000000e+00> : vector<32x128xf32>
    %260 = tpu.matmul %257, %259, %cst_235 {dimension_numbers = #tpu.dot_dimension_numbers<[1], [0], [0], [1], [0, 0, 1, 1], [], []>} : vector<32x128xbf16>, vector<128x128xbf16>, vector<32x128xf32> -> vector<32x128xf32>
    %261 = arith.addf %253, %260 : vector<32x128xf32>
    %c5_236 = arith.constant 5 : index
    %c0_237 = arith.constant 0 : index
    %c0_238 = arith.constant 0 : index
    %262 = vector.load %arg5[%c5_236, %c0_237, %c0_238] : memref<16x32x128xbf16, #tpu.memory_space<vmem>>, vector<1x32x128xbf16>
    %263 = vector.shape_cast %262 : vector<1x32x128xbf16> to vector<32x128xbf16>
    %cst_239 = arith.constant dense<0.000000e+00> : vector<32x128xf32>
    %264 = tpu.matmul %263, %220, %cst_239 {dimension_numbers = #tpu.dot_dimension_numbers<[1], [0], [0], [1], [0, 0, 1, 1], [], []>} : vector<32x128xbf16>, vector<128x128xbf16>, vector<32x128xf32> -> vector<32x128xf32>
    %265 = arith.truncf %264 : vector<32x128xf32> to vector<32x128xbf16>
    %c5_240 = arith.constant 5 : index
    %c0_241 = arith.constant 0 : index
    %c0_242 = arith.constant 0 : index
    %266 = vector.load %arg6[%c5_240, %c0_241, %c0_242] : memref<16x128x128xbf16, #tpu.memory_space<vmem>>, vector<1x128x128xbf16>
    %267 = vector.shape_cast %266 : vector<1x128x128xbf16> to vector<128x128xbf16>
    %cst_243 = arith.constant dense<0.000000e+00> : vector<32x128xf32>
    %268 = tpu.matmul %265, %267, %cst_243 {dimension_numbers = #tpu.dot_dimension_numbers<[1], [0], [0], [1], [0, 0, 1, 1], [], []>} : vector<32x128xbf16>, vector<128x128xbf16>, vector<32x128xf32> -> vector<32x128xf32>
    %269 = arith.addf %261, %268 : vector<32x128xf32>
    %c6_244 = arith.constant 6 : index
    %c0_245 = arith.constant 0 : index
    %c0_246 = arith.constant 0 : index
    %270 = vector.load %arg5[%c6_244, %c0_245, %c0_246] : memref<16x32x128xbf16, #tpu.memory_space<vmem>>, vector<1x32x128xbf16>
    %271 = vector.shape_cast %270 : vector<1x32x128xbf16> to vector<32x128xbf16>
    %cst_247 = arith.constant dense<0.000000e+00> : vector<32x128xf32>
    %272 = tpu.matmul %271, %220, %cst_247 {dimension_numbers = #tpu.dot_dimension_numbers<[1], [0], [0], [1], [0, 0, 1, 1], [], []>} : vector<32x128xbf16>, vector<128x128xbf16>, vector<32x128xf32> -> vector<32x128xf32>
    %273 = arith.truncf %272 : vector<32x128xf32> to vector<32x128xbf16>
    %c6_248 = arith.constant 6 : index
    %c0_249 = arith.constant 0 : index
    %c0_250 = arith.constant 0 : index
    %274 = vector.load %arg6[%c6_248, %c0_249, %c0_250] : memref<16x128x128xbf16, #tpu.memory_space<vmem>>, vector<1x128x128xbf16>
    %275 = vector.shape_cast %274 : vector<1x128x128xbf16> to vector<128x128xbf16>
    %cst_251 = arith.constant dense<0.000000e+00> : vector<32x128xf32>
    %276 = tpu.matmul %273, %275, %cst_251 {dimension_numbers = #tpu.dot_dimension_numbers<[1], [0], [0], [1], [0, 0, 1, 1], [], []>} : vector<32x128xbf16>, vector<128x128xbf16>, vector<32x128xf32> -> vector<32x128xf32>
    %277 = arith.addf %269, %276 : vector<32x128xf32>
    %c7_252 = arith.constant 7 : index
    %c0_253 = arith.constant 0 : index
    %c0_254 = arith.constant 0 : index
    %278 = vector.load %arg5[%c7_252, %c0_253, %c0_254] : memref<16x32x128xbf16, #tpu.memory_space<vmem>>, vector<1x32x128xbf16>
    %279 = vector.shape_cast %278 : vector<1x32x128xbf16> to vector<32x128xbf16>
    %cst_255 = arith.constant dense<0.000000e+00> : vector<32x128xf32>
    %280 = tpu.matmul %279, %220, %cst_255 {dimension_numbers = #tpu.dot_dimension_numbers<[1], [0], [0], [1], [0, 0, 1, 1], [], []>} : vector<32x128xbf16>, vector<128x128xbf16>, vector<32x128xf32> -> vector<32x128xf32>
    %281 = arith.truncf %280 : vector<32x128xf32> to vector<32x128xbf16>
    %c7_256 = arith.constant 7 : index
    %c0_257 = arith.constant 0 : index
    %c0_258 = arith.constant 0 : index
    %282 = vector.load %arg6[%c7_256, %c0_257, %c0_258] : memref<16x128x128xbf16, #tpu.memory_space<vmem>>, vector<1x128x128xbf16>
    %283 = vector.shape_cast %282 : vector<1x128x128xbf16> to vector<128x128xbf16>
    %cst_259 = arith.constant dense<0.000000e+00> : vector<32x128xf32>
    %284 = tpu.matmul %281, %283, %cst_259 {dimension_numbers = #tpu.dot_dimension_numbers<[1], [0], [0], [1], [0, 0, 1, 1], [], []>} : vector<32x128xbf16>, vector<128x128xbf16>, vector<32x128xf32> -> vector<32x128xf32>
    %285 = arith.addf %277, %284 : vector<32x128xf32>
    %c8_260 = arith.constant 8 : index
    %c0_261 = arith.constant 0 : index
    %c0_262 = arith.constant 0 : index
    %286 = vector.load %arg5[%c8_260, %c0_261, %c0_262] : memref<16x32x128xbf16, #tpu.memory_space<vmem>>, vector<1x32x128xbf16>
    %287 = vector.shape_cast %286 : vector<1x32x128xbf16> to vector<32x128xbf16>
    %cst_263 = arith.constant dense<0.000000e+00> : vector<32x128xf32>
    %288 = tpu.matmul %287, %220, %cst_263 {dimension_numbers = #tpu.dot_dimension_numbers<[1], [0], [0], [1], [0, 0, 1, 1], [], []>} : vector<32x128xbf16>, vector<128x128xbf16>, vector<32x128xf32> -> vector<32x128xf32>
    %289 = arith.truncf %288 : vector<32x128xf32> to vector<32x128xbf16>
    %c8_264 = arith.constant 8 : index
    %c0_265 = arith.constant 0 : index
    %c0_266 = arith.constant 0 : index
    %290 = vector.load %arg6[%c8_264, %c0_265, %c0_266] : memref<16x128x128xbf16, #tpu.memory_space<vmem>>, vector<1x128x128xbf16>
    %291 = vector.shape_cast %290 : vector<1x128x128xbf16> to vector<128x128xbf16>
    %cst_267 = arith.constant dense<0.000000e+00> : vector<32x128xf32>
    %292 = tpu.matmul %289, %291, %cst_267 {dimension_numbers = #tpu.dot_dimension_numbers<[1], [0], [0], [1], [0, 0, 1, 1], [], []>} : vector<32x128xbf16>, vector<128x128xbf16>, vector<32x128xf32> -> vector<32x128xf32>
    %293 = arith.addf %285, %292 : vector<32x128xf32>
    %c9_268 = arith.constant 9 : index
    %c0_269 = arith.constant 0 : index
    %c0_270 = arith.constant 0 : index
    %294 = vector.load %arg5[%c9_268, %c0_269, %c0_270] : memref<16x32x128xbf16, #tpu.memory_space<vmem>>, vector<1x32x128xbf16>
    %295 = vector.shape_cast %294 : vector<1x32x128xbf16> to vector<32x128xbf16>
    %cst_271 = arith.constant dense<0.000000e+00> : vector<32x128xf32>
    %296 = tpu.matmul %295, %220, %cst_271 {dimension_numbers = #tpu.dot_dimension_numbers<[1], [0], [0], [1], [0, 0, 1, 1], [], []>} : vector<32x128xbf16>, vector<128x128xbf16>, vector<32x128xf32> -> vector<32x128xf32>
    %297 = arith.truncf %296 : vector<32x128xf32> to vector<32x128xbf16>
    %c9_272 = arith.constant 9 : index
    %c0_273 = arith.constant 0 : index
    %c0_274 = arith.constant 0 : index
    %298 = vector.load %arg6[%c9_272, %c0_273, %c0_274] : memref<16x128x128xbf16, #tpu.memory_space<vmem>>, vector<1x128x128xbf16>
    %299 = vector.shape_cast %298 : vector<1x128x128xbf16> to vector<128x128xbf16>
    %cst_275 = arith.constant dense<0.000000e+00> : vector<32x128xf32>
    %300 = tpu.matmul %297, %299, %cst_275 {dimension_numbers = #tpu.dot_dimension_numbers<[1], [0], [0], [1], [0, 0, 1, 1], [], []>} : vector<32x128xbf16>, vector<128x128xbf16>, vector<32x128xf32> -> vector<32x128xf32>
    %301 = arith.addf %293, %300 : vector<32x128xf32>
    %c10_276 = arith.constant 10 : index
    %c0_277 = arith.constant 0 : index
    %c0_278 = arith.constant 0 : index
    %302 = vector.load %arg5[%c10_276, %c0_277, %c0_278] : memref<16x32x128xbf16, #tpu.memory_space<vmem>>, vector<1x32x128xbf16>
    %303 = vector.shape_cast %302 : vector<1x32x128xbf16> to vector<32x128xbf16>
    %cst_279 = arith.constant dense<0.000000e+00> : vector<32x128xf32>
    %304 = tpu.matmul %303, %220, %cst_279 {dimension_numbers = #tpu.dot_dimension_numbers<[1], [0], [0], [1], [0, 0, 1, 1], [], []>} : vector<32x128xbf16>, vector<128x128xbf16>, vector<32x128xf32> -> vector<32x128xf32>
    %305 = arith.truncf %304 : vector<32x128xf32> to vector<32x128xbf16>
    %c10_280 = arith.constant 10 : index
    %c0_281 = arith.constant 0 : index
    %c0_282 = arith.constant 0 : index
    %306 = vector.load %arg6[%c10_280, %c0_281, %c0_282] : memref<16x128x128xbf16, #tpu.memory_space<vmem>>, vector<1x128x128xbf16>
    %307 = vector.shape_cast %306 : vector<1x128x128xbf16> to vector<128x128xbf16>
    %cst_283 = arith.constant dense<0.000000e+00> : vector<32x128xf32>
    %308 = tpu.matmul %305, %307, %cst_283 {dimension_numbers = #tpu.dot_dimension_numbers<[1], [0], [0], [1], [0, 0, 1, 1], [], []>} : vector<32x128xbf16>, vector<128x128xbf16>, vector<32x128xf32> -> vector<32x128xf32>
    %309 = arith.addf %301, %308 : vector<32x128xf32>
    %c11_284 = arith.constant 11 : index
    %c0_285 = arith.constant 0 : index
    %c0_286 = arith.constant 0 : index
    %310 = vector.load %arg5[%c11_284, %c0_285, %c0_286] : memref<16x32x128xbf16, #tpu.memory_space<vmem>>, vector<1x32x128xbf16>
    %311 = vector.shape_cast %310 : vector<1x32x128xbf16> to vector<32x128xbf16>
    %cst_287 = arith.constant dense<0.000000e+00> : vector<32x128xf32>
    %312 = tpu.matmul %311, %220, %cst_287 {dimension_numbers = #tpu.dot_dimension_numbers<[1], [0], [0], [1], [0, 0, 1, 1], [], []>} : vector<32x128xbf16>, vector<128x128xbf16>, vector<32x128xf32> -> vector<32x128xf32>
    %313 = arith.truncf %312 : vector<32x128xf32> to vector<32x128xbf16>
    %c11_288 = arith.constant 11 : index
    %c0_289 = arith.constant 0 : index
    %c0_290 = arith.constant 0 : index
    %314 = vector.load %arg6[%c11_288, %c0_289, %c0_290] : memref<16x128x128xbf16, #tpu.memory_space<vmem>>, vector<1x128x128xbf16>
    %315 = vector.shape_cast %314 : vector<1x128x128xbf16> to vector<128x128xbf16>
    %cst_291 = arith.constant dense<0.000000e+00> : vector<32x128xf32>
    %316 = tpu.matmul %313, %315, %cst_291 {dimension_numbers = #tpu.dot_dimension_numbers<[1], [0], [0], [1], [0, 0, 1, 1], [], []>} : vector<32x128xbf16>, vector<128x128xbf16>, vector<32x128xf32> -> vector<32x128xf32>
    %317 = arith.addf %309, %316 : vector<32x128xf32>
    %c12_292 = arith.constant 12 : index
    %c0_293 = arith.constant 0 : index
    %c0_294 = arith.constant 0 : index
    %318 = vector.load %arg5[%c12_292, %c0_293, %c0_294] : memref<16x32x128xbf16, #tpu.memory_space<vmem>>, vector<1x32x128xbf16>
    %319 = vector.shape_cast %318 : vector<1x32x128xbf16> to vector<32x128xbf16>
    %cst_295 = arith.constant dense<0.000000e+00> : vector<32x128xf32>
    %320 = tpu.matmul %319, %220, %cst_295 {dimension_numbers = #tpu.dot_dimension_numbers<[1], [0], [0], [1], [0, 0, 1, 1], [], []>} : vector<32x128xbf16>, vector<128x128xbf16>, vector<32x128xf32> -> vector<32x128xf32>
    %321 = arith.truncf %320 : vector<32x128xf32> to vector<32x128xbf16>
    %c12_296 = arith.constant 12 : index
    %c0_297 = arith.constant 0 : index
    %c0_298 = arith.constant 0 : index
    %322 = vector.load %arg6[%c12_296, %c0_297, %c0_298] : memref<16x128x128xbf16, #tpu.memory_space<vmem>>, vector<1x128x128xbf16>
    %323 = vector.shape_cast %322 : vector<1x128x128xbf16> to vector<128x128xbf16>
    %cst_299 = arith.constant dense<0.000000e+00> : vector<32x128xf32>
    %324 = tpu.matmul %321, %323, %cst_299 {dimension_numbers = #tpu.dot_dimension_numbers<[1], [0], [0], [1], [0, 0, 1, 1], [], []>} : vector<32x128xbf16>, vector<128x128xbf16>, vector<32x128xf32> -> vector<32x128xf32>
    %325 = arith.addf %317, %324 : vector<32x128xf32>
    %c13_300 = arith.constant 13 : index
    %c0_301 = arith.constant 0 : index
    %c0_302 = arith.constant 0 : index
    %326 = vector.load %arg5[%c13_300, %c0_301, %c0_302] : memref<16x32x128xbf16, #tpu.memory_space<vmem>>, vector<1x32x128xbf16>
    %327 = vector.shape_cast %326 : vector<1x32x128xbf16> to vector<32x128xbf16>
    %cst_303 = arith.constant dense<0.000000e+00> : vector<32x128xf32>
    %328 = tpu.matmul %327, %220, %cst_303 {dimension_numbers = #tpu.dot_dimension_numbers<[1], [0], [0], [1], [0, 0, 1, 1], [], []>} : vector<32x128xbf16>, vector<128x128xbf16>, vector<32x128xf32> -> vector<32x128xf32>
    %329 = arith.truncf %328 : vector<32x128xf32> to vector<32x128xbf16>
    %c13_304 = arith.constant 13 : index
    %c0_305 = arith.constant 0 : index
    %c0_306 = arith.constant 0 : index
    %330 = vector.load %arg6[%c13_304, %c0_305, %c0_306] : memref<16x128x128xbf16, #tpu.memory_space<vmem>>, vector<1x128x128xbf16>
    %331 = vector.shape_cast %330 : vector<1x128x128xbf16> to vector<128x128xbf16>
    %cst_307 = arith.constant dense<0.000000e+00> : vector<32x128xf32>
    %332 = tpu.matmul %329, %331, %cst_307 {dimension_numbers = #tpu.dot_dimension_numbers<[1], [0], [0], [1], [0, 0, 1, 1], [], []>} : vector<32x128xbf16>, vector<128x128xbf16>, vector<32x128xf32> -> vector<32x128xf32>
    %333 = arith.addf %325, %332 : vector<32x128xf32>
    %c14_308 = arith.constant 14 : index
    %c0_309 = arith.constant 0 : index
    %c0_310 = arith.constant 0 : index
    %334 = vector.load %arg5[%c14_308, %c0_309, %c0_310] : memref<16x32x128xbf16, #tpu.memory_space<vmem>>, vector<1x32x128xbf16>
    %335 = vector.shape_cast %334 : vector<1x32x128xbf16> to vector<32x128xbf16>
    %cst_311 = arith.constant dense<0.000000e+00> : vector<32x128xf32>
    %336 = tpu.matmul %335, %220, %cst_311 {dimension_numbers = #tpu.dot_dimension_numbers<[1], [0], [0], [1], [0, 0, 1, 1], [], []>} : vector<32x128xbf16>, vector<128x128xbf16>, vector<32x128xf32> -> vector<32x128xf32>
    %337 = arith.truncf %336 : vector<32x128xf32> to vector<32x128xbf16>
    %c14_312 = arith.constant 14 : index
    %c0_313 = arith.constant 0 : index
    %c0_314 = arith.constant 0 : index
    %338 = vector.load %arg6[%c14_312, %c0_313, %c0_314] : memref<16x128x128xbf16, #tpu.memory_space<vmem>>, vector<1x128x128xbf16>
    %339 = vector.shape_cast %338 : vector<1x128x128xbf16> to vector<128x128xbf16>
    %cst_315 = arith.constant dense<0.000000e+00> : vector<32x128xf32>
    %340 = tpu.matmul %337, %339, %cst_315 {dimension_numbers = #tpu.dot_dimension_numbers<[1], [0], [0], [1], [0, 0, 1, 1], [], []>} : vector<32x128xbf16>, vector<128x128xbf16>, vector<32x128xf32> -> vector<32x128xf32>
    %341 = arith.addf %333, %340 : vector<32x128xf32>
    %c15_316 = arith.constant 15 : index
    %c0_317 = arith.constant 0 : index
    %c0_318 = arith.constant 0 : index
    %342 = vector.load %arg5[%c15_316, %c0_317, %c0_318] : memref<16x32x128xbf16, #tpu.memory_space<vmem>>, vector<1x32x128xbf16>
    %343 = vector.shape_cast %342 : vector<1x32x128xbf16> to vector<32x128xbf16>
    %cst_319 = arith.constant dense<0.000000e+00> : vector<32x128xf32>
    %344 = tpu.matmul %343, %220, %cst_319 {dimension_numbers = #tpu.dot_dimension_numbers<[1], [0], [0], [1], [0, 0, 1, 1], [], []>} : vector<32x128xbf16>, vector<128x128xbf16>, vector<32x128xf32> -> vector<32x128xf32>
    %345 = arith.truncf %344 : vector<32x128xf32> to vector<32x128xbf16>
    %c15_320 = arith.constant 15 : index
    %c0_321 = arith.constant 0 : index
    %c0_322 = arith.constant 0 : index
    %346 = vector.load %arg6[%c15_320, %c0_321, %c0_322] : memref<16x128x128xbf16, #tpu.memory_space<vmem>>, vector<1x128x128xbf16>
    %347 = vector.shape_cast %346 : vector<1x128x128xbf16> to vector<128x128xbf16>
    %cst_323 = arith.constant dense<0.000000e+00> : vector<32x128xf32>
    %348 = tpu.matmul %345, %347, %cst_323 {dimension_numbers = #tpu.dot_dimension_numbers<[1], [0], [0], [1], [0, 0, 1, 1], [], []>} : vector<32x128xbf16>, vector<128x128xbf16>, vector<32x128xf32> -> vector<32x128xf32>
    %349 = arith.addf %341, %348 : vector<32x128xf32>
    %cst_324 = arith.constant dense<0.000000e+00> : vector<128xf32>
    %350 = vector.multi_reduction <add>, %349, %cst_324 [0] : vector<32x128xf32> to vector<128xf32>
    %351 = vector.shape_cast %350 : vector<128xf32> to vector<1x128xf32>
    %cst_325 = arith.constant 3.125000e-02 : f32
    %352 = vector.broadcast %cst_325 : f32 to vector<1x128xf32>
    %353 = arith.mulf %351, %352 : vector<1x128xf32>
    %354 = vector.broadcast %353 : vector<1x128xf32> to vector<32x128xf32>
    %355 = arith.subf %349, %354 : vector<32x128xf32>
    %356 = arith.mulf %355, %355 : vector<32x128xf32>
    %cst_326 = arith.constant dense<0.000000e+00> : vector<128xf32>
    %357 = vector.multi_reduction <add>, %356, %cst_326 [0] : vector<32x128xf32> to vector<128xf32>
    %358 = vector.shape_cast %357 : vector<128xf32> to vector<1x128xf32>
    %cst_327 = arith.constant 3.125000e-02 : f32
    %359 = vector.broadcast %cst_327 : f32 to vector<1x128xf32>
    %360 = arith.mulf %358, %359 : vector<1x128xf32>
    %c0_328 = arith.constant 0 : index
    %c0_329 = arith.constant 0 : index
    %361 = vector.load %arg7[%c0_328, %c0_329] : memref<1x128xf32, #tpu.memory_space<vmem>>, vector<1x128xf32>
    %362 = vector.broadcast %353 : vector<1x128xf32> to vector<32x128xf32>
    %363 = arith.subf %349, %362 : vector<32x128xf32>
    %364 = vector.broadcast %361 : vector<1x128xf32> to vector<32x128xf32>
    %365 = arith.mulf %364, %363 : vector<32x128xf32>
    %cst_330 = arith.constant 9.99999974E-6 : f32
    %366 = vector.broadcast %cst_330 : f32 to vector<1x128xf32>
    %367 = arith.addf %360, %366 : vector<1x128xf32>
    %368 = math.rsqrt %367 : vector<1x128xf32>
    %369 = vector.broadcast %368 : vector<1x128xf32> to vector<32x128xf32>
    %370 = arith.mulf %365, %369 : vector<32x128xf32>
    %c0_331 = arith.constant 0 : index
    %c0_332 = arith.constant 0 : index
    %371 = vector.load %arg8[%c0_331, %c0_332] : memref<1x128xf32, #tpu.memory_space<vmem>>, vector<1x128xf32>
    %372 = vector.broadcast %371 : vector<1x128xf32> to vector<32x128xf32>
    %373 = arith.addf %370, %372 : vector<32x128xf32>
    %cst_333 = arith.constant 2.000000e-01 : f32
    %374 = vector.broadcast %cst_333 : f32 to vector<32x128xf32>
    %375 = arith.mulf %374, %373 : vector<32x128xf32>
    %376 = arith.maximumf %373, %375 : vector<32x128xf32>
    %377 = arith.truncf %376 : vector<32x128xf32> to vector<32x128xbf16>
    %cst_334 = arith.constant 0.000000e+00 : f32
    %378 = vector.broadcast %cst_334 : f32 to vector<8x128xf32>
    %c0_335 = arith.constant 0 : index
    %c0_336 = arith.constant 0 : index
    %c0_337 = arith.constant 0 : index
    %379 = vector.load %arg9[%c0_335, %c0_336, %c0_337] : memref<16x8x32xbf16, #tpu.memory_space<vmem>>, vector<1x8x32xbf16>
    %380 = vector.shape_cast %379 : vector<1x8x32xbf16> to vector<8x32xbf16>
    %cst_338 = arith.constant dense<0.000000e+00> : vector<8x128xf32>
    %381 = tpu.matmul %380, %377, %cst_338 {dimension_numbers = #tpu.dot_dimension_numbers<[1], [0], [0], [1], [0, 0, 1, 1], [], []>} : vector<8x32xbf16>, vector<32x128xbf16>, vector<8x128xf32> -> vector<8x128xf32>
    %382 = arith.truncf %381 : vector<8x128xf32> to vector<8x128xbf16>
    %c0_339 = arith.constant 0 : index
    %c0_340 = arith.constant 0 : index
    %c0_341 = arith.constant 0 : index
    %383 = vector.load %arg10[%c0_339, %c0_340, %c0_341] : memref<16x128x128xbf16, #tpu.memory_space<vmem>>, vector<1x128x128xbf16>
    %384 = vector.shape_cast %383 : vector<1x128x128xbf16> to vector<128x128xbf16>
    %cst_342 = arith.constant dense<0.000000e+00> : vector<8x128xf32>
    %385 = tpu.matmul %382, %384, %cst_342 {dimension_numbers = #tpu.dot_dimension_numbers<[1], [0], [0], [1], [0, 0, 1, 1], [], []>} : vector<8x128xbf16>, vector<128x128xbf16>, vector<8x128xf32> -> vector<8x128xf32>
    %386 = arith.addf %378, %385 : vector<8x128xf32>
    %c1_343 = arith.constant 1 : index
    %c0_344 = arith.constant 0 : index
    %c0_345 = arith.constant 0 : index
    %387 = vector.load %arg9[%c1_343, %c0_344, %c0_345] : memref<16x8x32xbf16, #tpu.memory_space<vmem>>, vector<1x8x32xbf16>
    %388 = vector.shape_cast %387 : vector<1x8x32xbf16> to vector<8x32xbf16>
    %cst_346 = arith.constant dense<0.000000e+00> : vector<8x128xf32>
    %389 = tpu.matmul %388, %377, %cst_346 {dimension_numbers = #tpu.dot_dimension_numbers<[1], [0], [0], [1], [0, 0, 1, 1], [], []>} : vector<8x32xbf16>, vector<32x128xbf16>, vector<8x128xf32> -> vector<8x128xf32>
    %390 = arith.truncf %389 : vector<8x128xf32> to vector<8x128xbf16>
    %c1_347 = arith.constant 1 : index
    %c0_348 = arith.constant 0 : index
    %c0_349 = arith.constant 0 : index
    %391 = vector.load %arg10[%c1_347, %c0_348, %c0_349] : memref<16x128x128xbf16, #tpu.memory_space<vmem>>, vector<1x128x128xbf16>
    %392 = vector.shape_cast %391 : vector<1x128x128xbf16> to vector<128x128xbf16>
    %cst_350 = arith.constant dense<0.000000e+00> : vector<8x128xf32>
    %393 = tpu.matmul %390, %392, %cst_350 {dimension_numbers = #tpu.dot_dimension_numbers<[1], [0], [0], [1], [0, 0, 1, 1], [], []>} : vector<8x128xbf16>, vector<128x128xbf16>, vector<8x128xf32> -> vector<8x128xf32>
    %394 = arith.addf %386, %393 : vector<8x128xf32>
    %c2_351 = arith.constant 2 : index
    %c0_352 = arith.constant 0 : index
    %c0_353 = arith.constant 0 : index
    %395 = vector.load %arg9[%c2_351, %c0_352, %c0_353] : memref<16x8x32xbf16, #tpu.memory_space<vmem>>, vector<1x8x32xbf16>
    %396 = vector.shape_cast %395 : vector<1x8x32xbf16> to vector<8x32xbf16>
    %cst_354 = arith.constant dense<0.000000e+00> : vector<8x128xf32>
    %397 = tpu.matmul %396, %377, %cst_354 {dimension_numbers = #tpu.dot_dimension_numbers<[1], [0], [0], [1], [0, 0, 1, 1], [], []>} : vector<8x32xbf16>, vector<32x128xbf16>, vector<8x128xf32> -> vector<8x128xf32>
    %398 = arith.truncf %397 : vector<8x128xf32> to vector<8x128xbf16>
    %c2_355 = arith.constant 2 : index
    %c0_356 = arith.constant 0 : index
    %c0_357 = arith.constant 0 : index
    %399 = vector.load %arg10[%c2_355, %c0_356, %c0_357] : memref<16x128x128xbf16, #tpu.memory_space<vmem>>, vector<1x128x128xbf16>
    %400 = vector.shape_cast %399 : vector<1x128x128xbf16> to vector<128x128xbf16>
    %cst_358 = arith.constant dense<0.000000e+00> : vector<8x128xf32>
    %401 = tpu.matmul %398, %400, %cst_358 {dimension_numbers = #tpu.dot_dimension_numbers<[1], [0], [0], [1], [0, 0, 1, 1], [], []>} : vector<8x128xbf16>, vector<128x128xbf16>, vector<8x128xf32> -> vector<8x128xf32>
    %402 = arith.addf %394, %401 : vector<8x128xf32>
    %c3_359 = arith.constant 3 : index
    %c0_360 = arith.constant 0 : index
    %c0_361 = arith.constant 0 : index
    %403 = vector.load %arg9[%c3_359, %c0_360, %c0_361] : memref<16x8x32xbf16, #tpu.memory_space<vmem>>, vector<1x8x32xbf16>
    %404 = vector.shape_cast %403 : vector<1x8x32xbf16> to vector<8x32xbf16>
    %cst_362 = arith.constant dense<0.000000e+00> : vector<8x128xf32>
    %405 = tpu.matmul %404, %377, %cst_362 {dimension_numbers = #tpu.dot_dimension_numbers<[1], [0], [0], [1], [0, 0, 1, 1], [], []>} : vector<8x32xbf16>, vector<32x128xbf16>, vector<8x128xf32> -> vector<8x128xf32>
    %406 = arith.truncf %405 : vector<8x128xf32> to vector<8x128xbf16>
    %c3_363 = arith.constant 3 : index
    %c0_364 = arith.constant 0 : index
    %c0_365 = arith.constant 0 : index
    %407 = vector.load %arg10[%c3_363, %c0_364, %c0_365] : memref<16x128x128xbf16, #tpu.memory_space<vmem>>, vector<1x128x128xbf16>
    %408 = vector.shape_cast %407 : vector<1x128x128xbf16> to vector<128x128xbf16>
    %cst_366 = arith.constant dense<0.000000e+00> : vector<8x128xf32>
    %409 = tpu.matmul %406, %408, %cst_366 {dimension_numbers = #tpu.dot_dimension_numbers<[1], [0], [0], [1], [0, 0, 1, 1], [], []>} : vector<8x128xbf16>, vector<128x128xbf16>, vector<8x128xf32> -> vector<8x128xf32>
    %410 = arith.addf %402, %409 : vector<8x128xf32>
    %c4_367 = arith.constant 4 : index
    %c0_368 = arith.constant 0 : index
    %c0_369 = arith.constant 0 : index
    %411 = vector.load %arg9[%c4_367, %c0_368, %c0_369] : memref<16x8x32xbf16, #tpu.memory_space<vmem>>, vector<1x8x32xbf16>
    %412 = vector.shape_cast %411 : vector<1x8x32xbf16> to vector<8x32xbf16>
    %cst_370 = arith.constant dense<0.000000e+00> : vector<8x128xf32>
    %413 = tpu.matmul %412, %377, %cst_370 {dimension_numbers = #tpu.dot_dimension_numbers<[1], [0], [0], [1], [0, 0, 1, 1], [], []>} : vector<8x32xbf16>, vector<32x128xbf16>, vector<8x128xf32> -> vector<8x128xf32>
    %414 = arith.truncf %413 : vector<8x128xf32> to vector<8x128xbf16>
    %c4_371 = arith.constant 4 : index
    %c0_372 = arith.constant 0 : index
    %c0_373 = arith.constant 0 : index
    %415 = vector.load %arg10[%c4_371, %c0_372, %c0_373] : memref<16x128x128xbf16, #tpu.memory_space<vmem>>, vector<1x128x128xbf16>
    %416 = vector.shape_cast %415 : vector<1x128x128xbf16> to vector<128x128xbf16>
    %cst_374 = arith.constant dense<0.000000e+00> : vector<8x128xf32>
    %417 = tpu.matmul %414, %416, %cst_374 {dimension_numbers = #tpu.dot_dimension_numbers<[1], [0], [0], [1], [0, 0, 1, 1], [], []>} : vector<8x128xbf16>, vector<128x128xbf16>, vector<8x128xf32> -> vector<8x128xf32>
    %418 = arith.addf %410, %417 : vector<8x128xf32>
    %c5_375 = arith.constant 5 : index
    %c0_376 = arith.constant 0 : index
    %c0_377 = arith.constant 0 : index
    %419 = vector.load %arg9[%c5_375, %c0_376, %c0_377] : memref<16x8x32xbf16, #tpu.memory_space<vmem>>, vector<1x8x32xbf16>
    %420 = vector.shape_cast %419 : vector<1x8x32xbf16> to vector<8x32xbf16>
    %cst_378 = arith.constant dense<0.000000e+00> : vector<8x128xf32>
    %421 = tpu.matmul %420, %377, %cst_378 {dimension_numbers = #tpu.dot_dimension_numbers<[1], [0], [0], [1], [0, 0, 1, 1], [], []>} : vector<8x32xbf16>, vector<32x128xbf16>, vector<8x128xf32> -> vector<8x128xf32>
    %422 = arith.truncf %421 : vector<8x128xf32> to vector<8x128xbf16>
    %c5_379 = arith.constant 5 : index
    %c0_380 = arith.constant 0 : index
    %c0_381 = arith.constant 0 : index
    %423 = vector.load %arg10[%c5_379, %c0_380, %c0_381] : memref<16x128x128xbf16, #tpu.memory_space<vmem>>, vector<1x128x128xbf16>
    %424 = vector.shape_cast %423 : vector<1x128x128xbf16> to vector<128x128xbf16>
    %cst_382 = arith.constant dense<0.000000e+00> : vector<8x128xf32>
    %425 = tpu.matmul %422, %424, %cst_382 {dimension_numbers = #tpu.dot_dimension_numbers<[1], [0], [0], [1], [0, 0, 1, 1], [], []>} : vector<8x128xbf16>, vector<128x128xbf16>, vector<8x128xf32> -> vector<8x128xf32>
    %426 = arith.addf %418, %425 : vector<8x128xf32>
    %c6_383 = arith.constant 6 : index
    %c0_384 = arith.constant 0 : index
    %c0_385 = arith.constant 0 : index
    %427 = vector.load %arg9[%c6_383, %c0_384, %c0_385] : memref<16x8x32xbf16, #tpu.memory_space<vmem>>, vector<1x8x32xbf16>
    %428 = vector.shape_cast %427 : vector<1x8x32xbf16> to vector<8x32xbf16>
    %cst_386 = arith.constant dense<0.000000e+00> : vector<8x128xf32>
    %429 = tpu.matmul %428, %377, %cst_386 {dimension_numbers = #tpu.dot_dimension_numbers<[1], [0], [0], [1], [0, 0, 1, 1], [], []>} : vector<8x32xbf16>, vector<32x128xbf16>, vector<8x128xf32> -> vector<8x128xf32>
    %430 = arith.truncf %429 : vector<8x128xf32> to vector<8x128xbf16>
    %c6_387 = arith.constant 6 : index
    %c0_388 = arith.constant 0 : index
    %c0_389 = arith.constant 0 : index
    %431 = vector.load %arg10[%c6_387, %c0_388, %c0_389] : memref<16x128x128xbf16, #tpu.memory_space<vmem>>, vector<1x128x128xbf16>
    %432 = vector.shape_cast %431 : vector<1x128x128xbf16> to vector<128x128xbf16>
    %cst_390 = arith.constant dense<0.000000e+00> : vector<8x128xf32>
    %433 = tpu.matmul %430, %432, %cst_390 {dimension_numbers = #tpu.dot_dimension_numbers<[1], [0], [0], [1], [0, 0, 1, 1], [], []>} : vector<8x128xbf16>, vector<128x128xbf16>, vector<8x128xf32> -> vector<8x128xf32>
    %434 = arith.addf %426, %433 : vector<8x128xf32>
    %c7_391 = arith.constant 7 : index
    %c0_392 = arith.constant 0 : index
    %c0_393 = arith.constant 0 : index
    %435 = vector.load %arg9[%c7_391, %c0_392, %c0_393] : memref<16x8x32xbf16, #tpu.memory_space<vmem>>, vector<1x8x32xbf16>
    %436 = vector.shape_cast %435 : vector<1x8x32xbf16> to vector<8x32xbf16>
    %cst_394 = arith.constant dense<0.000000e+00> : vector<8x128xf32>
    %437 = tpu.matmul %436, %377, %cst_394 {dimension_numbers = #tpu.dot_dimension_numbers<[1], [0], [0], [1], [0, 0, 1, 1], [], []>} : vector<8x32xbf16>, vector<32x128xbf16>, vector<8x128xf32> -> vector<8x128xf32>
    %438 = arith.truncf %437 : vector<8x128xf32> to vector<8x128xbf16>
    %c7_395 = arith.constant 7 : index
    %c0_396 = arith.constant 0 : index
    %c0_397 = arith.constant 0 : index
    %439 = vector.load %arg10[%c7_395, %c0_396, %c0_397] : memref<16x128x128xbf16, #tpu.memory_space<vmem>>, vector<1x128x128xbf16>
    %440 = vector.shape_cast %439 : vector<1x128x128xbf16> to vector<128x128xbf16>
    %cst_398 = arith.constant dense<0.000000e+00> : vector<8x128xf32>
    %441 = tpu.matmul %438, %440, %cst_398 {dimension_numbers = #tpu.dot_dimension_numbers<[1], [0], [0], [1], [0, 0, 1, 1], [], []>} : vector<8x128xbf16>, vector<128x128xbf16>, vector<8x128xf32> -> vector<8x128xf32>
    %442 = arith.addf %434, %441 : vector<8x128xf32>
    %c8_399 = arith.constant 8 : index
    %c0_400 = arith.constant 0 : index
    %c0_401 = arith.constant 0 : index
    %443 = vector.load %arg9[%c8_399, %c0_400, %c0_401] : memref<16x8x32xbf16, #tpu.memory_space<vmem>>, vector<1x8x32xbf16>
    %444 = vector.shape_cast %443 : vector<1x8x32xbf16> to vector<8x32xbf16>
    %cst_402 = arith.constant dense<0.000000e+00> : vector<8x128xf32>
    %445 = tpu.matmul %444, %377, %cst_402 {dimension_numbers = #tpu.dot_dimension_numbers<[1], [0], [0], [1], [0, 0, 1, 1], [], []>} : vector<8x32xbf16>, vector<32x128xbf16>, vector<8x128xf32> -> vector<8x128xf32>
    %446 = arith.truncf %445 : vector<8x128xf32> to vector<8x128xbf16>
    %c8_403 = arith.constant 8 : index
    %c0_404 = arith.constant 0 : index
    %c0_405 = arith.constant 0 : index
    %447 = vector.load %arg10[%c8_403, %c0_404, %c0_405] : memref<16x128x128xbf16, #tpu.memory_space<vmem>>, vector<1x128x128xbf16>
    %448 = vector.shape_cast %447 : vector<1x128x128xbf16> to vector<128x128xbf16>
    %cst_406 = arith.constant dense<0.000000e+00> : vector<8x128xf32>
    %449 = tpu.matmul %446, %448, %cst_406 {dimension_numbers = #tpu.dot_dimension_numbers<[1], [0], [0], [1], [0, 0, 1, 1], [], []>} : vector<8x128xbf16>, vector<128x128xbf16>, vector<8x128xf32> -> vector<8x128xf32>
    %450 = arith.addf %442, %449 : vector<8x128xf32>
    %c9_407 = arith.constant 9 : index
    %c0_408 = arith.constant 0 : index
    %c0_409 = arith.constant 0 : index
    %451 = vector.load %arg9[%c9_407, %c0_408, %c0_409] : memref<16x8x32xbf16, #tpu.memory_space<vmem>>, vector<1x8x32xbf16>
    %452 = vector.shape_cast %451 : vector<1x8x32xbf16> to vector<8x32xbf16>
    %cst_410 = arith.constant dense<0.000000e+00> : vector<8x128xf32>
    %453 = tpu.matmul %452, %377, %cst_410 {dimension_numbers = #tpu.dot_dimension_numbers<[1], [0], [0], [1], [0, 0, 1, 1], [], []>} : vector<8x32xbf16>, vector<32x128xbf16>, vector<8x128xf32> -> vector<8x128xf32>
    %454 = arith.truncf %453 : vector<8x128xf32> to vector<8x128xbf16>
    %c9_411 = arith.constant 9 : index
    %c0_412 = arith.constant 0 : index
    %c0_413 = arith.constant 0 : index
    %455 = vector.load %arg10[%c9_411, %c0_412, %c0_413] : memref<16x128x128xbf16, #tpu.memory_space<vmem>>, vector<1x128x128xbf16>
    %456 = vector.shape_cast %455 : vector<1x128x128xbf16> to vector<128x128xbf16>
    %cst_414 = arith.constant dense<0.000000e+00> : vector<8x128xf32>
    %457 = tpu.matmul %454, %456, %cst_414 {dimension_numbers = #tpu.dot_dimension_numbers<[1], [0], [0], [1], [0, 0, 1, 1], [], []>} : vector<8x128xbf16>, vector<128x128xbf16>, vector<8x128xf32> -> vector<8x128xf32>
    %458 = arith.addf %450, %457 : vector<8x128xf32>
    %c10_415 = arith.constant 10 : index
    %c0_416 = arith.constant 0 : index
    %c0_417 = arith.constant 0 : index
    %459 = vector.load %arg9[%c10_415, %c0_416, %c0_417] : memref<16x8x32xbf16, #tpu.memory_space<vmem>>, vector<1x8x32xbf16>
    %460 = vector.shape_cast %459 : vector<1x8x32xbf16> to vector<8x32xbf16>
    %cst_418 = arith.constant dense<0.000000e+00> : vector<8x128xf32>
    %461 = tpu.matmul %460, %377, %cst_418 {dimension_numbers = #tpu.dot_dimension_numbers<[1], [0], [0], [1], [0, 0, 1, 1], [], []>} : vector<8x32xbf16>, vector<32x128xbf16>, vector<8x128xf32> -> vector<8x128xf32>
    %462 = arith.truncf %461 : vector<8x128xf32> to vector<8x128xbf16>
    %c10_419 = arith.constant 10 : index
    %c0_420 = arith.constant 0 : index
    %c0_421 = arith.constant 0 : index
    %463 = vector.load %arg10[%c10_419, %c0_420, %c0_421] : memref<16x128x128xbf16, #tpu.memory_space<vmem>>, vector<1x128x128xbf16>
    %464 = vector.shape_cast %463 : vector<1x128x128xbf16> to vector<128x128xbf16>
    %cst_422 = arith.constant dense<0.000000e+00> : vector<8x128xf32>
    %465 = tpu.matmul %462, %464, %cst_422 {dimension_numbers = #tpu.dot_dimension_numbers<[1], [0], [0], [1], [0, 0, 1, 1], [], []>} : vector<8x128xbf16>, vector<128x128xbf16>, vector<8x128xf32> -> vector<8x128xf32>
    %466 = arith.addf %458, %465 : vector<8x128xf32>
    %c11_423 = arith.constant 11 : index
    %c0_424 = arith.constant 0 : index
    %c0_425 = arith.constant 0 : index
    %467 = vector.load %arg9[%c11_423, %c0_424, %c0_425] : memref<16x8x32xbf16, #tpu.memory_space<vmem>>, vector<1x8x32xbf16>
    %468 = vector.shape_cast %467 : vector<1x8x32xbf16> to vector<8x32xbf16>
    %cst_426 = arith.constant dense<0.000000e+00> : vector<8x128xf32>
    %469 = tpu.matmul %468, %377, %cst_426 {dimension_numbers = #tpu.dot_dimension_numbers<[1], [0], [0], [1], [0, 0, 1, 1], [], []>} : vector<8x32xbf16>, vector<32x128xbf16>, vector<8x128xf32> -> vector<8x128xf32>
    %470 = arith.truncf %469 : vector<8x128xf32> to vector<8x128xbf16>
    %c11_427 = arith.constant 11 : index
    %c0_428 = arith.constant 0 : index
    %c0_429 = arith.constant 0 : index
    %471 = vector.load %arg10[%c11_427, %c0_428, %c0_429] : memref<16x128x128xbf16, #tpu.memory_space<vmem>>, vector<1x128x128xbf16>
    %472 = vector.shape_cast %471 : vector<1x128x128xbf16> to vector<128x128xbf16>
    %cst_430 = arith.constant dense<0.000000e+00> : vector<8x128xf32>
    %473 = tpu.matmul %470, %472, %cst_430 {dimension_numbers = #tpu.dot_dimension_numbers<[1], [0], [0], [1], [0, 0, 1, 1], [], []>} : vector<8x128xbf16>, vector<128x128xbf16>, vector<8x128xf32> -> vector<8x128xf32>
    %474 = arith.addf %466, %473 : vector<8x128xf32>
    %c12_431 = arith.constant 12 : index
    %c0_432 = arith.constant 0 : index
    %c0_433 = arith.constant 0 : index
    %475 = vector.load %arg9[%c12_431, %c0_432, %c0_433] : memref<16x8x32xbf16, #tpu.memory_space<vmem>>, vector<1x8x32xbf16>
    %476 = vector.shape_cast %475 : vector<1x8x32xbf16> to vector<8x32xbf16>
    %cst_434 = arith.constant dense<0.000000e+00> : vector<8x128xf32>
    %477 = tpu.matmul %476, %377, %cst_434 {dimension_numbers = #tpu.dot_dimension_numbers<[1], [0], [0], [1], [0, 0, 1, 1], [], []>} : vector<8x32xbf16>, vector<32x128xbf16>, vector<8x128xf32> -> vector<8x128xf32>
    %478 = arith.truncf %477 : vector<8x128xf32> to vector<8x128xbf16>
    %c12_435 = arith.constant 12 : index
    %c0_436 = arith.constant 0 : index
    %c0_437 = arith.constant 0 : index
    %479 = vector.load %arg10[%c12_435, %c0_436, %c0_437] : memref<16x128x128xbf16, #tpu.memory_space<vmem>>, vector<1x128x128xbf16>
    %480 = vector.shape_cast %479 : vector<1x128x128xbf16> to vector<128x128xbf16>
    %cst_438 = arith.constant dense<0.000000e+00> : vector<8x128xf32>
    %481 = tpu.matmul %478, %480, %cst_438 {dimension_numbers = #tpu.dot_dimension_numbers<[1], [0], [0], [1], [0, 0, 1, 1], [], []>} : vector<8x128xbf16>, vector<128x128xbf16>, vector<8x128xf32> -> vector<8x128xf32>
    %482 = arith.addf %474, %481 : vector<8x128xf32>
    %c13_439 = arith.constant 13 : index
    %c0_440 = arith.constant 0 : index
    %c0_441 = arith.constant 0 : index
    %483 = vector.load %arg9[%c13_439, %c0_440, %c0_441] : memref<16x8x32xbf16, #tpu.memory_space<vmem>>, vector<1x8x32xbf16>
    %484 = vector.shape_cast %483 : vector<1x8x32xbf16> to vector<8x32xbf16>
    %cst_442 = arith.constant dense<0.000000e+00> : vector<8x128xf32>
    %485 = tpu.matmul %484, %377, %cst_442 {dimension_numbers = #tpu.dot_dimension_numbers<[1], [0], [0], [1], [0, 0, 1, 1], [], []>} : vector<8x32xbf16>, vector<32x128xbf16>, vector<8x128xf32> -> vector<8x128xf32>
    %486 = arith.truncf %485 : vector<8x128xf32> to vector<8x128xbf16>
    %c13_443 = arith.constant 13 : index
    %c0_444 = arith.constant 0 : index
    %c0_445 = arith.constant 0 : index
    %487 = vector.load %arg10[%c13_443, %c0_444, %c0_445] : memref<16x128x128xbf16, #tpu.memory_space<vmem>>, vector<1x128x128xbf16>
    %488 = vector.shape_cast %487 : vector<1x128x128xbf16> to vector<128x128xbf16>
    %cst_446 = arith.constant dense<0.000000e+00> : vector<8x128xf32>
    %489 = tpu.matmul %486, %488, %cst_446 {dimension_numbers = #tpu.dot_dimension_numbers<[1], [0], [0], [1], [0, 0, 1, 1], [], []>} : vector<8x128xbf16>, vector<128x128xbf16>, vector<8x128xf32> -> vector<8x128xf32>
    %490 = arith.addf %482, %489 : vector<8x128xf32>
    %c14_447 = arith.constant 14 : index
    %c0_448 = arith.constant 0 : index
    %c0_449 = arith.constant 0 : index
    %491 = vector.load %arg9[%c14_447, %c0_448, %c0_449] : memref<16x8x32xbf16, #tpu.memory_space<vmem>>, vector<1x8x32xbf16>
    %492 = vector.shape_cast %491 : vector<1x8x32xbf16> to vector<8x32xbf16>
    %cst_450 = arith.constant dense<0.000000e+00> : vector<8x128xf32>
    %493 = tpu.matmul %492, %377, %cst_450 {dimension_numbers = #tpu.dot_dimension_numbers<[1], [0], [0], [1], [0, 0, 1, 1], [], []>} : vector<8x32xbf16>, vector<32x128xbf16>, vector<8x128xf32> -> vector<8x128xf32>
    %494 = arith.truncf %493 : vector<8x128xf32> to vector<8x128xbf16>
    %c14_451 = arith.constant 14 : index
    %c0_452 = arith.constant 0 : index
    %c0_453 = arith.constant 0 : index
    %495 = vector.load %arg10[%c14_451, %c0_452, %c0_453] : memref<16x128x128xbf16, #tpu.memory_space<vmem>>, vector<1x128x128xbf16>
    %496 = vector.shape_cast %495 : vector<1x128x128xbf16> to vector<128x128xbf16>
    %cst_454 = arith.constant dense<0.000000e+00> : vector<8x128xf32>
    %497 = tpu.matmul %494, %496, %cst_454 {dimension_numbers = #tpu.dot_dimension_numbers<[1], [0], [0], [1], [0, 0, 1, 1], [], []>} : vector<8x128xbf16>, vector<128x128xbf16>, vector<8x128xf32> -> vector<8x128xf32>
    %498 = arith.addf %490, %497 : vector<8x128xf32>
    %c15_455 = arith.constant 15 : index
    %c0_456 = arith.constant 0 : index
    %c0_457 = arith.constant 0 : index
    %499 = vector.load %arg9[%c15_455, %c0_456, %c0_457] : memref<16x8x32xbf16, #tpu.memory_space<vmem>>, vector<1x8x32xbf16>
    %500 = vector.shape_cast %499 : vector<1x8x32xbf16> to vector<8x32xbf16>
    %cst_458 = arith.constant dense<0.000000e+00> : vector<8x128xf32>
    %501 = tpu.matmul %500, %377, %cst_458 {dimension_numbers = #tpu.dot_dimension_numbers<[1], [0], [0], [1], [0, 0, 1, 1], [], []>} : vector<8x32xbf16>, vector<32x128xbf16>, vector<8x128xf32> -> vector<8x128xf32>
    %502 = arith.truncf %501 : vector<8x128xf32> to vector<8x128xbf16>
    %c15_459 = arith.constant 15 : index
    %c0_460 = arith.constant 0 : index
    %c0_461 = arith.constant 0 : index
    %503 = vector.load %arg10[%c15_459, %c0_460, %c0_461] : memref<16x128x128xbf16, #tpu.memory_space<vmem>>, vector<1x128x128xbf16>
    %504 = vector.shape_cast %503 : vector<1x128x128xbf16> to vector<128x128xbf16>
    %cst_462 = arith.constant dense<0.000000e+00> : vector<8x128xf32>
    %505 = tpu.matmul %502, %504, %cst_462 {dimension_numbers = #tpu.dot_dimension_numbers<[1], [0], [0], [1], [0, 0, 1, 1], [], []>} : vector<8x128xbf16>, vector<128x128xbf16>, vector<8x128xf32> -> vector<8x128xf32>
    %506 = arith.addf %498, %505 : vector<8x128xf32>
    %cst_463 = arith.constant dense<0.000000e+00> : vector<128xf32>
    %507 = vector.multi_reduction <add>, %506, %cst_463 [0] : vector<8x128xf32> to vector<128xf32>
    %508 = vector.shape_cast %507 : vector<128xf32> to vector<1x128xf32>
    %cst_464 = arith.constant 1.250000e-01 : f32
    %509 = vector.broadcast %cst_464 : f32 to vector<1x128xf32>
    %510 = arith.mulf %508, %509 : vector<1x128xf32>
    %511 = vector.broadcast %510 : vector<1x128xf32> to vector<8x128xf32>
    %512 = arith.subf %506, %511 : vector<8x128xf32>
    %513 = arith.mulf %512, %512 : vector<8x128xf32>
    %cst_465 = arith.constant dense<0.000000e+00> : vector<128xf32>
    %514 = vector.multi_reduction <add>, %513, %cst_465 [0] : vector<8x128xf32> to vector<128xf32>
    %515 = vector.shape_cast %514 : vector<128xf32> to vector<1x128xf32>
    %cst_466 = arith.constant 1.250000e-01 : f32
    %516 = vector.broadcast %cst_466 : f32 to vector<1x128xf32>
    %517 = arith.mulf %515, %516 : vector<1x128xf32>
    %c0_467 = arith.constant 0 : index
    %c0_468 = arith.constant 0 : index
    %518 = vector.load %arg11[%c0_467, %c0_468] : memref<1x128xf32, #tpu.memory_space<vmem>>, vector<1x128xf32>
    %519 = vector.broadcast %510 : vector<1x128xf32> to vector<8x128xf32>
    %520 = arith.subf %506, %519 : vector<8x128xf32>
    %521 = vector.broadcast %518 : vector<1x128xf32> to vector<8x128xf32>
    %522 = arith.mulf %521, %520 : vector<8x128xf32>
    %cst_469 = arith.constant 9.99999974E-6 : f32
    %523 = vector.broadcast %cst_469 : f32 to vector<1x128xf32>
    %524 = arith.addf %517, %523 : vector<1x128xf32>
    %525 = math.rsqrt %524 : vector<1x128xf32>
    %526 = vector.broadcast %525 : vector<1x128xf32> to vector<8x128xf32>
    %527 = arith.mulf %522, %526 : vector<8x128xf32>
    %c0_470 = arith.constant 0 : index
    %c0_471 = arith.constant 0 : index
    %528 = vector.load %arg12[%c0_470, %c0_471] : memref<1x128xf32, #tpu.memory_space<vmem>>, vector<1x128xf32>
    %529 = vector.broadcast %528 : vector<1x128xf32> to vector<8x128xf32>
    %530 = arith.addf %527, %529 : vector<8x128xf32>
    %cst_472 = arith.constant 2.000000e-01 : f32
    %531 = vector.broadcast %cst_472 : f32 to vector<8x128xf32>
    %532 = arith.mulf %531, %530 : vector<8x128xf32>
    %533 = arith.maximumf %530, %532 : vector<8x128xf32>
    %534 = arith.truncf %533 : vector<8x128xf32> to vector<8x128xbf16>
    %cst_473 = arith.constant 0.000000e+00 : f32
    %535 = vector.broadcast %cst_473 : f32 to vector<8x128xf32>
    %c0_474 = arith.constant 0 : index
    %c0_475 = arith.constant 0 : index
    %c0_476 = arith.constant 0 : index
    %536 = vector.load %arg13[%c0_474, %c0_475, %c0_476] : memref<4x8x8xbf16, #tpu.memory_space<vmem>>, vector<1x8x8xbf16>
    %537 = vector.shape_cast %536 : vector<1x8x8xbf16> to vector<8x8xbf16>
    %cst_477 = arith.constant dense<0.000000e+00> : vector<8x128xf32>
    %538 = tpu.matmul %537, %534, %cst_477 {dimension_numbers = #tpu.dot_dimension_numbers<[1], [0], [0], [1], [0, 0, 1, 1], [], []>} : vector<8x8xbf16>, vector<8x128xbf16>, vector<8x128xf32> -> vector<8x128xf32>
    %539 = arith.truncf %538 : vector<8x128xf32> to vector<8x128xbf16>
    %c0_478 = arith.constant 0 : index
    %c0_479 = arith.constant 0 : index
    %c0_480 = arith.constant 0 : index
    %540 = vector.load %arg14[%c0_478, %c0_479, %c0_480] : memref<4x128x128xbf16, #tpu.memory_space<vmem>>, vector<1x128x128xbf16>
    %541 = vector.shape_cast %540 : vector<1x128x128xbf16> to vector<128x128xbf16>
    %cst_481 = arith.constant dense<0.000000e+00> : vector<8x128xf32>
    %542 = tpu.matmul %539, %541, %cst_481 {dimension_numbers = #tpu.dot_dimension_numbers<[1], [0], [0], [1], [0, 0, 1, 1], [], []>} : vector<8x128xbf16>, vector<128x128xbf16>, vector<8x128xf32> -> vector<8x128xf32>
    %543 = arith.addf %535, %542 : vector<8x128xf32>
    %c1_482 = arith.constant 1 : index
    %c0_483 = arith.constant 0 : index
    %c0_484 = arith.constant 0 : index
    %544 = vector.load %arg13[%c1_482, %c0_483, %c0_484] : memref<4x8x8xbf16, #tpu.memory_space<vmem>>, vector<1x8x8xbf16>
    %545 = vector.shape_cast %544 : vector<1x8x8xbf16> to vector<8x8xbf16>
    %cst_485 = arith.constant dense<0.000000e+00> : vector<8x128xf32>
    %546 = tpu.matmul %545, %534, %cst_485 {dimension_numbers = #tpu.dot_dimension_numbers<[1], [0], [0], [1], [0, 0, 1, 1], [], []>} : vector<8x8xbf16>, vector<8x128xbf16>, vector<8x128xf32> -> vector<8x128xf32>
    %547 = arith.truncf %546 : vector<8x128xf32> to vector<8x128xbf16>
    %c1_486 = arith.constant 1 : index
    %c0_487 = arith.constant 0 : index
    %c0_488 = arith.constant 0 : index
    %548 = vector.load %arg14[%c1_486, %c0_487, %c0_488] : memref<4x128x128xbf16, #tpu.memory_space<vmem>>, vector<1x128x128xbf16>
    %549 = vector.shape_cast %548 : vector<1x128x128xbf16> to vector<128x128xbf16>
    %cst_489 = arith.constant dense<0.000000e+00> : vector<8x128xf32>
    %550 = tpu.matmul %547, %549, %cst_489 {dimension_numbers = #tpu.dot_dimension_numbers<[1], [0], [0], [1], [0, 0, 1, 1], [], []>} : vector<8x128xbf16>, vector<128x128xbf16>, vector<8x128xf32> -> vector<8x128xf32>
    %551 = arith.addf %543, %550 : vector<8x128xf32>
    %c2_490 = arith.constant 2 : index
    %c0_491 = arith.constant 0 : index
    %c0_492 = arith.constant 0 : index
    %552 = vector.load %arg13[%c2_490, %c0_491, %c0_492] : memref<4x8x8xbf16, #tpu.memory_space<vmem>>, vector<1x8x8xbf16>
    %553 = vector.shape_cast %552 : vector<1x8x8xbf16> to vector<8x8xbf16>
    %cst_493 = arith.constant dense<0.000000e+00> : vector<8x128xf32>
    %554 = tpu.matmul %553, %534, %cst_493 {dimension_numbers = #tpu.dot_dimension_numbers<[1], [0], [0], [1], [0, 0, 1, 1], [], []>} : vector<8x8xbf16>, vector<8x128xbf16>, vector<8x128xf32> -> vector<8x128xf32>
    %555 = arith.truncf %554 : vector<8x128xf32> to vector<8x128xbf16>
    %c2_494 = arith.constant 2 : index
    %c0_495 = arith.constant 0 : index
    %c0_496 = arith.constant 0 : index
    %556 = vector.load %arg14[%c2_494, %c0_495, %c0_496] : memref<4x128x128xbf16, #tpu.memory_space<vmem>>, vector<1x128x128xbf16>
    %557 = vector.shape_cast %556 : vector<1x128x128xbf16> to vector<128x128xbf16>
    %cst_497 = arith.constant dense<0.000000e+00> : vector<8x128xf32>
    %558 = tpu.matmul %555, %557, %cst_497 {dimension_numbers = #tpu.dot_dimension_numbers<[1], [0], [0], [1], [0, 0, 1, 1], [], []>} : vector<8x128xbf16>, vector<128x128xbf16>, vector<8x128xf32> -> vector<8x128xf32>
    %559 = arith.addf %551, %558 : vector<8x128xf32>
    %c3_498 = arith.constant 3 : index
    %c0_499 = arith.constant 0 : index
    %c0_500 = arith.constant 0 : index
    %560 = vector.load %arg13[%c3_498, %c0_499, %c0_500] : memref<4x8x8xbf16, #tpu.memory_space<vmem>>, vector<1x8x8xbf16>
    %561 = vector.shape_cast %560 : vector<1x8x8xbf16> to vector<8x8xbf16>
    %cst_501 = arith.constant dense<0.000000e+00> : vector<8x128xf32>
    %562 = tpu.matmul %561, %534, %cst_501 {dimension_numbers = #tpu.dot_dimension_numbers<[1], [0], [0], [1], [0, 0, 1, 1], [], []>} : vector<8x8xbf16>, vector<8x128xbf16>, vector<8x128xf32> -> vector<8x128xf32>
    %563 = arith.truncf %562 : vector<8x128xf32> to vector<8x128xbf16>
    %c3_502 = arith.constant 3 : index
    %c0_503 = arith.constant 0 : index
    %c0_504 = arith.constant 0 : index
    %564 = vector.load %arg14[%c3_502, %c0_503, %c0_504] : memref<4x128x128xbf16, #tpu.memory_space<vmem>>, vector<1x128x128xbf16>
    %565 = vector.shape_cast %564 : vector<1x128x128xbf16> to vector<128x128xbf16>
    %cst_505 = arith.constant dense<0.000000e+00> : vector<8x128xf32>
    %566 = tpu.matmul %563, %565, %cst_505 {dimension_numbers = #tpu.dot_dimension_numbers<[1], [0], [0], [1], [0, 0, 1, 1], [], []>} : vector<8x128xbf16>, vector<128x128xbf16>, vector<8x128xf32> -> vector<8x128xf32>
    %567 = arith.addf %559, %566 : vector<8x128xf32>
    %cst_506 = arith.constant dense<0.000000e+00> : vector<128xf32>
    %568 = vector.multi_reduction <add>, %567, %cst_506 [0] : vector<8x128xf32> to vector<128xf32>
    %569 = vector.shape_cast %568 : vector<128xf32> to vector<1x128xf32>
    %cst_507 = arith.constant 5.000000e-01 : f32
    %570 = vector.broadcast %cst_507 : f32 to vector<1x128xf32>
    %571 = arith.mulf %569, %570 : vector<1x128xf32>
    %572 = tpu.iota {dimensions = array<i32: 0>} : vector<8x128xi32>
    %c2_i32 = arith.constant 2 : i32
    %573 = vector.broadcast %c2_i32 : i32 to vector<8x128xi32>
    %574 = arith.cmpi slt, %572, %573 : vector<8x128xi32>
    %575 = vector.broadcast %571 : vector<1x128xf32> to vector<8x128xf32>
    %576 = arith.subf %567, %575 : vector<8x128xf32>
    %cst_508 = arith.constant 0.000000e+00 : f32
    %577 = vector.broadcast %cst_508 : f32 to vector<8x128xf32>
    %578 = arith.select %574, %576, %577 : vector<8x128xi1>, vector<8x128xf32>
    %579 = arith.mulf %578, %578 : vector<8x128xf32>
    %cst_509 = arith.constant dense<0.000000e+00> : vector<128xf32>
    %580 = vector.multi_reduction <add>, %579, %cst_509 [0] : vector<8x128xf32> to vector<128xf32>
    %581 = vector.shape_cast %580 : vector<128xf32> to vector<1x128xf32>
    %cst_510 = arith.constant 5.000000e-01 : f32
    %582 = vector.broadcast %cst_510 : f32 to vector<1x128xf32>
    %583 = arith.mulf %581, %582 : vector<1x128xf32>
    %c0_511 = arith.constant 0 : index
    %c0_512 = arith.constant 0 : index
    %584 = vector.load %arg15[%c0_511, %c0_512] : memref<1x128xf32, #tpu.memory_space<vmem>>, vector<1x128xf32>
    %585 = vector.broadcast %571 : vector<1x128xf32> to vector<8x128xf32>
    %586 = arith.subf %567, %585 : vector<8x128xf32>
    %587 = vector.broadcast %584 : vector<1x128xf32> to vector<8x128xf32>
    %588 = arith.mulf %587, %586 : vector<8x128xf32>
    %cst_513 = arith.constant 9.99999974E-6 : f32
    %589 = vector.broadcast %cst_513 : f32 to vector<1x128xf32>
    %590 = arith.addf %583, %589 : vector<1x128xf32>
    %591 = math.rsqrt %590 : vector<1x128xf32>
    %592 = vector.broadcast %591 : vector<1x128xf32> to vector<8x128xf32>
    %593 = arith.mulf %588, %592 : vector<8x128xf32>
    %c0_514 = arith.constant 0 : index
    %c0_515 = arith.constant 0 : index
    %594 = vector.load %arg16[%c0_514, %c0_515] : memref<1x128xf32, #tpu.memory_space<vmem>>, vector<1x128xf32>
    %595 = vector.broadcast %594 : vector<1x128xf32> to vector<8x128xf32>
    %596 = arith.addf %593, %595 : vector<8x128xf32>
    %cst_516 = arith.constant 2.000000e-01 : f32
    %597 = vector.broadcast %cst_516 : f32 to vector<8x128xf32>
    %598 = arith.mulf %597, %596 : vector<8x128xf32>
    %599 = arith.maximumf %596, %598 : vector<8x128xf32>
    %600 = arith.truncf %599 : vector<8x128xf32> to vector<8x128xbf16>
    %c0_517 = arith.constant 0 : index
    %c0_518 = arith.constant 0 : index
    %601 = vector.load %arg17[%c0_517, %c0_518] : memref<128x128xbf16, #tpu.memory_space<vmem>>, vector<128x128xbf16>
    %cst_519 = arith.constant dense<0.000000e+00> : vector<8x128xf32>
    %602 = tpu.matmul %600, %601, %cst_519 {dimension_numbers = #tpu.dot_dimension_numbers<[1], [0], [0], [1], [0, 0, 1, 1], [], []>} : vector<8x128xbf16>, vector<128x128xbf16>, vector<8x128xf32> -> vector<8x128xf32>
    %c0_520 = arith.constant 0 : index
    %c0_521 = arith.constant 0 : index
    %603 = vector.load %arg18[%c0_520, %c0_521] : memref<8x128xf32, #tpu.memory_space<vmem>>, vector<8x128xf32>
    tpu.vector_store %arg18[%c0_520, %c0_521], %602 {strides = array<i32>} : memref<8x128xf32, #tpu.memory_space<vmem>>, vector<8x128xf32>,
    return
  }
}

</mosaic_0001>

<bundles_post_ra>
// kernel: forward.1
= control target key start
LH: loop header
LB: loop body
LE: loop exit
PB: predicated region body
PF: predicated region fallthrough
CT: control target
= control target key end

     0   :  { %vm6713_vm6 = vcmask 261120   ;;  %vm8323_vm10 = vcmask 1043456   ;;  %vm8319_vm11 = vcmask 64512   ;;  %s15308_s1 = inlined_call_operand.vmem [shape: bf16[128,128], index: 1, kind: input, shape index: {}]   ;;  %s15309_s0 = inlined_call_operand.vmem [shape: bf16[1152,128], index: 0, kind: input, shape index: {}]   ;;  %s15310_s2 = inlined_call_operand.vmem [shape: bf16[16,128,128], index: 2, kind: input, shape index: {}]   ;;  %s15311_s3 = inlined_call_operand.vmem [shape: f32[1,128], index: 3, kind: input, shape index: {}]   ;;  %s15312_s4 = inlined_call_operand.vmem [shape: f32[1,128], index: 4, kind: input, shape index: {}, may-alias: {4,8,12,16}]   ;;  %s15313_s6 = inlined_call_operand.vmem [shape: bf16[16,128,128], index: 6, kind: input, shape index: {}]   ;;  %s15314_s5 = inlined_call_operand.vmem [shape: bf16[16,32,128], index: 5, kind: input, shape index: {}]   ;;  %s15315_s7 = inlined_call_operand.vmem [shape: f32[1,128], index: 7, kind: input, shape index: {}]   ;;  %s15316_s8 = inlined_call_operand.vmem [shape: f32[1,128], index: 8, kind: input, shape index: {}, may-alias: {4,8,12,16}]   ;;  %s15317_s10 = inlined_call_operand.vmem [shape: bf16[16,128,128], index: 10, kind: input, shape index: {}]   ;;  %s15318_s9 = inlined_call_operand.vmem [shape: bf16[16,8,32], index: 9, kind: input, shape index: {}]   ;;  %s15319_s11 = inlined_call_operand.vmem [shape: f32[1,128], index: 11, kind: input, shape index: {}]   ;;  %s15320_s12 = inlined_call_operand.vmem [shape: f32[1,128], index: 12, kind: input, shape index: {}, may-alias: {4,8,12,16}]   ;;  %s15321_s13 = inlined_call_operand.vmem [shape: bf16[4,8,8], index: 13, kind: input, shape index: {}]   ;;  %s15322_s14 = inlined_call_operand.vmem [shape: bf16[4,128,128], index: 14, kind: input, shape index: {}]   ;;  %s15323_s15 = inlined_call_operand.vmem [shape: f32[1,128], index: 15, kind: input, shape index: {}]   ;;  %s15324_s16 = inlined_call_operand.vmem [shape: f32[1,128], index: 16, kind: input, shape index: {}, may-alias: {4,8,12,16}]   ;;  %s15325_s17 = inlined_call_operand.vmem [shape: bf16[128,128], index: 17, kind: input, shape index: {}]   ;;  %s15326_s18 = inlined_call_operand.vmem [shape: f32[8,128], index: 18, kind: output, shape index: {}]  }
   0x1   :  { %15330 = sst [smem:[#allocation3_spill]] %s15308_s1 }
   0x2   :  { %15331 = sst [smem:[#allocation4_spill]] %s15309_s0 }
   0x3   :  { %15332 = sst [smem:[#allocation5_spill]] %s15310_s2 }
   0x4   :  { %s15333_s29 = sld [smem:[#allocation3_spill]] }
   0x5   :  { %s15334_s23 = sld [smem:[#allocation4_spill]] }
   0x6   :  { %s15335_s27 = sld [smem:[#allocation5_spill]] }
   0xa   :  { %v12088_v0 = vld [vmem:[%s15333_s29 + $0x38] sm:$0xff]  ;;  %v12087_v4 = vld [vmem:[%s15333_s29 + $0x30] sm:$0xff]  ;;  %v12086_v8 = vld [vmem:[%s15333_s29 + $0x28] sm:$0xff] }
   0xb   :  { %v12105_v1 = vld [vmem:[%s15333_s29 + $0x38] sm:$0xff]  ;;  %196 = vmatpush.bf16.msra.mxu0 %v12088_v0  ;;  %v12104_v5 = vld [vmem:[%s15333_s29 + $0x30] sm:$0xff]  ;;  %v12103_v9 = vld [vmem:[%s15333_s29 + $0x28] sm:$0xff] }
   0xc   :  { %v12122_v2 = vld [vmem:[%s15333_s29 + $0x38] sm:$0xff]  ;;  %440 = vmatpush.bf16.msra.mxu1 %v12105_v1  ;;  %v12121_v6 = vld [vmem:[%s15333_s29 + $0x30] sm:$0xff]  ;;  %v12120_v10 = vld [vmem:[%s15333_s29 + $0x28] sm:$0xff] }
   0xd   :  { %v12139_v3 = vld [vmem:[%s15333_s29 + $0x38] sm:$0xff]  ;;  %685 = vmatpush.bf16.msra.mxu2 %v12122_v2  ;;  %v12138_v7 = vld [vmem:[%s15333_s29 + $0x30] sm:$0xff]  ;;  %v12137_v11 = vld [vmem:[%s15333_s29 + $0x28] sm:$0xff] }
   0xe   :  { %930 = vmatpush.bf16.msra.mxu3 %v12139_v3  ;;  %v12085_v12 = vld [vmem:[%s15333_s29 + $0x20] sm:$0xff]  ;;  %v12084_v16 = vld [vmem:[%s15333_s29 + $0x18] sm:$0xff]  ;;  %v12083_v20 = vld [vmem:[%s15333_s29 + $0x10] sm:$0xff] }
   0xf   :  { %197 = vmatpush.bf16.msra.mxu0 %v12087_v4  ;;  %v12102_v13 = vld [vmem:[%s15333_s29 + $0x20] sm:$0xff]  ;;  %v12101_v17 = vld [vmem:[%s15333_s29 + $0x18] sm:$0xff]  ;;  %v12100_v21 = vld [vmem:[%s15333_s29 + $0x10] sm:$0xff] }
  0x10   :  { %441 = vmatpush.bf16.msra.mxu1 %v12104_v5  ;;  %v12119_v14 = vld [vmem:[%s15333_s29 + $0x20] sm:$0xff]  ;;  %v12118_v18 = vld [vmem:[%s15333_s29 + $0x18] sm:$0xff]  ;;  %v12117_v22 = vld [vmem:[%s15333_s29 + $0x10] sm:$0xff] }
  0x11   :  { %686 = vmatpush.bf16.msra.mxu2 %v12121_v6  ;;  %v12136_v15 = vld [vmem:[%s15333_s29 + $0x20] sm:$0xff]  ;;  %v12135_v19 = vld [vmem:[%s15333_s29 + $0x18] sm:$0xff]  ;;  %v12134_v23 = vld [vmem:[%s15333_s29 + $0x10] sm:$0xff] }
  0x12   :  { %931 = vmatpush.bf16.msra.mxu3 %v12138_v7  ;;  %v12082_v24 = vld [vmem:[%s15333_s29 + $0x8] sm:$0xff]  ;;  %v12081_v28 = vld [vmem:[%s15333_s29] sm:$0xff]  ;;  %v12106_v34 = vld [vmem:[%s15334_s23 + $0x90] sm:$0xff] }
  0x13   :  { %198 = vmatpush.bf16.msra.mxu0 %v12086_v8  ;;  %v12099_v25 = vld [vmem:[%s15333_s29 + $0x8] sm:$0xff]  ;;  %v12098_v29 = vld [vmem:[%s15333_s29] sm:$0xff]  ;;  %v12123_v35 = vld [vmem:[%s15334_s23 + $0xd8] sm:$0xff] }
  0x14   :  { %442 = vmatpush.bf16.msra.mxu1 %v12103_v9  ;;  %v12116_v26 = vld [vmem:[%s15333_s29 + $0x8] sm:$0xff]  ;;  %v12115_v30 = vld [vmem:[%s15333_s29] sm:$0xff]  ;;  %v12090_v37 = vld [vmem:[%s15334_s23 + $0x50] sm:$0xff] }
  0x15   :  { %687 = vmatpush.bf16.msra.mxu2 %v12120_v10  ;;  %v12133_v27 = vld [vmem:[%s15333_s29 + $0x8] sm:$0xff]  ;;  %v12132_v31 = vld [vmem:[%s15333_s29] sm:$0xff]  ;;  %v12107_v38 = vld [vmem:[%s15334_s23 + $0x98] sm:$0xff] }
  0x16   :  { %932 = vmatpush.bf16.msra.mxu3 %v12137_v11  ;;  %v12072_v32 = vld [vmem:[%s15334_s23] sm:$0xff]  ;;  %v12089_v33 = vld [vmem:[%s15334_s23 + $0x48] sm:$0xff]  ;;  %v12074_v40 = vld [vmem:[%s15334_s23 + $0x10] sm:$0xff] }
  0x17   :  { %199 = vmatpush.bf16.msra.mxu0 %v12085_v12  ;;  %v12073_v36 = vld [vmem:[%s15334_s23 + $0x8] sm:$0xff]  ;;  %v12124_v39 = vld [vmem:[%s15334_s23 + $0xe0] sm:$0xff]  ;;  %v12091_v41 = vld [vmem:[%s15334_s23 + $0x58] sm:$0xff] }
  0x18   :  { %443 = vmatpush.bf16.msra.mxu1 %v12102_v13  ;;  %v12108_v42 = vld [vmem:[%s15334_s23 + $0xa0] sm:$0xff]  ;;  %v12125_v43 = vld [vmem:[%s15334_s23 + $0xe8] sm:$0xff]  ;;  %v12075_v44 = vld [vmem:[%s15334_s23 + $0x18] sm:$0xff] }
  0x19   :  { %688 = vmatpush.bf16.msra.mxu2 %v12119_v14  ;;  %v12092_v45 = vld [vmem:[%s15334_s23 + $0x60] sm:$0xff]  ;;  %v12109_v46 = vld [vmem:[%s15334_s23 + $0xa8] sm:$0xff]  ;;  %v12126_v47 = vld [vmem:[%s15334_s23 + $0xf0] sm:$0xff] }
  0x1a   :  { %933 = vmatpush.bf16.msra.mxu3 %v12136_v15  ;;  %v12076_v48 = vld [vmem:[%s15334_s23 + $0x20] sm:$0xff]  ;;  %v12093_v49 = vld [vmem:[%s15334_s23 + $0x68] sm:$0xff]  ;;  %v12110_v50 = vld [vmem:[%s15334_s23 + $0xb0] sm:$0xff] }
  0x1b   :  { %200 = vmatpush.bf16.msra.mxu0 %v12084_v16  ;;  %v12127_v51 = vld [vmem:[%s15334_s23 + $0xf8] sm:$0xff]  ;;  %v12077_v56 = vld [vmem:[%s15334_s23 + $0x28] sm:$0xff]  ;;  %v12094_v57 = vld [vmem:[%s15334_s23 + $0x70] sm:$0xff] }
  0x1c   :  { %444 = vmatpush.bf16.msra.mxu1 %v12101_v17  ;;  %v12190_v52 = vld [vmem:[%s15333_s29 + $0x38] sm:$0xff]  ;;  %v12128_v59 = vld [vmem:[%s15334_s23 + $0x100] sm:$0xff]  ;;  %v12189_v60 = vld [vmem:[%s15333_s29 + $0x30] sm:$0xff] }
  0x1d   :  { %689 = vmatpush.bf16.msra.mxu2 %v12118_v18  ;;  %v12156_v53 = vld [vmem:[%s15333_s29 + $0x38] sm:$0xff]  ;;  %v12155_v61 = vld [vmem:[%s15333_s29 + $0x30] sm:$0xff]  ;;  %v12154_v0 = vld [vmem:[%s15333_s29 + $0x28] sm:$0xff] }
  0x1e   :  { %934 = vmatpush.bf16.msra.mxu3 %v12135_v19  ;;  %v12207_v54 = vld [vmem:[%s15333_s29 + $0x38] sm:$0xff]  ;;  %v12172_v62 = vld [vmem:[%s15333_s29 + $0x30] sm:$0xff]  ;;  %v12188_v1 = vld [vmem:[%s15333_s29 + $0x28] sm:$0xff] }
  0x1f   :  { %201 = vmatpush.bf16.msra.mxu0 %v12083_v20  ;;  %v12173_v55 = vld [vmem:[%s15333_s29 + $0x38] sm:$0xff]  ;;  %v12206_v63 = vld [vmem:[%s15333_s29 + $0x30] sm:$0xff]  ;;  %v12171_v2 = vld [vmem:[%s15333_s29 + $0x28] sm:$0xff] }
  0x20   :  { %445 = vmatpush.bf16.msra.mxu1 %v12100_v21  ;;  %v12111_v58 = vld [vmem:[%s15334_s23 + $0xb8] sm:$0xff]  ;;  %v12205_v3 = vld [vmem:[%s15333_s29 + $0x28] sm:$0xff]  ;;  %v12078_v4 = vld [vmem:[%s15334_s23 + $0x30] sm:$0xff] }
  0x21   :  { %690 = vmatpush.bf16.msra.mxu2 %v12117_v22  ;;  %v12095_v5 = vld [vmem:[%s15334_s23 + $0x78] sm:$0xff]  ;;  %v12153_v6 = vld [vmem:[%s15333_s29 + $0x20] sm:$0xff]  ;;  %v12129_v10 = vld [vmem:[%s15334_s23 + $0x108] sm:$0xff] }
  0x22   :  { %935 = vmatpush.bf16.msra.mxu3 %v12134_v23  ;;  %v12170_v7 = vld [vmem:[%s15333_s29 + $0x20] sm:$0xff]  ;;  %v12152_v12 = vld [vmem:[%s15333_s29 + $0x18] sm:$0xff]  ;;  %v12151_v16 = vld [vmem:[%s15333_s29 + $0x10] sm:$0xff] }
  0x23   :  { %202 = vmatpush.bf16.msra.mxu0 %v12082_v24  ;;  %v12187_v8 = vld [vmem:[%s15333_s29 + $0x20] sm:$0xff]  ;;  %v12169_v13 = vld [vmem:[%s15333_s29 + $0x18] sm:$0xff]  ;;  %v12168_v17 = vld [vmem:[%s15333_s29 + $0x10] sm:$0xff] }
  0x24   :  { %446 = vmatpush.bf16.msra.mxu1 %v12099_v25  ;;  %v12112_v9 = vld [vmem:[%s15334_s23 + $0xc0] sm:$0xff]  ;;  %v12186_v14 = vld [vmem:[%s15333_s29 + $0x18] sm:$0xff]  ;;  %v12185_v18 = vld [vmem:[%s15333_s29 + $0x10] sm:$0xff] }
  0x25   :  { %691 = vmatpush.bf16.msra.mxu2 %v12116_v26  ;;  %v12204_v11 = vld [vmem:[%s15333_s29 + $0x20] sm:$0xff]  ;;  %v12203_v15 = vld [vmem:[%s15333_s29 + $0x18] sm:$0xff]  ;;  %v12202_v19 = vld [vmem:[%s15333_s29 + $0x10] sm:$0xff] }
  0x26   :  { %936 = vmatpush.bf16.msra.mxu3 %v12133_v27  ;;  %v12150_v20 = vld [vmem:[%s15333_s29 + $0x8] sm:$0xff]  ;;  %v12079_v24 = vld [vmem:[%s15334_s23 + $0x38] sm:$0xff]  ;;  %v12096_v25 = vld [vmem:[%s15334_s23 + $0x80] sm:$0xff] }
  0x27   :  { %203 = vmatpush.bf16.msra.mxu0 %v12081_v28  ;;  %v12167_v21 = vld [vmem:[%s15333_s29 + $0x8] sm:$0xff]  ;;  %v12130_v27 = vld [vmem:[%s15334_s23 + $0x110] sm:$0xff]  ;;  %v12149_v28 = vld [vmem:[%s15333_s29] sm:$0xff] }
  0x28   :  { %447 = vmatpush.bf16.msra.mxu1 %v12098_v29  ;;  %v12184_v22 = vld [vmem:[%s15333_s29 + $0x8] sm:$0xff]  ;;  %v12166_v29 = vld [vmem:[%s15333_s29] sm:$0xff] }
  0x29   :  { %692 = vmatpush.bf16.msra.mxu2 %v12115_v30  ;;  %v12201_v23 = vld [vmem:[%s15333_s29 + $0x8] sm:$0xff]  ;;  %v12183_v30 = vld [vmem:[%s15333_s29] sm:$0xff] }
  0x2a   :  { %937 = vmatpush.bf16.msra.mxu3 %v12132_v31  ;;  %204 = vmatmul.bf16.vlgmr.msra.gmra.mxu0 %v12072_v32  ;;  %v12113_v26 = vld [vmem:[%s15334_s23 + $0xc8] sm:$0xff]  ;;  %v12200_v31 = vld [vmem:[%s15333_s29] sm:$0xff] }
  0x2b   :  { %448 = vmatmul.bf16.vlgmr.msra.gmra.mxu1 %v12089_v33  ;;  %1175 = vmatpush.bf16.msrb.mxu0 %v12156_v53  ;;  %v12080_v32 = vld [vmem:[%s15334_s23 + $0x40] sm:$0xff]  ;;  %v12097_v33 = vld [vmem:[%s15334_s23 + $0x88] sm:$0xff] }
  0x2c   :  { %693 = vmatmul.bf16.vlgmr.msra.gmra.mxu2 %v12106_v34  ;;  %1420 = vmatpush.bf16.msrb.mxu1 %v12173_v55 }
  0x2d   :  { %938 = vmatmul.bf16.vlgmr.msra.gmra.mxu3 %v12123_v35  ;;  %1665 = vmatpush.bf16.msrb.mxu2 %v12190_v52 }
  0x2e   :  { %1910 = vmatpush.bf16.msrb.mxu3 %v12207_v54 }
  0x2f   :  { %1176 = vmatpush.bf16.msrb.mxu0 %v12155_v61 }
  0x30   :  { %1421 = vmatpush.bf16.msrb.mxu1 %v12172_v62  ;;  %v12174_v62 = vld [vmem:[%s15334_s23 + $0x1b0] sm:$0xff] }
  0x31   :  { %1666 = vmatpush.bf16.msrb.mxu2 %v12189_v60 }
  0x32   :  { %1911 = vmatpush.bf16.msrb.mxu3 %v12206_v63  ;;  %v12191_v63 = vld [vmem:[%s15334_s23 + $0x1f8] sm:$0xff] }
  0x33   :  { %1177 = vmatpush.bf16.msrb.mxu0 %v12154_v0 }
  0x34   :  { %1422 = vmatpush.bf16.msrb.mxu1 %v12171_v2 }
  0x35   :  { %1667 = vmatpush.bf16.msrb.mxu2 %v12188_v1 }
  0x36   :  { %1912 = vmatpush.bf16.msrb.mxu3 %v12205_v3 }
  0x37   :  { %1178 = vmatpush.bf16.msrb.mxu0 %v12153_v6 }
  0x38   :  { %1423 = vmatpush.bf16.msrb.mxu1 %v12170_v7 }
  0x39   :  { %1668 = vmatpush.bf16.msrb.mxu2 %v12187_v8 }
  0x3a   :  { %209 = vmatmul.bf16.gmra.mxu0 %v12073_v36  ;;  %1913 = vmatpush.bf16.msrb.mxu3 %v12204_v11  ;;  %v12114_v36 = vld [vmem:[%s15334_s23 + $0xd0] sm:$0xff] }
  0x3b   :  { %453 = vmatmul.bf16.gmra.mxu1 %v12090_v37  ;;  %1179 = vmatpush.bf16.msrb.mxu0 %v12152_v12  ;;  %v12131_v37 = vld [vmem:[%s15334_s23 + $0x118] sm:$0xff] }
  0x3c   :  { %698 = vmatmul.bf16.gmra.mxu2 %v12107_v38  ;;  %1424 = vmatpush.bf16.msrb.mxu1 %v12169_v13 }
  0x3d   :  { %943 = vmatmul.bf16.gmra.mxu3 %v12124_v39  ;;  %1669 = vmatpush.bf16.msrb.mxu2 %v12186_v14 }
  0x3e   :  { %1914 = vmatpush.bf16.msrb.mxu3 %v12203_v15 }
  0x3f   :  { %1180 = vmatpush.bf16.msrb.mxu0 %v12151_v16 }
  0x40   :  { %1425 = vmatpush.bf16.msrb.mxu1 %v12168_v17 }
  0x41   :  { %1670 = vmatpush.bf16.msrb.mxu2 %v12185_v18 }
  0x42   :  { %1915 = vmatpush.bf16.msrb.mxu3 %v12202_v19 }
  0x43   :  { %1181 = vmatpush.bf16.msrb.mxu0 %v12150_v20  ;;  %v12141_v20 = vld [vmem:[%s15334_s23 + $0x128] sm:$0xff] }
  0x44   :  { %1426 = vmatpush.bf16.msrb.mxu1 %v12167_v21  ;;  %v12158_v21 = vld [vmem:[%s15334_s23 + $0x170] sm:$0xff] }
  0x45   :  { %1671 = vmatpush.bf16.msrb.mxu2 %v12184_v22 }
  0x46   :  { %1916 = vmatpush.bf16.msrb.mxu3 %v12201_v23 }
  0x47   :  { %1182 = vmatpush.bf16.msrb.mxu0 %v12149_v28 }
  0x48   :  { %1427 = vmatpush.bf16.msrb.mxu1 %v12166_v29 }
  0x49   :  { %1672 = vmatpush.bf16.msrb.mxu2 %v12183_v30 }
  0x4a   :  { %214 = vmatmul.bf16.gmra.mxu0 %v12074_v40  ;;  %1917 = vmatpush.bf16.msrb.mxu3 %v12200_v31 }
  0x4b   :  { %458 = vmatmul.bf16.gmra.mxu1 %v12091_v41 }
  0x4c   :  { %703 = vmatmul.bf16.gmra.mxu2 %v12108_v42 }
  0x4d   :  { %948 = vmatmul.bf16.gmra.mxu3 %v12125_v43 }
  0x5a   :  { %219 = vmatmul.bf16.gmra.mxu0 %v12075_v44 }
  0x5b   :  { %463 = vmatmul.bf16.gmra.mxu1 %v12092_v45 }
  0x5c   :  { %708 = vmatmul.bf16.gmra.mxu2 %v12109_v46 }
  0x5d   :  { %953 = vmatmul.bf16.gmra.mxu3 %v12126_v47 }
  0x6a   :  { %224 = vmatmul.bf16.gmra.mxu0 %v12076_v48 }
  0x6b   :  { %468 = vmatmul.bf16.gmra.mxu1 %v12093_v49 }
  0x6c   :  { %713 = vmatmul.bf16.gmra.mxu2 %v12110_v50 }
  0x6d   :  { %958 = vmatmul.bf16.gmra.mxu3 %v12127_v51 }
  0x7a   :  { %229 = vmatmul.bf16.gmra.mxu0 %v12077_v56  ;;  %v12140_v56 = vld [vmem:[%s15334_s23 + $0x120] sm:$0xff] }
  0x7b   :  { %473 = vmatmul.bf16.gmra.mxu1 %v12094_v57  ;;  %v12157_v57 = vld [vmem:[%s15334_s23 + $0x168] sm:$0xff] }
  0x7c   :  { %718 = vmatmul.bf16.gmra.mxu2 %v12111_v58 }
  0x7d   :  { %963 = vmatmul.bf16.gmra.mxu3 %v12128_v59 }
  0x8a   :  { %234 = vmatmul.bf16.gmra.mxu0 %v12078_v4 }
  0x8b   :  { %478 = vmatmul.bf16.gmra.mxu1 %v12095_v5 }
  0x8c   :  { %723 = vmatmul.bf16.gmra.mxu2 %v12112_v9 }
  0x8d   :  { %968 = vmatmul.bf16.gmra.mxu3 %v12129_v10 }
  0x9a   :  { %239 = vmatmul.bf16.gmra.mxu0 %v12079_v24 }
  0x9b   :  { %483 = vmatmul.bf16.gmra.mxu1 %v12096_v25 }
  0x9c   :  { %728 = vmatmul.bf16.gmra.mxu2 %v12113_v26  ;;  %v12175_v26 = vld [vmem:[%s15334_s23 + $0x1b8] sm:$0xff] }
  0x9d   :  { %973 = vmatmul.bf16.gmra.mxu3 %v12130_v27  ;;  %v12192_v27 = vld [vmem:[%s15334_s23 + $0x200] sm:$0xff] }
  0xa7   :  { %v205_v34 = vpop.f32.mrf.mxu0 }
  0xa8   :  { %v449_v35 = vpop.f32.mrf.mxu1  ;;  %v250_v38 = vmul.f32 0.2, %v205_v34 }
  0xa9   :  { %v494_v39 = vmul.f32 0.2, %v449_v35 }
  0xaa   :  { %v268_v40 = vmax.f32 %v205_v34, %v250_v38  ;;  %244 = vmatmul.bf16.gmra.mxu0 %v12080_v32 }
  0xab   :  { %v512_v41 = vmax.f32 %v449_v35, %v494_v39  ;;  %488 = vmatmul.bf16.gmra.mxu1 %v12097_v33 }
  0xac   :  { %733 = vmatmul.bf16.gmra.mxu2 %v12114_v36  ;;  %286 = vst [vmem:[#allocation2] sm:$0xff] %v268_v40 }
  0xad   :  { %978 = vmatmul.bf16.gmra.mxu3 %v12131_v37  ;;  %531 = vst [vmem:[#allocation2 + $0x90] sm:$0xff] %v512_v41 }
  0xaf   :  { %v694_v42 = vpop.f32.mrf.mxu2  ;;  %v207_v46 = vpop.f32.mrf.mxu0 }
  0xb0   :  { %v939_v43 = vpop.f32.mrf.mxu3  ;;  %v739_v44 = vmul.f32 0.2, %v694_v42  ;;  %v451_v47 = vpop.f32.mrf.mxu1  ;;  %v251_v48 = vmul.f32 0.2, %v207_v46 }
  0xb1   :  { %v984_v45 = vmul.f32 0.2, %v939_v43  ;;  %v495_v49 = vmul.f32 0.2, %v451_v47 }
  0xb2   :  { %v757_v50 = vmax.f32 %v694_v42, %v739_v44  ;;  %v269_v52 = vmax.f32 %v207_v46, %v251_v48  ;;  %v12142_v48 = vld [vmem:[%s15334_s23 + $0x130] sm:$0xff] }
  0xb3   :  { %v1002_v51 = vmax.f32 %v939_v43, %v984_v45  ;;  %v513_v53 = vmax.f32 %v451_v47, %v495_v49  ;;  %v12159_v49 = vld [vmem:[%s15334_s23 + $0x178] sm:$0xff] }
  0xb4   :  { %776 = vst [vmem:[#allocation2 + $0x120] sm:$0xff] %v757_v50 }
  0xb5   :  { %1021 = vst [vmem:[#allocation2 + $0x1b0] sm:$0xff] %v1002_v51 }
  0xb6   :  { %287 = vst [vmem:[#allocation2 + $0x8] sm:$0xff] %v269_v52 }
  0xb7   :  { %532 = vst [vmem:[#allocation2 + $0x98] sm:$0xff] %v513_v53  ;;  %v696_v54 = vpop.f32.mrf.mxu2  ;;  %v210_v60 = vpop.f32.mrf.mxu0 }
  0xb8   :  { %v941_v55 = vpop.f32.mrf.mxu3  ;;  %v740_v58 = vmul.f32 0.2, %v696_v54  ;;  %v454_v61 = vpop.f32.mrf.mxu1  ;;  %v252_v0 = vmul.f32 0.2, %v210_v60 }
  0xb9   :  { %v985_v59 = vmul.f32 0.2, %v941_v55  ;;  %v496_v1 = vmul.f32 0.2, %v454_v61 }
  0xba   :  { %v758_v2 = vmax.f32 %v696_v54, %v740_v58  ;;  %v270_v4 = vmax.f32 %v210_v60, %v252_v0  ;;  %1183 = vmatmul.bf16.vlgmr.msrb.gmra.mxu0 %v12140_v56  ;;  %v12176_v54 = vld [vmem:[%s15334_s23 + $0x1c0] sm:$0xff] }
  0xbb   :  { %v1003_v3 = vmax.f32 %v941_v55, %v985_v59  ;;  %v514_v5 = vmax.f32 %v454_v61, %v496_v1  ;;  %1428 = vmatmul.bf16.vlgmr.msrb.gmra.mxu1 %v12157_v57  ;;  %v12193_v55 = vld [vmem:[%s15334_s23 + $0x208] sm:$0xff] }
  0xbc   :  { %777 = vst [vmem:[#allocation2 + $0x128] sm:$0xff] %v758_v2  ;;  %1673 = vmatmul.bf16.vlgmr.msrb.gmra.mxu2 %v12174_v62 }
  0xbd   :  { %1918 = vmatmul.bf16.vlgmr.msrb.gmra.mxu3 %v12191_v63  ;;  %1022 = vst [vmem:[#allocation2 + $0x1b8] sm:$0xff] %v1003_v3 }
  0xbe   :  { %288 = vst [vmem:[#allocation2 + $0x10] sm:$0xff] %v270_v4 }
  0xbf   :  { %533 = vst [vmem:[#allocation2 + $0xa0] sm:$0xff] %v514_v5  ;;  %v699_v6 = vpop.f32.mrf.mxu2  ;;  %v212_v10 = vpop.f32.mrf.mxu0 }
  0xc0   :  { %v944_v7 = vpop.f32.mrf.mxu3  ;;  %v741_v8 = vmul.f32 0.2, %v699_v6  ;;  %v456_v11 = vpop.f32.mrf.mxu1  ;;  %v253_v12 = vmul.f32 0.2, %v212_v10 }
  0xc1   :  { %v986_v9 = vmul.f32 0.2, %v944_v7  ;;  %v497_v13 = vmul.f32 0.2, %v456_v11 }
  0xc2   :  { %v759_v14 = vmax.f32 %v699_v6, %v741_v8  ;;  %v271_v16 = vmax.f32 %v212_v10, %v253_v12  ;;  %v12143_v12 = vld [vmem:[%s15334_s23 + $0x138] sm:$0xff] }
  0xc3   :  { %v1004_v15 = vmax.f32 %v944_v7, %v986_v9  ;;  %v515_v17 = vmax.f32 %v456_v11, %v497_v13  ;;  %v12160_v13 = vld [vmem:[%s15334_s23 + $0x180] sm:$0xff] }
  0xc4   :  { %778 = vst [vmem:[#allocation2 + $0x130] sm:$0xff] %v759_v14 }
  0xc5   :  { %1023 = vst [vmem:[#allocation2 + $0x1c0] sm:$0xff] %v1004_v15 }
  0xc6   :  { %289 = vst [vmem:[#allocation2 + $0x18] sm:$0xff] %v271_v16 }
  0xc7   :  { %534 = vst [vmem:[#allocation2 + $0xa8] sm:$0xff] %v515_v17  ;;  %v701_v18 = vpop.f32.mrf.mxu2  ;;  %v215_v24 = vpop.f32.mrf.mxu0 }
  0xc8   :  { %v946_v19 = vpop.f32.mrf.mxu3  ;;  %v742_v22 = vmul.f32 0.2, %v701_v18  ;;  %v459_v25 = vpop.f32.mrf.mxu1  ;;  %v254_v28 = vmul.f32 0.2, %v215_v24 }
  0xc9   :  { %v987_v23 = vmul.f32 0.2, %v946_v19  ;;  %v498_v29 = vmul.f32 0.2, %v459_v25 }
  0xca   :  { %v760_v30 = vmax.f32 %v701_v18, %v742_v22  ;;  %v272_v32 = vmax.f32 %v215_v24, %v254_v28  ;;  %1188 = vmatmul.bf16.gmra.mxu0 %v12141_v20  ;;  %v12177_v18 = vld [vmem:[%s15334_s23 + $0x1c8] sm:$0xff] }
  0xcb   :  { %v1005_v31 = vmax.f32 %v946_v19, %v987_v23  ;;  %v516_v33 = vmax.f32 %v459_v25, %v498_v29  ;;  %1433 = vmatmul.bf16.gmra.mxu1 %v12158_v21  ;;  %v12194_v19 = vld [vmem:[%s15334_s23 + $0x210] sm:$0xff] }
  0xcc   :  { %779 = vst [vmem:[#allocation2 + $0x138] sm:$0xff] %v760_v30  ;;  %1678 = vmatmul.bf16.gmra.mxu2 %v12175_v26 }
  0xcd   :  { %1923 = vmatmul.bf16.gmra.mxu3 %v12192_v27  ;;  %1024 = vst [vmem:[#allocation2 + $0x1c8] sm:$0xff] %v1005_v31 }
  0xce   :  { %290 = vst [vmem:[#allocation2 + $0x20] sm:$0xff] %v272_v32 }
  0xcf   :  { %535 = vst [vmem:[#allocation2 + $0xb0] sm:$0xff] %v516_v33  ;;  %v704_v34 = vpop.f32.mrf.mxu2  ;;  %v217_v38 = vpop.f32.mrf.mxu0 }
  0xd0   :  { %v949_v35 = vpop.f32.mrf.mxu3  ;;  %v743_v36 = vmul.f32 0.2, %v704_v34  ;;  %v461_v39 = vpop.f32.mrf.mxu1  ;;  %v255_v40 = vmul.f32 0.2, %v217_v38 }
  0xd1   :  { %v988_v37 = vmul.f32 0.2, %v949_v35  ;;  %v499_v41 = vmul.f32 0.2, %v461_v39 }
  0xd2   :  { %v761_v42 = vmax.f32 %v704_v34, %v743_v36  ;;  %v273_v44 = vmax.f32 %v217_v38, %v255_v40  ;;  %v12144_v40 = vld [vmem:[%s15334_s23 + $0x140] sm:$0xff] }
  0xd3   :  { %v1006_v43 = vmax.f32 %v949_v35, %v988_v37  ;;  %v517_v45 = vmax.f32 %v461_v39, %v499_v41  ;;  %v12161_v41 = vld [vmem:[%s15334_s23 + $0x188] sm:$0xff] }
  0xd4   :  { %780 = vst [vmem:[#allocation2 + $0x140] sm:$0xff] %v761_v42 }
  0xd5   :  { %1025 = vst [vmem:[#allocation2 + $0x1d0] sm:$0xff] %v1006_v43 }
  0xd6   :  { %291 = vst [vmem:[#allocation2 + $0x28] sm:$0xff] %v273_v44 }
  0xd7   :  { %536 = vst [vmem:[#allocation2 + $0xb8] sm:$0xff] %v517_v45  ;;  %v706_v46 = vpop.f32.mrf.mxu2  ;;  %v220_v52 = vpop.f32.mrf.mxu0 }
  0xd8   :  { %v951_v47 = vpop.f32.mrf.mxu3  ;;  %v744_v50 = vmul.f32 0.2, %v706_v46  ;;  %v464_v53 = vpop.f32.mrf.mxu1  ;;  %v256_v56 = vmul.f32 0.2, %v220_v52 }
  0xd9   :  { %v989_v51 = vmul.f32 0.2, %v951_v47  ;;  %v500_v57 = vmul.f32 0.2, %v464_v53 }
  0xda   :  { %v762_v58 = vmax.f32 %v706_v46, %v744_v50  ;;  %v274_v60 = vmax.f32 %v220_v52, %v256_v56  ;;  %1193 = vmatmul.bf16.gmra.mxu0 %v12142_v48  ;;  %v12178_v46 = vld [vmem:[%s15334_s23 + $0x1d0] sm:$0xff]  ;;  %v12231_v56 = vld [vmem:[%s15335_s27 + $0xb8] sm:$0xff] }
  0xdb   :  { %v1007_v59 = vmax.f32 %v951_v47, %v989_v51  ;;  %v518_v61 = vmax.f32 %v464_v53, %v500_v57  ;;  %1438 = vmatmul.bf16.gmra.mxu1 %v12159_v49  ;;  %v12195_v47 = vld [vmem:[%s15334_s23 + $0x218] sm:$0xff]  ;;  %2383 = vmatpush.bf16.msra.mxu2 %v12231_v56  ;;  %v12220_v56 = vld [vmem:[%s15335_s27 + $0x60] sm:$0xff] }
  0xdc   :  { %781 = vst [vmem:[#allocation2 + $0x148] sm:$0xff] %v762_v58  ;;  %1683 = vmatmul.bf16.gmra.mxu2 %v12176_v54 }
  0xdd   :  { %1928 = vmatmul.bf16.gmra.mxu3 %v12193_v55  ;;  %1026 = vst [vmem:[#allocation2 + $0x1d8] sm:$0xff] %v1007_v59 }
  0xde   :  { %292 = vst [vmem:[#allocation2 + $0x30] sm:$0xff] %v274_v60 }
  0xdf   :  { %537 = vst [vmem:[#allocation2 + $0xc0] sm:$0xff] %v518_v61  ;;  %v709_v62 = vpop.f32.mrf.mxu2  ;;  %v222_v2 = vpop.f32.mrf.mxu0 }
  0xe0   :  { %v954_v63 = vpop.f32.mrf.mxu3  ;;  %v745_v0 = vmul.f32 0.2, %v709_v62  ;;  %v466_v3 = vpop.f32.mrf.mxu1  ;;  %v257_v4 = vmul.f32 0.2, %v222_v2 }
  0xe1   :  { %v990_v1 = vmul.f32 0.2, %v954_v63  ;;  %v501_v5 = vmul.f32 0.2, %v466_v3 }
  0xe2   :  { %v13111_v6 = vmax.f32 %v709_v62, %v745_v0  ;;  %v275_v8 = vmax.f32 %v222_v2, %v257_v4  ;;  %v12223_v4 = vld [vmem:[%s15335_s27 + $0x78] sm:$0xff] }
  0xe3   :  { %v1008_v7 = vmax.f32 %v954_v63, %v990_v1  ;;  %v519_v9 = vmax.f32 %v466_v3, %v501_v5  ;;  %v12239_v5 = vld [vmem:[%s15335_s27 + $0xf8] sm:$0xff]  ;;  %2148 = vmatpush.bf16.msra.mxu0 %v12223_v4 }
  0xe4   :  { %782 = vst [vmem:[#allocation2 + $0x150] sm:$0xff] %v13111_v6  ;;  %2537 = vmatpush.bf16.msra.mxu3 %v12239_v5  ;;  %v12219_v4 = vld [vmem:[%s15335_s27 + $0x58] sm:$0xff] }
  0xe5   :  { %1027 = vst [vmem:[#allocation2 + $0x1e0] sm:$0xff] %v1008_v7  ;;  %v12211_v5 = vld [vmem:[%s15335_s27 + $0x18] sm:$0xff] }
  0xe6   :  { %293 = vst [vmem:[#allocation2 + $0x38] sm:$0xff] %v275_v8 }
  0xe7   :  { %538 = vst [vmem:[#allocation2 + $0xc8] sm:$0xff] %v519_v9  ;;  %v711_v10 = vpop.f32.mrf.mxu2  ;;  %v225_v16 = vpop.f32.mrf.mxu0  ;;  %v12145_v9 = vld [vmem:[%s15334_s23 + $0x148] sm:$0xff] }
  0xe8   :  { %v956_v11 = vpop.f32.mrf.mxu3  ;;  %v746_v14 = vmul.f32 0.2, %v711_v10  ;;  %v469_v17 = vpop.f32.mrf.mxu1  ;;  %v258_v20 = vmul.f32 0.2, %v225_v16 }
  0xe9   :  { %v991_v15 = vmul.f32 0.2, %v956_v11  ;;  %v502_v21 = vmul.f32 0.2, %v469_v17 }
  0xea   :  { %v764_v22 = vmax.f32 %v711_v10, %v746_v14  ;;  %v276_v24 = vmax.f32 %v225_v16, %v258_v20  ;;  %1198 = vmatmul.bf16.gmra.mxu0 %v12143_v12  ;;  %v12162_v10 = vld [vmem:[%s15334_s23 + $0x190] sm:$0xff]  ;;  %v12179_v16 = vld [vmem:[%s15334_s23 + $0x1d8] sm:$0xff] }
  0xeb   :  { %v1009_v23 = vmax.f32 %v956_v11, %v991_v15  ;;  %v520_v25 = vmax.f32 %v469_v17, %v502_v21  ;;  %1443 = vmatmul.bf16.gmra.mxu1 %v12160_v13  ;;  %v12215_v11 = vld [vmem:[%s15335_s27 + $0x38] sm:$0xff]  ;;  %v12196_v17 = vld [vmem:[%s15334_s23 + $0x220] sm:$0xff] }
  0xec   :  { %783 = vst [vmem:[#allocation2 + $0x158] sm:$0xff] %v764_v22  ;;  %1688 = vmatmul.bf16.gmra.mxu2 %v12177_v18  ;;  %2245 = vmatpush.bf16.msra.mxu1 %v12215_v11 }
  0xed   :  { %1933 = vmatmul.bf16.gmra.mxu3 %v12194_v19  ;;  %1028 = vst [vmem:[#allocation2 + $0x1e8] sm:$0xff] %v1009_v23 }
  0xee   :  { %294 = vst [vmem:[#allocation2 + $0x40] sm:$0xff] %v276_v24 }
  0xef   :  { %539 = vst [vmem:[#allocation2 + $0xd0] sm:$0xff] %v520_v25  ;;  %v714_v26 = vpop.f32.mrf.mxu2  ;;  %v227_v30 = vpop.f32.mrf.mxu0 }
  0xf0   :  { %v959_v27 = vpop.f32.mrf.mxu3  ;;  %v747_v28 = vmul.f32 0.2, %v714_v26  ;;  %v471_v31 = vpop.f32.mrf.mxu1  ;;  %v259_v32 = vmul.f32 0.2, %v227_v30 }
  0xf1   :  { %v992_v29 = vmul.f32 0.2, %v959_v27  ;;  %v503_v33 = vmul.f32 0.2, %v471_v31 }
  0xf2   :  { %v13126_v34 = vmax.f32 %v714_v26, %v747_v28  ;;  %v277_v36 = vmax.f32 %v227_v30, %v259_v32  ;;  %v12230_v30 = vld [vmem:[%s15335_s27 + $0xb0] sm:$0xff] }
  0xf3   :  { %v1010_v35 = vmax.f32 %v959_v27, %v992_v29  ;;  %v521_v37 = vmax.f32 %v471_v31, %v503_v33  ;;  %v12222_v31 = vld [vmem:[%s15335_s27 + $0x70] sm:$0xff]  ;;  %2384 = vmatpush.bf16.msra.mxu2 %v12230_v30  ;;  %v12225_v30 = vld [vmem:[%s15335_s27 + $0x88] sm:$0xff] }
  0xf4   :  { %784 = vst [vmem:[#allocation2 + $0x160] sm:$0xff] %v13126_v34  ;;  %2149 = vmatpush.bf16.msra.mxu0 %v12222_v31  ;;  %v12233_v31 = vld [vmem:[%s15335_s27 + $0xc8] sm:$0xff] }
  0xf5   :  { %1029 = vst [vmem:[#allocation2 + $0x1f0] sm:$0xff] %v1010_v35  ;;  %v12214_v35 = vld [vmem:[%s15335_s27 + $0x30] sm:$0xff] }
  0xf6   :  { %295 = vst [vmem:[#allocation2 + $0x48] sm:$0xff] %v277_v36  ;;  %v12238_v36 = vld [vmem:[%s15335_s27 + $0xf0] sm:$0xff]  ;;  %2246 = vmatpush.bf16.msra.mxu1 %v12214_v35  ;;  %v12147_v35 = vld [vmem:[%s15334_s23 + $0x158] sm:$0xff] }
  0xf7   :  { %540 = vst [vmem:[#allocation2 + $0xd8] sm:$0xff] %v521_v37  ;;  %v716_v38 = vpop.f32.mrf.mxu2  ;;  %v230_v44 = vpop.f32.mrf.mxu0  ;;  %2538 = vmatpush.bf16.msra.mxu3 %v12238_v36  ;;  %v12164_v36 = vld [vmem:[%s15334_s23 + $0x1a0] sm:$0xff] }
  0xf8   :  { %v961_v39 = vpop.f32.mrf.mxu3  ;;  %v748_v42 = vmul.f32 0.2, %v716_v38  ;;  %v474_v45 = vpop.f32.mrf.mxu1  ;;  %v260_v48 = vmul.f32 0.2, %v230_v44 }
  0xf9   :  { %v993_v43 = vmul.f32 0.2, %v961_v39  ;;  %v504_v49 = vmul.f32 0.2, %v474_v45 }
  0xfa   :  { %v766_v50 = vmax.f32 %v716_v38, %v748_v42  ;;  %v13141_v52 = vmax.f32 %v230_v44, %v260_v48  ;;  %1203 = vmatmul.bf16.gmra.mxu0 %v12144_v40  ;;  %v12213_v42 = vld [vmem:[%s15335_s27 + $0x28] sm:$0xff]  ;;  %v12163_v48 = vld [vmem:[%s15334_s23 + $0x198] sm:$0xff] }
  0xfb   :  { %v1011_v51 = vmax.f32 %v961_v39, %v993_v43  ;;  %v522_v53 = vmax.f32 %v474_v45, %v504_v49  ;;  %1448 = vmatmul.bf16.gmra.mxu1 %v12161_v41  ;;  %v12221_v41 = vld [vmem:[%s15335_s27 + $0x68] sm:$0xff]  ;;  %v12180_v49 = vld [vmem:[%s15334_s23 + $0x1e0] sm:$0xff] }
  0xfc   :  { %785 = vst [vmem:[#allocation2 + $0x168] sm:$0xff] %v766_v50  ;;  %1693 = vmatmul.bf16.gmra.mxu2 %v12178_v46  ;;  %v12229_v43 = vld [vmem:[%s15335_s27 + $0xa8] sm:$0xff]  ;;  %2150 = vmatpush.bf16.msra.mxu0 %v12221_v41 }
  0xfd   :  { %1938 = vmatmul.bf16.gmra.mxu3 %v12195_v47  ;;  %1030 = vst [vmem:[#allocation2 + $0x1f8] sm:$0xff] %v1011_v51  ;;  %v12237_v44 = vld [vmem:[%s15335_s27 + $0xe8] sm:$0xff]  ;;  %2385 = vmatpush.bf16.msra.mxu2 %v12229_v43  ;;  %v12146_v47 = vld [vmem:[%s15334_s23 + $0x150] sm:$0xff] }
  0xfe   :  { %296 = vst [vmem:[#allocation2 + $0x50] sm:$0xff] %v13141_v52  ;;  %2247 = vmatpush.bf16.msra.mxu1 %v12213_v42  ;;  %2539 = vmatpush.bf16.msra.mxu3 %v12237_v44  ;;  %v12198_v43 = vld [vmem:[%s15334_s23 + $0x230] sm:$0xff]  ;;  %v12216_v44 = vld [vmem:[%s15335_s27 + $0x40] sm:$0xff] }
  0xff   :  { %541 = vst [vmem:[#allocation2 + $0xe0] sm:$0xff] %v522_v53  ;;  %v719_v54 = vpop.f32.mrf.mxu2  ;;  %v232_v59 = vpop.f32.mrf.mxu0 }
 0x100   :  { %v964_v55 = vpop.f32.mrf.mxu3  ;;  %v749_v57 = vmul.f32 0.2, %v719_v54  ;;  %v476_v60 = vpop.f32.mrf.mxu1  ;;  %v261_v61 = vmul.f32 0.2, %v232_v59  ;;  %2151 = vmatpush.bf16.msra.mxu0 %v12220_v56 }
 0x101   :  { %v994_v58 = vmul.f32 0.2, %v964_v55  ;;  %v505_v62 = vmul.f32 0.2, %v476_v60 }
 0x102   :  { %v13147_v63 = vmax.f32 %v719_v54, %v749_v57  ;;  %v279_v1 = vmax.f32 %v232_v59, %v261_v61  ;;  %v12212_v59 = vld [vmem:[%s15335_s27 + $0x20] sm:$0xff] }
 0x103   :  { %v1012_v0 = vmax.f32 %v964_v55, %v994_v58  ;;  %v523_v2 = vmax.f32 %v476_v60, %v505_v62  ;;  %v12197_v55 = vld [vmem:[%s15334_s23 + $0x228] sm:$0xff]  ;;  %v12228_v60 = vld [vmem:[%s15335_s27 + $0xa0] sm:$0xff]  ;;  %2248 = vmatpush.bf16.msra.mxu1 %v12212_v59 }
 0x104   :  { %786 = vst [vmem:[#allocation2 + $0x170] sm:$0xff] %v13147_v63  ;;  %v2077_v3 = vpack.c.bf16 %v13147_v63, %v13126_v34  ;;  %2386 = vmatpush.bf16.msra.mxu2 %v12228_v60  ;;  %2152 = vmatpush.bf16.msra.mxu0 %v12219_v4 }
 0x105   :  { %1031 = vst [vmem:[#allocation2 + $0x200] sm:$0xff] %v1012_v0  ;;  %v12236_v0 = vld [vmem:[%s15335_s27 + $0xe0] sm:$0xff] }
 0x106   :  { %297 = vst [vmem:[#allocation2 + $0x58] sm:$0xff] %v279_v1  ;;  %2540 = vmatpush.bf16.msra.mxu3 %v12236_v0 }
 0x107   :  { %542 = vst [vmem:[#allocation2 + $0xe8] sm:$0xff] %v523_v2  ;;  %v721_v7 = vpop.f32.mrf.mxu2  ;;  %v235_v14 = vpop.f32.mrf.mxu0  ;;  %2249 = vmatpush.bf16.msra.mxu1 %v12211_v5 }
 0x108   :  { %v966_v8 = vpop.f32.mrf.mxu3  ;;  %v750_v12 = vmul.f32 0.2, %v721_v7  ;;  %v479_v15 = vpop.f32.mrf.mxu1  ;;  %v262_v18 = vmul.f32 0.2, %v235_v14 }
 0x109   :  { %v995_v13 = vmul.f32 0.2, %v966_v8  ;;  %v506_v19 = vmul.f32 0.2, %v479_v15 }
 0x10a   :  { %v768_v20 = vmax.f32 %v721_v7, %v750_v12  ;;  %v13173_v22 = vmax.f32 %v235_v14, %v262_v18  ;;  %1208 = vmatmul.bf16.gmra.mxu0 %v12145_v9  ;;  %v12227_v7 = vld [vmem:[%s15335_s27 + $0x98] sm:$0xff] }
 0x10b   :  { %v1013_v21 = vmax.f32 %v966_v8, %v995_v13  ;;  %v524_v23 = vmax.f32 %v479_v15, %v506_v19  ;;  %1453 = vmatmul.bf16.gmra.mxu1 %v12162_v10  ;;  %v12235_v9 = vld [vmem:[%s15335_s27 + $0xd8] sm:$0xff]  ;;  %2387 = vmatpush.bf16.msra.mxu2 %v12227_v7  ;;  %v12210_v19 = vld [vmem:[%s15335_s27 + $0x10] sm:$0xff] }
 0x10c   :  { %787 = vst [vmem:[#allocation2 + $0x178] sm:$0xff] %v768_v20  ;;  %1698 = vmatmul.bf16.gmra.mxu2 %v12179_v16  ;;  %v12218_v16 = vld [vmem:[%s15335_s27 + $0x50] sm:$0xff]  ;;  %2541 = vmatpush.bf16.msra.mxu3 %v12235_v9 }
 0x10d   :  { %1943 = vmatmul.bf16.gmra.mxu3 %v12196_v17  ;;  %1032 = vst [vmem:[#allocation2 + $0x208] sm:$0xff] %v1013_v21  ;;  %v12226_v20 = vld [vmem:[%s15335_s27 + $0x90] sm:$0xff]  ;;  %2153 = vmatpush.bf16.msra.mxu0 %v12218_v16 }
 0x10e   :  { %298 = vst [vmem:[#allocation2 + $0x60] sm:$0xff] %v13173_v22  ;;  %2250 = vmatpush.bf16.msra.mxu1 %v12210_v19  ;;  %v12182_v16 = vld [vmem:[%s15334_s23 + $0x1f0] sm:$0xff] }
 0x10f   :  { %543 = vst [vmem:[#allocation2 + $0xf0] sm:$0xff] %v524_v23  ;;  %v724_v24 = vpop.f32.mrf.mxu2  ;;  %v237_v28 = vpop.f32.mrf.mxu0  ;;  %2388 = vmatpush.bf16.msra.mxu2 %v12226_v20 }
 0x110   :  { %v969_v25 = vpop.f32.mrf.mxu3  ;;  %v751_v26 = vmul.f32 0.2, %v724_v24  ;;  %v481_v29 = vpop.f32.mrf.mxu1  ;;  %v263_v32 = vmul.f32 0.2, %v237_v28 }
 0x111   :  { %v996_v27 = vmul.f32 0.2, %v969_v25  ;;  %v507_v33 = vmul.f32 0.2, %v481_v29 }
 0x112   :  { %v13188_v37 = vmax.f32 %v724_v24, %v751_v26  ;;  %v281_v39 = vmax.f32 %v237_v28, %v263_v32  ;;  %v12234_v24 = vld [vmem:[%s15335_s27 + $0xd0] sm:$0xff] }
 0x113   :  { %v1014_v38 = vmax.f32 %v969_v25, %v996_v27  ;;  %v525_v40 = vmax.f32 %v481_v29, %v507_v33  ;;  %v12217_v27 = vld [vmem:[%s15335_s27 + $0x48] sm:$0xff]  ;;  %2542 = vmatpush.bf16.msra.mxu3 %v12234_v24  ;;  %2389 = vmatpush.bf16.msra.mxu2 %v12225_v30 }
 0x114   :  { %788 = vst [vmem:[#allocation2 + $0x180] sm:$0xff] %v13188_v37  ;;  %v12209_v29 = vld [vmem:[%s15335_s27 + $0x8] sm:$0xff]  ;;  %2154 = vmatpush.bf16.msra.mxu0 %v12217_v27 }
 0x115   :  { %1033 = vst [vmem:[#allocation2 + $0x210] sm:$0xff] %v1014_v38  ;;  %v12181_v38 = vld [vmem:[%s15334_s23 + $0x1e8] sm:$0xff]  ;;  %2251 = vmatpush.bf16.msra.mxu1 %v12209_v29 }
 0x116   :  { %299 = vst [vmem:[#allocation2 + $0x68] sm:$0xff] %v281_v39 }
 0x117   :  { %544 = vst [vmem:[#allocation2 + $0xf8] sm:$0xff] %v525_v40  ;;  %v726_v45 = vpop.f32.mrf.mxu2  ;;  %v240_v53 = vpop.f32.mrf.mxu0  ;;  %2543 = vmatpush.bf16.msra.mxu3 %v12233_v31 }
 0x118   :  { %v971_v46 = vpop.f32.mrf.mxu3  ;;  %v752_v50 = vmul.f32 0.2, %v726_v45  ;;  %v484_v54 = vpop.f32.mrf.mxu1  ;;  %v264_v57 = vmul.f32 0.2, %v240_v53  ;;  %2155 = vmatpush.bf16.msra.mxu0 %v12216_v44 }
 0x119   :  { %v997_v51 = vmul.f32 0.2, %v971_v46  ;;  %v508_v58 = vmul.f32 0.2, %v484_v54 }
 0x11a   :  { %v770_v61 = vmax.f32 %v726_v45, %v752_v50  ;;  %v13227_v1 = vmax.f32 %v240_v53, %v264_v57  ;;  %1213 = vmatmul.bf16.gmra.mxu0 %v12146_v47  ;;  %v12208_v47 = vld [vmem:[%s15335_s27] sm:$0xff] }
 0x11b   :  { %v1015_v62 = vmax.f32 %v971_v46, %v997_v51  ;;  %v526_v2 = vmax.f32 %v484_v54, %v508_v58  ;;  %1458 = vmatmul.bf16.gmra.mxu1 %v12163_v48  ;;  %v12224_v48 = vld [vmem:[%s15335_s27 + $0x80] sm:$0xff] }
 0x11c   :  { %789 = vst [vmem:[#allocation2 + $0x188] sm:$0xff] %v770_v61  ;;  %1703 = vmatmul.bf16.gmra.mxu2 %v12180_v49  ;;  %v2038_v8 = vpack.c.bf16 %v13227_v1, %v13173_v22  ;;  %v12232_v51 = vld [vmem:[%s15335_s27 + $0xc0] sm:$0xff]  ;;  %2252 = vmatpush.bf16.msra.mxu1 %v12208_v47 }
 0x11d   :  { %1948 = vmatmul.bf16.gmra.mxu3 %v12197_v55  ;;  %1034 = vst [vmem:[#allocation2 + $0x218] sm:$0xff] %v1015_v62  ;;  %2390 = vmatpush.bf16.msra.mxu2 %v12224_v48 }
 0x11e   :  { %300 = vst [vmem:[#allocation2 + $0x70] sm:$0xff] %v13227_v1  ;;  %2544 = vmatpush.bf16.msra.mxu3 %v12232_v51  ;;  %v2059_v51 = vld [vmem:[#allocation2 + $0x120] sm:$0xff] }
 0x11f   :  { %545 = vst [vmem:[#allocation2 + $0x100] sm:$0xff] %v526_v2  ;;  %v729_v10 = vpop.f32.mrf.mxu2  ;;  %v242_v14 = vpop.f32.mrf.mxu0 }
 0x120   :  { %v974_v11 = vpop.f32.mrf.mxu3  ;;  %v753_v12 = vmul.f32 0.2, %v729_v10  ;;  %v486_v15 = vpop.f32.mrf.mxu1  ;;  %v265_v17 = vmul.f32 0.2, %v242_v14 }
 0x121   :  { %v998_v13 = vmul.f32 0.2, %v974_v11  ;;  %v509_v18 = vmul.f32 0.2, %v486_v15 }
 0x122   :  { %v13253_v21 = vmax.f32 %v729_v10, %v753_v12  ;;  %v283_v25 = vmax.f32 %v242_v14, %v265_v17  ;;  %v12148_v10 = vld [vmem:[%s15334_s23 + $0x160] sm:$0xff]  ;;  %v12199_v17 = vld [vmem:[%s15334_s23 + $0x238] sm:$0xff] }
 0x123   :  { %v1016_v23 = vmax.f32 %v974_v11, %v998_v13  ;;  %v527_v26 = vmax.f32 %v486_v15, %v509_v18  ;;  %v12165_v11 = vld [vmem:[%s15334_s23 + $0x1a8] sm:$0xff] }
 0x124   :  { %790 = vst [vmem:[#allocation2 + $0x190] sm:$0xff] %v13253_v21  ;;  %v2078_v28 = vpack.c.bf16 %v13253_v21, %v13188_v37 }
 0x125   :  { %1035 = vst [vmem:[#allocation2 + $0x220] sm:$0xff] %v1016_v23 }
 0x126   :  { %301 = vst [vmem:[#allocation2 + $0x78] sm:$0xff] %v283_v25 }
 0x127   :  { %546 = vst [vmem:[#allocation2 + $0x108] sm:$0xff] %v527_v26  ;;  %v731_v32 = vpop.f32.mrf.mxu2  ;;  %v245_v41 = vpop.f32.mrf.mxu0 }
 0x128   :  { %v976_v33 = vpop.f32.mrf.mxu3  ;;  %v754_v39 = vmul.f32 0.2, %v731_v32  ;;  %v489_v42 = vpop.f32.mrf.mxu1  ;;  %v266_v45 = vmul.f32 0.2, %v245_v41 }
 0x129   :  { %v999_v40 = vmul.f32 0.2, %v976_v33  ;;  %v510_v46 = vmul.f32 0.2, %v489_v42 }
 0x12a   :  { %v772_v49 = vmax.f32 %v731_v32, %v754_v39  ;;  %v284_v53 = vmax.f32 %v245_v41, %v266_v45  ;;  %1218 = vmatmul.bf16.gmra.mxu0 %v12147_v35  ;;  %v2060_v41 = vld [vmem:[#allocation2 + $0x130] sm:$0xff] }
 0x12b   :  { %v1017_v50 = vmax.f32 %v976_v33, %v999_v40  ;;  %v528_v54 = vmax.f32 %v489_v42, %v510_v46  ;;  %1463 = vmatmul.bf16.gmra.mxu1 %v12164_v36  ;;  %v2020_v42 = vld [vmem:[#allocation2 + $0x10] sm:$0xff] }
 0x12c   :  { %791 = vst [vmem:[#allocation2 + $0x198] sm:$0xff] %v772_v49  ;;  %1708 = vmatmul.bf16.gmra.mxu2 %v12181_v38  ;;  %v2295_v45 = vld [vmem:[#allocation2 + $0x11] sm:$0xff] }
 0x12d   :  { %1953 = vmatmul.bf16.gmra.mxu3 %v12198_v43  ;;  %1036 = vst [vmem:[#allocation2 + $0x228] sm:$0xff] %v1017_v50  ;;  %v2449_v46 = vld [vmem:[#allocation2 + $0x131] sm:$0xff] }
 0x12e   :  { %302 = vst [vmem:[#allocation2 + $0x80] sm:$0xff] %v284_v53  ;;  %v2019_v53 = vld [vmem:[#allocation2] sm:$0xff] }
 0x12f   :  { %547 = vst [vmem:[#allocation2 + $0x110] sm:$0xff] %v528_v54  ;;  %v734_v55 = vpop.f32.mrf.mxu2  ;;  %v247_v59 = vpop.f32.mrf.mxu0 }
 0x130   :  { %v979_v56 = vpop.f32.mrf.mxu3  ;;  %v755_v57 = vmul.f32 0.2, %v734_v55  ;;  %v491_v60 = vpop.f32.mrf.mxu1  ;;  %v267_v61 = vmul.f32 0.2, %v247_v59 }
 0x131   :  { %v1000_v58 = vmul.f32 0.2, %v979_v56  ;;  %v511_v62 = vmul.f32 0.2, %v491_v60 }
 0x132   :  { %v773_v0 = vmax.f32 %v734_v55, %v755_v57  ;;  %v285_v4 = vmax.f32 %v247_v59, %v267_v61  ;;  %v2035_v57 = vpack.c.bf16 %v2020_v42, %v2019_v53  ;;  %v2448_v59 = vld [vmem:[#allocation2 + $0x121] sm:$0xff] }
 0x133   :  { %v1018_v2 = vmax.f32 %v979_v56, %v1000_v58  ;;  %v529_v5 = vmax.f32 %v491_v60, %v511_v62  ;;  %v2075_v56 = vpack.c.bf16 %v2060_v41, %v2059_v51  ;;  %v2294_v58 = vld [vmem:[#allocation2 + $0x1] sm:$0xff] }
 0x134   :  { %792 = vst [vmem:[#allocation2 + $0x1a0] sm:$0xff] %v773_v0  ;;  %v2310_v62 = vpack.c.bf16 %v2295_v45, %v2294_v58  ;;  %v2464_v0 = vpack.c.bf16 %v2449_v46, %v2448_v59 }
 0x135   :  { %1037 = vst [vmem:[#allocation2 + $0x230] sm:$0xff] %v1018_v2 }
 0x136   :  { %303 = vst [vmem:[#allocation2 + $0x88] sm:$0xff] %v285_v4 }
 0x137   :  { %548 = vst [vmem:[#allocation2 + $0x118] sm:$0xff] %v529_v5  ;;  %v736_v7 = vpop.f32.mrf.mxu2  ;;  %v1184_v14 = vpop.f32.mrf.mxu0 }
 0x138   :  { %v981_v9 = vpop.f32.mrf.mxu3  ;;  %v756_v12 = vmul.f32 0.2, %v736_v7  ;;  %v1429_v15 = vpop.f32.mrf.mxu1  ;;  %v1229_v18 = vmul.f32 0.2, %v1184_v14 }
 0x139   :  { %v1001_v13 = vmul.f32 0.2, %v981_v9  ;;  %v1474_v19 = vmul.f32 0.2, %v1429_v15 }
 0x13a   :  { %v774_v20 = vmax.f32 %v736_v7, %v756_v12  ;;  %v1247_v24 = vmax.f32 %v1184_v14, %v1229_v18  ;;  %1223 = vmatmul.bf16.gmra.mxu0 %v12148_v10 }
 0x13b   :  { %v1019_v23 = vmax.f32 %v981_v9, %v1001_v13  ;;  %v1492_v25 = vmax.f32 %v1429_v15, %v1474_v19  ;;  %1468 = vmatmul.bf16.gmra.mxu1 %v12165_v11  ;;  %v2022_v19 = vld [vmem:[#allocation2 + $0x30] sm:$0xff] }
 0x13c   :  { %793 = vst [vmem:[#allocation2 + $0x1a8] sm:$0xff] %v774_v20  ;;  %1713 = vmatmul.bf16.gmra.mxu2 %v12182_v16 }
 0x13d   :  { %1958 = vmatmul.bf16.gmra.mxu3 %v12199_v17  ;;  %1038 = vst [vmem:[#allocation2 + $0x238] sm:$0xff] %v1019_v23 }
 0x13e   :  { %1266 = vst [vmem:[#allocation2 + $0x240] sm:$0xff] %v1247_v24  ;;  %v2297_v24 = vld [vmem:[#allocation2 + $0x31] sm:$0xff] }
 0x13f   :  { %1511 = vst [vmem:[#allocation2 + $0x2d0] sm:$0xff] %v1492_v25  ;;  %v1674_v26 = vpop.f32.mrf.mxu2  ;;  %v1186_v31 = vpop.f32.mrf.mxu0  ;;  %v2451_v25 = vld [vmem:[#allocation2 + $0x151] sm:$0xff] }
 0x140   :  { %v1919_v27 = vpop.f32.mrf.mxu3  ;;  %v1719_v29 = vmul.f32 0.2, %v1674_v26  ;;  %v1431_v32 = vpop.f32.mrf.mxu1  ;;  %v1230_v33 = vmul.f32 0.2, %v1186_v31 }
 0x141   :  { %v1964_v30 = vmul.f32 0.2, %v1919_v27  ;;  %v1475_v35 = vmul.f32 0.2, %v1431_v32 }
 0x142   :  { %v1737_v36 = vmax.f32 %v1674_v26, %v1719_v29  ;;  %v1248_v39 = vmax.f32 %v1186_v31, %v1230_v33  ;;  %v2061_v31 = vld [vmem:[#allocation2 + $0x140] sm:$0xff] }
 0x143   :  { %v1982_v38 = vmax.f32 %v1919_v27, %v1964_v30  ;;  %v1493_v40 = vmax.f32 %v1431_v32, %v1475_v35  ;;  %v2021_v32 = vld [vmem:[#allocation2 + $0x20] sm:$0xff] }
 0x144   :  { %1756 = vst [vmem:[#allocation2 + $0x360] sm:$0xff] %v1737_v36  ;;  %v2076_v36 = vpack.c.bf16 %v13111_v6, %v2061_v31 }
 0x145   :  { %2001 = vst [vmem:[#allocation2 + $0x3f0] sm:$0xff] %v1982_v38  ;;  %v2036_v38 = vpack.c.bf16 %v2022_v19, %v2021_v32 }
 0x146   :  { %1267 = vst [vmem:[#allocation2 + $0x248] sm:$0xff] %v1248_v39  ;;  %v2296_v39 = vld [vmem:[#allocation2 + $0x21] sm:$0xff] }
 0x147   :  { %1512 = vst [vmem:[#allocation2 + $0x2d8] sm:$0xff] %v1493_v40  ;;  %v1676_v43 = vpop.f32.mrf.mxu2  ;;  %v1189_v49 = vpop.f32.mrf.mxu0  ;;  %v2450_v40 = vld [vmem:[#allocation2 + $0x141] sm:$0xff] }
 0x148   :  { %v1921_v44 = vpop.f32.mrf.mxu3  ;;  %v1720_v47 = vmul.f32 0.2, %v1676_v43  ;;  %v1434_v50 = vpop.f32.mrf.mxu1  ;;  %v1231_v54 = vmul.f32 0.2, %v1189_v49 }
 0x149   :  { %v1965_v48 = vmul.f32 0.2, %v1921_v44  ;;  %v1476_v55 = vmul.f32 0.2, %v1434_v50 }
 0x14a   :  { %v1738_v60 = vmax.f32 %v1676_v43, %v1720_v47  ;;  %v1249_v2 = vmax.f32 %v1189_v49, %v1231_v54  ;;  %2156 = vmatmul.bf16.vlgmr.msra.gmra.mxu0 %v2075_v56  ;;  %v2311_v43 = vpack.c.bf16 %v2297_v24, %v2296_v39  ;;  %v2455_v39 = vld [vmem:[#allocation2 + $0x191] sm:$0xff] }
 0x14b   :  { %v1983_v61 = vmax.f32 %v1921_v44, %v1965_v48  ;;  %v1494_v4 = vmax.f32 %v1434_v50, %v1476_v55  ;;  %2253 = vmatmul.bf16.vlgmr.msra.gmra.mxu1 %v2035_v57  ;;  %v2465_v44 = vpack.c.bf16 %v2451_v25, %v2450_v40 }
 0x14c   :  { %1757 = vst [vmem:[#allocation2 + $0x368] sm:$0xff] %v1738_v60  ;;  %2391 = vmatmul.bf16.vlgmr.msra.gmra.mxu2 %v2310_v62  ;;  %v2453_v62 = vld [vmem:[#allocation2 + $0x171] sm:$0xff] }
 0x14d   :  { %2545 = vmatmul.bf16.vlgmr.msra.gmra.mxu3 %v2464_v0  ;;  %2002 = vst [vmem:[#allocation2 + $0x3f8] sm:$0xff] %v1983_v61  ;;  %v2299_v61 = vld [vmem:[#allocation2 + $0x51] sm:$0xff] }
 0x14e   :  { %1268 = vst [vmem:[#allocation2 + $0x250] sm:$0xff] %v1249_v2 }
 0x14f   :  { %1513 = vst [vmem:[#allocation2 + $0x2e0] sm:$0xff] %v1494_v4  ;;  %v1679_v5 = vpop.f32.mrf.mxu2  ;;  %v1191_v11 = vpop.f32.mrf.mxu0 }
 0x150   :  { %v1924_v7 = vpop.f32.mrf.mxu3  ;;  %v1721_v9 = vmul.f32 0.2, %v1679_v5  ;;  %v1436_v12 = vpop.f32.mrf.mxu1  ;;  %v1232_v13 = vmul.f32 0.2, %v1191_v11 }
 0x151   :  { %v1966_v10 = vmul.f32 0.2, %v1924_v7  ;;  %v1477_v14 = vmul.f32 0.2, %v1436_v12 }
 0x152   :  { %v13309_v15 = vmax.f32 %v1679_v5, %v1721_v9  ;;  %v1250_v17 = vmax.f32 %v1191_v11, %v1232_v13  ;;  %v2452_v13 = vld [vmem:[#allocation2 + $0x161] sm:$0xff] }
 0x153   :  { %v1984_v16 = vmax.f32 %v1924_v7, %v1966_v10  ;;  %v1495_v18 = vmax.f32 %v1436_v12, %v1477_v14  ;;  %v2023_v7 = vld [vmem:[#allocation2 + $0x40] sm:$0xff] }
 0x154   :  { %1758 = vst [vmem:[#allocation2 + $0x370] sm:$0xff] %v13309_v15  ;;  %v2037_v11 = vpack.c.bf16 %v13141_v52, %v2023_v7  ;;  %v2298_v12 = vld [vmem:[#allocation2 + $0x41] sm:$0xff] }
 0x155   :  { %2003 = vst [vmem:[#allocation2 + $0x400] sm:$0xff] %v1984_v16  ;;  %v2457_v7 = vld [vmem:[#allocation2 + $0x1c1] sm:$0xff] }
 0x156   :  { %1269 = vst [vmem:[#allocation2 + $0x258] sm:$0xff] %v1250_v17  ;;  %v2312_v17 = vpack.c.bf16 %v2299_v61, %v2298_v12 }
 0x157   :  { %1514 = vst [vmem:[#allocation2 + $0x2e8] sm:$0xff] %v1495_v18  ;;  %v1681_v20 = vpop.f32.mrf.mxu2  ;;  %v1194_v29 = vpop.f32.mrf.mxu0  ;;  %v2466_v18 = vpack.c.bf16 %v2453_v62, %v2452_v13  ;;  %v2067_v13 = vld [vmem:[#allocation2 + $0x1b0] sm:$0xff] }
 0x158   :  { %v1926_v23 = vpop.f32.mrf.mxu3  ;;  %v1722_v26 = vmul.f32 0.2, %v1681_v20  ;;  %v1439_v30 = vpop.f32.mrf.mxu1  ;;  %v1233_v33 = vmul.f32 0.2, %v1194_v29 }
 0x159   :  { %v1967_v27 = vmul.f32 0.2, %v1926_v23  ;;  %v1478_v35 = vmul.f32 0.2, %v1439_v30 }
 0x15a   :  { %v1740_v41 = vmax.f32 %v1681_v20, %v1722_v26  ;;  %v13313_v45 = vmax.f32 %v1194_v29, %v1233_v33  ;;  %2161 = vmatmul.bf16.gmra.mxu0 %v2076_v36 }
 0x15b   :  { %v1985_v42 = vmax.f32 %v1926_v23, %v1967_v27  ;;  %v1496_v46 = vmax.f32 %v1439_v30, %v1478_v35  ;;  %2258 = vmatmul.bf16.gmra.mxu1 %v2036_v38  ;;  %v2301_v38 = vld [vmem:[#allocation2 + $0x71] sm:$0xff] }
 0x15c   :  { %1759 = vst [vmem:[#allocation2 + $0x378] sm:$0xff] %v1740_v41  ;;  %2396 = vmatmul.bf16.gmra.mxu2 %v2311_v43 }
 0x15d   :  { %2550 = vmatmul.bf16.gmra.mxu3 %v2465_v44  ;;  %2004 = vst [vmem:[#allocation2 + $0x408] sm:$0xff] %v1985_v42 }
 0x15e   :  { %1270 = vst [vmem:[#allocation2 + $0x260] sm:$0xff] %v13313_v45 }
 0x15f   :  { %1515 = vst [vmem:[#allocation2 + $0x2f0] sm:$0xff] %v1496_v46  ;;  %v1684_v6 = vpop.f32.mrf.mxu2  ;;  %v1196_v50 = vpop.f32.mrf.mxu0 }
 0x160   :  { %v1929_v47 = vpop.f32.mrf.mxu3  ;;  %v1723_v48 = vmul.f32 0.2, %v1684_v6  ;;  %v1441_v51 = vpop.f32.mrf.mxu1  ;;  %v1234_v53 = vmul.f32 0.2, %v1196_v50 }
 0x161   :  { %v1968_v49 = vmul.f32 0.2, %v1929_v47  ;;  %v1479_v54 = vmul.f32 0.2, %v1441_v51 }
 0x162   :  { %v13316_v55 = vmax.f32 %v1684_v6, %v1723_v48  ;;  %v1252_v57 = vmax.f32 %v1196_v50, %v1234_v53  ;;  %v2300_v6 = vld [vmem:[#allocation2 + $0x61] sm:$0xff] }
 0x163   :  { %v1986_v56 = vmax.f32 %v1929_v47, %v1968_v49  ;;  %v1497_v58 = vmax.f32 %v1441_v51, %v1479_v54  ;;  %v2454_v47 = vld [vmem:[#allocation2 + $0x181] sm:$0xff]  ;;  %v2313_v50 = vpack.c.bf16 %v2301_v38, %v2300_v6  ;;  %v12246_v6 = vld [vmem:[%s15335_s27 + $0x130] sm:$0xff] }
 0x164   :  { %1760 = vst [vmem:[#allocation2 + $0x380] sm:$0xff] %v13316_v55  ;;  %v2467_v51 = vpack.c.bf16 %v2455_v39, %v2454_v47  ;;  %v12254_v47 = vld [vmem:[%s15335_s27 + $0x170] sm:$0xff] }
 0x165   :  { %2005 = vst [vmem:[#allocation2 + $0x410] sm:$0xff] %v1986_v56 }
 0x166   :  { %1271 = vst [vmem:[#allocation2 + $0x268] sm:$0xff] %v1252_v57 }
 0x167   :  { %1516 = vst [vmem:[#allocation2 + $0x2f8] sm:$0xff] %v1497_v58  ;;  %v1686_v59 = vpop.f32.mrf.mxu2  ;;  %v1199_v4 = vpop.f32.mrf.mxu0 }
 0x168   :  { %v1931_v60 = vpop.f32.mrf.mxu3  ;;  %v1724_v0 = vmul.f32 0.2, %v1686_v59  ;;  %v1444_v5 = vpop.f32.mrf.mxu1  ;;  %v1235_v9 = vmul.f32 0.2, %v1199_v4 }
 0x169   :  { %v1969_v2 = vmul.f32 0.2, %v1931_v60  ;;  %v1480_v10 = vmul.f32 0.2, %v1444_v5 }
 0x16a   :  { %v1742_v14 = vmax.f32 %v1686_v59, %v1724_v0  ;;  %v13320_v19 = vmax.f32 %v1199_v4, %v1235_v9  ;;  %2166 = vmatmul.bf16.gmra.mxu0 %v2077_v3  ;;  %v2028_v0 = vld [vmem:[#allocation2 + $0xa0] sm:$0xff] }
 0x16b   :  { %v1987_v16 = vmax.f32 %v1931_v60, %v1969_v2  ;;  %v1498_v20 = vmax.f32 %v1444_v5, %v1480_v10  ;;  %2263 = vmatmul.bf16.gmra.mxu1 %v2037_v11  ;;  %v2303_v5 = vld [vmem:[#allocation2 + $0xa1] sm:$0xff] }
 0x16c   :  { %1761 = vst [vmem:[#allocation2 + $0x388] sm:$0xff] %v1742_v14  ;;  %2401 = vmatmul.bf16.gmra.mxu2 %v2312_v17  ;;  %v2619_v52 = vpack.c.bf16 %v13320_v19, %v13313_v45  ;;  %v2027_v14 = vld [vmem:[#allocation2 + $0x90] sm:$0xff] }
 0x16d   :  { %2555 = vmatmul.bf16.gmra.mxu3 %v2466_v18  ;;  %2006 = vst [vmem:[#allocation2 + $0x418] sm:$0xff] %v1987_v16 }
 0x16e   :  { %1272 = vst [vmem:[#allocation2 + $0x270] sm:$0xff] %v13320_v19 }
 0x16f   :  { %1517 = vst [vmem:[#allocation2 + $0x300] sm:$0xff] %v1498_v20  ;;  %v1689_v23 = vpop.f32.mrf.mxu2  ;;  %v1201_v27 = vpop.f32.mrf.mxu0  ;;  %v2039_v20 = vpack.c.bf16 %v2028_v0, %v2027_v14  ;;  %v2305_v0 = vld [vmem:[#allocation2 + $0xc1] sm:$0xff] }
 0x170   :  { %v1934_v24 = vpop.f32.mrf.mxu3  ;;  %v1725_v25 = vmul.f32 0.2, %v1689_v23  ;;  %v1446_v29 = vpop.f32.mrf.mxu1  ;;  %v1236_v30 = vmul.f32 0.2, %v1201_v27 }
 0x171   :  { %v1970_v26 = vmul.f32 0.2, %v1934_v24  ;;  %v1481_v34 = vmul.f32 0.2, %v1446_v29 }
 0x172   :  { %v13328_v63 = vmax.f32 %v1689_v23, %v1725_v25  ;;  %v1254_v31 = vmax.f32 %v1201_v27, %v1236_v30  ;;  %v2302_v23 = vld [vmem:[#allocation2 + $0x91] sm:$0xff] }
 0x173   :  { %v1988_v3 = vmax.f32 %v1934_v24, %v1970_v26  ;;  %v1499_v32 = vmax.f32 %v1446_v29, %v1481_v34  ;;  %v2456_v24 = vld [vmem:[#allocation2 + $0x1b1] sm:$0xff]  ;;  %v2314_v27 = vpack.c.bf16 %v2303_v5, %v2302_v23 }
 0x174   :  { %1762 = vst [vmem:[#allocation2 + $0x390] sm:$0xff] %v13328_v63  ;;  %v2773_v33 = vpack.c.bf16 %v13328_v63, %v13316_v55  ;;  %v2468_v29 = vpack.c.bf16 %v2457_v7, %v2456_v24 }
 0x175   :  { %2007 = vst [vmem:[#allocation2 + $0x420] sm:$0xff] %v1988_v3  ;;  %v12247_v3 = vld [vmem:[%s15335_s27 + $0x138] sm:$0xff] }
 0x176   :  { %1273 = vst [vmem:[#allocation2 + $0x278] sm:$0xff] %v1254_v31  ;;  %v12255_v31 = vld [vmem:[%s15335_s27 + $0x178] sm:$0xff]  ;;  %2691 = vmatpush.bf16.msrb.mxu0 %v12247_v3 }
 0x177   :  { %1518 = vst [vmem:[#allocation2 + $0x308] sm:$0xff] %v1499_v32  ;;  %v1691_v35 = vpop.f32.mrf.mxu2  ;;  %v1204_v42 = vpop.f32.mrf.mxu0  ;;  %v12263_v32 = vld [vmem:[%s15335_s27 + $0x1b8] sm:$0xff]  ;;  %2845 = vmatpush.bf16.msrb.mxu1 %v12255_v31 }
 0x178   :  { %v1936_v36 = vpop.f32.mrf.mxu3  ;;  %v1726_v40 = vmul.f32 0.2, %v1691_v35  ;;  %v1449_v43 = vpop.f32.mrf.mxu1  ;;  %v1237_v44 = vmul.f32 0.2, %v1204_v42  ;;  %2999 = vmatpush.bf16.msrb.mxu2 %v12263_v32  ;;  %v12243_v31 = vld [vmem:[%s15335_s27 + $0x118] sm:$0xff] }
 0x179   :  { %v1971_v41 = vmul.f32 0.2, %v1936_v36  ;;  %v1482_v46 = vmul.f32 0.2, %v1449_v43  ;;  %v12251_v32 = vld [vmem:[%s15335_s27 + $0x158] sm:$0xff] }
 0x17a   :  { %v1744_v48 = vmax.f32 %v1691_v35, %v1726_v40  ;;  %v13333_v53 = vmax.f32 %v1204_v42, %v1237_v44  ;;  %2171 = vmatmul.bf16.gmra.mxu0 %v2078_v28 }
 0x17b   :  { %v1989_v49 = vmax.f32 %v1936_v36, %v1971_v41  ;;  %v1500_v54 = vmax.f32 %v1449_v43, %v1482_v46  ;;  %2268 = vmatmul.bf16.gmra.mxu1 %v2038_v8  ;;  %v2068_v8 = vld [vmem:[#allocation2 + $0x1c0] sm:$0xff]  ;;  %2692 = vmatpush.bf16.msrb.mxu0 %v12246_v6 }
 0x17c   :  { %1763 = vst [vmem:[#allocation2 + $0x398] sm:$0xff] %v1744_v48  ;;  %2406 = vmatmul.bf16.gmra.mxu2 %v2313_v50  ;;  %v2079_v18 = vpack.c.bf16 %v2068_v8, %v2067_v13  ;;  %v12271_v36 = vld [vmem:[%s15335_s27 + $0x1f8] sm:$0xff]  ;;  %v12262_v50 = vld [vmem:[%s15335_s27 + $0x1b0] sm:$0xff]  ;;  %2846 = vmatpush.bf16.msrb.mxu1 %v12254_v47  ;;  %v2069_v8 = vld [vmem:[#allocation2 + $0x1d0] sm:$0xff] }
 0x17d   :  { %2560 = vmatmul.bf16.gmra.mxu3 %v2467_v51  ;;  %2008 = vst [vmem:[#allocation2 + $0x428] sm:$0xff] %v1989_v49  ;;  %v12270_v51 = vld [vmem:[%s15335_s27 + $0x1f0] sm:$0xff]  ;;  %3000 = vmatpush.bf16.msrb.mxu2 %v12262_v50 }
 0x17e   :  { %1274 = vst [vmem:[#allocation2 + $0x280] sm:$0xff] %v13333_v53  ;;  %3153 = vmatpush.bf16.msrb.mxu3 %v12271_v36  ;;  %v12259_v36 = vld [vmem:[%s15335_s27 + $0x198] sm:$0xff] }
 0x17f   :  { %1519 = vst [vmem:[#allocation2 + $0x310] sm:$0xff] %v1500_v54  ;;  %v1694_v56 = vpop.f32.mrf.mxu2  ;;  %v1206_v60 = vpop.f32.mrf.mxu0 }
 0x180   :  { %v1939_v57 = vpop.f32.mrf.mxu3  ;;  %v1727_v58 = vmul.f32 0.2, %v1694_v56  ;;  %v1451_v61 = vpop.f32.mrf.mxu1  ;;  %v1238_v62 = vmul.f32 0.2, %v1206_v60 }
 0x181   :  { %v1972_v59 = vmul.f32 0.2, %v1939_v57  ;;  %v1483_v37 = vmul.f32 0.2, %v1451_v61 }
 0x182   :  { %v13342_v21 = vmax.f32 %v1694_v56, %v1727_v58  ;;  %v1256_v22 = vmax.f32 %v1206_v60, %v1238_v62  ;;  %3154 = vmatpush.bf16.msrb.mxu3 %v12270_v51  ;;  %v12245_v58 = vld [vmem:[%s15335_s27 + $0x128] sm:$0xff]  ;;  %v12242_v51 = vld [vmem:[%s15335_s27 + $0x110] sm:$0xff] }
 0x183   :  { %v1990_v28 = vmax.f32 %v1939_v57, %v1972_v59  ;;  %v1501_v1 = vmax.f32 %v1451_v61, %v1483_v37  ;;  %v12253_v59 = vld [vmem:[%s15335_s27 + $0x168] sm:$0xff]  ;;  %v2070_v61 = vld [vmem:[#allocation2 + $0x1e0] sm:$0xff]  ;;  %2693 = vmatpush.bf16.msrb.mxu0 %v12245_v58 }
 0x184   :  { %1764 = vst [vmem:[#allocation2 + $0x3a0] sm:$0xff] %v13342_v21  ;;  %v12261_v60 = vld [vmem:[%s15335_s27 + $0x1a8] sm:$0xff]  ;;  %v2030_v37 = vld [vmem:[#allocation2 + $0xc0] sm:$0xff]  ;;  %2847 = vmatpush.bf16.msrb.mxu1 %v12253_v59  ;;  %v2080_v14 = vpack.c.bf16 %v2070_v61, %v2069_v8 }
 0x185   :  { %2009 = vst [vmem:[#allocation2 + $0x430] sm:$0xff] %v1990_v28  ;;  %v2029_v62 = vld [vmem:[#allocation2 + $0xb0] sm:$0xff]  ;;  %3001 = vmatpush.bf16.msrb.mxu2 %v12261_v60  ;;  %v12266_v60 = vld [vmem:[%s15335_s27 + $0x1d0] sm:$0xff]  ;;  %v2072_v61 = vld [vmem:[#allocation2 + $0x200] sm:$0xff] }
 0x186   :  { %1275 = vst [vmem:[#allocation2 + $0x288] sm:$0xff] %v1256_v22  ;;  %v12269_v28 = vld [vmem:[%s15335_s27 + $0x1e8] sm:$0xff] }
 0x187   :  { %1520 = vst [vmem:[#allocation2 + $0x318] sm:$0xff] %v1501_v1  ;;  %v1696_v2 = vpop.f32.mrf.mxu2  ;;  %v1209_v11 = vpop.f32.mrf.mxu0  ;;  %3155 = vmatpush.bf16.msrb.mxu3 %v12269_v28  ;;  %v12241_v28 = vld [vmem:[%s15335_s27 + $0x108] sm:$0xff] }
 0x188   :  { %v1941_v4 = vpop.f32.mrf.mxu3  ;;  %v1728_v9 = vmul.f32 0.2, %v1696_v2  ;;  %v1454_v12 = vpop.f32.mrf.mxu1  ;;  %v1239_v16 = vmul.f32 0.2, %v1209_v11 }
 0x189   :  { %v1973_v10 = vmul.f32 0.2, %v1941_v4  ;;  %v1484_v17 = vmul.f32 0.2, %v1454_v12 }
 0x18a   :  { %v1746_v25 = vmax.f32 %v1696_v2, %v1728_v9  ;;  %v13345_v30 = vmax.f32 %v1209_v11, %v1239_v16  ;;  %2176 = vmatmul.bf16.gmra.mxu0 %v2079_v18  ;;  %v2459_v2 = vld [vmem:[#allocation2 + $0x1e1] sm:$0xff]  ;;  %v2458_v11 = vld [vmem:[#allocation2 + $0x1d1] sm:$0xff]  ;;  %v2040_v16 = vpack.c.bf16 %v2030_v37, %v2029_v62 }
 0x18b   :  { %v1991_v26 = vmax.f32 %v1941_v4, %v1973_v10  ;;  %2273 = vmatmul.bf16.gmra.mxu1 %v2039_v20  ;;  %v13347_v34 = vmax.f32 %v1454_v12, %v1484_v17  ;;  %v2304_v10 = vld [vmem:[#allocation2 + $0xb1] sm:$0xff]  ;;  %v12244_v17 = vld [vmem:[%s15335_s27 + $0x120] sm:$0xff]  ;;  %v2032_v62 = vld [vmem:[#allocation2 + $0xe0] sm:$0xff] }
 0x18c   :  { %1765 = vst [vmem:[#allocation2 + $0x3a8] sm:$0xff] %v1746_v25  ;;  %2411 = vmatmul.bf16.gmra.mxu2 %v2314_v27  ;;  %v2620_v35 = vpack.c.bf16 %v13345_v30, %v13333_v53  ;;  %v12252_v18 = vld [vmem:[%s15335_s27 + $0x160] sm:$0xff]  ;;  %v2315_v24 = vpack.c.bf16 %v2305_v0, %v2304_v10  ;;  %v2469_v25 = vpack.c.bf16 %v2459_v2, %v2458_v11  ;;  %v2031_v2 = vld [vmem:[#allocation2 + $0xd0] sm:$0xff] }
 0x18d   :  { %2565 = vmatmul.bf16.gmra.mxu3 %v2468_v29  ;;  %2010 = vst [vmem:[#allocation2 + $0x438] sm:$0xff] %v1991_v26  ;;  %v12260_v26 = vld [vmem:[%s15335_s27 + $0x1a0] sm:$0xff]  ;;  %2694 = vmatpush.bf16.msrb.mxu0 %v12244_v17 }
 0x18e   :  { %1276 = vst [vmem:[#allocation2 + $0x290] sm:$0xff] %v13345_v30  ;;  %v12268_v27 = vld [vmem:[%s15335_s27 + $0x1e0] sm:$0xff]  ;;  %2848 = vmatpush.bf16.msrb.mxu1 %v12252_v18  ;;  %3002 = vmatpush.bf16.msrb.mxu2 %v12260_v26 }
 0x18f   :  { %1521 = vst [vmem:[#allocation2 + $0x320] sm:$0xff] %v13347_v34  ;;  %v1699_v38 = vpop.f32.mrf.mxu2  ;;  %v1211_v42 = vpop.f32.mrf.mxu0  ;;  %3156 = vmatpush.bf16.msrb.mxu3 %v12268_v27  ;;  %v2307_v37 = vld [vmem:[#allocation2 + $0xe1] sm:$0xff] }
 0x190   :  { %v1944_v39 = vpop.f32.mrf.mxu3  ;;  %v1729_v40 = vmul.f32 0.2, %v1699_v38  ;;  %v1456_v43 = vpop.f32.mrf.mxu1  ;;  %v1240_v44 = vmul.f32 0.2, %v1211_v42  ;;  %v12240_v27 = vld [vmem:[%s15335_s27 + $0x100] sm:$0xff] }
 0x191   :  { %v1974_v41 = vmul.f32 0.2, %v1944_v39  ;;  %v1485_v46 = vmul.f32 0.2, %v1456_v43  ;;  %2695 = vmatpush.bf16.msrb.mxu0 %v12243_v31  ;;  %v12256_v31 = vld [vmem:[%s15335_s27 + $0x180] sm:$0xff] }
 0x192   :  { %v13371_v48 = vmax.f32 %v1699_v38, %v1729_v40  ;;  %v1258_v54 = vmax.f32 %v1211_v42, %v1240_v44  ;;  %v12267_v40 = vld [vmem:[%s15335_s27 + $0x1d8] sm:$0xff]  ;;  %2849 = vmatpush.bf16.msrb.mxu1 %v12251_v32  ;;  %3003 = vmatpush.bf16.msrb.mxu2 %v12259_v36  ;;  %v12264_v36 = vld [vmem:[%s15335_s27 + $0x1c0] sm:$0xff] }
 0x193   :  { %v13373_v49 = vmax.f32 %v1944_v39, %v1974_v41  ;;  %v1503_v56 = vmax.f32 %v1456_v43, %v1485_v46  ;;  %3157 = vmatpush.bf16.msrb.mxu3 %v12267_v40  ;;  %v2914_v55 = vld [vmem:[#allocation2 + $0x281] sm:$0xff] }
 0x194   :  { %1766 = vst [vmem:[#allocation2 + $0x3b0] sm:$0xff] %v13371_v48  ;;  %v2774_v57 = vpack.c.bf16 %v13371_v48, %v13342_v21  ;;  %v3068_v63 = vld [vmem:[#allocation2 + $0x3a1] sm:$0xff] }
 0x195   :  { %2011 = vst [vmem:[#allocation2 + $0x440] sm:$0xff] %v13373_v49  ;;  %2696 = vmatpush.bf16.msrb.mxu0 %v12242_v51 }
 0x196   :  { %1277 = vst [vmem:[#allocation2 + $0x298] sm:$0xff] %v1258_v54  ;;  %v12250_v54 = vld [vmem:[%s15335_s27 + $0x150] sm:$0xff] }
 0x197   :  { %1522 = vst [vmem:[#allocation2 + $0x328] sm:$0xff] %v1503_v56  ;;  %v1701_v22 = vpop.f32.mrf.mxu2  ;;  %v1214_v7 = vpop.f32.mrf.mxu0  ;;  %v12258_v56 = vld [vmem:[%s15335_s27 + $0x190] sm:$0xff]  ;;  %2850 = vmatpush.bf16.msrb.mxu1 %v12250_v54  ;;  %3158 = vmatpush.bf16.msrb.mxu3 %v12266_v60  ;;  %v2074_v60 = vld [vmem:[#allocation2 + $0x220] sm:$0xff] }
 0x198   :  { %v1946_v1 = vpop.f32.mrf.mxu3  ;;  %v1730_v4 = vmul.f32 0.2, %v1701_v22  ;;  %v1459_v9 = vpop.f32.mrf.mxu1  ;;  %v1241_v12 = vmul.f32 0.2, %v1214_v7  ;;  %3004 = vmatpush.bf16.msrb.mxu2 %v12258_v56 }
 0x199   :  { %v1975_v5 = vmul.f32 0.2, %v1946_v1  ;;  %v1486_v13 = vmul.f32 0.2, %v1459_v9  ;;  %2697 = vmatpush.bf16.msrb.mxu0 %v12241_v28  ;;  %v2309_v28 = vld [vmem:[#allocation2 + $0x101] sm:$0xff] }
 0x19a   :  { %v1748_v20 = vmax.f32 %v1701_v22, %v1730_v4  ;;  %v13409_v29 = vmax.f32 %v1214_v7, %v1241_v12  ;;  %2181 = vmatmul.bf16.gmra.mxu0 %v2080_v14  ;;  %v12249_v22 = vld [vmem:[%s15335_s27 + $0x148] sm:$0xff]  ;;  %v2461_v4 = vld [vmem:[#allocation2 + $0x201] sm:$0xff] }
 0x19b   :  { %v1993_v23 = vmax.f32 %v1946_v1, %v1975_v5  ;;  %v1504_v3 = vmax.f32 %v1459_v9, %v1486_v13  ;;  %2278 = vmatmul.bf16.gmra.mxu1 %v2040_v16  ;;  %v12257_v1 = vld [vmem:[%s15335_s27 + $0x188] sm:$0xff]  ;;  %v2041_v13 = vpack.c.bf16 %v2032_v62, %v2031_v2 }
 0x19c   :  { %1767 = vst [vmem:[#allocation2 + $0x3b8] sm:$0xff] %v1748_v20  ;;  %2416 = vmatmul.bf16.gmra.mxu2 %v2315_v24  ;;  %v12265_v5 = vld [vmem:[%s15335_s27 + $0x1c8] sm:$0xff]  ;;  %2851 = vmatpush.bf16.msrb.mxu1 %v12249_v22  ;;  %v2463_v22 = vld [vmem:[#allocation2 + $0x221] sm:$0xff] }
 0x19d   :  { %2570 = vmatmul.bf16.gmra.mxu3 %v2469_v25  ;;  %2012 = vst [vmem:[#allocation2 + $0x448] sm:$0xff] %v1993_v23  ;;  %v2071_v12 = vld [vmem:[#allocation2 + $0x1f0] sm:$0xff]  ;;  %3005 = vmatpush.bf16.msrb.mxu2 %v12257_v1 }
 0x19e   :  { %1278 = vst [vmem:[#allocation2 + $0x2a0] sm:$0xff] %v13409_v29  ;;  %v2306_v14 = vld [vmem:[#allocation2 + $0xd1] sm:$0xff]  ;;  %v2081_v18 = vpack.c.bf16 %v2072_v61, %v2071_v12  ;;  %3159 = vmatpush.bf16.msrb.mxu3 %v12265_v5  ;;  %2698 = vmatpush.bf16.msrb.mxu0 %v12240_v27  ;;  %v2034_v61 = vld [vmem:[#allocation2 + $0x100] sm:$0xff] }
 0x19f   :  { %1523 = vst [vmem:[#allocation2 + $0x330] sm:$0xff] %v1504_v3  ;;  %v1704_v38 = vpop.f32.mrf.mxu2  ;;  %v1216_v43 = vpop.f32.mrf.mxu0  ;;  %v2316_v20 = vpack.c.bf16 %v2307_v37, %v2306_v14  ;;  %v2460_v23 = vld [vmem:[#allocation2 + $0x1f1] sm:$0xff]  ;;  %v12248_v3 = vld [vmem:[%s15335_s27 + $0x140] sm:$0xff] }
 0x1a0   :  { %v1949_v39 = vpop.f32.mrf.mxu3  ;;  %v1731_v41 = vmul.f32 0.2, %v1704_v38  ;;  %v1461_v44 = vpop.f32.mrf.mxu1  ;;  %v1242_v46 = vmul.f32 0.2, %v1216_v43  ;;  %v2470_v26 = vpack.c.bf16 %v2461_v4, %v2460_v23  ;;  %2852 = vmatpush.bf16.msrb.mxu1 %v12248_v3  ;;  %v2073_v4 = vld [vmem:[#allocation2 + $0x210] sm:$0xff] }
 0x1a1   :  { %v1976_v42 = vmul.f32 0.2, %v1949_v39  ;;  %v1487_v6 = vmul.f32 0.2, %v1461_v44  ;;  %3006 = vmatpush.bf16.msrb.mxu2 %v12256_v31  ;;  %v2033_v5 = vld [vmem:[#allocation2 + $0xf0] sm:$0xff] }
 0x1a2   :  { %v13424_v47 = vmax.f32 %v1704_v38, %v1731_v41  ;;  %v1260_v58 = vmax.f32 %v1216_v43, %v1242_v46  ;;  %3160 = vmatpush.bf16.msrb.mxu3 %v12264_v36  ;;  %v2308_v12 = vld [vmem:[#allocation2 + $0xf1] sm:$0xff] }
 0x1a3   :  { %v1994_v50 = vmax.f32 %v1949_v39, %v1976_v42  ;;  %v1505_v59 = vmax.f32 %v1461_v44, %v1487_v6 }
 0x1a4   :  { %1768 = vst [vmem:[#allocation2 + $0x3c0] sm:$0xff] %v13424_v47 }
 0x1a5   :  { %2013 = vst [vmem:[#allocation2 + $0x450] sm:$0xff] %v1994_v50 }
 0x1a6   :  { %1279 = vst [vmem:[#allocation2 + $0x2a8] sm:$0xff] %v1260_v58 }
 0x1a7   :  { %1524 = vst [vmem:[#allocation2 + $0x338] sm:$0xff] %v1505_v59  ;;  %v1706_v8 = vpop.f32.mrf.mxu2  ;;  %v1219_v10 = vpop.f32.mrf.mxu0 }
 0x1a8   :  { %v1951_v0 = vpop.f32.mrf.mxu3  ;;  %v1732_v7 = vmul.f32 0.2, %v1706_v8  ;;  %v1464_v11 = vpop.f32.mrf.mxu1  ;;  %v1243_v16 = vmul.f32 0.2, %v1219_v10 }
 0x1a9   :  { %v1977_v9 = vmul.f32 0.2, %v1951_v0  ;;  %v1488_v17 = vmul.f32 0.2, %v1464_v11 }
 0x1aa   :  { %v1750_v24 = vmax.f32 %v1706_v8, %v1732_v7  ;;  %v13460_v32 = vmax.f32 %v1219_v10, %v1243_v16  ;;  %2186 = vmatmul.bf16.gmra.mxu0 %v2081_v18  ;;  %v2082_v10 = vpack.c.bf16 %v2074_v60, %v2073_v4  ;;  %v3064_v4 = vld [vmem:[#allocation2 + $0x361] sm:$0xff] }
 0x1ab   :  { %v1995_v25 = vmax.f32 %v1951_v0, %v1977_v9  ;;  %2283 = vmatmul.bf16.gmra.mxu1 %v2041_v13  ;;  %v13465_v38 = vmax.f32 %v1464_v11, %v1488_v17  ;;  %v2042_v11 = vpack.c.bf16 %v2034_v61, %v2033_v5  ;;  %v2462_v13 = vld [vmem:[#allocation2 + $0x211] sm:$0xff]  ;;  %v2317_v17 = vpack.c.bf16 %v2309_v28, %v2308_v12  ;;  %v2602_v28 = vld [vmem:[#allocation2 + $0x240] sm:$0xff] }
 0x1ac   :  { %1769 = vst [vmem:[#allocation2 + $0x3c8] sm:$0xff] %v1750_v24  ;;  %2421 = vmatmul.bf16.gmra.mxu2 %v2316_v20  ;;  %v2621_v39 = vpack.c.bf16 %v13460_v32, %v13409_v29  ;;  %v2471_v18 = vpack.c.bf16 %v2463_v22, %v2462_v13  ;;  %v2756_v22 = vld [vmem:[#allocation2 + $0x360] sm:$0xff] }
 0x1ad   :  { %2575 = vmatmul.bf16.gmra.mxu3 %v2470_v26  ;;  %2014 = vst [vmem:[#allocation2 + $0x458] sm:$0xff] %v1995_v25  ;;  %v2916_v21 = vld [vmem:[#allocation2 + $0x2a1] sm:$0xff] }
 0x1ae   :  { %1280 = vst [vmem:[#allocation2 + $0x2b0] sm:$0xff] %v13460_v32  ;;  %v2919_v29 = vld [vmem:[#allocation2 + $0x2e1] sm:$0xff] }
 0x1af   :  { %1525 = vst [vmem:[#allocation2 + $0x340] sm:$0xff] %v13465_v38  ;;  %v1709_v40 = vpop.f32.mrf.mxu2  ;;  %v1221_v44 = vpop.f32.mrf.mxu0  ;;  %v3073_v32 = vld [vmem:[#allocation2 + $0x401] sm:$0xff] }
 0x1b0   :  { %v1954_v41 = vpop.f32.mrf.mxu3  ;;  %v1733_v42 = vmul.f32 0.2, %v1709_v40  ;;  %v1466_v46 = vpop.f32.mrf.mxu1  ;;  %v1244_v6 = vmul.f32 0.2, %v1221_v44 }
 0x1b1   :  { %v1978_v43 = vmul.f32 0.2, %v1954_v41  ;;  %v1489_v50 = vmul.f32 0.2, %v1466_v46 }
 0x1b2   :  { %v13471_v51 = vmax.f32 %v1709_v40, %v1733_v42  ;;  %v1262_v56 = vmax.f32 %v1221_v44, %v1244_v6 }
 0x1b3   :  { %v13473_v54 = vmax.f32 %v1954_v41, %v1978_v43  ;;  %v1507_v58 = vmax.f32 %v1466_v46, %v1489_v50  ;;  %v2603_v46 = vld [vmem:[#allocation2 + $0x250] sm:$0xff]  ;;  %v3070_v48 = vld [vmem:[#allocation2 + $0x3c1] sm:$0xff] }
 0x1b4   :  { %1770 = vst [vmem:[#allocation2 + $0x3d0] sm:$0xff] %v13471_v51  ;;  %v2775_v59 = vpack.c.bf16 %v13471_v51, %v13424_v47  ;;  %v2610_v51 = vld [vmem:[#allocation2 + $0x2d0] sm:$0xff] }
 0x1b5   :  { %2015 = vst [vmem:[#allocation2 + $0x460] sm:$0xff] %v13473_v54 }
 0x1b6   :  { %1281 = vst [vmem:[#allocation2 + $0x2b8] sm:$0xff] %v1262_v56  ;;  %v2911_v56 = vld [vmem:[#allocation2 + $0x251] sm:$0xff] }
 0x1b7   :  { %1526 = vst [vmem:[#allocation2 + $0x348] sm:$0xff] %v1507_v58  ;;  %v1711_v62 = vpop.f32.mrf.mxu2  ;;  %v1224_v0 = vpop.f32.mrf.mxu0  ;;  %v3065_v58 = vld [vmem:[#allocation2 + $0x371] sm:$0xff] }
 0x1b8   :  { %v1956_v37 = vpop.f32.mrf.mxu3  ;;  %v1734_v1 = vmul.f32 0.2, %v1711_v62  ;;  %v1469_v2 = vpop.f32.mrf.mxu1  ;;  %v1245_v7 = vmul.f32 0.2, %v1224_v0 }
 0x1b9   :  { %v1979_v8 = vmul.f32 0.2, %v1956_v37  ;;  %v1490_v9 = vmul.f32 0.2, %v1469_v2 }
 0x1ba   :  { %v1752_v14 = vmax.f32 %v1711_v62, %v1734_v1  ;;  %v1263_v20 = vmax.f32 %v1224_v0, %v1245_v7  ;;  %2191 = vmatmul.bf16.gmra.mxu0 %v2082_v10  ;;  %v2772_v0 = vpack.c.bf16 %v13309_v15, %v2756_v22  ;;  %v3080_v10 = vpack.c.bf16 %v3065_v58, %v3064_v4 }
 0x1bb   :  { %v1997_v16 = vmax.f32 %v1956_v37, %v1979_v8  ;;  %v1508_v23 = vmax.f32 %v1469_v2, %v1490_v9  ;;  %2288 = vmatmul.bf16.gmra.mxu1 %v2042_v11  ;;  %v2618_v8 = vpack.c.bf16 %v2603_v46, %v2602_v28  ;;  %v2910_v2 = vld [vmem:[#allocation2 + $0x241] sm:$0xff] }
 0x1bc   :  { %1771 = vst [vmem:[#allocation2 + $0x3d8] sm:$0xff] %v1752_v14  ;;  %2426 = vmatmul.bf16.gmra.mxu2 %v2317_v17  ;;  %v2926_v9 = vpack.c.bf16 %v2911_v56, %v2910_v2 }
 0x1bd   :  { %2580 = vmatmul.bf16.gmra.mxu3 %v2471_v18  ;;  %2016 = vst [vmem:[#allocation2 + $0x468] sm:$0xff] %v1997_v16 }
 0x1be   :  { %1282 = vst [vmem:[#allocation2 + $0x2c0] sm:$0xff] %v1263_v20 }
 0x1bf   :  { %1527 = vst [vmem:[#allocation2 + $0x350] sm:$0xff] %v1508_v23  ;;  %v1714_v24 = vpop.f32.mrf.mxu2  ;;  %v1226_v3 = vpop.f32.mrf.mxu0  ;;  %v2913_v23 = vld [vmem:[#allocation2 + $0x271] sm:$0xff] }
 0x1c0   :  { %v1959_v25 = vpop.f32.mrf.mxu3  ;;  %v1735_v26 = vmul.f32 0.2, %v1714_v24  ;;  %v1471_v31 = vpop.f32.mrf.mxu1  ;;  %v1246_v36 = vmul.f32 0.2, %v1226_v3 }
 0x1c1   :  { %v1980_v27 = vmul.f32 0.2, %v1959_v25  ;;  %v1491_v40 = vmul.f32 0.2, %v1471_v31 }
 0x1c2   :  { %v1753_v41 = vmax.f32 %v1714_v24, %v1735_v26  ;;  %v1264_v43 = vmax.f32 %v1226_v3, %v1246_v36  ;;  %v3067_v24 = vld [vmem:[#allocation2 + $0x391] sm:$0xff]  ;;  %v3066_v36 = vld [vmem:[#allocation2 + $0x381] sm:$0xff] }
 0x1c3   :  { %v1998_v42 = vmax.f32 %v1959_v25, %v1980_v27  ;;  %v1509_v44 = vmax.f32 %v1471_v31, %v1491_v40  ;;  %v2912_v31 = vld [vmem:[#allocation2 + $0x261] sm:$0xff] }
 0x1c4   :  { %1772 = vst [vmem:[#allocation2 + $0x3e0] sm:$0xff] %v1753_v41  ;;  %v2927_v41 = vpack.c.bf16 %v2913_v23, %v2912_v31  ;;  %v2765_v31 = vld [vmem:[#allocation2 + $0x400] sm:$0xff] }
 0x1c5   :  { %2017 = vst [vmem:[#allocation2 + $0x470] sm:$0xff] %v1998_v42  ;;  %v3081_v42 = vpack.c.bf16 %v3067_v24, %v3066_v36 }
 0x1c6   :  { %1283 = vst [vmem:[#allocation2 + $0x2c8] sm:$0xff] %v1264_v43 }
 0x1c7   :  { %1528 = vst [vmem:[#allocation2 + $0x358] sm:$0xff] %v1509_v44  ;;  %v1716_v6 = vpop.f32.mrf.mxu2  ;;  %v2157_v62 = vpop.f32.mrf.mxu0 }
 0x1c8   :  { %v1961_v50 = vpop.f32.mrf.mxu3  ;;  %v1736_v60 = vmul.f32 0.2, %v1716_v6  ;;  %v2254_v37 = vpop.f32.mrf.mxu1 }
 0x1c9   :  { %v1981_v61 = vmul.f32 0.2, %v1961_v50  ;;  %v2255_v1 = vadd.f32 %v2254_v37, %v2157_v62  ;;  %v2915_v62 = vld [vmem:[#allocation2 + $0x291] sm:$0xff] }
 0x1ca   :  { %v1754_v5 = vmax.f32 %v1716_v6, %v1736_v60  ;;  %2699 = vmatmul.bf16.vlgmr.msrb.gmra.mxu0 %v2618_v8  ;;  %v3069_v37 = vld [vmem:[#allocation2 + $0x3b1] sm:$0xff]  ;;  %v2928_v22 = vpack.c.bf16 %v2915_v62, %v2914_v55  ;;  %v12279_v62 = vld [vmem:[%s15335_s27 + $0x238] sm:$0xff] }
 0x1cb   :  { %v1999_v7 = vmax.f32 %v1961_v50, %v1981_v61  ;;  %2853 = vmatmul.bf16.vlgmr.msrb.gmra.mxu1 %v2772_v0  ;;  %3308 = vmatpush.bf16.msra.mxu0 %v12279_v62 }
 0x1cc   :  { %1773 = vst [vmem:[#allocation2 + $0x3e8] sm:$0xff] %v1754_v5  ;;  %3007 = vmatmul.bf16.vlgmr.msrb.gmra.mxu2 %v2926_v9 }
 0x1cd   :  { %3161 = vmatmul.bf16.vlgmr.msrb.gmra.mxu3 %v3080_v10  ;;  %2018 = vst [vmem:[#allocation2 + $0x478] sm:$0xff] %v1999_v7 }
 0x1cf   :  { %v2392_v11 = vpop.f32.mrf.mxu2  ;;  %v2159_v14 = vpop.f32.mrf.mxu0 }
 0x1d0   :  { %v2546_v12 = vpop.f32.mrf.mxu3  ;;  %v2432_v13 = vadd.f32 %v2392_v11, %v2255_v1  ;;  %v2256_v16 = vpop.f32.mrf.mxu1  ;;  %v3082_v1 = vpack.c.bf16 %v3069_v37, %v3068_v63  ;;  %v12287_v37 = vld [vmem:[%s15335_s27 + $0x278] sm:$0xff] }
 0x1d1   :  { %v2257_v17 = vadd.f32 %v2256_v16, %v2159_v14  ;;  %3463 = vmatpush.bf16.msra.mxu1 %v12287_v37  ;;  %v12274_v37 = vld [vmem:[%s15335_s27 + $0x210] sm:$0xff] }
 0x1d2   :  { %v13480_v18 = vadd.f32 %v2546_v12, %v2432_v13  ;;  %v2917_v12 = vld [vmem:[#allocation2 + $0x2b1] sm:$0xff] }
 0x1d3   :  { %v3071_v13 = vld [vmem:[#allocation2 + $0x3d1] sm:$0xff]  ;;  %v2929_v16 = vpack.c.bf16 %v2917_v12, %v2916_v21  ;;  %v3075_v21 = vld [vmem:[#allocation2 + $0x421] sm:$0xff] }
 0x1d4   :  { %v12301_v12 = vld [vmem:[%s15335_s27 + $0x2e8] sm:$0xff] }
 0x1d7   :  { %v2394_v15 = vpop.f32.mrf.mxu2  ;;  %v2162_v26 = vpop.f32.mrf.mxu0 }
 0x1d8   :  { %v2548_v20 = vpop.f32.mrf.mxu3  ;;  %v2433_v25 = vadd.f32 %v2394_v15, %v2257_v17  ;;  %v2259_v27 = vpop.f32.mrf.mxu1  ;;  %v3083_v17 = vpack.c.bf16 %v3071_v13, %v3070_v48  ;;  %v2613_v13 = vld [vmem:[#allocation2 + $0x300] sm:$0xff] }
 0x1d9   :  { %v2260_v3 = vadd.f32 %v2259_v27, %v2162_v26 }
 0x1da   :  { %v13482_v40 = vadd.f32 %v2548_v20, %v2433_v25  ;;  %2704 = vmatmul.bf16.gmra.mxu0 %v2619_v52 }
 0x1db   :  { %2858 = vmatmul.bf16.gmra.mxu1 %v2773_v33 }
 0x1dc   :  { %3012 = vmatmul.bf16.gmra.mxu2 %v2927_v41 }
 0x1dd   :  { %3166 = vmatmul.bf16.gmra.mxu3 %v3081_v42 }
 0x1df   :  { %v2397_v43 = vpop.f32.mrf.mxu2  ;;  %v2164_v6 = vpop.f32.mrf.mxu0 }
 0x1e0   :  { %v2551_v44 = vpop.f32.mrf.mxu3  ;;  %v2434_v46 = vadd.f32 %v2397_v43, %v2260_v3  ;;  %v2261_v50 = vpop.f32.mrf.mxu1  ;;  %v2611_v3 = vld [vmem:[#allocation2 + $0x2e0] sm:$0xff] }
 0x1e1   :  { %v2262_v56 = vadd.f32 %v2261_v50, %v2164_v6  ;;  %v2918_v6 = vld [vmem:[#allocation2 + $0x2d1] sm:$0xff] }
 0x1e2   :  { %v13490_v58 = vadd.f32 %v2551_v44, %v2434_v46  ;;  %v2622_v44 = vpack.c.bf16 %v2611_v3, %v2610_v51  ;;  %v3072_v50 = vld [vmem:[#allocation2 + $0x3f1] sm:$0xff]  ;;  %v12283_v51 = vld [vmem:[%s15335_s27 + $0x258] sm:$0xff] }
 0x1e3   :  { %v3074_v3 = vld [vmem:[#allocation2 + $0x411] sm:$0xff] }
 0x1e7   :  { %v2399_v60 = vpop.f32.mrf.mxu2  ;;  %v2167_v19 = vpop.f32.mrf.mxu0 }
 0x1e8   :  { %v2553_v61 = vpop.f32.mrf.mxu3  ;;  %v2435_v45 = vadd.f32 %v2399_v60, %v2262_v56  ;;  %v2264_v52 = vpop.f32.mrf.mxu1  ;;  %v2930_v60 = vpack.c.bf16 %v2919_v29, %v2918_v6  ;;  %v12276_v29 = vld [vmem:[%s15335_s27 + $0x220] sm:$0xff] }
 0x1e9   :  { %v2265_v28 = vadd.f32 %v2264_v52, %v2167_v19  ;;  %v12303_v19 = vld [vmem:[%s15335_s27 + $0x2f8] sm:$0xff] }
 0x1ea   :  { %v13492_v33 = vadd.f32 %v2553_v61, %v2435_v45  ;;  %2709 = vmatmul.bf16.gmra.mxu0 %v2620_v35  ;;  %v3084_v61 = vpack.c.bf16 %v3073_v32, %v3072_v50  ;;  %v12295_v45 = vld [vmem:[%s15335_s27 + $0x2b8] sm:$0xff]  ;;  %3771 = vmatpush.bf16.msra.mxu3 %v12303_v19  ;;  %v12284_v32 = vld [vmem:[%s15335_s27 + $0x260] sm:$0xff]  ;;  %v12290_v19 = vld [vmem:[%s15335_s27 + $0x290] sm:$0xff] }
 0x1eb   :  { %2863 = vmatmul.bf16.gmra.mxu1 %v2774_v57  ;;  %3617 = vmatpush.bf16.msra.mxu2 %v12295_v45  ;;  %v12282_v45 = vld [vmem:[%s15335_s27 + $0x250] sm:$0xff] }
 0x1ec   :  { %3017 = vmatmul.bf16.gmra.mxu2 %v2928_v22 }
 0x1ed   :  { %3171 = vmatmul.bf16.gmra.mxu3 %v3082_v1 }
 0x1ef   :  { %v2402_v8 = vpop.f32.mrf.mxu2  ;;  %v2169_v4 = vpop.f32.mrf.mxu0 }
 0x1f0   :  { %v2556_v0 = vpop.f32.mrf.mxu3  ;;  %v2436_v2 = vadd.f32 %v2402_v8, %v2265_v28  ;;  %v2266_v5 = vpop.f32.mrf.mxu1 }
 0x1f1   :  { %v2267_v7 = vadd.f32 %v2266_v5, %v2169_v4  ;;  %v12294_v4 = vld [vmem:[%s15335_s27 + $0x2b0] sm:$0xff] }
 0x1f2   :  { %v13500_v9 = vadd.f32 %v2556_v0, %v2436_v2  ;;  %v12278_v0 = vld [vmem:[%s15335_s27 + $0x230] sm:$0xff]  ;;  %3618 = vmatpush.bf16.msra.mxu2 %v12294_v4  ;;  %v3077_v4 = vld [vmem:[#allocation2 + $0x441] sm:$0xff] }
 0x1f3   :  { %v12286_v2 = vld [vmem:[%s15335_s27 + $0x270] sm:$0xff]  ;;  %3309 = vmatpush.bf16.msra.mxu0 %v12278_v0 }
 0x1f4   :  { %v12302_v5 = vld [vmem:[%s15335_s27 + $0x2f0] sm:$0xff]  ;;  %3464 = vmatpush.bf16.msra.mxu1 %v12286_v2  ;;  %v2923_v2 = vld [vmem:[#allocation2 + $0x321] sm:$0xff] }
 0x1f5   :  { %3772 = vmatpush.bf16.msra.mxu3 %v12302_v5 }
 0x1f7   :  { %v2404_v10 = vpop.f32.mrf.mxu2  ;;  %v2172_v30 = vpop.f32.mrf.mxu0 }
 0x1f8   :  { %v2558_v11 = vpop.f32.mrf.mxu3  ;;  %v2437_v53 = vadd.f32 %v2404_v10, %v2267_v7  ;;  %v2269_v35 = vpop.f32.mrf.mxu1  ;;  %v12277_v7 = vld [vmem:[%s15335_s27 + $0x228] sm:$0xff] }
 0x1f9   :  { %v2270_v14 = vadd.f32 %v2269_v35, %v2172_v30  ;;  %v12285_v10 = vld [vmem:[%s15335_s27 + $0x268] sm:$0xff]  ;;  %3310 = vmatpush.bf16.msra.mxu0 %v12277_v7  ;;  %3773 = vmatpush.bf16.msra.mxu3 %v12301_v12 }
 0x1fa   :  { %v13502_v57 = vadd.f32 %v2558_v11, %v2437_v53  ;;  %2714 = vmatmul.bf16.gmra.mxu0 %v2621_v39  ;;  %v12293_v11 = vld [vmem:[%s15335_s27 + $0x2a8] sm:$0xff]  ;;  %v2767_v53 = vld [vmem:[#allocation2 + $0x420] sm:$0xff]  ;;  %3465 = vmatpush.bf16.msra.mxu1 %v12285_v10 }
 0x1fb   :  { %2868 = vmatmul.bf16.gmra.mxu1 %v2775_v59  ;;  %v2764_v59 = vld [vmem:[#allocation2 + $0x3f0] sm:$0xff]  ;;  %3619 = vmatpush.bf16.msra.mxu2 %v12293_v11 }
 0x1fc   :  { %3022 = vmatmul.bf16.gmra.mxu2 %v2929_v16  ;;  %v2776_v46 = vpack.c.bf16 %v2765_v31, %v2764_v59  ;;  %v12291_v59 = vld [vmem:[%s15335_s27 + $0x298] sm:$0xff]  ;;  %v2614_v11 = vld [vmem:[#allocation2 + $0x310] sm:$0xff] }
 0x1fd   :  { %3176 = vmatmul.bf16.gmra.mxu3 %v3083_v17  ;;  %3311 = vmatpush.bf16.msra.mxu0 %v12276_v29  ;;  %v2768_v12 = vld [vmem:[#allocation2 + $0x430] sm:$0xff] }
 0x1fe   :  { %3466 = vmatpush.bf16.msra.mxu1 %v12284_v32  ;;  %v2925_v32 = vld [vmem:[#allocation2 + $0x341] sm:$0xff] }
 0x1ff   :  { %v2407_v15 = vpop.f32.mrf.mxu2  ;;  %v2174_v24 = vpop.f32.mrf.mxu0 }
 0x200   :  { %v2561_v20 = vpop.f32.mrf.mxu3  ;;  %v2438_v23 = vadd.f32 %v2407_v15, %v2270_v14  ;;  %v2271_v25 = vpop.f32.mrf.mxu1  ;;  %v2921_v14 = vld [vmem:[#allocation2 + $0x301] sm:$0xff]  ;;  %v2612_v15 = vld [vmem:[#allocation2 + $0x2f0] sm:$0xff] }
 0x201   :  { %v2272_v26 = vadd.f32 %v2271_v25, %v2174_v24  ;;  %v2623_v24 = vpack.c.bf16 %v2613_v13, %v2612_v15  ;;  %v12296_v15 = vld [vmem:[%s15335_s27 + $0x2c0] sm:$0xff] }
 0x202   :  { %v13510_v27 = vadd.f32 %v2561_v20, %v2438_v23  ;;  %v2766_v20 = vld [vmem:[#allocation2 + $0x410] sm:$0xff]  ;;  %3467 = vmatpush.bf16.msra.mxu1 %v12283_v51 }
 0x203   :  { %v2777_v25 = vpack.c.bf16 %v2767_v53, %v2766_v20  ;;  %v2624_v53 = vpack.c.bf16 %v13347_v34, %v2614_v11  ;;  %v12280_v34 = vld [vmem:[%s15335_s27 + $0x240] sm:$0xff] }
 0x206   :  { %3468 = vmatpush.bf16.msra.mxu1 %v12282_v45 }
 0x207   :  { %v2409_v36 = vpop.f32.mrf.mxu2  ;;  %v2177_v42 = vpop.f32.mrf.mxu0 }
 0x208   :  { %v2563_v41 = vpop.f32.mrf.mxu3  ;;  %v2439_v39 = vadd.f32 %v2409_v36, %v2272_v26  ;;  %v2274_v47 = vpop.f32.mrf.mxu1  ;;  %v2920_v26 = vld [vmem:[#allocation2 + $0x2f1] sm:$0xff] }
 0x209   :  { %v2275_v43 = vadd.f32 %v2274_v47, %v2177_v42  ;;  %v2931_v36 = vpack.c.bf16 %v2921_v14, %v2920_v26  ;;  %v12300_v42 = vld [vmem:[%s15335_s27 + $0x2e0] sm:$0xff]  ;;  %v12275_v47 = vld [vmem:[%s15335_s27 + $0x218] sm:$0xff]  ;;  %v3076_v14 = vld [vmem:[#allocation2 + $0x431] sm:$0xff] }
 0x20a   :  { %v13512_v56 = vadd.f32 %v2563_v41, %v2439_v39  ;;  %2719 = vmatmul.bf16.gmra.mxu0 %v2622_v44  ;;  %v3085_v41 = vpack.c.bf16 %v3075_v21, %v3074_v3  ;;  %v12292_v39 = vld [vmem:[%s15335_s27 + $0x2a0] sm:$0xff]  ;;  %3774 = vmatpush.bf16.msra.mxu3 %v12300_v42 }
 0x20b   :  { %2873 = vmatmul.bf16.gmra.mxu1 %v2776_v46  ;;  %3620 = vmatpush.bf16.msra.mxu2 %v12292_v39  ;;  %v3079_v39 = vld [vmem:[#allocation2 + $0x461] sm:$0xff] }
 0x20c   :  { %3027 = vmatmul.bf16.gmra.mxu2 %v2930_v60  ;;  %3312 = vmatpush.bf16.msra.mxu0 %v12275_v47 }
 0x20d   :  { %3181 = vmatmul.bf16.gmra.mxu3 %v3084_v61 }
 0x20f   :  { %v2412_v52 = vpop.f32.mrf.mxu2  ;;  %v2179_v63 = vpop.f32.mrf.mxu0  ;;  %3621 = vmatpush.bf16.msra.mxu2 %v12291_v59  ;;  %v2616_v59 = vld [vmem:[#allocation2 + $0x330] sm:$0xff] }
 0x210   :  { %v2566_v28 = vpop.f32.mrf.mxu3  ;;  %v2440_v55 = vadd.f32 %v2412_v52, %v2275_v43  ;;  %v2276_v22 = vpop.f32.mrf.mxu1  ;;  %v12299_v43 = vld [vmem:[%s15335_s27 + $0x2d8] sm:$0xff]  ;;  %v12298_v52 = vld [vmem:[%s15335_s27 + $0x2d0] sm:$0xff]  ;;  %3313 = vmatpush.bf16.msra.mxu0 %v12274_v37 }
 0x211   :  { %v2277_v1 = vadd.f32 %v2276_v22, %v2179_v63  ;;  %3775 = vmatpush.bf16.msra.mxu3 %v12299_v43  ;;  %v12289_v63 = vld [vmem:[%s15335_s27 + $0x288] sm:$0xff] }
 0x212   :  { %v13526_v8 = vadd.f32 %v2566_v28, %v2440_v55  ;;  %v12273_v28 = vld [vmem:[%s15335_s27 + $0x208] sm:$0xff] }
 0x213   :  { %v12281_v55 = vld [vmem:[%s15335_s27 + $0x248] sm:$0xff]  ;;  %3622 = vmatpush.bf16.msra.mxu2 %v12290_v19 }
 0x214   :  { %v12297_v22 = vld [vmem:[%s15335_s27 + $0x2c8] sm:$0xff]  ;;  %3314 = vmatpush.bf16.msra.mxu0 %v12273_v28  ;;  %3469 = vmatpush.bf16.msra.mxu1 %v12281_v55 }
 0x215   :  { %3776 = vmatpush.bf16.msra.mxu3 %v12298_v52  ;;  %v2770_v43 = vld [vmem:[#allocation2 + $0x450] sm:$0xff] }
 0x217   :  { %v2414_v30 = vpop.f32.mrf.mxu2  ;;  %v2182_v16 = vpop.f32.mrf.mxu0  ;;  %3623 = vmatpush.bf16.msra.mxu2 %v12289_v63 }
 0x218   :  { %v2568_v35 = vpop.f32.mrf.mxu3  ;;  %v2441_v48 = vadd.f32 %v2414_v30, %v2277_v1  ;;  %v2279_v17 = vpop.f32.mrf.mxu1  ;;  %v2778_v30 = vpack.c.bf16 %v13373_v49, %v2768_v12  ;;  %v12288_v49 = vld [vmem:[%s15335_s27 + $0x280] sm:$0xff]  ;;  %3470 = vmatpush.bf16.msra.mxu1 %v12280_v34  ;;  %v3219_v12 = vld [vmem:[#allocation2 + $0x10] sm:$0xff] }
 0x219   :  { %v2280_v23 = vadd.f32 %v2279_v17, %v2182_v16  ;;  %v3086_v16 = vpack.c.bf16 %v3077_v4, %v3076_v14  ;;  %3777 = vmatpush.bf16.msra.mxu3 %v12297_v22  ;;  %v12272_v17 = vld [vmem:[%s15335_s27 + $0x200] sm:$0xff]  ;;  %v3528_v14 = vld [vmem:[#allocation2 + $0x11] sm:$0xff] }
 0x21a   :  { %v13552_v31 = vadd.f32 %v2568_v35, %v2441_v48  ;;  %2724 = vmatmul.bf16.gmra.mxu0 %v2623_v24  ;;  %v2922_v35 = vld [vmem:[#allocation2 + $0x311] sm:$0xff]  ;;  %v3529_v4 = vld [vmem:[#allocation2 + $0x21] sm:$0xff] }
 0x21b   :  { %2878 = vmatmul.bf16.gmra.mxu1 %v2777_v25  ;;  %v2932_v48 = vpack.c.bf16 %v2923_v2, %v2922_v35  ;;  %3315 = vmatpush.bf16.msra.mxu0 %v12272_v17  ;;  %v3544_v17 = vpack.c.bf16 %v3529_v4, %v3528_v14  ;;  %v3224_v4 = vld [vmem:[#allocation2 + $0x60] sm:$0xff]  ;;  %v3378_v14 = vld [vmem:[#allocation2 + $0x170] sm:$0xff] }
 0x21c   :  { %3032 = vmatmul.bf16.gmra.mxu2 %v2931_v36 }
 0x21d   :  { %3186 = vmatmul.bf16.gmra.mxu3 %v3085_v41  ;;  %3624 = vmatpush.bf16.msra.mxu2 %v12288_v49 }
 0x21e   :  { %3778 = vmatpush.bf16.msra.mxu3 %v12296_v15 }
 0x21f   :  { %v2417_v44 = vpop.f32.mrf.mxu2  ;;  %v2184_v50 = vpop.f32.mrf.mxu0 }
 0x220   :  { %v2571_v46 = vpop.f32.mrf.mxu3  ;;  %v2442_v6 = vadd.f32 %v2417_v44, %v2280_v23  ;;  %v2281_v60 = vpop.f32.mrf.mxu1 }
 0x221   :  { %v2282_v61 = vadd.f32 %v2281_v60, %v2184_v50  ;;  %v2924_v50 = vld [vmem:[#allocation2 + $0x331] sm:$0xff] }
 0x222   :  { %v13578_v62 = vadd.f32 %v2571_v46, %v2442_v6  ;;  %v2625_v46 = vpack.c.bf16 %v13465_v38, %v2616_v59  ;;  %v2779_v6 = vpack.c.bf16 %v13473_v54, %v2770_v43  ;;  %v3078_v60 = vld [vmem:[#allocation2 + $0x451] sm:$0xff]  ;;  %v2933_v37 = vpack.c.bf16 %v2925_v32, %v2924_v50  ;;  %v3220_v38 = vld [vmem:[#allocation2 + $0x20] sm:$0xff] }
 0x223   :  { %v3087_v45 = vpack.c.bf16 %v3079_v39, %v3078_v60  ;;  %v3375_v54 = vld [vmem:[#allocation2 + $0x140] sm:$0xff] }
 0x227   :  { %v2419_v1 = vpop.f32.mrf.mxu2  ;;  %v2187_v7 = vpop.f32.mrf.mxu0 }
 0x228   :  { %v2573_v0 = vpop.f32.mrf.mxu3  ;;  %v2443_v5 = vadd.f32 %v2419_v1, %v2282_v61  ;;  %v2284_v10 = vpop.f32.mrf.mxu1 }
 0x229   :  { %v2285_v13 = vadd.f32 %v2284_v10, %v2187_v7 }
 0x22a   :  { %v13606_v21 = vadd.f32 %v2573_v0, %v2443_v5  ;;  %2729 = vmatmul.bf16.gmra.mxu0 %v2624_v53  ;;  %v3683_v5 = vld [vmem:[#allocation2 + $0x141] sm:$0xff] }
 0x22b   :  { %2883 = vmatmul.bf16.gmra.mxu1 %v2778_v30  ;;  %v3235_v30 = vpack.c.bf16 %v3220_v38, %v3219_v12  ;;  %v3687_v12 = vld [vmem:[#allocation2 + $0x181] sm:$0xff] }
 0x22c   :  { %3037 = vmatmul.bf16.gmra.mxu2 %v2932_v48  ;;  %v3682_v48 = vld [vmem:[#allocation2 + $0x131] sm:$0xff] }
 0x22d   :  { %3191 = vmatmul.bf16.gmra.mxu3 %v3086_v16  ;;  %v3698_v34 = vpack.c.bf16 %v3683_v5, %v3682_v48  ;;  %v3379_v5 = vld [vmem:[#allocation2 + $0x180] sm:$0xff] }
 0x22f   :  { %v2422_v20 = vpop.f32.mrf.mxu2  ;;  %v2189_v25 = vpop.f32.mrf.mxu0 }
 0x230   :  { %v2576_v23 = vpop.f32.mrf.mxu3  ;;  %v2444_v24 = vadd.f32 %v2422_v20, %v2285_v13  ;;  %v2286_v26 = vpop.f32.mrf.mxu1  ;;  %v3374_v13 = vld [vmem:[#allocation2 + $0x130] sm:$0xff] }
 0x231   :  { %v2287_v3 = vadd.f32 %v2286_v26, %v2189_v25  ;;  %v3390_v35 = vpack.c.bf16 %v3375_v54, %v3374_v13 }
 0x232   :  { %v13620_v36 = vadd.f32 %v2576_v23, %v2444_v24 }
 0x237   :  { %v2424_v41 = vpop.f32.mrf.mxu2  ;;  %v2192_v47 = vpop.f32.mrf.mxu0 }
 0x238   :  { %v2578_v29 = vpop.f32.mrf.mxu3  ;;  %v2445_v42 = vadd.f32 %v2424_v41, %v2287_v3  ;;  %v2289_v51 = vpop.f32.mrf.mxu1  ;;  %v3222_v41 = vld [vmem:[#allocation2 + $0x40] sm:$0xff] }
 0x239   :  { %v2290_v44 = vadd.f32 %v2289_v51, %v2192_v47  ;;  %v3685_v47 = vld [vmem:[#allocation2 + $0x161] sm:$0xff] }
 0x23a   :  { %v13624_v61 = vadd.f32 %v2578_v29, %v2445_v42  ;;  %2734 = vmatmul.bf16.gmra.mxu0 %v2625_v46  ;;  %v3377_v29 = vld [vmem:[#allocation2 + $0x160] sm:$0xff]  ;;  %v3376_v46 = vld [vmem:[#allocation2 + $0x150] sm:$0xff] }
 0x23b   :  { %2888 = vmatmul.bf16.gmra.mxu1 %v2779_v6  ;;  %v3531_v42 = vld [vmem:[#allocation2 + $0x41] sm:$0xff]  ;;  %v3391_v60 = vpack.c.bf16 %v3377_v29, %v3376_v46 }
 0x23c   :  { %3042 = vmatmul.bf16.gmra.mxu2 %v2933_v37  ;;  %v3530_v37 = vld [vmem:[#allocation2 + $0x31] sm:$0xff] }
 0x23d   :  { %3196 = vmatmul.bf16.gmra.mxu3 %v3087_v45 }
 0x23f   :  { %v2427_v19 = vpop.f32.mrf.mxu2  ;;  %v2194_v55 = vpop.f32.mrf.mxu0 }
 0x240   :  { %v2581_v52 = vpop.f32.mrf.mxu3  ;;  %v2446_v28 = vadd.f32 %v2427_v19, %v2290_v44  ;;  %v2291_v63 = vpop.f32.mrf.mxu1  ;;  %v3221_v44 = vld [vmem:[#allocation2 + $0x30] sm:$0xff]  ;;  %v3545_v19 = vpack.c.bf16 %v3531_v42, %v3530_v37  ;;  %v3226_v42 = vld [vmem:[#allocation2 + $0x80] sm:$0xff] }
 0x241   :  { %v2292_v22 = vadd.f32 %v2291_v63, %v2194_v55  ;;  %v3236_v50 = vpack.c.bf16 %v3222_v41, %v3221_v44  ;;  %v3689_v44 = vld [vmem:[#allocation2 + $0x1a1] sm:$0xff]  ;;  %v3380_v37 = vld [vmem:[#allocation2 + $0x190] sm:$0xff] }
 0x242   :  { %v13626_v1 = vadd.f32 %v2581_v52, %v2446_v28 }
 0x247   :  { %v2429_v0 = vpop.f32.mrf.mxu2  ;;  %v2700_v10 = vpop.f32.mrf.mxu0 }
 0x248   :  { %v2583_v2 = vpop.f32.mrf.mxu3  ;;  %v2447_v7 = vadd.f32 %v2429_v0, %v2292_v22  ;;  %v2854_v11 = vpop.f32.mrf.mxu1  ;;  %v2740_v53 = vadd.f32 %v2700_v10, %v13480_v18 }
 0x24a   :  { %v13629_v16 = vadd.f32 %v2583_v2, %v2447_v7  ;;  %v2894_v49 = vadd.f32 %v2854_v11, %v2740_v53  ;;  %3316 = vmatmul.bf16.vlgmr.msra.gmra.mxu0 %v3235_v30  ;;  %v3533_v11 = vld [vmem:[#allocation2 + $0x61] sm:$0xff] }
 0x24b   :  { %3471 = vmatmul.bf16.vlgmr.msra.gmra.mxu1 %v3390_v35  ;;  %v3223_v35 = vld [vmem:[#allocation2 + $0x50] sm:$0xff] }
 0x24c   :  { %3625 = vmatmul.bf16.vlgmr.msra.gmra.mxu2 %v3544_v17  ;;  %v3237_v17 = vpack.c.bf16 %v3224_v4, %v3223_v35  ;;  %v3691_v35 = vld [vmem:[#allocation2 + $0x1d1] sm:$0xff] }
 0x24d   :  { %3779 = vmatmul.bf16.vlgmr.msra.gmra.mxu3 %v3698_v34  ;;  %v3392_v34 = vpack.c.bf16 %v3379_v5, %v3378_v14 }
 0x24f   :  { %v3008_v15 = vpop.f32.mrf.mxu2  ;;  %v2702_v24 = vpop.f32.mrf.mxu0 }
 0x250   :  { %v3162_v20 = vpop.f32.mrf.mxu3  ;;  %v3048_v23 = vadd.f32 %v3008_v15, %v2894_v49  ;;  %v2856_v25 = vpop.f32.mrf.mxu1  ;;  %v2741_v18 = vadd.f32 %v2702_v24, %v13482_v40  ;;  %v3684_v40 = vld [vmem:[#allocation2 + $0x151] sm:$0xff] }
 0x251   :  { %v3699_v52 = vpack.c.bf16 %v3685_v47, %v3684_v40  ;;  %v3532_v49 = vld [vmem:[#allocation2 + $0x51] sm:$0xff]  ;;  %v3381_v47 = vld [vmem:[#allocation2 + $0x1a0] sm:$0xff] }
 0x252   :  { %v13632_v26 = vadd.f32 %v3162_v20, %v3048_v23  ;;  %v2895_v3 = vadd.f32 %v2856_v25, %v2741_v18  ;;  %v3546_v20 = vpack.c.bf16 %v3533_v11, %v3532_v49  ;;  %v3228_v11 = vld [vmem:[#allocation2 + $0xb0] sm:$0xff]  ;;  %v3382_v49 = vld [vmem:[#allocation2 + $0x1c0] sm:$0xff] }
 0x257   :  { %v3010_v32 = vpop.f32.mrf.mxu2  ;;  %v2705_v59 = vpop.f32.mrf.mxu0 }
 0x258   :  { %v3164_v39 = vpop.f32.mrf.mxu3  ;;  %v3049_v51 = vadd.f32 %v3010_v32, %v2895_v3  ;;  %v2859_v43 = vpop.f32.mrf.mxu1  ;;  %v2742_v6 = vadd.f32 %v2705_v59, %v13490_v58 }
 0x25a   :  { %v13635_v45 = vadd.f32 %v3164_v39, %v3049_v51  ;;  %v2896_v28 = vadd.f32 %v2859_v43, %v2742_v6  ;;  %3321 = vmatmul.bf16.gmra.mxu0 %v3236_v50  ;;  %v3535_v43 = vld [vmem:[#allocation2 + $0x81] sm:$0xff] }
 0x25b   :  { %3476 = vmatmul.bf16.gmra.mxu1 %v3391_v60  ;;  %v3225_v60 = vld [vmem:[#allocation2 + $0x70] sm:$0xff] }
 0x25c   :  { %3630 = vmatmul.bf16.gmra.mxu2 %v3545_v19  ;;  %v3238_v19 = vpack.c.bf16 %v3226_v42, %v3225_v60  ;;  %v12318_v60 = vld [vmem:[%s15335_s27 + $0x370] sm:$0xff] }
 0x25d   :  { %3784 = vmatmul.bf16.gmra.mxu3 %v3699_v52  ;;  %v3393_v52 = vpack.c.bf16 %v3381_v47, %v3380_v37  ;;  %v12326_v37 = vld [vmem:[%s15335_s27 + $0x3b0] sm:$0xff] }
 0x25f   :  { %v3013_v55 = vpop.f32.mrf.mxu2  ;;  %v2707_v38 = vpop.f32.mrf.mxu0 }
 0x260   :  { %v3167_v63 = vpop.f32.mrf.mxu3  ;;  %v3050_v22 = vadd.f32 %v3013_v55, %v2896_v28  ;;  %v2861_v54 = vpop.f32.mrf.mxu1  ;;  %v2743_v58 = vadd.f32 %v2707_v38, %v13492_v33  ;;  %v3686_v33 = vld [vmem:[#allocation2 + $0x171] sm:$0xff] }
 0x261   :  { %v3700_v23 = vpack.c.bf16 %v3687_v12, %v3686_v33  ;;  %v3534_v28 = vld [vmem:[#allocation2 + $0x71] sm:$0xff] }
 0x262   :  { %v13638_v0 = vadd.f32 %v3167_v63, %v3050_v22  ;;  %v2897_v2 = vadd.f32 %v2861_v54, %v2743_v58  ;;  %v3547_v63 = vpack.c.bf16 %v3535_v43, %v3534_v28  ;;  %v3383_v12 = vld [vmem:[#allocation2 + $0x1d0] sm:$0xff] }
 0x263   :  { %v3385_v28 = vld [vmem:[#allocation2 + $0x1f0] sm:$0xff] }
 0x267   :  { %v3015_v7 = vpop.f32.mrf.mxu2  ;;  %v2710_v53 = vpop.f32.mrf.mxu0 }
 0x268   :  { %v3169_v10 = vpop.f32.mrf.mxu3  ;;  %v3051_v13 = vadd.f32 %v3015_v7, %v2897_v2  ;;  %v2864_v30 = vpop.f32.mrf.mxu1  ;;  %v2744_v48 = vadd.f32 %v2710_v53, %v13500_v9 }
 0x26a   :  { %v13641_v15 = vadd.f32 %v3169_v10, %v3051_v13  ;;  %v2898_v24 = vadd.f32 %v2864_v30, %v2744_v48  ;;  %3326 = vmatmul.bf16.gmra.mxu0 %v3237_v17  ;;  %v3537_v30 = vld [vmem:[#allocation2 + $0xb1] sm:$0xff] }
 0x26b   :  { %3481 = vmatmul.bf16.gmra.mxu1 %v3392_v34  ;;  %v3227_v34 = vld [vmem:[#allocation2 + $0xa0] sm:$0xff] }
 0x26c   :  { %3635 = vmatmul.bf16.gmra.mxu2 %v3546_v20  ;;  %v3239_v20 = vpack.c.bf16 %v3228_v11, %v3227_v34  ;;  %v12308_v34 = vld [vmem:[%s15335_s27 + $0x320] sm:$0xff] }
 0x26d   :  { %3789 = vmatmul.bf16.gmra.mxu3 %v3700_v23  ;;  %v3394_v23 = vpack.c.bf16 %v3383_v12, %v3382_v49  ;;  %v12324_v49 = vld [vmem:[%s15335_s27 + $0x3a0] sm:$0xff] }
 0x26f   :  { %v3018_v25 = vpop.f32.mrf.mxu2  ;;  %v2712_v41 = vpop.f32.mrf.mxu0 }
 0x270   :  { %v3172_v18 = vpop.f32.mrf.mxu3  ;;  %v3052_v3 = vadd.f32 %v3018_v25, %v2898_v24  ;;  %v2866_v29 = vpop.f32.mrf.mxu1  ;;  %v2745_v9 = vadd.f32 %v2712_v41, %v13502_v57  ;;  %v3688_v57 = vld [vmem:[#allocation2 + $0x191] sm:$0xff]  ;;  %v3536_v24 = vld [vmem:[#allocation2 + $0xa1] sm:$0xff] }
 0x271   :  { %v3701_v22 = vpack.c.bf16 %v3689_v44, %v3688_v57  ;;  %v12325_v57 = vld [vmem:[%s15335_s27 + $0x3a8] sm:$0xff] }
 0x272   :  { %v13644_v32 = vadd.f32 %v3172_v18, %v3052_v3  ;;  %v2899_v39 = vadd.f32 %v2866_v29, %v2745_v9  ;;  %v3548_v18 = vpack.c.bf16 %v3537_v30, %v3536_v24  ;;  %v12311_v29 = vld [vmem:[%s15335_s27 + $0x338] sm:$0xff] }
 0x273   :  { %v12327_v9 = vld [vmem:[%s15335_s27 + $0x3b8] sm:$0xff]  ;;  %3926 = vmatpush.bf16.msrb.mxu0 %v12311_v29 }
 0x274   :  { %4235 = vmatpush.bf16.msrb.mxu2 %v12327_v9  ;;  %v3692_v30 = vld [vmem:[#allocation2 + $0x1e1] sm:$0xff] }
 0x275   :  { %v12323_v24 = vld [vmem:[%s15335_s27 + $0x398] sm:$0xff] }
 0x277   :  { %v3020_v51 = vpop.f32.mrf.mxu2  ;;  %v2715_v6 = vpop.f32.mrf.mxu0 }
 0x278   :  { %v3174_v59 = vpop.f32.mrf.mxu3  ;;  %v3053_v46 = vadd.f32 %v3020_v51, %v2899_v39  ;;  %v2869_v50 = vpop.f32.mrf.mxu1  ;;  %v2746_v40 = vadd.f32 %v2715_v6, %v13510_v27  ;;  %v12335_v39 = vld [vmem:[%s15335_s27 + $0x3f8] sm:$0xff]  ;;  %4236 = vmatpush.bf16.msrb.mxu2 %v12326_v37  ;;  %v12329_v37 = vld [vmem:[%s15335_s27 + $0x3c8] sm:$0xff] }
 0x279   :  { %4389 = vmatpush.bf16.msrb.mxu3 %v12335_v39 }
 0x27a   :  { %v13647_v55 = vadd.f32 %v3174_v59, %v3053_v46  ;;  %v2900_v38 = vadd.f32 %v2869_v50, %v2746_v40  ;;  %3331 = vmatmul.bf16.gmra.mxu0 %v3238_v19  ;;  %v12310_v50 = vld [vmem:[%s15335_s27 + $0x330] sm:$0xff]  ;;  %v12309_v19 = vld [vmem:[%s15335_s27 + $0x328] sm:$0xff] }
 0x27b   :  { %3486 = vmatmul.bf16.gmra.mxu1 %v3393_v52  ;;  %v12334_v40 = vld [vmem:[%s15335_s27 + $0x3f0] sm:$0xff]  ;;  %3927 = vmatpush.bf16.msrb.mxu0 %v12310_v50  ;;  %v12317_v52 = vld [vmem:[%s15335_s27 + $0x368] sm:$0xff] }
 0x27c   :  { %3640 = vmatmul.bf16.gmra.mxu2 %v3547_v63  ;;  %v12333_v63 = vld [vmem:[%s15335_s27 + $0x3e8] sm:$0xff] }
 0x27d   :  { %3794 = vmatmul.bf16.gmra.mxu3 %v3701_v22  ;;  %4237 = vmatpush.bf16.msrb.mxu2 %v12325_v57  ;;  %v3387_v50 = vld [vmem:[#allocation2 + $0x210] sm:$0xff] }
 0x27e   :  { %4390 = vmatpush.bf16.msrb.mxu3 %v12334_v40 }
 0x27f   :  { %v3023_v54 = vpop.f32.mrf.mxu2  ;;  %v2717_v4 = vpop.f32.mrf.mxu0  ;;  %3928 = vmatpush.bf16.msrb.mxu0 %v12309_v19  ;;  %v3541_v19 = vld [vmem:[#allocation2 + $0xf1] sm:$0xff] }
 0x280   :  { %v3177_v58 = vpop.f32.mrf.mxu3  ;;  %v3054_v2 = vadd.f32 %v3023_v54, %v2900_v38  ;;  %v2871_v5 = vpop.f32.mrf.mxu1  ;;  %v2747_v27 = vadd.f32 %v2717_v4, %v13512_v56  ;;  %v3690_v56 = vld [vmem:[#allocation2 + $0x1c1] sm:$0xff]  ;;  %v3539_v54 = vld [vmem:[#allocation2 + $0xd1] sm:$0xff] }
 0x281   :  { %v3702_v3 = vpack.c.bf16 %v3691_v35, %v3690_v56  ;;  %4238 = vmatpush.bf16.msrb.mxu2 %v12324_v49  ;;  %v12331_v56 = vld [vmem:[%s15335_s27 + $0x3d8] sm:$0xff] }
 0x282   :  { %v13650_v7 = vadd.f32 %v3177_v58, %v3054_v2  ;;  %v2901_v10 = vadd.f32 %v2871_v5, %v2747_v27  ;;  %v3693_v58 = vld [vmem:[#allocation2 + $0x1f1] sm:$0xff]  ;;  %v3229_v27 = vld [vmem:[#allocation2 + $0xc0] sm:$0xff]  ;;  %4391 = vmatpush.bf16.msrb.mxu3 %v12333_v63 }
 0x283   :  { %3929 = vmatpush.bf16.msrb.mxu0 %v12308_v34 }
 0x285   :  { %4239 = vmatpush.bf16.msrb.mxu2 %v12323_v24  ;;  %v3389_v24 = vld [vmem:[#allocation2 + $0x230] sm:$0xff] }
 0x287   :  { %v3025_v13 = vpop.f32.mrf.mxu2  ;;  %v2720_v48 = vpop.f32.mrf.mxu0 }
 0x288   :  { %v3179_v53 = vpop.f32.mrf.mxu3  ;;  %v3055_v14 = vadd.f32 %v3025_v13, %v2901_v10  ;;  %v2874_v17 = vpop.f32.mrf.mxu1  ;;  %v2748_v33 = vadd.f32 %v2720_v48, %v13526_v8  ;;  %v12319_v8 = vld [vmem:[%s15335_s27 + $0x378] sm:$0xff]  ;;  %v3703_v48 = vpack.c.bf16 %v3693_v58, %v3692_v30  ;;  %v12328_v30 = vld [vmem:[%s15335_s27 + $0x3c0] sm:$0xff] }
 0x289   :  { %4081 = vmatpush.bf16.msrb.mxu1 %v12319_v8  ;;  %v3384_v10 = vld [vmem:[#allocation2 + $0x1e0] sm:$0xff] }
 0x28a   :  { %v13653_v25 = vadd.f32 %v3179_v53, %v3055_v14  ;;  %v2902_v41 = vadd.f32 %v2874_v17, %v2748_v33  ;;  %3336 = vmatmul.bf16.gmra.mxu0 %v3239_v20  ;;  %v3395_v13 = vpack.c.bf16 %v3385_v28, %v3384_v10  ;;  %v3538_v53 = vld [vmem:[#allocation2 + $0xc1] sm:$0xff] }
 0x28b   :  { %3491 = vmatmul.bf16.gmra.mxu1 %v3394_v23  ;;  %v3549_v14 = vpack.c.bf16 %v3539_v54, %v3538_v53  ;;  %v12332_v33 = vld [vmem:[%s15335_s27 + $0x3e0] sm:$0xff]  ;;  %v12307_v20 = vld [vmem:[%s15335_s27 + $0x318] sm:$0xff] }
 0x28c   :  { %3645 = vmatmul.bf16.gmra.mxu2 %v3548_v18  ;;  %v12315_v23 = vld [vmem:[%s15335_s27 + $0x358] sm:$0xff]  ;;  %4392 = vmatpush.bf16.msrb.mxu3 %v12332_v33  ;;  %v12320_v53 = vld [vmem:[%s15335_s27 + $0x380] sm:$0xff] }
 0x28d   :  { %3799 = vmatmul.bf16.gmra.mxu3 %v3702_v3  ;;  %4082 = vmatpush.bf16.msrb.mxu1 %v12318_v60  ;;  %v12321_v60 = vld [vmem:[%s15335_s27 + $0x388] sm:$0xff] }
 0x28e   :  { %3930 = vmatpush.bf16.msrb.mxu0 %v12307_v20 }
 0x28f   :  { %v3028_v42 = vpop.f32.mrf.mxu2  ;;  %v2722_v59 = vpop.f32.mrf.mxu0 }
 0x290   :  { %v3182_v47 = vpop.f32.mrf.mxu3  ;;  %v3056_v51 = vadd.f32 %v3028_v42, %v2902_v41  ;;  %v2876_v43 = vpop.f32.mrf.mxu1  ;;  %v2749_v44 = vadd.f32 %v2722_v59, %v13552_v31  ;;  %v3230_v31 = vld [vmem:[#allocation2 + $0xd0] sm:$0xff]  ;;  %4393 = vmatpush.bf16.msrb.mxu3 %v12331_v56  ;;  %v12322_v59 = vld [vmem:[%s15335_s27 + $0x390] sm:$0xff] }
 0x291   :  { %v3240_v12 = vpack.c.bf16 %v3230_v31, %v3229_v27  ;;  %4083 = vmatpush.bf16.msrb.mxu1 %v12317_v52  ;;  %4240 = vmatpush.bf16.msrb.mxu2 %v12322_v59  ;;  %v3695_v52 = vld [vmem:[#allocation2 + $0x211] sm:$0xff] }
 0x292   :  { %v13668_v46 = vadd.f32 %v3182_v47, %v3056_v51  ;;  %v2903_v6 = vadd.f32 %v2876_v43, %v2749_v44  ;;  %v12306_v47 = vld [vmem:[%s15335_s27 + $0x310] sm:$0xff]  ;;  %v3232_v43 = vld [vmem:[#allocation2 + $0xf0] sm:$0xff] }
 0x293   :  { %v12314_v51 = vld [vmem:[%s15335_s27 + $0x350] sm:$0xff]  ;;  %3931 = vmatpush.bf16.msrb.mxu0 %v12306_v47  ;;  %v12305_v44 = vld [vmem:[%s15335_s27 + $0x308] sm:$0xff]  ;;  %v3388_v47 = vld [vmem:[#allocation2 + $0x220] sm:$0xff] }
 0x295   :  { %4241 = vmatpush.bf16.msrb.mxu2 %v12321_v60 }
 0x297   :  { %v3030_v22 = vpop.f32.mrf.mxu2  ;;  %v2725_v4 = vpop.f32.mrf.mxu0  ;;  %3932 = vmatpush.bf16.msrb.mxu0 %v12305_v44 }
 0x298   :  { %v3184_v38 = vpop.f32.mrf.mxu3  ;;  %v3057_v2 = vadd.f32 %v3030_v22, %v2903_v6  ;;  %v2879_v5 = vpop.f32.mrf.mxu1  ;;  %v2750_v11 = vadd.f32 %v2725_v4, %v13578_v62  ;;  %v12316_v62 = vld [vmem:[%s15335_s27 + $0x360] sm:$0xff]  ;;  %v12313_v6 = vld [vmem:[%s15335_s27 + $0x348] sm:$0xff]  ;;  %v3231_v22 = vld [vmem:[#allocation2 + $0xe0] sm:$0xff] }
 0x299   :  { %4084 = vmatpush.bf16.msrb.mxu1 %v12316_v62  ;;  %v3241_v58 = vpack.c.bf16 %v3232_v43, %v3231_v22  ;;  %v3540_v4 = vld [vmem:[#allocation2 + $0xe1] sm:$0xff]  ;;  %4242 = vmatpush.bf16.msrb.mxu2 %v12320_v53 }
 0x29a   :  { %v13695_v35 = vadd.f32 %v3184_v38, %v3057_v2  ;;  %v2904_v17 = vadd.f32 %v2879_v5, %v2750_v11  ;;  %3341 = vmatmul.bf16.gmra.mxu0 %v3240_v12  ;;  %v3386_v38 = vld [vmem:[#allocation2 + $0x200] sm:$0xff]  ;;  %v3550_v10 = vpack.c.bf16 %v3541_v19, %v3540_v4 }
 0x29b   :  { %3496 = vmatmul.bf16.gmra.mxu1 %v3395_v13  ;;  %v3396_v2 = vpack.c.bf16 %v3387_v50, %v3386_v38  ;;  %v3694_v5 = vld [vmem:[#allocation2 + $0x201] sm:$0xff] }
 0x29c   :  { %3650 = vmatmul.bf16.gmra.mxu2 %v3549_v14  ;;  %v3704_v11 = vpack.c.bf16 %v3695_v52, %v3694_v5  ;;  %v12304_v13 = vld [vmem:[%s15335_s27 + $0x300] sm:$0xff]  ;;  %v3993_v22 = vld [vmem:[#allocation2 + $0x380] sm:$0xff] }
 0x29d   :  { %3804 = vmatmul.bf16.gmra.mxu3 %v3703_v48  ;;  %4085 = vmatpush.bf16.msrb.mxu1 %v12315_v23  ;;  %v3234_v23 = vld [vmem:[#allocation2 + $0x110] sm:$0xff]  ;;  %v3542_v43 = vld [vmem:[#allocation2 + $0x101] sm:$0xff] }
 0x29e   :  { %3933 = vmatpush.bf16.msrb.mxu0 %v12304_v13 }
 0x29f   :  { %v3033_v18 = vpop.f32.mrf.mxu2  ;;  %v2727_v29 = vpop.f32.mrf.mxu0 }
 0x2a0   :  { %v3187_v3 = vpop.f32.mrf.mxu3  ;;  %v3058_v41 = vadd.f32 %v3033_v18, %v2904_v17  ;;  %v2881_v8 = vpop.f32.mrf.mxu1  ;;  %v2751_v9 = vadd.f32 %v2727_v29, %v13606_v21  ;;  %v12330_v21 = vld [vmem:[%s15335_s27 + $0x3d0] sm:$0xff] }
 0x2a1   :  { %4086 = vmatpush.bf16.msrb.mxu1 %v12314_v51  ;;  %4394 = vmatpush.bf16.msrb.mxu3 %v12330_v21  ;;  %v3397_v21 = vpack.c.bf16 %v3389_v24, %v3388_v47 }
 0x2a2   :  { %v13722_v39 = vadd.f32 %v3187_v3, %v3058_v41  ;;  %v2905_v42 = vadd.f32 %v2881_v8, %v2751_v9  ;;  %v3543_v3 = vld [vmem:[#allocation2 + $0x111] sm:$0xff] }
 0x2a3   :  { %v3697_v41 = vld [vmem:[#allocation2 + $0x231] sm:$0xff] }
 0x2a5   :  { %4087 = vmatpush.bf16.msrb.mxu1 %v12313_v6  ;;  %4395 = vmatpush.bf16.msrb.mxu3 %v12329_v37  ;;  %v3551_v6 = vpack.c.bf16 %v3543_v3, %v3542_v43  ;;  %v3840_v3 = vld [vmem:[#allocation2 + $0x280] sm:$0xff]  ;;  %v3994_v43 = vld [vmem:[#allocation2 + $0x390] sm:$0xff] }
 0x2a7   :  { %v3035_v40 = vpop.f32.mrf.mxu2  ;;  %v2730_v57 = vpop.f32.mrf.mxu0 }
 0x2a8   :  { %v3189_v31 = vpop.f32.mrf.mxu3  ;;  %v3059_v28 = vadd.f32 %v3035_v40, %v2905_v42  ;;  %v2884_v63 = vpop.f32.mrf.mxu1  ;;  %v2752_v54 = vadd.f32 %v2730_v57, %v13620_v36  ;;  %v12312_v36 = vld [vmem:[%s15335_s27 + $0x340] sm:$0xff]  ;;  %v3233_v42 = vld [vmem:[#allocation2 + $0x100] sm:$0xff] }
 0x2a9   :  { %4088 = vmatpush.bf16.msrb.mxu1 %v12312_v36  ;;  %4396 = vmatpush.bf16.msrb.mxu3 %v12328_v30  ;;  %v3242_v59 = vpack.c.bf16 %v3234_v23, %v3233_v42  ;;  %v4146_v30 = vld [vmem:[#allocation2 + $0x251] sm:$0xff]  ;;  %v4303_v42 = vld [vmem:[#allocation2 + $0x3a1] sm:$0xff] }
 0x2aa   :  { %v13749_v27 = vadd.f32 %v3189_v31, %v3059_v28  ;;  %v2906_v12 = vadd.f32 %v2884_v63, %v2752_v54  ;;  %3346 = vmatmul.bf16.gmra.mxu0 %v3241_v58  ;;  %v3838_v63 = vld [vmem:[#allocation2 + $0x260] sm:$0xff] }
 0x2ab   :  { %3501 = vmatmul.bf16.gmra.mxu1 %v3396_v2  ;;  %v4147_v58 = vld [vmem:[#allocation2 + $0x261] sm:$0xff] }
 0x2ac   :  { %3655 = vmatmul.bf16.gmra.mxu2 %v3550_v10  ;;  %v4301_v2 = vld [vmem:[#allocation2 + $0x381] sm:$0xff] }
 0x2ad   :  { %3809 = vmatmul.bf16.gmra.mxu3 %v3704_v11  ;;  %v3837_v11 = vld [vmem:[#allocation2 + $0x250] sm:$0xff] }
 0x2ae   :  { %v3853_v36 = vpack.c.bf16 %v3838_v63, %v3837_v11  ;;  %v4305_v11 = vld [vmem:[#allocation2 + $0x3c1] sm:$0xff] }
 0x2af   :  { %v3038_v14 = vpop.f32.mrf.mxu2  ;;  %v2732_v34 = vpop.f32.mrf.mxu0 }
 0x2b0   :  { %v3192_v48 = vpop.f32.mrf.mxu3  ;;  %v3060_v17 = vadd.f32 %v3038_v14, %v2906_v12  ;;  %v2886_v62 = vpop.f32.mrf.mxu1  ;;  %v2753_v49 = vadd.f32 %v2732_v34, %v13624_v61  ;;  %v3696_v61 = vld [vmem:[#allocation2 + $0x221] sm:$0xff]  ;;  %v3992_v12 = vld [vmem:[#allocation2 + $0x370] sm:$0xff] }
 0x2b1   :  { %v3705_v50 = vpack.c.bf16 %v3697_v41, %v3696_v61  ;;  %v4008_v53 = vpack.c.bf16 %v3993_v22, %v3992_v12  ;;  %v3995_v41 = vld [vmem:[#allocation2 + $0x3a0] sm:$0xff] }
 0x2b2   :  { %v13764_v33 = vadd.f32 %v3192_v48, %v3060_v17  ;;  %v2907_v20 = vadd.f32 %v2886_v62, %v2753_v49  ;;  %v4162_v48 = vpack.c.bf16 %v4147_v58, %v4146_v30  ;;  %v3842_v58 = vld [vmem:[#allocation2 + $0x2a0] sm:$0xff]  ;;  %v3996_v30 = vld [vmem:[#allocation2 + $0x3b0] sm:$0xff] }
 0x2b7   :  { %v3040_v56 = vpop.f32.mrf.mxu2  ;;  %v2735_v8 = vpop.f32.mrf.mxu0 }
 0x2b8   :  { %v3194_v18 = vpop.f32.mrf.mxu3  ;;  %v3061_v29 = vadd.f32 %v3040_v56, %v2907_v20  ;;  %v2889_v9 = vpop.f32.mrf.mxu1  ;;  %v2754_v51 = vadd.f32 %v2735_v8, %v13626_v1 }
 0x2ba   :  { %v13767_v44 = vadd.f32 %v3194_v18, %v3061_v29  ;;  %v2908_v60 = vadd.f32 %v2889_v9, %v2754_v51  ;;  %3351 = vmatmul.bf16.gmra.mxu0 %v3242_v59  ;;  %v4149_v9 = vld [vmem:[#allocation2 + $0x281] sm:$0xff] }
 0x2bb   :  { %3506 = vmatmul.bf16.gmra.mxu1 %v3397_v21  ;;  %v3839_v21 = vld [vmem:[#allocation2 + $0x270] sm:$0xff] }
 0x2bc   :  { %3660 = vmatmul.bf16.gmra.mxu2 %v3551_v6  ;;  %v3854_v6 = vpack.c.bf16 %v3840_v3, %v3839_v21  ;;  %v4307_v21 = vld [vmem:[#allocation2 + $0x3e1] sm:$0xff] }
 0x2bd   :  { %3814 = vmatmul.bf16.gmra.mxu3 %v3705_v50  ;;  %v4009_v50 = vpack.c.bf16 %v3995_v41, %v3994_v43 }
 0x2bf   :  { %v3043_v37 = vpop.f32.mrf.mxu2  ;;  %v2737_v19 = vpop.f32.mrf.mxu0 }
 0x2c0   :  { %v3197_v40 = vpop.f32.mrf.mxu3  ;;  %v3062_v31 = vadd.f32 %v3043_v37, %v2908_v60  ;;  %v2891_v52 = vpop.f32.mrf.mxu1  ;;  %v2755_v1 = vadd.f32 %v2737_v19, %v13629_v16  ;;  %v4300_v16 = vld [vmem:[#allocation2 + $0x371] sm:$0xff] }
 0x2c1   :  { %v4316_v17 = vpack.c.bf16 %v4301_v2, %v4300_v16  ;;  %v4148_v60 = vld [vmem:[#allocation2 + $0x271] sm:$0xff]  ;;  %v3997_v2 = vld [vmem:[#allocation2 + $0x3c0] sm:$0xff] }
 0x2c2   :  { %v13770_v28 = vadd.f32 %v3197_v40, %v3062_v31  ;;  %v2909_v57 = vadd.f32 %v2891_v52, %v2755_v1  ;;  %v4163_v40 = vpack.c.bf16 %v4149_v9, %v4148_v60  ;;  %v3844_v9 = vld [vmem:[#allocation2 + $0x2c0] sm:$0xff]  ;;  %v3998_v60 = vld [vmem:[#allocation2 + $0x3d0] sm:$0xff] }
 0x2c7   :  { %v3045_v38 = vpop.f32.mrf.mxu2  ;;  %v3317_v5 = vpop.f32.mrf.mxu0 }
 0x2c8   :  { %v3199_v54 = vpop.f32.mrf.mxu3  ;;  %v3063_v4 = vadd.f32 %v3045_v38, %v2909_v57  ;;  %v3472_v10 = vpop.f32.mrf.mxu1  ;;  %v3357_v13 = vadd.f32 %v3317_v5, %v13632_v26 }
 0x2ca   :  { %v13773_v14 = vadd.f32 %v3199_v54, %v3063_v4  ;;  %v3512_v34 = vadd.f32 %v3472_v10, %v3357_v13  ;;  %3934 = vmatmul.bf16.vlgmr.msrb.gmra.mxu0 %v3853_v36  ;;  %v4151_v10 = vld [vmem:[#allocation2 + $0x2a1] sm:$0xff] }
 0x2cb   :  { %4089 = vmatmul.bf16.vlgmr.msrb.gmra.mxu1 %v4008_v53  ;;  %v3841_v53 = vld [vmem:[#allocation2 + $0x290] sm:$0xff] }
 0x2cc   :  { %4243 = vmatmul.bf16.vlgmr.msrb.gmra.mxu2 %v4162_v48  ;;  %v3855_v48 = vpack.c.bf16 %v3842_v58, %v3841_v53  ;;  %v4309_v53 = vld [vmem:[#allocation2 + $0x411] sm:$0xff] }
 0x2cd   :  { %4397 = vmatmul.bf16.vlgmr.msrb.gmra.mxu3 %v4316_v17  ;;  %v4010_v17 = vpack.c.bf16 %v3997_v2, %v3996_v30 }
 0x2cf   :  { %v3626_v62 = vpop.f32.mrf.mxu2  ;;  %v3319_v23 = vpop.f32.mrf.mxu0 }
 0x2d0   :  { %v3780_v49 = vpop.f32.mrf.mxu3  ;;  %v3666_v20 = vadd.f32 %v3626_v62, %v3512_v34  ;;  %v3474_v24 = vpop.f32.mrf.mxu1  ;;  %v3358_v26 = vadd.f32 %v3319_v23, %v13635_v45  ;;  %v4302_v45 = vld [vmem:[#allocation2 + $0x391] sm:$0xff] }
 0x2d1   :  { %v4317_v31 = vpack.c.bf16 %v4303_v42, %v4302_v45  ;;  %v4150_v34 = vld [vmem:[#allocation2 + $0x291] sm:$0xff]  ;;  %v3999_v42 = vld [vmem:[#allocation2 + $0x3e0] sm:$0xff] }
 0x2d2   :  { %v13776_v56 = vadd.f32 %v3780_v49, %v3666_v20  ;;  %v3513_v18 = vadd.f32 %v3474_v24, %v3358_v26  ;;  %v4164_v49 = vpack.c.bf16 %v4151_v10, %v4150_v34  ;;  %v3846_v10 = vld [vmem:[#allocation2 + $0x2f0] sm:$0xff]  ;;  %v4000_v34 = vld [vmem:[#allocation2 + $0x400] sm:$0xff] }
 0x2d7   :  { %v3628_v29 = vpop.f32.mrf.mxu2  ;;  %v3322_v51 = vpop.f32.mrf.mxu0 }
 0x2d8   :  { %v3782_v8 = vpop.f32.mrf.mxu3  ;;  %v3667_v47 = vadd.f32 %v3628_v29, %v3513_v18  ;;  %v3477_v59 = vpop.f32.mrf.mxu1  ;;  %v3359_v61 = vadd.f32 %v3322_v51, %v13638_v0 }
 0x2da   :  { %v13779_v37 = vadd.f32 %v3782_v8, %v3667_v47  ;;  %v3514_v19 = vadd.f32 %v3477_v59, %v3359_v61  ;;  %3939 = vmatmul.bf16.gmra.mxu0 %v3854_v6  ;;  %v4153_v59 = vld [vmem:[#allocation2 + $0x2c1] sm:$0xff] }
 0x2db   :  { %4094 = vmatmul.bf16.gmra.mxu1 %v4009_v50  ;;  %v3843_v50 = vld [vmem:[#allocation2 + $0x2b0] sm:$0xff] }
 0x2dc   :  { %4248 = vmatmul.bf16.gmra.mxu2 %v4163_v40  ;;  %v3856_v40 = vpack.c.bf16 %v3844_v9, %v3843_v50 }
 0x2dd   :  { %4402 = vmatmul.bf16.gmra.mxu3 %v4317_v31  ;;  %v4011_v31 = vpack.c.bf16 %v3999_v42, %v3998_v60  ;;  %v3847_v60 = vld [vmem:[#allocation2 + $0x300] sm:$0xff] }
 0x2df   :  { %v3631_v52 = vpop.f32.mrf.mxu2  ;;  %v3324_v63 = vpop.f32.mrf.mxu0 }
 0x2e0   :  { %v3785_v1 = vpop.f32.mrf.mxu3  ;;  %v3668_v57 = vadd.f32 %v3631_v52, %v3514_v19  ;;  %v3479_v22 = vpop.f32.mrf.mxu1  ;;  %v3360_v0 = vadd.f32 %v3324_v63, %v13641_v15  ;;  %v4304_v15 = vld [vmem:[#allocation2 + $0x3b1] sm:$0xff] }
 0x2e1   :  { %v4318_v20 = vpack.c.bf16 %v4305_v11, %v4304_v15  ;;  %v4152_v19 = vld [vmem:[#allocation2 + $0x2b1] sm:$0xff] }
 0x2e2   :  { %v13782_v38 = vadd.f32 %v3785_v1, %v3668_v57  ;;  %v3515_v54 = vadd.f32 %v3479_v22, %v3360_v0  ;;  %v4165_v1 = vpack.c.bf16 %v4153_v59, %v4152_v19  ;;  %v4001_v11 = vld [vmem:[#allocation2 + $0x410] sm:$0xff] }
 0x2e7   :  { %v3633_v4 = vpop.f32.mrf.mxu2  ;;  %v3327_v13 = vpop.f32.mrf.mxu0 }
 0x2e8   :  { %v3787_v5 = vpop.f32.mrf.mxu3  ;;  %v3669_v12 = vadd.f32 %v3633_v4, %v3515_v54  ;;  %v3482_v36 = vpop.f32.mrf.mxu1  ;;  %v3361_v16 = vadd.f32 %v3327_v13, %v13644_v32 }
 0x2ea   :  { %v13785_v62 = vadd.f32 %v3787_v5, %v3669_v12  ;;  %v3516_v23 = vadd.f32 %v3482_v36, %v3361_v16  ;;  %3944 = vmatmul.bf16.gmra.mxu0 %v3855_v48  ;;  %v4155_v36 = vld [vmem:[#allocation2 + $0x2f1] sm:$0xff] }
 0x2eb   :  { %4099 = vmatmul.bf16.gmra.mxu1 %v4010_v17  ;;  %v3845_v17 = vld [vmem:[#allocation2 + $0x2e0] sm:$0xff] }
 0x2ec   :  { %4253 = vmatmul.bf16.gmra.mxu2 %v4164_v49  ;;  %v3857_v49 = vpack.c.bf16 %v3846_v10, %v3845_v17  ;;  %v4005_v10 = vld [vmem:[#allocation2 + $0x450] sm:$0xff] }
 0x2ed   :  { %4407 = vmatmul.bf16.gmra.mxu3 %v4318_v20  ;;  %v4012_v20 = vpack.c.bf16 %v4001_v11, %v4000_v34 }
 0x2ef   :  { %v3636_v24 = vpop.f32.mrf.mxu2  ;;  %v3329_v3 = vpop.f32.mrf.mxu0 }
 0x2f0   :  { %v3790_v26 = vpop.f32.mrf.mxu3  ;;  %v3670_v18 = vadd.f32 %v3636_v24, %v3516_v23  ;;  %v3484_v41 = vpop.f32.mrf.mxu1  ;;  %v3362_v32 = vadd.f32 %v3329_v3, %v13647_v55  ;;  %v4306_v55 = vld [vmem:[#allocation2 + $0x3d1] sm:$0xff]  ;;  %v4154_v23 = vld [vmem:[#allocation2 + $0x2e1] sm:$0xff] }
 0x2f1   :  { %v4319_v57 = vpack.c.bf16 %v4307_v21, %v4306_v55  ;;  %v4156_v55 = vld [vmem:[#allocation2 + $0x301] sm:$0xff] }
 0x2f2   :  { %v13788_v29 = vadd.f32 %v3790_v26, %v3670_v18  ;;  %v3517_v8 = vadd.f32 %v3484_v41, %v3362_v32  ;;  %v4166_v26 = vpack.c.bf16 %v4155_v36, %v4154_v23  ;;  %v4313_v36 = vld [vmem:[#allocation2 + $0x451] sm:$0xff] }
 0x2f7   :  { %v3638_v47 = vpop.f32.mrf.mxu2  ;;  %v3332_v61 = vpop.f32.mrf.mxu0 }
 0x2f8   :  { %v3792_v51 = vpop.f32.mrf.mxu3  ;;  %v3671_v43 = vadd.f32 %v3638_v47, %v3517_v8  ;;  %v3487_v6 = vpop.f32.mrf.mxu1  ;;  %v3363_v45 = vadd.f32 %v3332_v61, %v13650_v7  ;;  %v3848_v47 = vld [vmem:[#allocation2 + $0x310] sm:$0xff] }
 0x2f9   :  { %v4311_v61 = vld [vmem:[#allocation2 + $0x431] sm:$0xff] }
 0x2fa   :  { %v13791_v52 = vadd.f32 %v3792_v51, %v3671_v43  ;;  %v3518_v63 = vadd.f32 %v3487_v6, %v3363_v45  ;;  %3949 = vmatmul.bf16.gmra.mxu0 %v3856_v40  ;;  %v4003_v51 = vld [vmem:[#allocation2 + $0x430] sm:$0xff]  ;;  %v4002_v45 = vld [vmem:[#allocation2 + $0x420] sm:$0xff] }
 0x2fb   :  { %4104 = vmatmul.bf16.gmra.mxu1 %v4011_v31  ;;  %v4157_v43 = vld [vmem:[#allocation2 + $0x311] sm:$0xff]  ;;  %v3858_v31 = vpack.c.bf16 %v3848_v47, %v3847_v60  ;;  %v4013_v19 = vpack.c.bf16 %v4003_v51, %v4002_v45 }
 0x2fc   :  { %4258 = vmatmul.bf16.gmra.mxu2 %v4165_v1  ;;  %v4310_v1 = vld [vmem:[#allocation2 + $0x421] sm:$0xff]  ;;  %v4007_v51 = vld [vmem:[#allocation2 + $0x470] sm:$0xff] }
 0x2fd   :  { %4412 = vmatmul.bf16.gmra.mxu3 %v4319_v57  ;;  %v4167_v57 = vpack.c.bf16 %v4157_v43, %v4156_v55 }
 0x2ff   :  { %v3641_v22 = vpop.f32.mrf.mxu2  ;;  %v3334_v58 = vpop.f32.mrf.mxu0 }
 0x300   :  { %v3795_v0 = vpop.f32.mrf.mxu3  ;;  %v3672_v54 = vadd.f32 %v3641_v22, %v3518_v63  ;;  %v3489_v2 = vpop.f32.mrf.mxu1  ;;  %v3364_v7 = vadd.f32 %v3334_v58, %v13653_v25  ;;  %v4308_v25 = vld [vmem:[#allocation2 + $0x401] sm:$0xff]  ;;  %v4321_v63 = vpack.c.bf16 %v4311_v61, %v4310_v1 }
 0x301   :  { %v4320_v18 = vpack.c.bf16 %v4309_v53, %v4308_v25 }
 0x302   :  { %v13794_v4 = vadd.f32 %v3795_v0, %v3672_v54  ;;  %v3519_v5 = vadd.f32 %v3489_v2, %v3364_v7 }
 0x307   :  { %v3643_v12 = vpop.f32.mrf.mxu2  ;;  %v3337_v16 = vpop.f32.mrf.mxu0 }
 0x308   :  { %v3797_v13 = vpop.f32.mrf.mxu3  ;;  %v3673_v30 = vadd.f32 %v3643_v12, %v3519_v5  ;;  %v3492_v48 = vpop.f32.mrf.mxu1  ;;  %v3365_v15 = vadd.f32 %v3337_v16, %v13668_v46  ;;  %v3849_v16 = vld [vmem:[#allocation2 + $0x320] sm:$0xff] }
 0x30a   :  { %v13797_v24 = vadd.f32 %v3797_v13, %v3673_v30  ;;  %v3520_v3 = vadd.f32 %v3492_v48, %v3365_v15  ;;  %3954 = vmatmul.bf16.gmra.mxu0 %v3857_v49  ;;  %v4159_v13 = vld [vmem:[#allocation2 + $0x331] sm:$0xff]  ;;  %v4004_v48 = vld [vmem:[#allocation2 + $0x440] sm:$0xff] }
 0x30b   :  { %4109 = vmatmul.bf16.gmra.mxu1 %v4012_v20  ;;  %v4014_v15 = vpack.c.bf16 %v4005_v10, %v4004_v48  ;;  %v4158_v49 = vld [vmem:[#allocation2 + $0x321] sm:$0xff] }
 0x30c   :  { %4263 = vmatmul.bf16.gmra.mxu2 %v4166_v26  ;;  %v4312_v20 = vld [vmem:[#allocation2 + $0x441] sm:$0xff]  ;;  %v4168_v23 = vpack.c.bf16 %v4159_v13, %v4158_v49 }
 0x30d   :  { %4417 = vmatmul.bf16.gmra.mxu3 %v4320_v18  ;;  %v4322_v25 = vpack.c.bf16 %v4313_v36, %v4312_v20 }
 0x30f   :  { %v3646_v41 = vpop.f32.mrf.mxu2  ;;  %v13799_v9 = vpop.f32.mrf.mxu0 }
 0x310   :  { %v3800_v32 = vpop.f32.mrf.mxu3  ;;  %v3674_v8 = vadd.f32 %v3646_v41, %v3520_v3  ;;  %v13801_v42 = vpop.f32.mrf.mxu1 }
 0x312   :  { %v13803_v46 = vadd.f32 %v3800_v32, %v3674_v8 }
 0x317   :  { %v13805_v59 = vpop.f32.mrf.mxu2  ;;  %v3342_v6 = vpop.f32.mrf.mxu0 }
 0x318   :  { %v13807_v21 = vpop.f32.mrf.mxu3  ;;  %v3497_v50 = vpop.f32.mrf.mxu1  ;;  %v3367_v40 = vadd.f32 %v3342_v6, %v13722_v39  ;;  %v3850_v39 = vld [vmem:[#allocation2 + $0x330] sm:$0xff] }
 0x319   :  { %v3859_v34 = vpack.c.bf16 %v3850_v39, %v3849_v16  ;;  %v4161_v6 = vld [vmem:[#allocation2 + $0x351] sm:$0xff] }
 0x31a   :  { %v3522_v22 = vadd.f32 %v3497_v50, %v3367_v40  ;;  %3959 = vmatmul.bf16.gmra.mxu0 %v3858_v31  ;;  %v4315_v50 = vld [vmem:[#allocation2 + $0x471] sm:$0xff]  ;;  %v3851_v40 = vld [vmem:[#allocation2 + $0x340] sm:$0xff] }
 0x31b   :  { %4114 = vmatmul.bf16.gmra.mxu1 %v4013_v19  ;;  %v4006_v31 = vld [vmem:[#allocation2 + $0x460] sm:$0xff] }
 0x31c   :  { %4268 = vmatmul.bf16.gmra.mxu2 %v4167_v57  ;;  %v4015_v1 = vpack.c.bf16 %v4007_v51, %v4006_v31  ;;  %v4160_v57 = vld [vmem:[#allocation2 + $0x341] sm:$0xff] }
 0x31d   :  { %4422 = vmatmul.bf16.gmra.mxu3 %v4321_v63  ;;  %v4314_v63 = vld [vmem:[#allocation2 + $0x461] sm:$0xff] }
 0x31f   :  { %v3651_v0 = vpop.f32.mrf.mxu2  ;;  %v13810_v2 = vpop.f32.mrf.mxu0 }
 0x320   :  { %v3805_v54 = vpop.f32.mrf.mxu3  ;;  %v3676_v58 = vadd.f32 %v3651_v0, %v3522_v22  ;;  %v13812_v7 = vpop.f32.mrf.mxu1  ;;  %v4169_v22 = vpack.c.bf16 %v4161_v6, %v4160_v57  ;;  %v4323_v0 = vpack.c.bf16 %v4315_v50, %v4314_v63 }
 0x322   :  { %v13814_v5 = vadd.f32 %v3805_v54, %v3676_v58 }
 0x327   :  { %v13816_v11 = vpop.f32.mrf.mxu2  ;;  %v3347_v53 = vpop.f32.mrf.mxu0 }
 0x328   :  { %v13818_v12 = vpop.f32.mrf.mxu3  ;;  %v3502_v30 = vpop.f32.mrf.mxu1  ;;  %v3369_v17 = vadd.f32 %v3347_v53, %v13764_v33  ;;  %v3852_v33 = vld [vmem:[#allocation2 + $0x350] sm:$0xff] }
 0x329   :  { %v3860_v55 = vpack.c.bf16 %v3852_v33, %v3851_v40 }
 0x32a   :  { %v3524_v26 = vadd.f32 %v3502_v30, %v3369_v17  ;;  %3964 = vmatmul.bf16.gmra.mxu0 %v3859_v34 }
 0x32b   :  { %4119 = vmatmul.bf16.gmra.mxu1 %v4014_v15 }
 0x32c   :  { %4273 = vmatmul.bf16.gmra.mxu2 %v4168_v23 }
 0x32d   :  { %4427 = vmatmul.bf16.gmra.mxu3 %v4322_v25 }
 0x32f   :  { %v3656_v18 = vpop.f32.mrf.mxu2  ;;  %v13821_v32 = vpop.f32.mrf.mxu0 }
 0x330   :  { %v3810_v3 = vpop.f32.mrf.mxu3  ;;  %v3678_v41 = vadd.f32 %v3656_v18, %v3524_v26  ;;  %v13823_v8 = vpop.f32.mrf.mxu1 }
 0x332   :  { %v13825_v47 = vadd.f32 %v3810_v3, %v3678_v41 }
 0x337   :  { %v13827_v43 = vpop.f32.mrf.mxu2  ;;  %v3352_v60 = vpop.f32.mrf.mxu0 }
 0x338   :  { %v13829_v61 = vpop.f32.mrf.mxu3  ;;  %v3507_v45 = vpop.f32.mrf.mxu1  ;;  %v3371_v19 = vadd.f32 %v3352_v60, %v13770_v28 }
 0x33a   :  { %v3526_v54 = vadd.f32 %v3507_v45, %v3371_v19  ;;  %3969 = vmatmul.bf16.gmra.mxu0 %v3860_v55 }
 0x33b   :  { %4124 = vmatmul.bf16.gmra.mxu1 %v4015_v1 }
 0x33c   :  { %4278 = vmatmul.bf16.gmra.mxu2 %v4169_v22 }
 0x33d   :  { %4432 = vmatmul.bf16.gmra.mxu3 %v4323_v0 }
 0x33f   :  { %v3661_v58 = vpop.f32.mrf.mxu2  ;;  %v13832_v13 = vpop.f32.mrf.mxu0 }
 0x340   :  { %v3815_v39 = vpop.f32.mrf.mxu3  ;;  %v3680_v10 = vadd.f32 %v3661_v58, %v3526_v54  ;;  %v13834_v36 = vpop.f32.mrf.mxu1 }
 0x342   :  { %v13836_v53 = vadd.f32 %v3815_v39, %v3680_v10 }
 0x347   :  { %v13838_v28 = vpop.f32.mrf.mxu2  ;;  %v3935_v16 = vpop.f32.mrf.mxu0 }
 0x348   :  { %v13840_v30 = vpop.f32.mrf.mxu3  ;;  %v4090_v48 = vpop.f32.mrf.mxu1  ;;  %v3975_v17 = vadd.f32 %v3935_v16, %v13776_v56 }
 0x34a   :  { %v4130_v34 = vadd.f32 %v4090_v48, %v3975_v17 }
 0x34f   :  { %v4244_v15 = vpop.f32.mrf.mxu2  ;;  %v3937_v23 = vpop.f32.mrf.mxu0 }
 0x350   :  { %v4398_v49 = vpop.f32.mrf.mxu3  ;;  %v4284_v20 = vadd.f32 %v4244_v15, %v4130_v34  ;;  %v4092_v25 = vpop.f32.mrf.mxu1  ;;  %v3976_v18 = vadd.f32 %v3937_v23, %v13779_v37 }
 0x352   :  { %v13843_v26 = vadd.f32 %v4398_v49, %v4284_v20  ;;  %v4131_v3 = vadd.f32 %v4092_v25, %v3976_v18 }
 0x357   :  { %v4246_v41 = vpop.f32.mrf.mxu2  ;;  %v3940_v6 = vpop.f32.mrf.mxu0 }
 0x358   :  { %v4400_v33 = vpop.f32.mrf.mxu3  ;;  %v4285_v51 = vadd.f32 %v4246_v41, %v4131_v3  ;;  %v4095_v50 = vpop.f32.mrf.mxu1  ;;  %v3977_v60 = vadd.f32 %v3940_v6, %v13782_v38 }
 0x35a   :  { %v13847_v45 = vadd.f32 %v4400_v33, %v4285_v51  ;;  %v4132_v56 = vadd.f32 %v4095_v50, %v3977_v60 }
 0x35c   :  { %v4454_v40 = vadd.f32 %v13847_v45, %v13843_v26 }
 0x35f   :  { %v4249_v31 = vpop.f32.mrf.mxu2  ;;  %v3942_v1 = vpop.f32.mrf.mxu0 }
 0x360   :  { %v4403_v19 = vpop.f32.mrf.mxu3  ;;  %v4286_v55 = vadd.f32 %v4249_v31, %v4132_v56  ;;  %v4097_v57 = vpop.f32.mrf.mxu1  ;;  %v3978_v63 = vadd.f32 %v3942_v1, %v13785_v62 }
 0x362   :  { %v13851_v37 = vadd.f32 %v4403_v19, %v4286_v55  ;;  %v4133_v0 = vadd.f32 %v4097_v57, %v3978_v63 }
 0x364   :  { %v4455_v22 = vadd.f32 %v4454_v40, %v13851_v37 }
 0x367   :  { %v4251_v54 = vpop.f32.mrf.mxu2  ;;  %v3945_v39 = vpop.f32.mrf.mxu0 }
 0x368   :  { %v4405_v38 = vpop.f32.mrf.mxu3  ;;  %v4287_v58 = vadd.f32 %v4251_v54, %v4133_v0  ;;  %v4100_v10 = vpop.f32.mrf.mxu1  ;;  %v3979_v16 = vadd.f32 %v3945_v39, %v13788_v29  ;;  %v3366_v54 = vadd.f32 %v13799_v9, %v13695_v35 }
 0x36a   :  { %v13856_v48 = vadd.f32 %v4405_v38, %v4287_v58  ;;  %v4134_v17 = vadd.f32 %v4100_v10, %v3979_v16 }
 0x36c   :  { %v4456_v34 = vadd.f32 %v4455_v22, %v13856_v48 }
 0x36f   :  { %v4254_v15 = vpop.f32.mrf.mxu2  ;;  %v3947_v23 = vpop.f32.mrf.mxu0 }
 0x370   :  { %v4408_v49 = vpop.f32.mrf.mxu3  ;;  %v4288_v20 = vadd.f32 %v4254_v15, %v4134_v17  ;;  %v4102_v62 = vpop.f32.mrf.mxu1  ;;  %v3980_v18 = vadd.f32 %v3947_v23, %v13791_v52  ;;  %v3521_v17 = vadd.f32 %v13801_v42, %v3366_v54 }
 0x372   :  { %v13859_v25 = vadd.f32 %v4408_v49, %v4288_v20  ;;  %v4135_v41 = vadd.f32 %v4102_v62, %v3980_v18  ;;  %v3675_v49 = vadd.f32 %v13805_v59, %v3521_v17 }
 0x374   :  { %v4457_v3 = vadd.f32 %v4456_v34, %v13859_v25  ;;  %v3829_v35 = vadd.f32 %v13807_v21, %v3675_v49 }
 0x377   :  { %v4256_v33 = vpop.f32.mrf.mxu2  ;;  %v3950_v6 = vpop.f32.mrf.mxu0 }
 0x378   :  { %v4410_v51 = vpop.f32.mrf.mxu3  ;;  %v4289_v29 = vadd.f32 %v4256_v33, %v4135_v41  ;;  %v4105_v50 = vpop.f32.mrf.mxu1  ;;  %v3981_v56 = vadd.f32 %v3950_v6, %v13794_v4 }
 0x37a   :  { %v13863_v60 = vadd.f32 %v4410_v51, %v4289_v29  ;;  %v4136_v31 = vadd.f32 %v4105_v50, %v3981_v56 }
 0x37c   :  { %v4458_v40 = vadd.f32 %v4457_v3, %v13863_v60 }
 0x37f   :  { %v4259_v19 = vpop.f32.mrf.mxu2  ;;  %v3952_v57 = vpop.f32.mrf.mxu0 }
 0x380   :  { %v4413_v55 = vpop.f32.mrf.mxu3  ;;  %v4290_v1 = vadd.f32 %v4259_v19, %v4136_v31  ;;  %v4107_v52 = vpop.f32.mrf.mxu1  ;;  %v3982_v22 = vadd.f32 %v3952_v57, %v13797_v24 }
 0x382   :  { %v13867_v63 = vadd.f32 %v4413_v55, %v4290_v1  ;;  %v4137_v38 = vadd.f32 %v4107_v52, %v3982_v22 }
 0x384   :  { %v4459_v0 = vadd.f32 %v4458_v40, %v13867_v63 }
 0x387   :  { %v4261_v58 = vpop.f32.mrf.mxu2  ;;  %v3955_v10 = vpop.f32.mrf.mxu0 }
 0x388   :  { %v4415_v4 = vpop.f32.mrf.mxu3  ;;  %v4291_v39 = vadd.f32 %v4261_v58, %v4137_v38  ;;  %v4110_v16 = vpop.f32.mrf.mxu1  ;;  %v3983_v15 = vadd.f32 %v3955_v10, %v13803_v46  ;;  %v3368_v46 = vadd.f32 %v13810_v2, %v13749_v27 }
 0x38a   :  { %v13874_v34 = vadd.f32 %v4415_v4, %v4291_v39  ;;  %v4138_v20 = vadd.f32 %v4110_v16, %v3983_v15  ;;  %v3523_v40 = vadd.f32 %v13812_v7, %v3368_v46 }
 0x38c   :  { %v4460_v24 = vadd.f32 %v4459_v0, %v13874_v34  ;;  %v3677_v19 = vadd.f32 %v13816_v11, %v3523_v40 }
 0x38e   :  { %v3831_v27 = vadd.f32 %v13818_v12, %v3677_v19 }
 0x38f   :  { %v4264_v23 = vpop.f32.mrf.mxu2  ;;  %v3957_v18 = vpop.f32.mrf.mxu0 }
 0x390   :  { %v4418_v62 = vpop.f32.mrf.mxu3  ;;  %v4292_v9 = vadd.f32 %v4264_v23, %v4138_v20  ;;  %v4112_v3 = vpop.f32.mrf.mxu1  ;;  %v3984_v33 = vadd.f32 %v3957_v18, %v3829_v35 }
 0x392   :  { %v13880_v41 = vadd.f32 %v4418_v62, %v4292_v9  ;;  %v4139_v51 = vadd.f32 %v4112_v3, %v3984_v33 }
 0x394   :  { %v4461_v42 = vadd.f32 %v4460_v24, %v13880_v41 }
 0x397   :  { %v4266_v59 = vpop.f32.mrf.mxu2  ;;  %v3960_v50 = vpop.f32.mrf.mxu0 }
 0x398   :  { %v4420_v29 = vpop.f32.mrf.mxu3  ;;  %v4293_v6 = vadd.f32 %v4266_v59, %v4139_v51  ;;  %v4115_v56 = vpop.f32.mrf.mxu1  ;;  %v3985_v31 = vadd.f32 %v3960_v50, %v13814_v5  ;;  %v3370_v5 = vadd.f32 %v13821_v32, %v13767_v44 }
 0x39a   :  { %v13886_v21 = vadd.f32 %v4420_v29, %v4293_v6  ;;  %v4140_v1 = vadd.f32 %v4115_v56, %v3985_v31  ;;  %v3525_v17 = vadd.f32 %v13823_v8, %v3370_v5  ;;  %v3372_v8 = vadd.f32 %v13832_v13, %v13773_v14 }
 0x39c   :  { %v4462_v55 = vadd.f32 %v4461_v42, %v13886_v21  ;;  %v3679_v49 = vadd.f32 %v13827_v43, %v3525_v17  ;;  %v3527_v59 = vadd.f32 %v13834_v36, %v3372_v8 }
 0x39e   :  { %v3833_v35 = vadd.f32 %v13829_v61, %v3679_v49  ;;  %v3681_v50 = vadd.f32 %v13838_v28, %v3527_v59 }
 0x39f   :  { %v4269_v57 = vpop.f32.mrf.mxu2  ;;  %v3962_v22 = vpop.f32.mrf.mxu0 }
 0x3a0   :  { %v4423_v52 = vpop.f32.mrf.mxu3  ;;  %v4294_v2 = vadd.f32 %v4269_v57, %v4140_v1  ;;  %v4117_v0 = vpop.f32.mrf.mxu1  ;;  %v3986_v38 = vadd.f32 %v3962_v22, %v3831_v27 }
 0x3a2   :  { %v13892_v54 = vadd.f32 %v4423_v52, %v4294_v2  ;;  %v4141_v58 = vadd.f32 %v4117_v0, %v3986_v38 }
 0x3a4   :  { %v4463_v7 = vadd.f32 %v4462_v55, %v13892_v54  ;;  %v3835_v55 = vadd.f32 %v13840_v30, %v3681_v50 }
 0x3a7   :  { %v4271_v11 = vpop.f32.mrf.mxu2  ;;  %v3965_v10 = vpop.f32.mrf.mxu0 }
 0x3a8   :  { %v4425_v4 = vpop.f32.mrf.mxu3  ;;  %v4295_v39 = vadd.f32 %v4271_v11, %v4141_v58  ;;  %v4120_v16 = vpop.f32.mrf.mxu1  ;;  %v3987_v15 = vadd.f32 %v3965_v10, %v13825_v47 }
 0x3aa   :  { %v4449_v12 = vadd.f32 %v4425_v4, %v4295_v39  ;;  %v4142_v20 = vadd.f32 %v4120_v16, %v3987_v15 }
 0x3ac   :  { %v4464_v24 = vadd.f32 %v4463_v7, %v4449_v12 }
 0x3af   :  { %v4274_v23 = vpop.f32.mrf.mxu2  ;;  %v3967_v32 = vpop.f32.mrf.mxu0 }
 0x3b0   :  { %v4428_v62 = vpop.f32.mrf.mxu3  ;;  %v4296_v44 = vadd.f32 %v4274_v23, %v4142_v20  ;;  %v4122_v9 = vpop.f32.mrf.mxu1  ;;  %v3988_v3 = vadd.f32 %v3967_v32, %v3833_v35 }
 0x3b2   :  { %v4450_v18 = vadd.f32 %v4428_v62, %v4296_v44  ;;  %v4143_v42 = vadd.f32 %v4122_v9, %v3988_v3 }
 0x3b4   :  { %v4465_v33 = vadd.f32 %v4464_v24, %v4450_v18 }
 0x3b7   :  { %v4276_v46 = vpop.f32.mrf.mxu2  ;;  %v3970_v43 = vpop.f32.mrf.mxu0 }
 0x3b8   :  { %v4430_v47 = vpop.f32.mrf.mxu3  ;;  %v4297_v51 = vadd.f32 %v4276_v46, %v4143_v42  ;;  %v3989_v6 = vadd.f32 %v3970_v43, %v13836_v53  ;;  %v4125_v61 = vpop.f32.mrf.mxu1 }
 0x3ba   :  { %v4451_v29 = vadd.f32 %v4430_v47, %v4297_v51  ;;  %v4144_v40 = vadd.f32 %v4125_v61, %v3989_v6 }
 0x3bc   :  { %v4466_v56 = vadd.f32 %v4465_v33, %v4451_v29 }
 0x3bf   :  { %v4279_v31 = vpop.f32.mrf.mxu2  ;;  %v3972_v13 = vpop.f32.mrf.mxu0 }
 0x3c0   :  { %v4433_v19 = vpop.f32.mrf.mxu3  ;;  %v4298_v14 = vadd.f32 %v4279_v31, %v4144_v40  ;;  %v3990_v57 = vadd.f32 %v3972_v13, %v3835_v55  ;;  %v4127_v27 = vpop.f32.mrf.mxu1 }
 0x3c2   :  { %v4452_v1 = vadd.f32 %v4433_v19, %v4298_v14  ;;  %v4145_v2 = vadd.f32 %v4127_v27, %v3990_v57  ;;  %v12354_v14 = vld [vmem:[%s15313_s6 + $0x70] sm:$0xff] }
 0x3c4   :  { %v4467_v52 = vadd.f32 %v4466_v56, %v4452_v1  ;;  %v12355_v56 = vld [vmem:[%s15313_s6 + $0x78] sm:$0xff] }
 0x3c5   :  { %4793 = vmatpush.bf16.msra.mxu2 %v12355_v56 }
 0x3c7   :  { %v4281_v36 = vpop.f32.mrf.mxu2 }
 0x3c8   :  { %v4299_v22 = vadd.f32 %v4281_v36, %v4145_v2  ;;  %v4435_v0 = vpop.f32.mrf.mxu3  ;;  %v12352_v36 = vld [vmem:[%s15313_s6 + $0x60] sm:$0xff] }
 0x3c9   :  { %4794 = vmatpush.bf16.msra.mxu2 %v12354_v14 }
 0x3ca   :  { %v4453_v53 = vadd.f32 %v4435_v0, %v4299_v22 }
 0x3cc   :  { %v4468_v38 = vadd.f32 %v4467_v52, %v4453_v53  ;;  %v12353_v52 = vld [vmem:[%s15313_s6 + $0x68] sm:$0xff] }
 0x3cd   :  { %4795 = vmatpush.bf16.msra.mxu2 %v12353_v52 }
 0x3ce   :  { %v4469_v7 = vrot.slane %v4468_v38, 4 }
 0x3d0   :  { %v4470_v28 = vadd.f32 %v4469_v7, %v4468_v38 }
 0x3d1   :  { %4796 = vmatpush.bf16.msra.mxu2 %v12352_v36 }
 0x3d2   :  { %v4471_v5 = vrot.slane %v4470_v28, 2 }
 0x3d4   :  { %v4472_v58 = vadd.f32 %v4471_v5, %v4470_v28  ;;  %v12350_v28 = vld [vmem:[%s15313_s6 + $0x50] sm:$0xff] }
 0x3d6   :  { %v4473_v11 = vrot.slane %v4472_v58, 1 }
 0x3d8   :  { %v4474_v4 = vadd.f32 %v4473_v11, %v4472_v58  ;;  %v12349_v11 = vld [vmem:[%s15313_s6 + $0x48] sm:$0xff] }
 0x3da   :  { %v4475_v39 = vmul.f32 0.0078125, %v4474_v4  ;;  %v12348_v4 = vld [vmem:[%s15313_s6 + $0x40] sm:$0xff] }
 0x3dc   :  { %v13908_v30 = vsub.f32 %v13843_v26, %v4475_v39  ;;  %v13911_v10 = vsub.f32 %v13847_v45, %v4475_v39  ;;  %v13914_v16 = vsub.f32 %v13851_v37, %v4475_v39  ;;  %v13917_v17 = vsub.f32 %v13856_v48, %v4475_v39 }
 0x3dd   :  { %v13920_v15 = vsub.f32 %v13859_v25, %v4475_v39  ;;  %v13923_v49 = vsub.f32 %v13863_v60, %v4475_v39  ;;  %v13926_v24 = vsub.f32 %v13867_v63, %v4475_v39  ;;  %v13929_v26 = vsub.f32 %v13874_v34, %v4475_v39 }
 0x3de   :  { %v13932_v45 = vsub.f32 %v13880_v41, %v4475_v39  ;;  %v13935_v37 = vsub.f32 %v13886_v21, %v4475_v39  ;;  %v13938_v48 = vsub.f32 %v13892_v54, %v4475_v39  ;;  %v13940_v25 = vsub.f32 %v4449_v12, %v4475_v39 }
 0x3df   :  { %v13942_v20 = vsub.f32 %v4450_v18, %v4475_v39  ;;  %v13944_v60 = vsub.f32 %v4451_v29, %v4475_v39  ;;  %v13946_v63 = vsub.f32 %v4452_v1, %v4475_v39  ;;  %v13948_v23 = vsub.f32 %v4453_v53, %v4475_v39  ;;  %v12351_v53 = vld [vmem:[%s15313_s6 + $0x58] sm:$0xff] }
 0x3e0   :  { %v4492_v34 = vmul.f32 %v13908_v30, %v13908_v30  ;;  %v4493_v41 = vmul.f32 %v13911_v10, %v13911_v10  ;;  %v4494_v21 = vmul.f32 %v13914_v16, %v13914_v16  ;;  %v4495_v12 = vmul.f32 %v13917_v17, %v13917_v17  ;;  %4797 = vmatpush.bf16.msra.mxu2 %v12351_v53 }
 0x3e1   :  { %v4496_v35 = vmul.f32 %v13920_v15, %v13920_v15  ;;  %v4497_v32 = vmul.f32 %v13923_v49, %v13923_v49  ;;  %v4498_v18 = vmul.f32 %v13926_v24, %v13926_v24  ;;  %v4499_v33 = vmul.f32 %v13929_v26, %v13929_v26 }
 0x3e2   :  { %v4508_v54 = vadd.f32 %v4493_v41, %v4492_v34  ;;  %v4500_v42 = vmul.f32 %v13932_v45, %v13932_v45  ;;  %v4501_v47 = vmul.f32 %v13935_v37, %v13935_v37  ;;  %v4502_v43 = vmul.f32 %v13938_v48, %v13938_v48  ;;  %v12664_v41 = vld [vmem:[%s15311_s3] ss:$0 sm:$0xff] }
 0x3e3   :  { %v4503_v29 = vmul.f32 %v13940_v25, %v13940_v25  ;;  %v4504_v61 = vmul.f32 %v13942_v20, %v13942_v20  ;;  %v4505_v40 = vmul.f32 %v13944_v60, %v13944_v60  ;;  %v4506_v19 = vmul.f32 %v13946_v63, %v13946_v63 }
 0x3e4   :  { %v4509_v62 = vadd.f32 %v4508_v54, %v4494_v21  ;;  %v4507_v13 = vmul.f32 %v13948_v23, %v13948_v23  ;;  %4798 = vmatpush.bf16.msra.mxu2 %v12350_v28 }
 0x3e6   :  { %v4510_v44 = vadd.f32 %v4509_v62, %v4495_v12  ;;  %v4534_v12 = vmul.f32 %v12664_v41, %v13908_v30  ;;  %v4535_v62 = vmul.f32 %v12664_v41, %v13911_v10  ;;  %v4543_v30 = vmul.f32 %v12664_v41, %v13935_v37  ;;  %v12665_v37 = vld [vmem:[%s15312_s4] ss:$0 sm:$0xff] }
 0x3e7   :  { %v4544_v10 = vmul.f32 %v12664_v41, %v13938_v48 }
 0x3e8   :  { %v4511_v9 = vadd.f32 %v4510_v44, %v4496_v35  ;;  %4799 = vmatpush.bf16.msra.mxu2 %v12349_v11  ;;  %v4536_v35 = vmul.f32 %v12664_v41, %v13914_v16  ;;  %v4545_v16 = vmul.f32 %v12664_v41, %v13940_v25 }
 0x3ea   :  { %v4512_v3 = vadd.f32 %v4511_v9, %v4497_v32  ;;  %v4537_v32 = vmul.f32 %v12664_v41, %v13917_v17  ;;  %v4538_v9 = vmul.f32 %v12664_v41, %v13920_v15  ;;  %v4546_v17 = vmul.f32 %v12664_v41, %v13942_v20 }
 0x3eb   :  { %v4547_v15 = vmul.f32 %v12664_v41, %v13944_v60 }
 0x3ec   :  { %v4513_v8 = vadd.f32 %v4512_v3, %v4498_v18  ;;  %4800 = vmatpush.bf16.msra.mxu2 %v12348_v4  ;;  %v4539_v18 = vmul.f32 %v12664_v41, %v13923_v49  ;;  %v4540_v3 = vmul.f32 %v12664_v41, %v13926_v24  ;;  %v4548_v49 = vmul.f32 %v12664_v41, %v13946_v63 }
 0x3ed   :  { %v4549_v24 = vmul.f32 %v12664_v41, %v13948_v23 }
 0x3ee   :  { %v4514_v46 = vadd.f32 %v4513_v8, %v4499_v33  ;;  %v4541_v33 = vmul.f32 %v12664_v41, %v13929_v26  ;;  %v4542_v8 = vmul.f32 %v12664_v41, %v13932_v45 }
 0x3f0   :  { %v4515_v51 = vadd.f32 %v4514_v46, %v4500_v42 }
 0x3f2   :  { %v4516_v59 = vadd.f32 %v4515_v51, %v4501_v47 }
 0x3f4   :  { %v4517_v6 = vadd.f32 %v4516_v59, %v4502_v43 }
 0x3f6   :  { %v4518_v50 = vadd.f32 %v4517_v6, %v4503_v29 }
 0x3f8   :  { %v4519_v31 = vadd.f32 %v4518_v50, %v4504_v61 }
 0x3fa   :  { %v4520_v55 = vadd.f32 %v4519_v31, %v4505_v40 }
 0x3fc   :  { %v4521_v1 = vadd.f32 %v4520_v55, %v4506_v19 }
 0x3fe   :  { %v4522_v57 = vadd.f32 %v4521_v1, %v4507_v13 }
 0x400   :  { %v4523_v27 = vrot.slane %v4522_v57, 4 }
 0x402   :  { %v4524_v2 = vadd.f32 %v4523_v27, %v4522_v57 }
 0x404   :  { %v4525_v22 = vrot.slane %v4524_v2, 2 }
 0x406   :  { %v4526_v0 = vadd.f32 %v4525_v22, %v4524_v2 }
 0x408   :  { %v4527_v38 = vrot.slane %v4526_v0, 1 }
 0x40a   :  { %v4528_v7 = vadd.f32 %v4527_v38, %v4526_v0 }
 0x40c   :  { %v4529_v5 = vmul.f32 0.0078125, %v4528_v7 }
 0x40e   :  { %v4550_v58 = vadd.f32 1e-05, %v4529_v5 }
 0x410   :  { %12672 = vrsqrt.f32 %v4550_v58  ;;  %vm4557_vm1 = vweird.f32 %v4550_v58 }
 0x416   :  { %v12673_v39 = vpop.eup %12672 }
 0x417   :  { %v4552_v34 = vmul.f32 %v12673_v39, %v4550_v58  ;;  %vm4558_vm0 = vweird.f32 %v12673_v39 }
 0x418   :  { %vm4559_vm2 = vmor %vm4557_vm1, %vm4558_vm0 }
 0x419   :  { %v4553_v21 = vmul.f32 %v12673_v39, %v4552_v34 }
 0x41b   :  { %v4554_v54 = vmul.f32 0.5, %v4553_v21 }
 0x41d   :  { %v4555_v44 = vsub.f32 1.5, %v4554_v54 }
 0x41f   :  { %v4556_v42 = vmul.f32 %v12673_v39, %v4555_v44 }
 0x421   :  { %v4560_v26 = vsel %vm4559_vm2, %v12673_v39, %v4556_v42 }
 0x422   :  { %v4561_v46 = vmul.f32 %v4560_v26, %v4534_v12  ;;  %v4562_v45 = vmul.f32 %v4560_v26, %v4535_v62  ;;  %v4563_v47 = vmul.f32 %v4560_v26, %v4536_v35  ;;  %v4564_v51 = vmul.f32 %v4560_v26, %v4537_v32 }
 0x423   :  { %v4565_v48 = vmul.f32 %v4560_v26, %v4538_v9  ;;  %v4566_v25 = vmul.f32 %v4560_v26, %v4539_v18  ;;  %v4567_v43 = vmul.f32 %v4560_v26, %v4540_v3  ;;  %v4568_v20 = vmul.f32 %v4560_v26, %v4541_v33 }
 0x424   :  { %v4569_v59 = vmul.f32 %v4560_v26, %v4542_v8  ;;  %v4570_v29 = vmul.f32 %v4560_v26, %v4543_v30  ;;  %v4571_v60 = vmul.f32 %v4560_v26, %v4544_v10  ;;  %v4572_v6 = vmul.f32 %v4560_v26, %v4545_v16 }
 0x425   :  { %v4573_v63 = vmul.f32 %v4560_v26, %v4546_v17  ;;  %v4574_v61 = vmul.f32 %v4560_v26, %v4547_v15  ;;  %v4575_v23 = vmul.f32 %v4560_v26, %v4548_v49  ;;  %v4576_v50 = vmul.f32 %v4560_v26, %v4549_v24 }
 0x426   :  { %v4581_v56 = vadd.f32 %v12665_v37, %v4561_v46  ;;  %v4582_v40 = vadd.f32 %v12665_v37, %v4562_v45  ;;  %v4583_v31 = vadd.f32 %v12665_v37, %v4563_v47  ;;  %v4584_v19 = vadd.f32 %v12665_v37, %v4564_v51 }
 0x427   :  { %v4585_v55 = vadd.f32 %v12665_v37, %v4565_v48  ;;  %v4586_v14 = vadd.f32 %v12665_v37, %v4566_v25  ;;  %v4587_v13 = vadd.f32 %v12665_v37, %v4567_v43  ;;  %v4588_v1 = vadd.f32 %v12665_v37, %v4568_v20 }
 0x428   :  { %v4589_v57 = vadd.f32 %v12665_v37, %v4569_v59  ;;  %v4590_v52 = vadd.f32 %v12665_v37, %v4570_v29  ;;  %v4591_v27 = vadd.f32 %v12665_v37, %v4571_v60  ;;  %v4592_v2 = vadd.f32 %v12665_v37, %v4572_v6  ;;  %v12346_v59 = vld [vmem:[%s15314_s5 + $0x10] sm:$0xff]  ;;  %v12336_v29 = vld [vmem:[%s15314_s5] sm:$0xff]  ;;  %v12347_v60 = vld [vmem:[%s15314_s5 + $0x18] sm:$0xff] }
 0x429   :  { %v4593_v36 = vadd.f32 %v12665_v37, %v4573_v63  ;;  %v4594_v22 = vadd.f32 %v12665_v37, %v4574_v61  ;;  %v4595_v0 = vadd.f32 %v12665_v37, %v4575_v23  ;;  %v4597_v53 = vmul.f32 0.2, %v4581_v56  ;;  %v12337_v6 = vld [vmem:[%s15314_s5 + $0x8] sm:$0xff]  ;;  %v12356_v63 = vld [vmem:[%s15314_s5 + $0x20] sm:$0xff] }
 0x42a   :  { %v4598_v38 = vmul.f32 0.2, %v4582_v40  ;;  %v4599_v7 = vmul.f32 0.2, %v4583_v31  ;;  %v4596_v28 = vadd.f32 %v12665_v37, %v4576_v50  ;;  %v4600_v5 = vmul.f32 0.2, %v4584_v19 }
 0x42b   :  { %v4601_v58 = vmul.f32 0.2, %v4585_v55  ;;  %v4602_v11 = vmul.f32 0.2, %v4586_v14  ;;  %v4603_v4 = vmul.f32 0.2, %v4587_v13  ;;  %v4613_v41 = vmax.f32 %v4581_v56, %v4597_v53 }
 0x42c   :  { %v4604_v39 = vmul.f32 0.2, %v4588_v1  ;;  %v4605_v34 = vmul.f32 0.2, %v4589_v57  ;;  %v4606_v21 = vmul.f32 0.2, %v4590_v52  ;;  %v4614_v62 = vmax.f32 %v4582_v40, %v4598_v38 }
 0x42d   :  { %v4607_v54 = vmul.f32 0.2, %v4591_v27  ;;  %v4608_v12 = vmul.f32 0.2, %v4592_v2  ;;  %v4609_v35 = vmul.f32 0.2, %v4593_v36  ;;  %v4615_v9 = vmax.f32 %v4583_v31, %v4599_v7 }
 0x42e   :  { %v4610_v44 = vmul.f32 0.2, %v4594_v22  ;;  %v4611_v32 = vmul.f32 0.2, %v4595_v0  ;;  %v4612_v18 = vmul.f32 0.2, %v4596_v28  ;;  %v4616_v3 = vmax.f32 %v4584_v19, %v4600_v5 }
 0x42f   :  { %v4617_v33 = vmax.f32 %v4585_v55, %v4601_v58  ;;  %v4618_v8 = vmax.f32 %v4586_v14, %v4602_v11  ;;  %v4619_v42 = vmax.f32 %v4587_v13, %v4603_v4  ;;  %v4620_v30 = vmax.f32 %v4588_v1, %v4604_v39  ;;  %v12357_v61 = vld [vmem:[%s15314_s5 + $0x28] sm:$0xff]  ;;  %v12376_v23 = vld [vmem:[%s15314_s5 + $0x40] sm:$0xff]  ;;  %v12345_v50 = vld [vmem:[%s15313_s6 + $0x38] sm:$0xff] }
 0x430   :  { %v4621_v10 = vmax.f32 %v4589_v57, %v4605_v34  ;;  %v4622_v16 = vmax.f32 %v4590_v52, %v4606_v21  ;;  %v4623_v17 = vmax.f32 %v4591_v27, %v4607_v54  ;;  %v4624_v15 = vmax.f32 %v4592_v2, %v4608_v12  ;;  %4860 = vmatpush.bf16.msra.mxu3 %v12345_v50  ;;  %v12344_v56 = vld [vmem:[%s15313_s6 + $0x30] sm:$0xff]  ;;  %v12377_v40 = vld [vmem:[%s15314_s5 + $0x48] sm:$0xff]  ;;  %v12342_v19 = vld [vmem:[%s15313_s6 + $0x20] sm:$0xff] }
 0x431   :  { %v4625_v49 = vmax.f32 %v4593_v36, %v4609_v35  ;;  %v4626_v24 = vmax.f32 %v4594_v22, %v4610_v44  ;;  %v4627_v26 = vmax.f32 %v4595_v0, %v4611_v32  ;;  %v4628_v46 = vmax.f32 %v4596_v28, %v4612_v18  ;;  %v12343_v31 = vld [vmem:[%s15313_s6 + $0x28] sm:$0xff]  ;;  %v12341_v55 = vld [vmem:[%s15313_s6 + $0x18] sm:$0xff]  ;;  %v12340_v14 = vld [vmem:[%s15313_s6 + $0x10] sm:$0xff] }
 0x432   :  { %v14028_v45 = vpack.c.bf16 %v4614_v62, %v4613_v41  ;;  %v14030_v47 = vpack.c.bf16 %v4616_v3, %v4615_v9  ;;  %v14032_v51 = vpack.c.bf16 %v4618_v8, %v4617_v33  ;;  %v14034_v37 = vpack.c.bf16 %v4620_v30, %v4619_v42  ;;  %v12396_v13 = vld [vmem:[%s15314_s5 + $0x60] sm:$0xff]  ;;  %v12339_v1 = vld [vmem:[%s15313_s6 + $0x8] sm:$0xff]  ;;  %v12365_v52 = vld [vmem:[%s15313_s6 + $0xb8] sm:$0xff] }
 0x433   :  { %v14036_v48 = vpack.c.bf16 %v4622_v16, %v4621_v10  ;;  %v14038_v25 = vpack.c.bf16 %v4624_v15, %v4623_v17  ;;  %v14040_v43 = vpack.c.bf16 %v4626_v24, %v4625_v49  ;;  %v14042_v20 = vpack.c.bf16 %v4628_v46, %v4627_v26  ;;  %v12338_v57 = vld [vmem:[%s15313_s6] sm:$0xff]  ;;  %v12364_v27 = vld [vmem:[%s15313_s6 + $0xb0] sm:$0xff]  ;;  %v12397_v2 = vld [vmem:[%s15314_s5 + $0x68] sm:$0xff] }
 0x434   :  { %4861 = vmatpush.bf16.msra.mxu3 %v12344_v56  ;;  %v12363_v36 = vld [vmem:[%s15313_s6 + $0xa8] sm:$0xff]  ;;  %v12362_v22 = vld [vmem:[%s15313_s6 + $0xa0] sm:$0xff]  ;;  %v12361_v0 = vld [vmem:[%s15313_s6 + $0x98] sm:$0xff] }
 0x435   :  { %4653 = vmatpush.bf16.msra.mxu0 %v14042_v20  ;;  %4707 = vmatpush.bf16.msra.mxu1 %v14042_v20  ;;  %v12360_v53 = vld [vmem:[%s15313_s6 + $0x90] sm:$0xff]  ;;  %v12416_v28 = vld [vmem:[%s15314_s5 + $0x80] sm:$0xff]  ;;  %v12359_v5 = vld [vmem:[%s15313_s6 + $0x88] sm:$0xff] }
 0x436   :  { %5022 = vmatpush.bf16.msrb.mxu2 %v14042_v20  ;;  %v12358_v58 = vld [vmem:[%s15313_s6 + $0x80] sm:$0xff]  ;;  %v12417_v54 = vld [vmem:[%s15314_s5 + $0x88] sm:$0xff]  ;;  %v12366_v18 = vld [vmem:[%s15314_s5 + $0x30] sm:$0xff] }
 0x437   :  { %v12436_v9 = vld [vmem:[%s15314_s5 + $0xa0] sm:$0xff]  ;;  %v12367_v42 = vld [vmem:[%s15314_s5 + $0x38] sm:$0xff]  ;;  %v12386_v16 = vld [vmem:[%s15314_s5 + $0x50] sm:$0xff] }
 0x438   :  { %4862 = vmatpush.bf16.msra.mxu3 %v12343_v31  ;;  %v12387_v17 = vld [vmem:[%s15314_s5 + $0x58] sm:$0xff]  ;;  %v12406_v15 = vld [vmem:[%s15314_s5 + $0x70] sm:$0xff]  ;;  %v12373_v46 = vld [vmem:[%s15313_s6 + $0xe8] sm:$0xff] }
 0x439   :  { %4654 = vmatpush.bf16.msra.mxu0 %v14040_v43  ;;  %4708 = vmatpush.bf16.msra.mxu1 %v14040_v43  ;;  %v12407_v49 = vld [vmem:[%s15314_s5 + $0x78] sm:$0xff]  ;;  %v12374_v26 = vld [vmem:[%s15313_s6 + $0xf0] sm:$0xff]  ;;  %v12382_v56 = vld [vmem:[%s15313_s6 + $0x120] sm:$0xff] }
 0x43a   :  { %5023 = vmatpush.bf16.msrb.mxu2 %v14040_v43  ;;  %v12375_v24 = vld [vmem:[%s15313_s6 + $0xf8] sm:$0xff]  ;;  %v12370_v50 = vld [vmem:[%s15313_s6 + $0xd0] sm:$0xff] }
 0x43c   :  { %4863 = vmatpush.bf16.msra.mxu3 %v12342_v19 }
 0x43d   :  { %4655 = vmatpush.bf16.msra.mxu0 %v14038_v25  ;;  %4709 = vmatpush.bf16.msra.mxu1 %v14038_v25 }
 0x43e   :  { %5024 = vmatpush.bf16.msrb.mxu2 %v14038_v25 }
 0x440   :  { %4864 = vmatpush.bf16.msra.mxu3 %v12341_v55  ;;  %v12369_v55 = vld [vmem:[%s15313_s6 + $0xc8] sm:$0xff] }
 0x441   :  { %4656 = vmatpush.bf16.msra.mxu0 %v14036_v48  ;;  %4710 = vmatpush.bf16.msra.mxu1 %v14036_v48 }
 0x442   :  { %5025 = vmatpush.bf16.msrb.mxu2 %v14036_v48 }
 0x444   :  { %4865 = vmatpush.bf16.msra.mxu3 %v12340_v14  ;;  %v12381_v14 = vld [vmem:[%s15313_s6 + $0x118] sm:$0xff] }
 0x445   :  { %4657 = vmatpush.bf16.msra.mxu0 %v14034_v37  ;;  %4711 = vmatpush.bf16.msra.mxu1 %v14034_v37 }
 0x446   :  { %5026 = vmatpush.bf16.msrb.mxu2 %v14034_v37 }
 0x448   :  { %4866 = vmatpush.bf16.msra.mxu3 %v12339_v1  ;;  %v12380_v1 = vld [vmem:[%s15313_s6 + $0x110] sm:$0xff] }
 0x449   :  { %4658 = vmatpush.bf16.msra.mxu0 %v14032_v51  ;;  %4712 = vmatpush.bf16.msra.mxu1 %v14032_v51 }
 0x44a   :  { %5027 = vmatpush.bf16.msrb.mxu2 %v14032_v51 }
 0x44c   :  { %4867 = vmatpush.bf16.msra.mxu3 %v12338_v57 }
 0x44d   :  { %4659 = vmatpush.bf16.msra.mxu0 %v14030_v47  ;;  %4713 = vmatpush.bf16.msra.mxu1 %v14030_v47 }
 0x44e   :  { %5028 = vmatpush.bf16.msrb.mxu2 %v14030_v47 }
 0x450   :  { %5108 = vmatpush.bf16.msrb.mxu3 %v12375_v24 }
 0x451   :  { %4660 = vmatpush.bf16.msra.mxu0 %v14028_v45  ;;  %4714 = vmatpush.bf16.msra.mxu1 %v14028_v45 }
 0x452   :  { %5029 = vmatpush.bf16.msrb.mxu2 %v14028_v45 }
 0x454   :  { %4715 = vmatmul.bf16.vlgmr.msra.gmra.mxu1 %v12346_v59  ;;  %4661 = vmatmul.bf16.vlgmr.msra.gmra.mxu0 %v12336_v29  ;;  %v12385_v59 = vld [vmem:[%s15313_s6 + $0x138] sm:$0xff]  ;;  %v12372_v29 = vld [vmem:[%s15313_s6 + $0xe0] sm:$0xff] }
 0x455   :  { %4896 = vmatpush.bf16.msrb.mxu0 %v14042_v20  ;;  %4982 = vmatpush.bf16.msrb.mxu1 %v12365_v52 }
 0x456   :  { %5109 = vmatpush.bf16.msrb.mxu3 %v12374_v26 }
 0x459   :  { %4897 = vmatpush.bf16.msrb.mxu0 %v14040_v43  ;;  %4983 = vmatpush.bf16.msrb.mxu1 %v12364_v27  ;;  %v12427_v27 = vld [vmem:[%s15314_s5 + $0x98] sm:$0xff] }
 0x45a   :  { %5110 = vmatpush.bf16.msrb.mxu3 %v12373_v46  ;;  %v12399_v46 = vld [vmem:[%s15313_s6 + $0x188] sm:$0xff] }
 0x45d   :  { %4898 = vmatpush.bf16.msrb.mxu0 %v14038_v25  ;;  %4984 = vmatpush.bf16.msrb.mxu1 %v12363_v36  ;;  %v12456_v36 = vld [vmem:[%s15314_s5 + $0xc0] sm:$0xff] }
 0x45e   :  { %5111 = vmatpush.bf16.msrb.mxu3 %v12372_v29 }
 0x461   :  { %4899 = vmatpush.bf16.msrb.mxu0 %v14036_v48  ;;  %4985 = vmatpush.bf16.msrb.mxu1 %v12362_v22  ;;  %v12379_v22 = vld [vmem:[%s15313_s6 + $0x108] sm:$0xff] }
 0x464   :  { %4720 = vmatmul.bf16.gmra.mxu1 %v12347_v60  ;;  %4666 = vmatmul.bf16.gmra.mxu0 %v12337_v6  ;;  %v12384_v60 = vld [vmem:[%s15313_s6 + $0x130] sm:$0xff] }
 0x465   :  { %4900 = vmatpush.bf16.msrb.mxu0 %v14034_v37  ;;  %4986 = vmatpush.bf16.msrb.mxu1 %v12361_v0  ;;  %v12426_v6 = vld [vmem:[%s15314_s5 + $0x90] sm:$0xff]  ;;  %v12395_v0 = vld [vmem:[%s15313_s6 + $0x178] sm:$0xff] }
 0x469   :  { %4901 = vmatpush.bf16.msrb.mxu0 %v14032_v51  ;;  %4987 = vmatpush.bf16.msrb.mxu1 %v12360_v53  ;;  %v12378_v53 = vld [vmem:[%s15313_s6 + $0x100] sm:$0xff] }
 0x46d   :  { %4902 = vmatpush.bf16.msrb.mxu0 %v14030_v47  ;;  %4988 = vmatpush.bf16.msrb.mxu1 %v12359_v5 }
 0x471   :  { %4903 = vmatpush.bf16.msrb.mxu0 %v14028_v45  ;;  %4989 = vmatpush.bf16.msrb.mxu1 %v12358_v58 }
 0x474   :  { %4904 = vmatmul.bf16.vlgmr.msrb.gmra.mxu0 %v12356_v63  ;;  %v12437_v63 = vld [vmem:[%s15314_s5 + $0xa8] sm:$0xff] }
 0x475   :  { %5148 = vmatpush.bf16.msra.mxu0 %v14042_v20  ;;  %5234 = vmatpush.bf16.msra.mxu1 %v12385_v59  ;;  %v12415_v59 = vld [vmem:[%s15313_s6 + $0x1f8] sm:$0xff] }
 0x479   :  { %5149 = vmatpush.bf16.msra.mxu0 %v14040_v43  ;;  %5235 = vmatpush.bf16.msra.mxu1 %v12384_v60  ;;  %v12414_v60 = vld [vmem:[%s15313_s6 + $0x1f0] sm:$0xff] }
 0x47d   :  { %5150 = vmatpush.bf16.msra.mxu0 %v14038_v25 }
 0x481   :  { %5151 = vmatpush.bf16.msra.mxu0 %v14036_v48 }
 0x484   :  { %4909 = vmatmul.bf16.gmra.mxu0 %v12357_v61  ;;  %v12371_v61 = vld [vmem:[%s15313_s6 + $0xd8] sm:$0xff] }
 0x485   :  { %5152 = vmatpush.bf16.msra.mxu0 %v14034_v37  ;;  %5112 = vmatpush.bf16.msrb.mxu3 %v12371_v61 }
 0x489   :  { %5153 = vmatpush.bf16.msra.mxu0 %v14032_v51  ;;  %5113 = vmatpush.bf16.msrb.mxu3 %v12370_v50  ;;  %v12412_v50 = vld [vmem:[%s15313_s6 + $0x1e0] sm:$0xff] }
 0x48d   :  { %5154 = vmatpush.bf16.msra.mxu0 %v14030_v47  ;;  %5114 = vmatpush.bf16.msrb.mxu3 %v12369_v55  ;;  %v12411_v55 = vld [vmem:[%s15313_s6 + $0x1d8] sm:$0xff] }
 0x491   :  { %5155 = vmatpush.bf16.msra.mxu0 %v14028_v45 }
 0x494   :  { %5156 = vmatmul.bf16.vlgmr.msra.gmra.mxu0 %v12376_v23  ;;  %v12383_v23 = vld [vmem:[%s15313_s6 + $0x128] sm:$0xff] }
 0x495   :  { %5400 = vmatpush.bf16.msrb.mxu0 %v14042_v20  ;;  %5236 = vmatpush.bf16.msra.mxu1 %v12383_v23 }
 0x499   :  { %5401 = vmatpush.bf16.msrb.mxu0 %v14040_v43  ;;  %5237 = vmatpush.bf16.msra.mxu1 %v12382_v56  ;;  %v12424_v56 = vld [vmem:[%s15313_s6 + $0x230] sm:$0xff] }
 0x49d   :  { %5402 = vmatpush.bf16.msrb.mxu0 %v14038_v25  ;;  %5238 = vmatpush.bf16.msra.mxu1 %v12381_v14  ;;  %v12423_v14 = vld [vmem:[%s15313_s6 + $0x228] sm:$0xff] }
 0x4a1   :  { %5403 = vmatpush.bf16.msrb.mxu0 %v14036_v48  ;;  %5239 = vmatpush.bf16.msra.mxu1 %v12380_v1 }
 0x4a4   :  { %5161 = vmatmul.bf16.gmra.mxu0 %v12377_v40 }
 0x4a5   :  { %5404 = vmatpush.bf16.msrb.mxu0 %v14034_v37  ;;  %5240 = vmatpush.bf16.msra.mxu1 %v12379_v22  ;;  %v12421_v22 = vld [vmem:[%s15313_s6 + $0x218] sm:$0xff] }
 0x4a9   :  { %5405 = vmatpush.bf16.msrb.mxu0 %v14032_v51  ;;  %5241 = vmatpush.bf16.msra.mxu1 %v12378_v53  ;;  %v12420_v53 = vld [vmem:[%s15313_s6 + $0x210] sm:$0xff] }
 0x4ad   :  { %5406 = vmatpush.bf16.msrb.mxu0 %v14030_v47 }
 0x4b1   :  { %5407 = vmatpush.bf16.msrb.mxu0 %v14028_v45 }
 0x4b4   :  { %5408 = vmatmul.bf16.vlgmr.msrb.gmra.mxu0 %v12396_v13  ;;  %v12368_v13 = vld [vmem:[%s15313_s6 + $0xc0] sm:$0xff] }
 0x4b5   :  { %5652 = vmatpush.bf16.msra.mxu0 %v14042_v20  ;;  %5115 = vmatpush.bf16.msrb.mxu3 %v12368_v13  ;;  %v12422_v13 = vld [vmem:[%s15313_s6 + $0x220] sm:$0xff] }
 0x4b9   :  { %5653 = vmatpush.bf16.msra.mxu0 %v14040_v43 }
 0x4bd   :  { %5654 = vmatpush.bf16.msra.mxu0 %v14038_v25 }
 0x4c1   :  { %5655 = vmatpush.bf16.msra.mxu0 %v14036_v48 }
 0x4c4   :  { %5413 = vmatmul.bf16.gmra.mxu0 %v12397_v2 }
 0x4c5   :  { %5656 = vmatpush.bf16.msra.mxu0 %v14034_v37 }
 0x4c9   :  { %5657 = vmatpush.bf16.msra.mxu0 %v14032_v51 }
 0x4cd   :  { %5658 = vmatpush.bf16.msra.mxu0 %v14030_v47 }
 0x4d1   :  { %5659 = vmatpush.bf16.msra.mxu0 %v14028_v45  ;;  %v4716_v38 = vpop.f32.mrf.mxu1  ;;  %v4662_v7 = vpop.f32.mrf.mxu0 }
 0x4d4   :  { %5660 = vmatmul.bf16.vlgmr.msra.gmra.mxu0 %v12416_v28 }
 0x4d5   :  { %5904 = vmatpush.bf16.msrb.mxu0 %v14042_v20 }
 0x4d9   :  { %5905 = vmatpush.bf16.msrb.mxu0 %v14040_v43  ;;  %v4718_v11 = vpop.f32.mrf.mxu1  ;;  %v4664_v4 = vpop.f32.mrf.mxu0 }
 0x4da   :  { %v4726_v39 = vpack.c.bf16 %v4718_v11, %v4716_v38  ;;  %v4672_v34 = vpack.c.bf16 %v4664_v4, %v4662_v7  ;;  %v12394_v38 = vld [vmem:[%s15313_s6 + $0x170] sm:$0xff]  ;;  %v12393_v4 = vld [vmem:[%s15313_s6 + $0x168] sm:$0xff] }
 0x4dc   :  { %4801 = vmatmul.bf16.vlgmr.msra.gmra.mxu2 %v4726_v39  ;;  %4868 = vmatmul.bf16.vlgmr.msra.gmra.mxu3 %v4672_v34  ;;  %v12405_v39 = vld [vmem:[%s15313_s6 + $0x1b8] sm:$0xff]  ;;  %v12392_v34 = vld [vmem:[%s15313_s6 + $0x160] sm:$0xff] }
 0x4dd   :  { %5906 = vmatpush.bf16.msrb.mxu0 %v14038_v25  ;;  %5274 = vmatpush.bf16.msra.mxu2 %v14042_v20 }
 0x4de   :  { %5360 = vmatpush.bf16.msra.mxu3 %v12395_v0  ;;  %v12408_v0 = vld [vmem:[%s15313_s6 + $0x1c0] sm:$0xff] }
 0x4e1   :  { %5907 = vmatpush.bf16.msrb.mxu0 %v14036_v48  ;;  %5275 = vmatpush.bf16.msra.mxu2 %v14040_v43  ;;  %v4721_v41 = vpop.f32.mrf.mxu1  ;;  %v4667_v21 = vpop.f32.mrf.mxu0 }
 0x4e2   :  { %5361 = vmatpush.bf16.msra.mxu3 %v12394_v38 }
 0x4e4   :  { %5665 = vmatmul.bf16.gmra.mxu0 %v12417_v54  ;;  %v12446_v54 = vld [vmem:[%s15314_s5 + $0xb0] sm:$0xff] }
 0x4e5   :  { %5908 = vmatpush.bf16.msrb.mxu0 %v14034_v37  ;;  %5276 = vmatpush.bf16.msra.mxu2 %v14038_v25 }
 0x4e6   :  { %5362 = vmatpush.bf16.msra.mxu3 %v12393_v4  ;;  %v12418_v4 = vld [vmem:[%s15313_s6 + $0x200] sm:$0xff] }
 0x4e9   :  { %5909 = vmatpush.bf16.msrb.mxu0 %v14032_v51  ;;  %5277 = vmatpush.bf16.msra.mxu2 %v14036_v48  ;;  %v4723_v12 = vpop.f32.mrf.mxu1  ;;  %v4669_v62 = vpop.f32.mrf.mxu0 }
 0x4ea   :  { %v4727_v35 = vpack.c.bf16 %v4723_v12, %v4721_v41  ;;  %v4673_v44 = vpack.c.bf16 %v4669_v62, %v4667_v21  ;;  %v12404_v41 = vld [vmem:[%s15313_s6 + $0x1b0] sm:$0xff]  ;;  %5363 = vmatpush.bf16.msra.mxu3 %v12392_v34 }
 0x4ec   :  { %4806 = vmatmul.bf16.gmra.mxu2 %v4727_v35  ;;  %4873 = vmatmul.bf16.gmra.mxu3 %v4673_v44  ;;  %v12457_v35 = vld [vmem:[%s15314_s5 + $0xc8] sm:$0xff] }
 0x4ed   :  { %5910 = vmatpush.bf16.msrb.mxu0 %v14030_v47  ;;  %5278 = vmatpush.bf16.msra.mxu2 %v14034_v37 }
 0x4f1   :  { %5911 = vmatpush.bf16.msrb.mxu0 %v14028_v45  ;;  %5279 = vmatpush.bf16.msra.mxu2 %v14032_v51  ;;  %v4905_v32 = vpop.f32.mrf.mxu0 }
 0x4f4   :  { %5912 = vmatmul.bf16.vlgmr.msrb.gmra.mxu0 %v12436_v9  ;;  %v12403_v9 = vld [vmem:[%s15313_s6 + $0x1a8] sm:$0xff] }
 0x4f5   :  { %6156 = vmatpush.bf16.msra.mxu0 %v14042_v20  ;;  %5280 = vmatpush.bf16.msra.mxu2 %v14030_v47 }
 0x4f9   :  { %6157 = vmatpush.bf16.msra.mxu0 %v14040_v43  ;;  %5281 = vmatpush.bf16.msra.mxu2 %v14028_v45  ;;  %v4907_v3 = vpop.f32.mrf.mxu0 }
 0x4fa   :  { %v4915_v33 = vpack.c.bf16 %v4907_v3, %v4905_v32  ;;  %v12391_v32 = vld [vmem:[%s15313_s6 + $0x158] sm:$0xff]  ;;  %v12402_v3 = vld [vmem:[%s15313_s6 + $0x1a0] sm:$0xff] }
 0x4fb   :  { %5364 = vmatpush.bf16.msra.mxu3 %v12391_v32  ;;  %v12444_v32 = vld [vmem:[%s15313_s6 + $0x2b0] sm:$0xff] }
 0x4fc   :  { %5030 = vmatmul.bf16.vlgmr.msrb.gmra.mxu2 %v12366_v18  ;;  %4990 = vmatmul.bf16.vlgmr.msrb.gmra.mxu1 %v4915_v33  ;;  %v12390_v18 = vld [vmem:[%s15313_s6 + $0x150] sm:$0xff] }
 0x4fd   :  { %6158 = vmatpush.bf16.msra.mxu0 %v14038_v25  ;;  %5526 = vmatpush.bf16.msrb.mxu2 %v14042_v20 }
 0x4fe   :  { %5486 = vmatpush.bf16.msrb.mxu1 %v12405_v39  ;;  %v12434_v39 = vld [vmem:[%s15313_s6 + $0x270] sm:$0xff] }
 0x4ff   :  { %5365 = vmatpush.bf16.msra.mxu3 %v12390_v18 }
 0x501   :  { %6159 = vmatpush.bf16.msra.mxu0 %v14036_v48  ;;  %5527 = vmatpush.bf16.msrb.mxu2 %v14040_v43  ;;  %v4910_v8 = vpop.f32.mrf.mxu0 }
 0x502   :  { %5487 = vmatpush.bf16.msrb.mxu1 %v12404_v41  ;;  %v12445_v41 = vld [vmem:[%s15313_s6 + $0x2b8] sm:$0xff] }
 0x504   :  { %5917 = vmatmul.bf16.gmra.mxu0 %v12437_v63  ;;  %v12425_v63 = vld [vmem:[%s15313_s6 + $0x238] sm:$0xff] }
 0x505   :  { %6160 = vmatpush.bf16.msra.mxu0 %v14034_v37  ;;  %5528 = vmatpush.bf16.msrb.mxu2 %v14038_v25 }
 0x506   :  { %5488 = vmatpush.bf16.msrb.mxu1 %v12403_v9 }
 0x509   :  { %6161 = vmatpush.bf16.msra.mxu0 %v14032_v51  ;;  %5529 = vmatpush.bf16.msrb.mxu2 %v14036_v48  ;;  %v4912_v30 = vpop.f32.mrf.mxu0 }
 0x50a   :  { %v4916_v10 = vpack.c.bf16 %v4912_v30, %v4910_v8  ;;  %5489 = vmatpush.bf16.msrb.mxu1 %v12402_v3  ;;  %v12486_v3 = vld [vmem:[%s15314_s5 + $0xf0] sm:$0xff] }
 0x50c   :  { %5035 = vmatmul.bf16.gmra.mxu2 %v12367_v42  ;;  %4995 = vmatmul.bf16.gmra.mxu1 %v4916_v10  ;;  %v12389_v42 = vld [vmem:[%s15313_s6 + $0x148] sm:$0xff]  ;;  %v12401_v10 = vld [vmem:[%s15313_s6 + $0x198] sm:$0xff] }
 0x50d   :  { %6162 = vmatpush.bf16.msra.mxu0 %v14030_v47  ;;  %5530 = vmatpush.bf16.msrb.mxu2 %v14034_v37 }
 0x50e   :  { %5366 = vmatpush.bf16.msra.mxu3 %v12389_v42  ;;  %5490 = vmatpush.bf16.msrb.mxu1 %v12401_v10  ;;  %v12443_v42 = vld [vmem:[%s15313_s6 + $0x2a8] sm:$0xff]  ;;  %v12442_v10 = vld [vmem:[%s15313_s6 + $0x2a0] sm:$0xff] }
 0x511   :  { %6163 = vmatpush.bf16.msra.mxu0 %v14028_v45  ;;  %5531 = vmatpush.bf16.msrb.mxu2 %v14032_v51  ;;  %v5157_v2 = vpop.f32.mrf.mxu0 }
 0x514   :  { %6164 = vmatmul.bf16.vlgmr.msra.gmra.mxu0 %v12456_v36 }
 0x515   :  { %6408 = vmatpush.bf16.msrb.mxu0 %v14042_v20  ;;  %5532 = vmatpush.bf16.msrb.mxu2 %v14030_v47 }
 0x519   :  { %6409 = vmatpush.bf16.msrb.mxu0 %v14040_v43  ;;  %5533 = vmatpush.bf16.msrb.mxu2 %v14028_v45  ;;  %v5159_v5 = vpop.f32.mrf.mxu0 }
 0x51a   :  { %v5167_v11 = vpack.c.bf16 %v5159_v5, %v5157_v2  ;;  %v12409_v2 = vld [vmem:[%s15313_s6 + $0x1c8] sm:$0xff] }
 0x51c   :  { %5282 = vmatmul.bf16.vlgmr.msra.gmra.mxu2 %v12386_v16  ;;  %5242 = vmatmul.bf16.vlgmr.msra.gmra.mxu1 %v5167_v11  ;;  %v12388_v16 = vld [vmem:[%s15313_s6 + $0x140] sm:$0xff]  ;;  %v12435_v11 = vld [vmem:[%s15313_s6 + $0x278] sm:$0xff] }
 0x51d   :  { %6410 = vmatpush.bf16.msrb.mxu0 %v14038_v25  ;;  %5778 = vmatpush.bf16.msra.mxu2 %v14042_v20 }
 0x51e   :  { %5367 = vmatpush.bf16.msra.mxu3 %v12388_v16 }
 0x521   :  { %6411 = vmatpush.bf16.msrb.mxu0 %v14036_v48  ;;  %5779 = vmatpush.bf16.msra.mxu2 %v14040_v43  ;;  %v5162_v12 = vpop.f32.mrf.mxu0 }
 0x524   :  { %6169 = vmatmul.bf16.gmra.mxu0 %v12457_v35  ;;  %v12432_v35 = vld [vmem:[%s15313_s6 + $0x260] sm:$0xff] }
 0x525   :  { %6412 = vmatpush.bf16.msrb.mxu0 %v14034_v37  ;;  %5780 = vmatpush.bf16.msra.mxu2 %v14038_v25 }
 0x529   :  { %6413 = vmatpush.bf16.msrb.mxu0 %v14032_v51  ;;  %5781 = vmatpush.bf16.msra.mxu2 %v14036_v48  ;;  %v5164_v8 = vpop.f32.mrf.mxu0 }
 0x52a   :  { %v5168_v30 = vpack.c.bf16 %v5164_v8, %v5162_v12  ;;  %v12433_v12 = vld [vmem:[%s15313_s6 + $0x268] sm:$0xff]  ;;  %v12431_v8 = vld [vmem:[%s15313_s6 + $0x258] sm:$0xff] }
 0x52c   :  { %5287 = vmatmul.bf16.gmra.mxu2 %v12387_v17  ;;  %5247 = vmatmul.bf16.gmra.mxu1 %v5168_v30  ;;  %v12430_v30 = vld [vmem:[%s15313_s6 + $0x250] sm:$0xff] }
 0x52d   :  { %6414 = vmatpush.bf16.msrb.mxu0 %v14030_v47  ;;  %5782 = vmatpush.bf16.msra.mxu2 %v14034_v37 }
 0x531   :  { %6415 = vmatpush.bf16.msrb.mxu0 %v14028_v45  ;;  %5783 = vmatpush.bf16.msra.mxu2 %v14032_v51  ;;  %v5409_v24 = vpop.f32.mrf.mxu0 }
 0x535   :  { %5784 = vmatpush.bf16.msra.mxu2 %v14030_v47 }
 0x539   :  { %5785 = vmatpush.bf16.msra.mxu2 %v14028_v45  ;;  %v5411_v61 = vpop.f32.mrf.mxu0 }
 0x53a   :  { %v5419_v23 = vpack.c.bf16 %v5411_v61, %v5409_v24  ;;  %v12428_v24 = vld [vmem:[%s15313_s6 + $0x240] sm:$0xff]  ;;  %v12454_v61 = vld [vmem:[%s15313_s6 + $0x2f0] sm:$0xff] }
 0x53c   :  { %5534 = vmatmul.bf16.vlgmr.msrb.gmra.mxu2 %v12406_v15 }
 0x53d   :  { %6030 = vmatpush.bf16.msrb.mxu2 %v14042_v20 }
 0x541   :  { %6031 = vmatpush.bf16.msrb.mxu2 %v14040_v43 }
 0x545   :  { %6032 = vmatpush.bf16.msrb.mxu2 %v14038_v25 }
 0x549   :  { %6033 = vmatpush.bf16.msrb.mxu2 %v14036_v48 }
 0x54c   :  { %5539 = vmatmul.bf16.gmra.mxu2 %v12407_v49  ;;  %v12447_v49 = vld [vmem:[%s15314_s5 + $0xb8] sm:$0xff] }
 0x54d   :  { %6034 = vmatpush.bf16.msrb.mxu2 %v14034_v37 }
 0x551   :  { %6035 = vmatpush.bf16.msrb.mxu2 %v14032_v51 }
 0x555   :  { %6036 = vmatpush.bf16.msrb.mxu2 %v14030_v47 }
 0x559   :  { %6037 = vmatpush.bf16.msrb.mxu2 %v14028_v45 }
 0x55c   :  { %5786 = vmatmul.bf16.vlgmr.msra.gmra.mxu2 %v12426_v6 }
 0x55d   :  { %6282 = vmatpush.bf16.msra.mxu2 %v14042_v20 }
 0x55f   :  { %v4802_v40 = vpop.f32.mrf.mxu2  ;;  %v4869_v31 = vpop.f32.mrf.mxu3 }
 0x560   :  { %v4870_v19 = vadd.f32 %v4869_v31, %v4802_v40 }
 0x561   :  { %6283 = vmatpush.bf16.msra.mxu2 %v14040_v43 }
 0x565   :  { %6284 = vmatpush.bf16.msra.mxu2 %v14038_v25 }
 0x567   :  { %v14312_v57 = vpop.f32.mrf.mxu2  ;;  %v14314_v52 = vpop.f32.mrf.mxu3 }
 0x569   :  { %6285 = vmatpush.bf16.msra.mxu2 %v14036_v48 }
 0x56c   :  { %5791 = vmatmul.bf16.gmra.mxu2 %v12427_v27 }
 0x56d   :  { %6286 = vmatpush.bf16.msra.mxu2 %v14034_v37 }
 0x56f   :  { %v4807_v7 = vpop.f32.mrf.mxu2  ;;  %v4874_v28 = vpop.f32.mrf.mxu3 }
 0x570   :  { %v4875_v58 = vadd.f32 %v4874_v28, %v4807_v7  ;;  %v12467_v28 = vld [vmem:[%s15314_s5 + $0xd8] sm:$0xff] }
 0x571   :  { %6287 = vmatpush.bf16.msra.mxu2 %v14032_v51 }
 0x575   :  { %6288 = vmatpush.bf16.msra.mxu2 %v14030_v47 }
 0x577   :  { %v14350_v21 = vpop.f32.mrf.mxu2 }
 0x579   :  { %6289 = vmatpush.bf16.msra.mxu2 %v14028_v45  ;;  %v4991_v62 = vpop.f32.mrf.mxu1 }
 0x57a   :  { %v14359_v44 = vadd.f32 %v4991_v62, %v4870_v19  ;;  %v5414_v19 = vpop.f32.mrf.mxu0 }
 0x57c   :  { %6038 = vmatmul.bf16.vlgmr.msrb.gmra.mxu2 %v12446_v54 }
 0x57d   :  { %6534 = vmatpush.bf16.msrb.mxu2 %v14042_v20 }
 0x57f   :  { %v5031_v33 = vpop.f32.mrf.mxu2 }
 0x581   :  { %6535 = vmatpush.bf16.msrb.mxu2 %v14040_v43  ;;  %v14378_v20 = vpop.f32.mrf.mxu1  ;;  %v12400_v43 = vld [vmem:[%s15313_s6 + $0x190] sm:$0xff] }
 0x582   :  { %5491 = vmatpush.bf16.msrb.mxu1 %v12400_v43  ;;  %v5416_v27 = vpop.f32.mrf.mxu0 }
 0x583   :  { %v5420_v36 = vpack.c.bf16 %v5416_v27, %v5414_v19 }
 0x585   :  { %6536 = vmatpush.bf16.msrb.mxu2 %v14038_v25  ;;  %v12476_v25 = vld [vmem:[%s15314_s5 + $0xe0] sm:$0xff] }
 0x586   :  { %6416 = vmatmul.bf16.vlgmr.msrb.gmra.mxu0 %v12476_v25  ;;  %5492 = vmatpush.bf16.msrb.mxu1 %v12399_v46  ;;  %v12440_v25 = vld [vmem:[%s15313_s6 + $0x290] sm:$0xff] }
 0x587   :  { %v5033_v17 = vpop.f32.mrf.mxu2 }
 0x588   :  { %v5041_v15 = vpack.c.bf16 %v5033_v17, %v5031_v33  ;;  %v12429_v17 = vld [vmem:[%s15313_s6 + $0x248] sm:$0xff] }
 0x589   :  { %6537 = vmatpush.bf16.msrb.mxu2 %v14036_v48  ;;  %v4996_v26 = vpop.f32.mrf.mxu1  ;;  %v12398_v48 = vld [vmem:[%s15313_s6 + $0x180] sm:$0xff] }
 0x58a   :  { %5116 = vmatmul.bf16.vlgmr.msrb.gmra.mxu3 %v5041_v15  ;;  %v14403_v29 = vadd.f32 %v4996_v26, %v4875_v58  ;;  %5493 = vmatpush.bf16.msrb.mxu1 %v12398_v48  ;;  %v5661_v5 = vpop.f32.mrf.mxu0  ;;  %v12419_v58 = vld [vmem:[%s15313_s6 + $0x208] sm:$0xff] }
 0x58b   :  { %5612 = vmatpush.bf16.msrb.mxu3 %v12415_v59  ;;  %v12487_v59 = vld [vmem:[%s15314_s5 + $0xf8] sm:$0xff] }
 0x58c   :  { %6043 = vmatmul.bf16.gmra.mxu2 %v12447_v49  ;;  %v12441_v49 = vld [vmem:[%s15313_s6 + $0x298] sm:$0xff] }
 0x58d   :  { %6538 = vmatpush.bf16.msrb.mxu2 %v14034_v37  ;;  %v12413_v37 = vld [vmem:[%s15313_s6 + $0x1e8] sm:$0xff]  ;;  %5494 = vmatmul.bf16.vlgmr.msrb.gmra.mxu1 %v5419_v23  ;;  %v12465_v23 = vld [vmem:[%s15313_s6 + $0x338] sm:$0xff] }
 0x58e   :  { %5738 = vmatpush.bf16.msra.mxu1 %v12425_v63  ;;  %v12438_v63 = vld [vmem:[%s15313_s6 + $0x280] sm:$0xff] }
 0x58f   :  { %v5036_v6 = vpop.f32.mrf.mxu2  ;;  %5613 = vmatpush.bf16.msrb.mxu3 %v12414_v60  ;;  %v12439_v60 = vld [vmem:[%s15313_s6 + $0x288] sm:$0xff] }
 0x591   :  { %6539 = vmatpush.bf16.msrb.mxu2 %v14032_v51  ;;  %v12466_v51 = vld [vmem:[%s15314_s5 + $0xd0] sm:$0xff] }
 0x592   :  { %5739 = vmatpush.bf16.msra.mxu1 %v12424_v56  ;;  %v5663_v54 = vpop.f32.mrf.mxu0  ;;  %v12453_v56 = vld [vmem:[%s15313_s6 + $0x2e8] sm:$0xff] }
 0x593   :  { %5614 = vmatpush.bf16.msrb.mxu3 %v12413_v37  ;;  %v5671_v62 = vpack.c.bf16 %v5663_v54, %v5661_v5 }
 0x595   :  { %6540 = vmatpush.bf16.msrb.mxu2 %v14030_v47  ;;  %v12477_v47 = vld [vmem:[%s15314_s5 + $0xe8] sm:$0xff] }
 0x596   :  { %6421 = vmatmul.bf16.gmra.mxu0 %v12477_v47  ;;  %5740 = vmatpush.bf16.msra.mxu1 %v12423_v14  ;;  %v12451_v14 = vld [vmem:[%s15313_s6 + $0x2d8] sm:$0xff] }
 0x597   :  { %v5038_v40 = vpop.f32.mrf.mxu2  ;;  %5615 = vmatpush.bf16.msrb.mxu3 %v12412_v50 }
 0x598   :  { %v5042_v31 = vpack.c.bf16 %v5038_v40, %v5036_v6  ;;  %v12455_v6 = vld [vmem:[%s15313_s6 + $0x2f8] sm:$0xff] }
 0x599   :  { %6541 = vmatpush.bf16.msrb.mxu2 %v14028_v45  ;;  %v12410_v45 = vld [vmem:[%s15313_s6 + $0x1d0] sm:$0xff] }
 0x59a   :  { %5121 = vmatmul.bf16.gmra.mxu3 %v5042_v31  ;;  %5741 = vmatpush.bf16.msra.mxu1 %v12422_v13  ;;  %v5666_v33 = vpop.f32.mrf.mxu0  ;;  %v12452_v31 = vld [vmem:[%s15313_s6 + $0x2e0] sm:$0xff]  ;;  %v12450_v13 = vld [vmem:[%s15313_s6 + $0x2d0] sm:$0xff] }
 0x59b   :  { %5616 = vmatpush.bf16.msrb.mxu3 %v12411_v55 }
 0x59c   :  { %6290 = vmatmul.bf16.vlgmr.msra.gmra.mxu2 %v12466_v51  ;;  %v12464_v51 = vld [vmem:[%s15313_s6 + $0x330] sm:$0xff] }
 0x59d   :  { %5499 = vmatmul.bf16.gmra.mxu1 %v5420_v36  ;;  %v12449_v36 = vld [vmem:[%s15313_s6 + $0x2c8] sm:$0xff] }
 0x59e   :  { %5742 = vmatpush.bf16.msra.mxu1 %v12421_v22 }
 0x59f   :  { %v5283_v1 = vpop.f32.mrf.mxu2  ;;  %5617 = vmatpush.bf16.msrb.mxu3 %v12410_v45  ;;  %v12463_v45 = vld [vmem:[%s15313_s6 + $0x328] sm:$0xff] }
 0x5a2   :  { %5743 = vmatpush.bf16.msra.mxu1 %v12420_v53  ;;  %v5668_v43 = vpop.f32.mrf.mxu0  ;;  %v12448_v53 = vld [vmem:[%s15313_s6 + $0x2c0] sm:$0xff] }
 0x5a3   :  { %5618 = vmatpush.bf16.msrb.mxu3 %v12409_v2  ;;  %v5672_v15 = vpack.c.bf16 %v5668_v43, %v5666_v33 }
 0x5a6   :  { %5744 = vmatpush.bf16.msra.mxu1 %v12419_v58  ;;  %v12459_v58 = vld [vmem:[%s15313_s6 + $0x308] sm:$0xff] }
 0x5a7   :  { %v5285_v38 = vpop.f32.mrf.mxu2  ;;  %5619 = vmatpush.bf16.msrb.mxu3 %v12408_v0  ;;  %v12461_v0 = vld [vmem:[%s15313_s6 + $0x318] sm:$0xff] }
 0x5a8   :  { %v5293_v7 = vpack.c.bf16 %v5285_v38, %v5283_v1  ;;  %v12462_v1 = vld [vmem:[%s15313_s6 + $0x320] sm:$0xff]  ;;  %v12460_v38 = vld [vmem:[%s15313_s6 + $0x310] sm:$0xff] }
 0x5aa   :  { %5368 = vmatmul.bf16.vlgmr.msra.gmra.mxu3 %v5293_v7  ;;  %5745 = vmatpush.bf16.msra.mxu1 %v12418_v4  ;;  %v5913_v48 = vpop.f32.mrf.mxu0  ;;  %v14568_v4 = vpop.f32.mrf.mxu1 }
 0x5ab   :  { %5864 = vmatpush.bf16.msra.mxu3 %v12435_v11  ;;  %v12475_v11 = vld [vmem:[%s15313_s6 + $0x378] sm:$0xff] }
 0x5ac   :  { %6295 = vmatmul.bf16.gmra.mxu2 %v12467_v28 }
 0x5ad   :  { %5746 = vmatmul.bf16.vlgmr.msra.gmra.mxu1 %v5671_v62  ;;  %v12485_v62 = vld [vmem:[%s15313_s6 + $0x3b8] sm:$0xff] }
 0x5ae   :  { %5990 = vmatpush.bf16.msrb.mxu1 %v12445_v41 }
 0x5af   :  { %v5288_v34 = vpop.f32.mrf.mxu2  ;;  %5865 = vmatpush.bf16.msra.mxu3 %v12434_v39  ;;  %v12458_v39 = vld [vmem:[%s15313_s6 + $0x300] sm:$0xff] }
 0x5b2   :  { %5991 = vmatpush.bf16.msrb.mxu1 %v12444_v32  ;;  %v5915_v50 = vpop.f32.mrf.mxu0  ;;  %v5243_v32 = vpop.f32.mrf.mxu1 }
 0x5b3   :  { %5866 = vmatpush.bf16.msra.mxu3 %v12433_v12  ;;  %v5923_v40 = vpack.c.bf16 %v5915_v50, %v5913_v48  ;;  %v12473_v12 = vld [vmem:[%s15313_s6 + $0x368] sm:$0xff] }
 0x5b6   :  { %5992 = vmatpush.bf16.msrb.mxu1 %v12443_v42  ;;  %v12471_v42 = vld [vmem:[%s15313_s6 + $0x358] sm:$0xff] }
 0x5b7   :  { %v5290_v9 = vpop.f32.mrf.mxu2  ;;  %5867 = vmatpush.bf16.msra.mxu3 %v12432_v35 }
 0x5b8   :  { %v5294_v18 = vpack.c.bf16 %v5290_v9, %v5288_v34  ;;  %v12474_v34 = vld [vmem:[%s15313_s6 + $0x370] sm:$0xff]  ;;  %v12472_v9 = vld [vmem:[%s15313_s6 + $0x360] sm:$0xff] }
 0x5ba   :  { %5373 = vmatmul.bf16.gmra.mxu3 %v5294_v18  ;;  %5993 = vmatpush.bf16.msrb.mxu1 %v12442_v10  ;;  %v5918_v55 = vpop.f32.mrf.mxu0  ;;  %v12484_v18 = vld [vmem:[%s15313_s6 + $0x3b0] sm:$0xff] }
 0x5bb   :  { %5868 = vmatpush.bf16.msra.mxu3 %v12431_v8  ;;  %v12470_v10 = vld [vmem:[%s15313_s6 + $0x350] sm:$0xff] }
 0x5bc   :  { %6542 = vmatmul.bf16.vlgmr.msrb.gmra.mxu2 %v12486_v3 }
 0x5bd   :  { %5751 = vmatmul.bf16.gmra.mxu1 %v5672_v15 }
 0x5be   :  { %5994 = vmatpush.bf16.msrb.mxu1 %v12441_v49  ;;  %v12469_v49 = vld [vmem:[%s15313_s6 + $0x348] sm:$0xff] }
 0x5bf   :  { %v5535_v16 = vpop.f32.mrf.mxu2  ;;  %5869 = vmatpush.bf16.msra.mxu3 %v12430_v30  ;;  %v12483_v30 = vld [vmem:[%s15313_s6 + $0x3a8] sm:$0xff] }
 0x5c2   :  { %5995 = vmatpush.bf16.msrb.mxu1 %v12440_v25  ;;  %v5920_v2 = vpop.f32.mrf.mxu0  ;;  %v12481_v25 = vld [vmem:[%s15313_s6 + $0x398] sm:$0xff] }
 0x5c3   :  { %5870 = vmatpush.bf16.msra.mxu3 %v12429_v17  ;;  %v5924_v22 = vpack.c.bf16 %v5920_v2, %v5918_v55  ;;  %v14600_v17 = vpop.f32.mrf.mxu1 }
 0x5c6   :  { %5996 = vmatpush.bf16.msrb.mxu1 %v12439_v60 }
 0x5c7   :  { %v5537_v26 = vpop.f32.mrf.mxu2  ;;  %5871 = vmatpush.bf16.msra.mxu3 %v12428_v24 }
 0x5c8   :  { %v5545_v46 = vpack.c.bf16 %v5537_v26, %v5535_v16  ;;  %v12482_v16 = vld [vmem:[%s15313_s6 + $0x3a0] sm:$0xff]  ;;  %v4876_v26 = vpop.f32.mrf.mxu3 }
 0x5ca   :  { %5620 = vmatmul.bf16.vlgmr.msrb.gmra.mxu3 %v5545_v46  ;;  %5997 = vmatpush.bf16.msrb.mxu1 %v12438_v63  ;;  %v6165_v5 = vpop.f32.mrf.mxu0  ;;  %v12468_v46 = vld [vmem:[%s15313_s6 + $0x340] sm:$0xff] }
 0x5cb   :  { %6116 = vmatpush.bf16.msrb.mxu3 %v12455_v6  ;;  %v5248_v63 = vpop.f32.mrf.mxu1 }
 0x5cc   :  { %6547 = vmatmul.bf16.gmra.mxu2 %v12487_v59  ;;  %v12480_v59 = vld [vmem:[%s15313_s6 + $0x390] sm:$0xff] }
 0x5cd   :  { %5998 = vmatmul.bf16.vlgmr.msrb.gmra.mxu1 %v5923_v40  ;;  %v12494_v40 = vld [vmem:[%s15313_s6 + $0x3f0] sm:$0xff] }
 0x5ce   :  { %6242 = vmatpush.bf16.msra.mxu1 %v12465_v23 }
 0x5cf   :  { %v5540_v37 = vpop.f32.mrf.mxu2  ;;  %6117 = vmatpush.bf16.msrb.mxu3 %v12454_v61  ;;  %v12479_v61 = vld [vmem:[%s15313_s6 + $0x388] sm:$0xff] }
 0x5d2   :  { %6243 = vmatpush.bf16.msra.mxu1 %v12464_v51  ;;  %v6167_v54 = vpop.f32.mrf.mxu0 }
 0x5d3   :  { %6118 = vmatpush.bf16.msrb.mxu3 %v12453_v56  ;;  %v6175_v35 = vpack.c.bf16 %v6167_v54, %v6165_v5  ;;  %v12478_v56 = vld [vmem:[%s15313_s6 + $0x380] sm:$0xff]  ;;  %v12489_v5 = vld [vmem:[%s15313_s6 + $0x3c8] sm:$0xff] }
 0x5d6   :  { %6244 = vmatpush.bf16.msra.mxu1 %v12463_v45 }
 0x5d7   :  { %v5542_v19 = vpop.f32.mrf.mxu2  ;;  %6119 = vmatpush.bf16.msrb.mxu3 %v12452_v31 }
 0x5d8   :  { %v5546_v47 = vpack.c.bf16 %v5542_v19, %v5540_v37  ;;  %v12495_v37 = vld [vmem:[%s15313_s6 + $0x3f8] sm:$0xff] }
 0x5da   :  { %5625 = vmatmul.bf16.gmra.mxu3 %v5546_v47  ;;  %6245 = vmatpush.bf16.msra.mxu1 %v12462_v1  ;;  %v6170_v8 = vpop.f32.mrf.mxu0  ;;  %v12493_v47 = vld [vmem:[%s15313_s6 + $0x3e8] sm:$0xff] }
 0x5db   :  { %6120 = vmatpush.bf16.msrb.mxu3 %v12451_v14  ;;  %v14632_v14 = vpop.f32.mrf.mxu1 }
 0x5dd   :  { %6003 = vmatmul.bf16.gmra.mxu1 %v5924_v22 }
 0x5de   :  { %6246 = vmatpush.bf16.msra.mxu1 %v12461_v0 }
 0x5df   :  { %v5787_v27 = vpop.f32.mrf.mxu2  ;;  %6121 = vmatpush.bf16.msrb.mxu3 %v12450_v13 }
 0x5e2   :  { %6247 = vmatpush.bf16.msra.mxu1 %v12460_v38  ;;  %v6172_v15 = vpop.f32.mrf.mxu0 }
 0x5e3   :  { %6122 = vmatpush.bf16.msrb.mxu3 %v12449_v36  ;;  %v6176_v24 = vpack.c.bf16 %v6172_v15, %v6170_v8 }
 0x5e6   :  { %6248 = vmatpush.bf16.msra.mxu1 %v12459_v58 }
 0x5e7   :  { %v5789_v7 = vpop.f32.mrf.mxu2  ;;  %6123 = vmatpush.bf16.msrb.mxu3 %v12448_v53  ;;  %v12490_v53 = vld [vmem:[%s15313_s6 + $0x3d0] sm:$0xff] }
 0x5e8   :  { %v5797_v28 = vpack.c.bf16 %v5789_v7, %v5787_v27  ;;  %v12492_v27 = vld [vmem:[%s15313_s6 + $0x3e0] sm:$0xff] }
 0x5ea   :  { %5872 = vmatmul.bf16.vlgmr.msra.gmra.mxu3 %v5797_v28  ;;  %6249 = vmatpush.bf16.msra.mxu1 %v12458_v39 }
 0x5eb   :  { %6368 = vmatpush.bf16.msra.mxu3 %v12475_v11  ;;  %v4877_v11 = vadd.f32 %v4876_v26, %v14350_v21 }
 0x5ed   :  { %6250 = vmatmul.bf16.vlgmr.msra.gmra.mxu1 %v6175_v35  ;;  %v5004_v39 = vadd.f32 %v14568_v4, %v4877_v11 }
 0x5ee   :  { %6494 = vmatpush.bf16.msrb.mxu1 %v12485_v62 }
 0x5ef   :  { %v5792_v41 = vpop.f32.mrf.mxu2  ;;  %6369 = vmatpush.bf16.msra.mxu3 %v12474_v34 }
 0x5f2   :  { %6495 = vmatpush.bf16.msrb.mxu1 %v12484_v18 }
 0x5f3   :  { %6370 = vmatpush.bf16.msra.mxu3 %v12473_v12 }
 0x5f6   :  { %6496 = vmatpush.bf16.msrb.mxu1 %v12483_v30 }
 0x5f7   :  { %v5794_v3 = vpop.f32.mrf.mxu2  ;;  %6371 = vmatpush.bf16.msra.mxu3 %v12472_v9 }
 0x5f8   :  { %v5798_v33 = vpack.c.bf16 %v5794_v3, %v5792_v41  ;;  %v12488_v41 = vld [vmem:[%s15313_s6 + $0x3c0] sm:$0xff] }
 0x5fa   :  { %5877 = vmatmul.bf16.gmra.mxu3 %v5798_v33  ;;  %6497 = vmatpush.bf16.msrb.mxu1 %v12482_v16 }
 0x5fb   :  { %6372 = vmatpush.bf16.msra.mxu3 %v12471_v42 }
 0x5fd   :  { %6255 = vmatmul.bf16.gmra.mxu1 %v6176_v24 }
 0x5fe   :  { %6498 = vmatpush.bf16.msrb.mxu1 %v12481_v25 }
 0x5ff   :  { %v6039_v43 = vpop.f32.mrf.mxu2  ;;  %6373 = vmatpush.bf16.msra.mxu3 %v12470_v10 }
 0x602   :  { %6499 = vmatpush.bf16.msrb.mxu1 %v12480_v59 }
 0x603   :  { %6374 = vmatpush.bf16.msra.mxu3 %v12469_v49  ;;  %v6417_v6 = vpop.f32.mrf.mxu0 }
 0x606   :  { %6500 = vmatpush.bf16.msrb.mxu1 %v12479_v61 }
 0x607   :  { %v6041_v48 = vpop.f32.mrf.mxu2  ;;  %6375 = vmatpush.bf16.msra.mxu3 %v12468_v46 }
 0x608   :  { %v6049_v60 = vpack.c.bf16 %v6041_v48, %v6039_v43 }
 0x60a   :  { %6124 = vmatmul.bf16.vlgmr.msrb.gmra.mxu3 %v6049_v60  ;;  %6501 = vmatpush.bf16.msrb.mxu1 %v12478_v56 }
 0x60b   :  { %6620 = vmatpush.bf16.msrb.mxu3 %v12495_v37  ;;  %v6419_v19 = vpop.f32.mrf.mxu0 }
 0x60c   :  { %v6427_v55 = vpack.c.bf16 %v6419_v19, %v6417_v6 }
 0x60d   :  { %v5117_v23 = vpop.f32.mrf.mxu3 }
 0x60e   :  { %v5127_v50 = vadd.f32 %v5117_v23, %v14359_v44  ;;  %v4872_v44 = vadd.f32 %v14314_v52, %v14312_v57  ;;  %6502 = vmatmul.bf16.vlgmr.msrb.gmra.mxu1 %v6427_v55  ;;  %v12491_v57 = vld [vmem:[%s15313_s6 + $0x3d8] sm:$0xff] }
 0x60f   :  { %v6044_v31 = vpop.f32.mrf.mxu2  ;;  %6621 = vmatpush.bf16.msrb.mxu3 %v12494_v40 }
 0x610   :  { %v5253_v51 = vadd.f32 %v5243_v32, %v5127_v50  ;;  %v5002_v45 = vadd.f32 %v14378_v20, %v4872_v44  ;;  %v5495_v20 = vpop.f32.mrf.mxu1 }
 0x613   :  { %6622 = vmatpush.bf16.msrb.mxu3 %v12493_v47  ;;  %v6422_v22 = vpop.f32.mrf.mxu0 }
 0x615   :  { %v5119_v13 = vpop.f32.mrf.mxu3 }
 0x616   :  { %v14635_v1 = vadd.f32 %v5119_v13, %v5002_v45 }
 0x617   :  { %v6046_v2 = vpop.f32.mrf.mxu2  ;;  %6623 = vmatpush.bf16.msrb.mxu3 %v12492_v27 }
 0x618   :  { %v6050_v36 = vpack.c.bf16 %v6046_v2, %v6044_v31  ;;  %v14657_v12 = vpop.f32.mrf.mxu1 }
 0x61a   :  { %6129 = vmatmul.bf16.gmra.mxu3 %v6050_v36 }
 0x61b   :  { %6624 = vmatpush.bf16.msrb.mxu3 %v12491_v57  ;;  %v6424_v28 = vpop.f32.mrf.mxu0 }
 0x61c   :  { %v6428_v58 = vpack.c.bf16 %v6424_v28, %v6422_v22 }
 0x61d   :  { %v5122_v52 = vpop.f32.mrf.mxu3 }
 0x61e   :  { %v5129_v0 = vadd.f32 %v5122_v52, %v14403_v29  ;;  %6507 = vmatmul.bf16.gmra.mxu1 %v6428_v58  ;;  %v5254_v58 = vadd.f32 %v14600_v17, %v14635_v1 }
 0x61f   :  { %v6291_v38 = vpop.f32.mrf.mxu2  ;;  %6625 = vmatpush.bf16.msrb.mxu3 %v12490_v53 }
 0x620   :  { %v5255_v7 = vadd.f32 %v5248_v63, %v5129_v0  ;;  %v5500_v4 = vpop.f32.mrf.mxu1 }
 0x623   :  { %6626 = vmatpush.bf16.msrb.mxu3 %v12489_v5 }
 0x625   :  { %v5124_v29 = vpop.f32.mrf.mxu3 }
 0x626   :  { %v14652_v34 = vadd.f32 %v5124_v29, %v5004_v39 }
 0x627   :  { %v6293_v54 = vpop.f32.mrf.mxu2  ;;  %6627 = vmatpush.bf16.msrb.mxu3 %v12488_v41 }
 0x628   :  { %v6301_v62 = vpack.c.bf16 %v6293_v54, %v6291_v38  ;;  %v5502_v8 = vpop.f32.mrf.mxu1 }
 0x62a   :  { %6376 = vmatmul.bf16.vlgmr.msra.gmra.mxu3 %v6301_v62 }
 0x62d   :  { %v5369_v35 = vpop.f32.mrf.mxu3 }
 0x62e   :  { %v5379_v32 = vadd.f32 %v5369_v35, %v5253_v51 }
 0x62f   :  { %v6296_v21 = vpop.f32.mrf.mxu2 }
 0x630   :  { %v5505_v9 = vadd.f32 %v5495_v20, %v5379_v32  ;;  %v5747_v15 = vpop.f32.mrf.mxu1 }
 0x635   :  { %v5371_v18 = vpop.f32.mrf.mxu3 }
 0x636   :  { %v5380_v11 = vadd.f32 %v5371_v18, %v5254_v58 }
 0x637   :  { %v6298_v3 = vpop.f32.mrf.mxu2 }
 0x638   :  { %v6302_v33 = vpack.c.bf16 %v6298_v3, %v6296_v21  ;;  %v5749_v59 = vpop.f32.mrf.mxu1  ;;  %v5506_v29 = vadd.f32 %v14657_v12, %v5380_v11 }
 0x63a   :  { %6381 = vmatmul.bf16.gmra.mxu3 %v6302_v33 }
 0x63d   :  { %v5374_v42 = vpop.f32.mrf.mxu3 }
 0x63e   :  { %v5381_v30 = vadd.f32 %v5374_v42, %v5255_v7 }
 0x63f   :  { %v6543_v10 = vpop.f32.mrf.mxu2 }
 0x640   :  { %v5507_v16 = vadd.f32 %v5500_v4, %v5381_v30  ;;  %v5752_v61 = vpop.f32.mrf.mxu1 }
 0x645   :  { %v5376_v43 = vpop.f32.mrf.mxu3 }
 0x647   :  { %v6545_v49 = vpop.f32.mrf.mxu2 }
 0x648   :  { %v6553_v24 = vpack.c.bf16 %v6545_v49, %v6543_v10  ;;  %v5754_v56 = vpop.f32.mrf.mxu1 }
 0x64a   :  { %6628 = vmatmul.bf16.vlgmr.msrb.gmra.mxu3 %v6553_v24 }
 0x64d   :  { %v5621_v25 = vpop.f32.mrf.mxu3 }
 0x64e   :  { %v5631_v26 = vadd.f32 %v5621_v25, %v5505_v9  ;;  %v5256_v9 = vadd.f32 %v14632_v14, %v14652_v34 }
 0x64f   :  { %v6548_v46 = vpop.f32.mrf.mxu2 }
 0x650   :  { %v5757_v48 = vadd.f32 %v5747_v15, %v5631_v26  ;;  %v5999_v51 = vpop.f32.mrf.mxu1  ;;  %v5382_v4 = vadd.f32 %v5376_v43, %v5256_v9 }
 0x652   :  { %v5508_v42 = vadd.f32 %v5502_v8, %v5382_v4 }
 0x655   :  { %v5623_v60 = vpop.f32.mrf.mxu3 }
 0x656   :  { %v5632_v54 = vadd.f32 %v5623_v60, %v5506_v29 }
 0x657   :  { %v6550_v6 = vpop.f32.mrf.mxu2 }
 0x658   :  { %v6554_v63 = vpack.c.bf16 %v6550_v6, %v6548_v46  ;;  %v6001_v44 = vpop.f32.mrf.mxu1  ;;  %v5758_v62 = vadd.f32 %v5749_v59, %v5632_v54 }
 0x65a   :  { %6633 = vmatmul.bf16.gmra.mxu3 %v6554_v63 }
 0x65d   :  { %v5626_v37 = vpop.f32.mrf.mxu3 }
 0x65e   :  { %v5633_v23 = vadd.f32 %v5626_v37, %v5507_v16 }
 0x660   :  { %v5759_v50 = vadd.f32 %v5752_v61, %v5633_v23  ;;  %v6004_v2 = vpop.f32.mrf.mxu1 }
 0x665   :  { %v5628_v40 = vpop.f32.mrf.mxu3 }
 0x666   :  { %v5634_v17 = vadd.f32 %v5628_v40, %v5508_v42 }
 0x668   :  { %v6006_v57 = vpop.f32.mrf.mxu1  ;;  %v5760_v49 = vadd.f32 %v5754_v56, %v5634_v17 }
 0x66d   :  { %v5873_v31 = vpop.f32.mrf.mxu3 }
 0x66e   :  { %v5883_v19 = vadd.f32 %v5873_v31, %v5757_v48 }
 0x670   :  { %v6009_v47 = vadd.f32 %v5999_v51, %v5883_v19  ;;  %v6251_v20 = vpop.f32.mrf.mxu1 }
 0x675   :  { %v5875_v55 = vpop.f32.mrf.mxu3 }
 0x676   :  { %v5884_v32 = vadd.f32 %v5875_v55, %v5758_v62  ;;  %v12507_v62 = vld [vmem:[%s15317_s10 + $0x58] sm:$0xff] }
 0x678   :  { %v6253_v53 = vpop.f32.mrf.mxu1  ;;  %v6010_v3 = vadd.f32 %v6001_v44, %v5884_v32 }
 0x67d   :  { %v5878_v45 = vpop.f32.mrf.mxu3 }
 0x67e   :  { %v5885_v13 = vadd.f32 %v5878_v45, %v5759_v50 }
 0x680   :  { %v6256_v28 = vpop.f32.mrf.mxu1  ;;  %v6011_v16 = vadd.f32 %v6004_v2, %v5885_v13  ;;  %v12511_v2 = vld [vmem:[%s15317_s10 + $0x78] sm:$0xff] }
 0x681   :  { %6831 = vmatpush.bf16.msra.mxu2 %v12511_v2  ;;  %v12551_v2 = vld [vmem:[%s15317_s10 + $0x1b8] sm:$0xff] }
 0x685   :  { %v5880_v27 = vpop.f32.mrf.mxu3 }
 0x686   :  { %v5886_v25 = vadd.f32 %v5880_v27, %v5760_v49 }
 0x688   :  { %v6258_v39 = vpop.f32.mrf.mxu1  ;;  %v6012_v60 = vadd.f32 %v6006_v57, %v5886_v25  ;;  %v12510_v57 = vld [vmem:[%s15317_s10 + $0x70] sm:$0xff] }
 0x689   :  { %6832 = vmatpush.bf16.msra.mxu2 %v12510_v57  ;;  %v12502_v57 = vld [vmem:[%s15317_s10 + $0x30] sm:$0xff] }
 0x68d   :  { %v6125_v36 = vpop.f32.mrf.mxu3 }
 0x68e   :  { %v6135_v22 = vadd.f32 %v6125_v36, %v6009_v47 }
 0x690   :  { %v6503_v35 = vpop.f32.mrf.mxu1  ;;  %v6261_v1 = vadd.f32 %v6251_v20, %v6135_v22 }
 0x695   :  { %v6127_v52 = vpop.f32.mrf.mxu3 }
 0x696   :  { %v6136_v33 = vadd.f32 %v6127_v52, %v6010_v3  ;;  %v12505_v3 = vld [vmem:[%s15317_s10 + $0x48] sm:$0xff] }
 0x698   :  { %v6505_v30 = vpop.f32.mrf.mxu1  ;;  %v6262_v18 = vadd.f32 %v6253_v53, %v6136_v33 }
 0x69d   :  { %v6130_v0 = vpop.f32.mrf.mxu3 }
 0x69e   :  { %v6137_v24 = vadd.f32 %v6130_v0, %v6011_v16 }
 0x6a0   :  { %v6263_v48 = vadd.f32 %v6256_v28, %v6137_v24  ;;  %v6508_v43 = vpop.f32.mrf.mxu1 }
 0x6a5   :  { %v6132_v38 = vpop.f32.mrf.mxu3 }
 0x6a6   :  { %v6138_v63 = vadd.f32 %v6132_v38, %v6012_v60 }
 0x6a8   :  { %v6264_v23 = vadd.f32 %v6258_v39, %v6138_v63  ;;  %v6510_v56 = vpop.f32.mrf.mxu1  ;;  %v12508_v39 = vld [vmem:[%s15317_s10 + $0x60] sm:$0xff] }
 0x6ad   :  { %v6377_v7 = vpop.f32.mrf.mxu3 }
 0x6ae   :  { %v6387_v12 = vadd.f32 %v6377_v7, %v6261_v1  ;;  %v12509_v7 = vld [vmem:[%s15317_s10 + $0x68] sm:$0xff] }
 0x6af   :  { %6833 = vmatpush.bf16.msra.mxu2 %v12509_v7  ;;  %v11307_v7 = vld [vmem:[%s15318_s9 + $0x14] sm:$0xf] }
 0x6b0   :  { %v6513_v26 = vadd.f32 %v6503_v35, %v6387_v12 }
 0x6b3   :  { %6834 = vmatpush.bf16.msra.mxu2 %v12508_v39  ;;  %v12497_v39 = vld [vmem:[%s15317_s10 + $0x8] sm:$0xff] }
 0x6b5   :  { %v6379_v5 = vpop.f32.mrf.mxu3 }
 0x6b6   :  { %v6388_v15 = vadd.f32 %v6379_v5, %v6262_v18 }
 0x6b7   :  { %6835 = vmatpush.bf16.msra.mxu2 %v12507_v62  ;;  %v12526_v62 = vld [vmem:[%s15317_s10 + $0xf0] sm:$0xff] }
 0x6b8   :  { %v6514_v46 = vadd.f32 %v6505_v30, %v6388_v15  ;;  %v12504_v30 = vld [vmem:[%s15317_s10 + $0x40] sm:$0xff] }
 0x6b9   :  { %v12666_v15 = vld [vmem:[%s15315_s7] ss:$0 sm:$0xff] }
 0x6bd   :  { %v6382_v41 = vpop.f32.mrf.mxu3 }
 0x6be   :  { %v6389_v8 = vadd.f32 %v6382_v41, %v6263_v48  ;;  %v12667_v48 = vld [vmem:[%s15316_s8] ss:$0 sm:$0xff] }
 0x6c0   :  { %v6515_v61 = vadd.f32 %v6508_v43, %v6389_v8 }
 0x6c5   :  { %v6384_v21 = vpop.f32.mrf.mxu3 }
 0x6c6   :  { %v6390_v40 = vadd.f32 %v6384_v21, %v6264_v23  ;;  %v12506_v21 = vld [vmem:[%s15317_s10 + $0x50] sm:$0xff] }
 0x6c7   :  { %6836 = vmatpush.bf16.msra.mxu2 %v12506_v21  ;;  %v12523_v21 = vld [vmem:[%s15317_s10 + $0xd8] sm:$0xff] }
 0x6c8   :  { %v6516_v51 = vadd.f32 %v6510_v56, %v6390_v40 }
 0x6cb   :  { %6837 = vmatpush.bf16.msra.mxu2 %v12505_v3  ;;  %v12520_v3 = vld [vmem:[%s15317_s10 + $0xc0] sm:$0xff] }
 0x6cd   :  { %v6629_v10 = vpop.f32.mrf.mxu3 }
 0x6ce   :  { %v6639_v14 = vadd.f32 %v6629_v10, %v6513_v26 }
 0x6cf   :  { %6838 = vmatpush.bf16.msra.mxu2 %v12504_v30 }
 0x6d5   :  { %v6631_v59 = vpop.f32.mrf.mxu3 }
 0x6d6   :  { %v6640_v34 = vadd.f32 %v6631_v59, %v6514_v46 }
 0x6d8   :  { %v6643_v6 = vadd.f32 %v6640_v34, %v6639_v14 }
 0x6dd   :  { %v6634_v37 = vpop.f32.mrf.mxu3 }
 0x6de   :  { %v6641_v50 = vadd.f32 %v6634_v37, %v6515_v61 }
 0x6e0   :  { %v6644_v31 = vadd.f32 %v6643_v6, %v6641_v50 }
 0x6e5   :  { %v6636_v19 = vpop.f32.mrf.mxu3 }
 0x6e6   :  { %v6642_v47 = vadd.f32 %v6636_v19, %v6516_v51 }
 0x6e8   :  { %v6645_v55 = vadd.f32 %v6644_v31, %v6642_v47 }
 0x6ea   :  { %v6646_v44 = vrot.slane %v6645_v55, 4 }
 0x6ec   :  { %v6647_v45 = vadd.f32 %v6646_v44, %v6645_v55 }
 0x6ee   :  { %v6648_v13 = vrot.slane %v6647_v45, 2 }
 0x6f0   :  { %v6649_v27 = vadd.f32 %v6648_v13, %v6647_v45  ;;  %v6712_v45 = vld [vmem:[%s15318_s9] sm:$0xf]  ;;  %v11075_v13 = vld [vmem:[%s15318_s9 + $0x4] sm:$0xf] }
 0x6f2   :  { %v6650_v36 = vrot.slane %v6649_v27, 1 }
 0x6f4   :  { %v6651_v22 = vadd.f32 %v6650_v36, %v6649_v27  ;;  %v11257_v27 = vld [vmem:[%s15318_s9 + $0x10] sm:$0xf] }
 0x6f5   :  { %v12550_v36 = vld [vmem:[%s15317_s10 + $0x1b0] sm:$0xff] }
 0x6f6   :  { %v6652_v52 = vmul.f32 0.03125, %v6651_v22  ;;  %v12503_v22 = vld [vmem:[%s15317_s10 + $0x38] sm:$0xff] }
 0x6f7   :  { %6892 = vmatpush.bf16.msra.mxu3 %v12503_v22  ;;  %v12540_v22 = vld [vmem:[%s15317_s10 + $0x160] sm:$0xff] }
 0x6f8   :  { %v6653_v20 = vsub.f32 %v6639_v14, %v6652_v52  ;;  %v6654_v0 = vsub.f32 %v6640_v34, %v6652_v52  ;;  %v6655_v53 = vsub.f32 %v6641_v50, %v6652_v52  ;;  %v6656_v38 = vsub.f32 %v6642_v47, %v6652_v52  ;;  %v12549_v52 = vld [vmem:[%s15317_s10 + $0x1a8] sm:$0xff] }
 0x6fa   :  { %v6657_v28 = vmul.f32 %v6653_v20, %v6653_v20  ;;  %v6658_v5 = vmul.f32 %v6654_v0, %v6654_v0  ;;  %v6659_v58 = vmul.f32 %v6655_v53, %v6655_v53  ;;  %v6660_v29 = vmul.f32 %v6656_v38, %v6656_v38 }
 0x6fb   :  { %v6675_v25 = vmul.f32 %v12666_v15, %v6653_v20  ;;  %v6676_v26 = vmul.f32 %v12666_v15, %v6654_v0  ;;  %v6677_v46 = vmul.f32 %v12666_v15, %v6655_v53  ;;  %v6678_v59 = vmul.f32 %v12666_v15, %v6656_v38  ;;  %6893 = vmatpush.bf16.msra.mxu3 %v12502_v57  ;;  %v12501_v20 = vld [vmem:[%s15317_s10 + $0x28] sm:$0xff]  ;;  %v12548_v0 = vld [vmem:[%s15317_s10 + $0x1a0] sm:$0xff]  ;;  %v12547_v38 = vld [vmem:[%s15317_s10 + $0x198] sm:$0xff] }
 0x6fc   :  { %v6661_v11 = vadd.f32 %v6658_v5, %v6657_v28  ;;  %v12500_v53 = vld [vmem:[%s15317_s10 + $0x20] sm:$0xff]  ;;  %v12499_v28 = vld [vmem:[%s15317_s10 + $0x18] sm:$0xff]  ;;  %v12546_v5 = vld [vmem:[%s15317_s10 + $0x190] sm:$0xff] }
 0x6fd   :  { %v12534_v15 = vld [vmem:[%s15317_s10 + $0x130] sm:$0xff]  ;;  %v12539_v57 = vld [vmem:[%s15317_s10 + $0x158] sm:$0xff] }
 0x6fe   :  { %v6662_v41 = vadd.f32 %v6661_v11, %v6659_v58  ;;  %v12498_v58 = vld [vmem:[%s15317_s10 + $0x10] sm:$0xff]  ;;  %v12545_v11 = vld [vmem:[%s15317_s10 + $0x188] sm:$0xff] }
 0x6ff   :  { %6894 = vmatpush.bf16.msra.mxu3 %v12501_v20  ;;  %v12537_v20 = vld [vmem:[%s15317_s10 + $0x148] sm:$0xff] }
 0x700   :  { %v6663_v54 = vadd.f32 %v6662_v41, %v6660_v29  ;;  %v12544_v29 = vld [vmem:[%s15317_s10 + $0x180] sm:$0xff] }
 0x701   :  { %v12496_v41 = vld [vmem:[%s15317_s10] sm:$0xff] }
 0x702   :  { %v6664_v35 = vrot.slane %v6663_v54, 4 }
 0x703   :  { %6895 = vmatpush.bf16.msra.mxu3 %v12500_v53 }
 0x704   :  { %v6665_v32 = vadd.f32 %v6664_v35, %v6663_v54  ;;  %v12527_v54 = vld [vmem:[%s15317_s10 + $0xf8] sm:$0xff]  ;;  %v12525_v35 = vld [vmem:[%s15317_s10 + $0xe8] sm:$0xff] }
 0x706   :  { %v6666_v9 = vrot.slane %v6665_v32, 2 }
 0x707   :  { %6896 = vmatpush.bf16.msra.mxu3 %v12499_v28 }
 0x708   :  { %v6667_v4 = vadd.f32 %v6666_v9, %v6665_v32  ;;  %v12524_v32 = vld [vmem:[%s15317_s10 + $0xe0] sm:$0xff]  ;;  %v12522_v9 = vld [vmem:[%s15317_s10 + $0xd0] sm:$0xff] }
 0x70a   :  { %v6668_v33 = vrot.slane %v6667_v4, 1 }
 0x70b   :  { %6897 = vmatpush.bf16.msra.mxu3 %v12498_v58 }
 0x70c   :  { %v6669_v42 = vadd.f32 %v6668_v33, %v6667_v4  ;;  %v12521_v4 = vld [vmem:[%s15317_s10 + $0xc8] sm:$0xff] }
 0x70e   :  { %v6670_v10 = vmul.f32 0.03125, %v6669_v42 }
 0x70f   :  { %6898 = vmatpush.bf16.msra.mxu3 %v12497_v39  ;;  %v12575_v39 = vld [vmem:[%s15317_s10 + $0x278] sm:$0xff] }
 0x710   :  { %v6679_v17 = vadd.f32 1e-05, %v6670_v10 }
 0x712   :  { %12674 = vrsqrt.f32 %v6679_v17  ;;  %vm6686_vm4 = vweird.f32 %v6679_v17 }
 0x713   :  { %6899 = vmatpush.bf16.msra.mxu3 %v12496_v41 }
 0x717   :  { %7087 = vmatpush.bf16.msrb.mxu3 %v12527_v54  ;;  %v12574_v54 = vld [vmem:[%s15317_s10 + $0x270] sm:$0xff] }
 0x718   :  { %v12675_v1 = vpop.eup %12674 }
 0x719   :  { %v6681_v18 = vmul.f32 %v12675_v1, %v6679_v17  ;;  %vm6687_vm3 = vweird.f32 %v12675_v1 }
 0x71a   :  { %vm6688_vm5 = vmor %vm6686_vm4, %vm6687_vm3 }
 0x71b   :  { %v6682_v16 = vmul.f32 %v12675_v1, %v6681_v18  ;;  %7088 = vmatpush.bf16.msrb.mxu3 %v12526_v62  ;;  %v11157_v18 = vld [vmem:[%s15318_s9 + $0x8] sm:$0xf] }
 0x71d   :  { %v6683_v12 = vmul.f32 0.5, %v6682_v16  ;;  %v12535_v16 = vld [vmem:[%s15317_s10 + $0x138] sm:$0xff] }
 0x71f   :  { %v6684_v49 = vsub.f32 1.5, %v6683_v12  ;;  %7089 = vmatpush.bf16.msrb.mxu3 %v12525_v35  ;;  %v12573_v35 = vld [vmem:[%s15317_s10 + $0x268] sm:$0xff] }
 0x721   :  { %v6685_v24 = vmul.f32 %v12675_v1, %v6684_v49  ;;  %v12533_v49 = vld [vmem:[%s15317_s10 + $0x128] sm:$0xff] }
 0x723   :  { %v6689_v14 = vsel %vm6688_vm5, %v12675_v1, %v6685_v24  ;;  %7090 = vmatpush.bf16.msrb.mxu3 %v12524_v32  ;;  %v12572_v32 = vld [vmem:[%s15317_s10 + $0x260] sm:$0xff] }
 0x724   :  { %v6690_v34 = vmul.f32 %v6689_v14, %v6675_v25  ;;  %v6691_v43 = vmul.f32 %v6689_v14, %v6676_v26  ;;  %v6692_v60 = vmul.f32 %v6689_v14, %v6677_v46  ;;  %v6693_v8 = vmul.f32 %v6689_v14, %v6678_v59  ;;  %v12532_v25 = vld [vmem:[%s15317_s10 + $0x120] sm:$0xff]  ;;  %v11207_v26 = vld [vmem:[%s15318_s9 + $0xc] sm:$0xf]  ;;  %v12531_v46 = vld [vmem:[%s15317_s10 + $0x118] sm:$0xff] }
 0x725   :  { %v12530_v59 = vld [vmem:[%s15317_s10 + $0x110] sm:$0xff]  ;;  %v12528_v14 = vld [vmem:[%s15317_s10 + $0x100] sm:$0xff] }
 0x726   :  { %v6698_v6 = vadd.f32 %v12667_v48, %v6690_v34  ;;  %v6699_v63 = vadd.f32 %v12667_v48, %v6691_v43  ;;  %v6700_v61 = vadd.f32 %v12667_v48, %v6692_v60  ;;  %v6701_v37 = vadd.f32 %v12667_v48, %v6693_v8  ;;  %v12529_v48 = vld [vmem:[%s15317_s10 + $0x108] sm:$0xff]  ;;  %v12567_v43 = vld [vmem:[%s15317_s10 + $0x238] sm:$0xff]  ;;  %v12566_v60 = vld [vmem:[%s15317_s10 + $0x230] sm:$0xff] }
 0x727   :  { %7091 = vmatpush.bf16.msrb.mxu3 %v12523_v21  ;;  %v12519_v8 = vld [vmem:[%s15317_s10 + $0xb8] sm:$0xff] }
 0x728   :  { %v6702_v23 = vmul.f32 0.2, %v6698_v6  ;;  %v6703_v50 = vmul.f32 0.2, %v6699_v63  ;;  %v6704_v40 = vmul.f32 0.2, %v6700_v61 }
 0x729   :  { %v6705_v31 = vmul.f32 0.2, %v6701_v37 }
 0x72a   :  { %v6706_v56 = vmax.f32 %v6698_v6, %v6702_v23  ;;  %v6707_v51 = vmax.f32 %v6699_v63, %v6703_v50  ;;  %v6708_v19 = vmax.f32 %v6700_v61, %v6704_v40  ;;  %v12518_v6 = vld [vmem:[%s15317_s10 + $0xb0] sm:$0xff]  ;;  %v12565_v63 = vld [vmem:[%s15317_s10 + $0x228] sm:$0xff]  ;;  %v11407_v23 = vld [vmem:[%s15318_s9 + $0x1c] sm:$0xf] }
 0x72b   :  { %v6709_v47 = vmax.f32 %v6701_v37, %v6705_v31  ;;  %7092 = vmatpush.bf16.msrb.mxu3 %v12522_v9  ;;  %v12517_v61 = vld [vmem:[%s15317_s10 + $0xa8] sm:$0xff]  ;;  %v12564_v37 = vld [vmem:[%s15317_s10 + $0x220] sm:$0xff]  ;;  %v12563_v40 = vld [vmem:[%s15317_s10 + $0x218] sm:$0xff] }
 0x72c   :  { %v14694_v55 = vpack.c.bf16 %v6707_v51, %v6706_v56  ;;  %v12516_v50 = vld [vmem:[%s15317_s10 + $0xa0] sm:$0xff]  ;;  %v12515_v31 = vld [vmem:[%s15317_s10 + $0x98] sm:$0xff]  ;;  %v12562_v56 = vld [vmem:[%s15317_s10 + $0x210] sm:$0xff] }
 0x72d   :  { %v14696_v44 = vpack.c.bf16 %v6709_v47, %v6708_v19  ;;  %v12514_v51 = vld [vmem:[%s15317_s10 + $0x90] sm:$0xff]  ;;  %v12561_v19 = vld [vmem:[%s15317_s10 + $0x208] sm:$0xff] }
 0x72e   :  { %v12513_v47 = vld [vmem:[%s15317_s10 + $0x88] sm:$0xff] }
 0x72f   :  { %6723 = vmatpush.bf16.msra.mxu0 %v14696_v44  ;;  %6758 = vmatpush.bf16.msra.mxu1 %v14696_v44 }
 0x730   :  { %6916 = vmatpush.bf16.msrb.mxu2 %v14696_v44  ;;  %7093 = vmatpush.bf16.msrb.mxu3 %v12521_v4  ;;  %v12559_v4 = vld [vmem:[%s15317_s10 + $0x1f8] sm:$0xff] }
 0x733   :  { %6724 = vmatpush.bf16.msra.mxu0 %v14694_v55  ;;  %6759 = vmatpush.bf16.msra.mxu1 %v14694_v55 }
 0x734   :  { %6917 = vmatpush.bf16.msrb.mxu2 %v14694_v55  ;;  %7094 = vmatpush.bf16.msrb.mxu3 %v12520_v3  ;;  %v12571_v3 = vld [vmem:[%s15317_s10 + $0x258] sm:$0xff] }
 0x736   :  { %11074 = vmatmul.msk.bf16.vlgmr.msra.gmra.mxu0 %vm6713_vm6, %v6712_v45  ;;  %11076 = vmatmul.msk.bf16.vlgmr.msra.gmra.mxu1 %vm6713_vm6, %v11075_v13  ;;  %v12560_v45 = vld [vmem:[%s15317_s10 + $0x200] sm:$0xff] }
 0x737   :  { %7112 = vmatpush.bf16.msrb.mxu0 %v14696_v44  ;;  %6989 = vmatpush.bf16.msrb.mxu1 %v12519_v8  ;;  %v12512_v13 = vld [vmem:[%s15317_s10 + $0x80] sm:$0xff]  ;;  %v12589_v8 = vld [vmem:[%s15317_s10 + $0x2e8] sm:$0xff] }
 0x73b   :  { %7113 = vmatpush.bf16.msrb.mxu0 %v14694_v55  ;;  %6990 = vmatpush.bf16.msrb.mxu1 %v12518_v6  ;;  %v12588_v6 = vld [vmem:[%s15317_s10 + $0x2e0] sm:$0xff] }
 0x73f   :  { %7210 = vmatpush.bf16.msra.mxu0 %v14696_v44  ;;  %6991 = vmatpush.bf16.msrb.mxu1 %v12517_v61  ;;  %v11557_v61 = vld [vmem:[%s15318_s9 + $0x28] sm:$0xf] }
 0x743   :  { %7211 = vmatpush.bf16.msra.mxu0 %v14694_v55  ;;  %6992 = vmatpush.bf16.msrb.mxu1 %v12516_v50  ;;  %v12584_v50 = vld [vmem:[%s15317_s10 + $0x2c0] sm:$0xff] }
 0x746   :  { %11258 = vmatmul.msk.bf16.vlgmr.msrb.gmra.mxu0 %vm6713_vm6, %v11257_v27  ;;  %v12543_v27 = vld [vmem:[%s15317_s10 + $0x178] sm:$0xff] }
 0x747   :  { %7381 = vmatpush.bf16.msrb.mxu0 %v12551_v2  ;;  %6993 = vmatpush.bf16.msrb.mxu1 %v12515_v31  ;;  %v12542_v2 = vld [vmem:[%s15317_s10 + $0x170] sm:$0xff] }
 0x74b   :  { %7382 = vmatpush.bf16.msrb.mxu0 %v12550_v36  ;;  %6994 = vmatpush.bf16.msrb.mxu1 %v12514_v51  ;;  %v12541_v36 = vld [vmem:[%s15317_s10 + $0x168] sm:$0xff] }
 0x74f   :  { %7383 = vmatpush.bf16.msrb.mxu0 %v12549_v52  ;;  %6995 = vmatpush.bf16.msrb.mxu1 %v12513_v47  ;;  %v12538_v52 = vld [vmem:[%s15317_s10 + $0x150] sm:$0xff] }
 0x753   :  { %7384 = vmatpush.bf16.msrb.mxu0 %v12548_v0  ;;  %6996 = vmatpush.bf16.msrb.mxu1 %v12512_v13  ;;  %v12536_v0 = vld [vmem:[%s15317_s10 + $0x140] sm:$0xff] }
 0x756   :  { %11308 = vmatmul.msk.bf16.vlgmr.msra.gmra.mxu0 %vm6713_vm6, %v11307_v7 }
 0x757   :  { %7385 = vmatpush.bf16.msrb.mxu0 %v12547_v38  ;;  %7283 = vmatpush.bf16.msra.mxu1 %v12543_v27 }
 0x75b   :  { %7386 = vmatpush.bf16.msrb.mxu0 %v12546_v5  ;;  %7284 = vmatpush.bf16.msra.mxu1 %v12542_v2 }
 0x75f   :  { %7387 = vmatpush.bf16.msrb.mxu0 %v12545_v11  ;;  %7285 = vmatpush.bf16.msra.mxu1 %v12541_v36 }
 0x763   :  { %7388 = vmatpush.bf16.msrb.mxu0 %v12544_v29  ;;  %7286 = vmatpush.bf16.msra.mxu1 %v12540_v22  ;;  %v12583_v22 = vld [vmem:[%s15317_s10 + $0x2b8] sm:$0xff] }
 0x767   :  { %7602 = vmatpush.bf16.msra.mxu0 %v14696_v44  ;;  %7287 = vmatpush.bf16.msra.mxu1 %v12539_v57 }
 0x76b   :  { %7603 = vmatpush.bf16.msra.mxu0 %v14694_v55  ;;  %7288 = vmatpush.bf16.msra.mxu1 %v12538_v52  ;;  %v12582_v52 = vld [vmem:[%s15317_s10 + $0x2b0] sm:$0xff] }
 0x76f   :  { %7289 = vmatpush.bf16.msra.mxu1 %v12537_v20 }
 0x773   :  { %7290 = vmatpush.bf16.msra.mxu1 %v12536_v0  ;;  %v12581_v0 = vld [vmem:[%s15317_s10 + $0x2a8] sm:$0xff] }
 0x7b3   :  { %v6726_v33 = vpop.f32.mrf.mxu0  ;;  %v6761_v42 = vpop.f32.mrf.mxu1 }
 0x7b4   :  { %v6730_v30 = vpack.c.bf16 %v6726_v33, %v6726_v33  ;;  %v6765_v10 = vpack.c.bf16 %v6761_v42, %v6761_v42  ;;  %v12558_v42 = vld [vmem:[%s15317_s10 + $0x1f0] sm:$0xff] }
 0x7b6   :  { %6839 = vmatmul.bf16.vlgmr.msra.gmra.mxu2 %v6765_v10  ;;  %6900 = vmatmul.bf16.vlgmr.msra.gmra.mxu3 %v6730_v30  ;;  %v12570_v30 = vld [vmem:[%s15317_s10 + $0x250] sm:$0xff] }
 0x7b7   :  { %7014 = vmatpush.bf16.msra.mxu2 %v14696_v44  ;;  %7308 = vmatpush.bf16.msra.mxu3 %v14696_v44 }
 0x7bb   :  { %7015 = vmatpush.bf16.msra.mxu2 %v14694_v55  ;;  %7309 = vmatpush.bf16.msra.mxu3 %v14694_v55  ;;  %v6728_v17 = vpop.f32.mrf.mxu0  ;;  %v6763_v1 = vpop.f32.mrf.mxu1 }
 0x7bc   :  { %v12557_v17 = vld [vmem:[%s15317_s10 + $0x1e8] sm:$0xff] }
 0x7bd   :  { %v12569_v1 = vld [vmem:[%s15317_s10 + $0x248] sm:$0xff] }
 0x7c3   :  { %v7115_v12 = vpop.f32.mrf.mxu0 }
 0x7c4   :  { %v7119_v34 = vpack.c.bf16 %v7115_v12, %v7115_v12 }
 0x7c6   :  { %11158 = vmatmul.msk.bf16.vlgmr.msrb.gmra.mxu2 %vm6713_vm6, %v11157_v18  ;;  %v12556_v18 = vld [vmem:[%s15317_s10 + $0x1e0] sm:$0xff] }
 0x7c7   :  { %7185 = vmatpush.bf16.msrb.mxu2 %v12535_v16  ;;  %v12568_v16 = vld [vmem:[%s15317_s10 + $0x240] sm:$0xff] }
 0x7cb   :  { %7186 = vmatpush.bf16.msrb.mxu2 %v12534_v15  ;;  %v7117_v24 = vpop.f32.mrf.mxu0  ;;  %v11357_v15 = vld [vmem:[%s15318_s9 + $0x18] sm:$0xf] }
 0x7cc   :  { %v12554_v24 = vld [vmem:[%s15317_s10 + $0x1d0] sm:$0xff] }
 0x7cf   :  { %7187 = vmatpush.bf16.msrb.mxu2 %v12533_v49  ;;  %v12555_v49 = vld [vmem:[%s15317_s10 + $0x1d8] sm:$0xff] }
 0x7d3   :  { %7188 = vmatpush.bf16.msrb.mxu2 %v12532_v25  ;;  %v7213_v5 = vpop.f32.mrf.mxu0 }
 0x7d4   :  { %v7217_v21 = vpack.c.bf16 %v7213_v5, %v7213_v5  ;;  %v12578_v5 = vld [vmem:[%s15317_s10 + $0x290] sm:$0xff] }
 0x7d6   :  { %11208 = vmatmul.msk.bf16.vlgmr.msra.gmra.mxu2 %vm6713_vm6, %v11207_v26  ;;  %v12553_v26 = vld [vmem:[%s15317_s10 + $0x1c8] sm:$0xff] }
 0x7d7   :  { %7189 = vmatpush.bf16.msrb.mxu2 %v12531_v46  ;;  %v12552_v46 = vld [vmem:[%s15317_s10 + $0x1c0] sm:$0xff] }
 0x7db   :  { %7190 = vmatpush.bf16.msrb.mxu2 %v12530_v59  ;;  %v7215_v29 = vpop.f32.mrf.mxu0 }
 0x7df   :  { %7191 = vmatpush.bf16.msrb.mxu2 %v12529_v48 }
 0x7e3   :  { %7192 = vmatpush.bf16.msrb.mxu2 %v12528_v14 }
 0x7e6   :  { %7193 = vmatmul.bf16.vlgmr.msrb.gmra.mxu2 %v7119_v34  ;;  %v11457_v34 = vld [vmem:[%s15318_s9 + $0x20] sm:$0xf] }
 0x7e7   :  { %7406 = vmatpush.bf16.msra.mxu2 %v14696_v44 }
 0x7eb   :  { %7407 = vmatpush.bf16.msra.mxu2 %v14694_v55 }
 0x7ef   :  { %7577 = vmatpush.bf16.msrb.mxu2 %v12567_v43  ;;  %v12591_v43 = vld [vmem:[%s15317_s10 + $0x2f8] sm:$0xff] }
 0x7f3   :  { %7578 = vmatpush.bf16.msrb.mxu2 %v12566_v60  ;;  %v12590_v60 = vld [vmem:[%s15317_s10 + $0x2f0] sm:$0xff] }
 0x7f6   :  { %11408 = vmatmul.msk.bf16.vlgmr.msra.gmra.mxu2 %vm6713_vm6, %v11407_v23  ;;  %v12585_v23 = vld [vmem:[%s15317_s10 + $0x2c8] sm:$0xff] }
 0x7f7   :  { %7579 = vmatpush.bf16.msrb.mxu2 %v12565_v63  ;;  %v12587_v63 = vld [vmem:[%s15317_s10 + $0x2d8] sm:$0xff] }
 0x7fb   :  { %7580 = vmatpush.bf16.msrb.mxu2 %v12564_v37  ;;  %v12586_v37 = vld [vmem:[%s15317_s10 + $0x2d0] sm:$0xff] }
 0x7ff   :  { %7581 = vmatpush.bf16.msrb.mxu2 %v12563_v40 }
 0x803   :  { %7582 = vmatpush.bf16.msrb.mxu2 %v12562_v56 }
 0x807   :  { %7583 = vmatpush.bf16.msrb.mxu2 %v12561_v19 }
 0x80b   :  { %7584 = vmatpush.bf16.msrb.mxu2 %v12560_v45 }
 0x80f   :  { %7798 = vmatpush.bf16.msra.mxu2 %v14696_v44 }
 0x813   :  { %7799 = vmatpush.bf16.msra.mxu2 %v14694_v55 }
 0x839   :  { %v6840_v53 = vpop.f32.mrf.mxu2  ;;  %v6901_v38 = vpop.f32.mrf.mxu3 }
 0x83a   :  { %v14914_v7 = vadd.f32 %v6901_v38, %v6840_v53  ;;  %v12580_v53 = vld [vmem:[%s15317_s10 + $0x2a0] sm:$0xff] }
 0x841   :  { %v6842_v28 = vpop.f32.mrf.mxu2  ;;  %v6903_v58 = vpop.f32.mrf.mxu3 }
 0x842   :  { %v12579_v28 = vld [vmem:[%s15317_s10 + $0x298] sm:$0xff] }
 0x849   :  { %v6919_v11 = vpop.f32.mrf.mxu2 }
 0x84a   :  { %v6923_v41 = vpack.c.bf16 %v6919_v11, %v6919_v11  ;;  %v12577_v11 = vld [vmem:[%s15317_s10 + $0x288] sm:$0xff] }
 0x84c   :  { %6997 = vmatmul.bf16.vlgmr.msrb.gmra.mxu1 %v6923_v41  ;;  %v12599_v41 = vld [vmem:[%s15317_s10 + $0x338] sm:$0xff] }
 0x84d   :  { %7675 = vmatpush.bf16.msrb.mxu1 %v12575_v39  ;;  %v12576_v39 = vld [vmem:[%s15317_s10 + $0x280] sm:$0xff] }
 0x851   :  { %7676 = vmatpush.bf16.msrb.mxu1 %v12574_v54  ;;  %v6921_v62 = vpop.f32.mrf.mxu2 }
 0x852   :  { %v12598_v62 = vld [vmem:[%s15317_s10 + $0x330] sm:$0xff] }
 0x855   :  { %7677 = vmatpush.bf16.msrb.mxu1 %v12573_v35  ;;  %v12597_v35 = vld [vmem:[%s15317_s10 + $0x328] sm:$0xff] }
 0x859   :  { %7678 = vmatpush.bf16.msrb.mxu1 %v12572_v32  ;;  %v7017_v9 = vpop.f32.mrf.mxu2 }
 0x85a   :  { %v7021_v33 = vpack.c.bf16 %v7017_v9, %v7017_v9  ;;  %v11607_v9 = vld [vmem:[%s15318_s9 + $0x2c] sm:$0xf] }
 0x85c   :  { %7095 = vmatmul.bf16.vlgmr.msrb.gmra.mxu3 %v7021_v33  ;;  %7291 = vmatmul.bf16.vlgmr.msra.gmra.mxu1 %v7217_v21  ;;  %v12596_v21 = vld [vmem:[%s15317_s10 + $0x320] sm:$0xff]  ;;  %v12593_v33 = vld [vmem:[%s15317_s10 + $0x308] sm:$0xff] }
 0x85d   :  { %7479 = vmatpush.bf16.msrb.mxu3 %v12559_v4  ;;  %7679 = vmatpush.bf16.msrb.mxu1 %v12571_v3  ;;  %v12595_v4 = vld [vmem:[%s15317_s10 + $0x318] sm:$0xff]  ;;  %v12594_v3 = vld [vmem:[%s15317_s10 + $0x310] sm:$0xff] }
 0x861   :  { %7480 = vmatpush.bf16.msrb.mxu3 %v12558_v42  ;;  %7680 = vmatpush.bf16.msrb.mxu1 %v12570_v30  ;;  %v7019_v10 = vpop.f32.mrf.mxu2  ;;  %v12592_v42 = vld [vmem:[%s15317_s10 + $0x300] sm:$0xff] }
 0x865   :  { %7481 = vmatpush.bf16.msrb.mxu3 %v12557_v17  ;;  %7681 = vmatpush.bf16.msrb.mxu1 %v12569_v1 }
 0x869   :  { %7482 = vmatpush.bf16.msrb.mxu3 %v12556_v18  ;;  %7682 = vmatpush.bf16.msrb.mxu1 %v12568_v16  ;;  %v7194_v12 = vpop.f32.mrf.mxu2  ;;  %v11707_v16 = vld [vmem:[%s15318_s9 + $0x34] sm:$0xf] }
 0x86c   :  { %11358 = vmatmul.msk.bf16.vlgmr.msra.gmra.mxu3 %vm6713_vm6, %v11357_v15 }
 0x86d   :  { %7896 = vmatpush.bf16.msra.mxu1 %v14696_v44  ;;  %7483 = vmatpush.bf16.msrb.mxu3 %v12555_v49 }
 0x871   :  { %7897 = vmatpush.bf16.msra.mxu1 %v14694_v55  ;;  %7484 = vmatpush.bf16.msrb.mxu3 %v12554_v24  ;;  %v7196_v25 = vpop.f32.mrf.mxu2 }
 0x875   :  { %7485 = vmatpush.bf16.msrb.mxu3 %v12553_v26 }
 0x879   :  { %7486 = vmatpush.bf16.msrb.mxu3 %v12552_v46  ;;  %v7409_v59 = vpop.f32.mrf.mxu2  ;;  %v12607_v46 = vld [vmem:[%s15317_s10 + $0x378] sm:$0xff] }
 0x87a   :  { %v7413_v48 = vpack.c.bf16 %v7409_v59, %v7409_v59 }
 0x87c   :  { %7487 = vmatmul.bf16.vlgmr.msrb.gmra.mxu3 %v7413_v48 }
 0x87d   :  { %7504 = vmatpush.bf16.msra.mxu3 %v14696_v44 }
 0x881   :  { %7505 = vmatpush.bf16.msra.mxu3 %v14694_v55  ;;  %v7411_v14 = vpop.f32.mrf.mxu2 }
 0x885   :  { %7700 = vmatpush.bf16.msrb.mxu3 %v14696_v44 }
 0x889   :  { %7701 = vmatpush.bf16.msrb.mxu3 %v14694_v55 }
 0x88c   :  { %11458 = vmatmul.msk.bf16.vlgmr.msra.gmra.mxu3 %vm6713_vm6, %v11457_v34 }
 0x88d   :  { %7871 = vmatpush.bf16.msra.mxu3 %v12591_v43  ;;  %v11757_v43 = vld [vmem:[%s15318_s9 + $0x38] sm:$0xf] }
 0x891   :  { %7872 = vmatpush.bf16.msra.mxu3 %v12590_v60  ;;  %v12606_v60 = vld [vmem:[%s15317_s10 + $0x370] sm:$0xff] }
 0x895   :  { %7873 = vmatpush.bf16.msra.mxu3 %v12589_v8 }
 0x899   :  { %7874 = vmatpush.bf16.msra.mxu3 %v12588_v6  ;;  %v12605_v6 = vld [vmem:[%s15317_s10 + $0x368] sm:$0xff] }
 0x89c   :  { %11558 = vmatmul.msk.bf16.vlgmr.msrb.gmra.mxu3 %vm6713_vm6, %v11557_v61  ;;  %v12603_v61 = vld [vmem:[%s15317_s10 + $0x358] sm:$0xff] }
 0x89d   :  { %7875 = vmatpush.bf16.msra.mxu3 %v12587_v63  ;;  %v12604_v63 = vld [vmem:[%s15317_s10 + $0x360] sm:$0xff] }
 0x8a1   :  { %7876 = vmatpush.bf16.msra.mxu3 %v12586_v37 }
 0x8a5   :  { %7877 = vmatpush.bf16.msra.mxu3 %v12585_v23  ;;  %v12602_v23 = vld [vmem:[%s15317_s10 + $0x350] sm:$0xff] }
 0x8a9   :  { %7878 = vmatpush.bf16.msra.mxu3 %v12584_v50  ;;  %v12601_v50 = vld [vmem:[%s15317_s10 + $0x348] sm:$0xff] }
 0x8ad   :  { %8092 = vmatpush.bf16.msrb.mxu3 %v14696_v44 }
 0x8b1   :  { %8093 = vmatpush.bf16.msrb.mxu3 %v14694_v55 }
 0x8c9   :  { %v6998_v40 = vpop.f32.mrf.mxu1 }
 0x8ca   :  { %v7002_v31 = vadd.f32 %v6998_v40, %v14914_v7  ;;  %v11507_v7 = vld [vmem:[%s15318_s9 + $0x24] sm:$0xf]  ;;  %v12615_v40 = vld [vmem:[%s15317_s10 + $0x3b8] sm:$0xff] }
 0x8d1   :  { %v7000_v56 = vpop.f32.mrf.mxu1 }
 0x8d2   :  { %v12600_v56 = vld [vmem:[%s15317_s10 + $0x340] sm:$0xff] }
 0x8d9   :  { %v7292_v51 = vpop.f32.mrf.mxu1 }
 0x8df   :  { %v7096_v19 = vpop.f32.mrf.mxu3 }
 0x8e0   :  { %v7100_v47 = vadd.f32 %v7096_v19, %v7002_v31 }
 0x8e1   :  { %v7294_v45 = vpop.f32.mrf.mxu1 }
 0x8e2   :  { %v7198_v13 = vadd.f32 %v7194_v12, %v7100_v47 }
 0x8e4   :  { %v7296_v27 = vadd.f32 %v7292_v51, %v7198_v13 }
 0x8e7   :  { %v7098_v2 = vpop.f32.mrf.mxu3 }
 0x8e8   :  { %v12613_v2 = vld [vmem:[%s15317_s10 + $0x3a8] sm:$0xff] }
 0x8ef   :  { %v7311_v36 = vpop.f32.mrf.mxu3 }
 0x8f0   :  { %v7315_v57 = vpack.c.bf16 %v7311_v36, %v7311_v36 }
 0x8f2   :  { %7389 = vmatmul.bf16.vlgmr.msrb.gmra.mxu0 %v7315_v57  ;;  %v12611_v57 = vld [vmem:[%s15317_s10 + $0x398] sm:$0xff] }
 0x8f3   :  { %7773 = vmatpush.bf16.msrb.mxu0 %v12583_v22  ;;  %v12612_v22 = vld [vmem:[%s15317_s10 + $0x3a0] sm:$0xff] }
 0x8f7   :  { %7774 = vmatpush.bf16.msrb.mxu0 %v12582_v52  ;;  %v7313_v20 = vpop.f32.mrf.mxu3 }
 0x8fb   :  { %7775 = vmatpush.bf16.msrb.mxu0 %v12581_v0  ;;  %v12610_v0 = vld [vmem:[%s15317_s10 + $0x390] sm:$0xff] }
 0x8ff   :  { %7776 = vmatpush.bf16.msrb.mxu0 %v12580_v53  ;;  %v7488_v38 = vpop.f32.mrf.mxu3  ;;  %v12609_v53 = vld [vmem:[%s15317_s10 + $0x388] sm:$0xff] }
 0x902   :  { %11508 = vmatmul.msk.bf16.vlgmr.msra.gmra.mxu0 %vm6713_vm6, %v11507_v7  ;;  %v12608_v7 = vld [vmem:[%s15317_s10 + $0x380] sm:$0xff] }
 0x903   :  { %7777 = vmatpush.bf16.msrb.mxu0 %v12579_v28  ;;  %v12623_v28 = vld [vmem:[%s15317_s10 + $0x3f8] sm:$0xff] }
 0x907   :  { %7778 = vmatpush.bf16.msrb.mxu0 %v12578_v5  ;;  %v7490_v58 = vpop.f32.mrf.mxu3  ;;  %v11807_v5 = vld [vmem:[%s15318_s9 + $0x3c] sm:$0xf] }
 0x908   :  { %v12622_v58 = vld [vmem:[%s15317_s10 + $0x3f0] sm:$0xff] }
 0x90b   :  { %7779 = vmatpush.bf16.msrb.mxu0 %v12577_v11  ;;  %v12621_v11 = vld [vmem:[%s15317_s10 + $0x3e8] sm:$0xff] }
 0x90f   :  { %7780 = vmatpush.bf16.msrb.mxu0 %v12576_v39  ;;  %v7507_v29 = vpop.f32.mrf.mxu3 }
 0x910   :  { %v7511_v54 = vpack.c.bf16 %v7507_v29, %v7507_v29 }
 0x912   :  { %7585 = vmatmul.bf16.vlgmr.msrb.gmra.mxu2 %v7511_v54 }
 0x913   :  { %7994 = vmatpush.bf16.msra.mxu0 %v14696_v44  ;;  %7969 = vmatpush.bf16.msrb.mxu2 %v12599_v41 }
 0x917   :  { %7995 = vmatpush.bf16.msra.mxu0 %v14694_v55  ;;  %7970 = vmatpush.bf16.msrb.mxu2 %v12598_v62  ;;  %v7509_v32 = vpop.f32.mrf.mxu3 }
 0x918   :  { %v12620_v32 = vld [vmem:[%s15317_s10 + $0x3e0] sm:$0xff] }
 0x91b   :  { %7971 = vmatpush.bf16.msrb.mxu2 %v12597_v35 }
 0x91f   :  { %7972 = vmatpush.bf16.msrb.mxu2 %v12596_v21  ;;  %v7703_v30 = vpop.f32.mrf.mxu3 }
 0x920   :  { %v7707_v10 = vpack.c.bf16 %v7703_v30, %v7703_v30 }
 0x922   :  { %11608 = vmatmul.msk.bf16.vlgmr.msra.gmra.mxu2 %vm6713_vm6, %v11607_v9  ;;  %7781 = vmatmul.bf16.vlgmr.msrb.gmra.mxu0 %v7707_v10  ;;  %v12619_v9 = vld [vmem:[%s15317_s10 + $0x3d8] sm:$0xff] }
 0x923   :  { %7973 = vmatpush.bf16.msrb.mxu2 %v12595_v4  ;;  %8165 = vmatpush.bf16.msrb.mxu0 %v12615_v40  ;;  %v12618_v4 = vld [vmem:[%s15317_s10 + $0x3d0] sm:$0xff] }
 0x927   :  { %7974 = vmatpush.bf16.msrb.mxu2 %v12594_v3  ;;  %v7705_v17 = vpop.f32.mrf.mxu3  ;;  %v12617_v3 = vld [vmem:[%s15317_s10 + $0x3c8] sm:$0xff] }
 0x92b   :  { %7975 = vmatpush.bf16.msrb.mxu2 %v12593_v33 }
 0x92f   :  { %7976 = vmatpush.bf16.msrb.mxu2 %v12592_v42  ;;  %v12616_v42 = vld [vmem:[%s15317_s10 + $0x3c0] sm:$0xff] }
 0x932   :  { %11708 = vmatmul.msk.bf16.vlgmr.msra.gmra.mxu0 %vm6713_vm6, %v11707_v16 }
 0x933   :  { %8190 = vmatpush.bf16.msra.mxu2 %v14696_v44 }
 0x937   :  { %8191 = vmatpush.bf16.msra.mxu2 %v14694_v55  ;;  %v11657_v55 = vld [vmem:[%s15318_s9 + $0x30] sm:$0xf] }
 0x96f   :  { %v7390_v1 = vpop.f32.mrf.mxu0 }
 0x970   :  { %v7394_v18 = vadd.f32 %v7390_v1, %v7296_v27  ;;  %v12614_v27 = vld [vmem:[%s15317_s10 + $0x3b0] sm:$0xff] }
 0x971   :  { %8166 = vmatpush.bf16.msrb.mxu0 %v12614_v27 }
 0x972   :  { %v7492_v44 = vadd.f32 %v7488_v38, %v7394_v18 }
 0x975   :  { %8167 = vmatpush.bf16.msrb.mxu0 %v12613_v2 }
 0x977   :  { %v7392_v12 = vpop.f32.mrf.mxu0 }
 0x979   :  { %8168 = vmatpush.bf16.msrb.mxu0 %v12612_v22 }
 0x97d   :  { %8169 = vmatpush.bf16.msrb.mxu0 %v12611_v57 }
 0x97f   :  { %v7605_v15 = vpop.f32.mrf.mxu0 }
 0x980   :  { %v7609_v49 = vpack.c.bf16 %v7605_v15, %v7605_v15 }
 0x981   :  { %8170 = vmatpush.bf16.msrb.mxu0 %v12610_v0 }
 0x982   :  { %7683 = vmatmul.bf16.vlgmr.msrb.gmra.mxu1 %v7609_v49 }
 0x983   :  { %8067 = vmatpush.bf16.msrb.mxu1 %v12607_v46 }
 0x985   :  { %8171 = vmatpush.bf16.msrb.mxu0 %v12609_v53 }
 0x987   :  { %v7607_v24 = vpop.f32.mrf.mxu0  ;;  %8068 = vmatpush.bf16.msrb.mxu1 %v12606_v60 }
 0x989   :  { %8172 = vmatpush.bf16.msrb.mxu0 %v12608_v7  ;;  %v11858_v7 = vld [vmem:[%s15321_s13 + $0x4] sm:$0xf] }
 0x98b   :  { %8069 = vmatpush.bf16.msrb.mxu1 %v12605_v6 }
 0x98f   :  { %8070 = vmatpush.bf16.msrb.mxu1 %v12604_v63 }
 0x992   :  { %11658 = vmatmul.msk.bf16.vlgmr.msra.gmra.mxu1 %vm6713_vm6, %v11657_v55 }
 0x993   :  { %8071 = vmatpush.bf16.msrb.mxu1 %v12603_v61 }
 0x995   :  { %v7586_v25 = vpop.f32.mrf.mxu2 }
 0x996   :  { %v7590_v26 = vadd.f32 %v7586_v25, %v7492_v44 }
 0x997   :  { %8072 = vmatpush.bf16.msrb.mxu1 %v12602_v23 }
 0x99b   :  { %8073 = vmatpush.bf16.msrb.mxu1 %v12601_v50 }
 0x99d   :  { %v7588_v59 = vpop.f32.mrf.mxu2 }
 0x99f   :  { %v7782_v8 = vpop.f32.mrf.mxu0  ;;  %8074 = vmatpush.bf16.msrb.mxu1 %v12600_v56 }
 0x9a5   :  { %v7801_v48 = vpop.f32.mrf.mxu2 }
 0x9a6   :  { %v7805_v14 = vpack.c.bf16 %v7801_v48, %v7801_v48 }
 0x9a7   :  { %v7784_v37 = vpop.f32.mrf.mxu0 }
 0x9a8   :  { %7879 = vmatmul.bf16.vlgmr.msra.gmra.mxu3 %v7805_v14 }
 0x9a9   :  { %8263 = vmatpush.bf16.msra.mxu3 %v12623_v28  ;;  %v8318_v28 = vld [vmem:[%s15321_s13] sm:$0xf] }
 0x9ad   :  { %v7803_v34 = vpop.f32.mrf.mxu2  ;;  %8264 = vmatpush.bf16.msra.mxu3 %v12622_v58  ;;  %v12638_v58 = vld [vmem:[%s15322_s14 + $0x70] sm:$0xff] }
 0x9af   :  { %v7997_v31 = vpop.f32.mrf.mxu0 }
 0x9b0   :  { %v8001_v51 = vpack.c.bf16 %v7997_v31, %v7997_v31 }
 0x9b1   :  { %8265 = vmatpush.bf16.msra.mxu3 %v12621_v11  ;;  %v12647_v11 = vld [vmem:[%s15322_s14 + $0xb8] sm:$0xff] }
 0x9b2   :  { %8075 = vmatmul.bf16.vlgmr.msrb.gmra.mxu1 %v8001_v51 }
 0x9b5   :  { %8266 = vmatpush.bf16.msra.mxu3 %v12620_v32  ;;  %v11990_v32 = vld [vmem:[%s15321_s13 + $0xc] sm:$0xf] }
 0x9b7   :  { %v7999_v19 = vpop.f32.mrf.mxu0 }
 0x9b8   :  { %11758 = vmatmul.msk.bf16.vlgmr.msrb.gmra.mxu3 %vm6713_vm6, %v11757_v43 }
 0x9b9   :  { %8267 = vmatpush.bf16.msra.mxu3 %v12619_v9  ;;  %v12630_v9 = vld [vmem:[%s15322_s14 + $0x30] sm:$0xff] }
 0x9bd   :  { %8268 = vmatpush.bf16.msra.mxu3 %v12618_v4  ;;  %v12629_v4 = vld [vmem:[%s15322_s14 + $0x28] sm:$0xff] }
 0x9c1   :  { %8269 = vmatpush.bf16.msra.mxu3 %v12617_v3  ;;  %v12628_v3 = vld [vmem:[%s15322_s14 + $0x20] sm:$0xff] }
 0x9c5   :  { %8270 = vmatpush.bf16.msra.mxu3 %v12616_v42  ;;  %v12646_v42 = vld [vmem:[%s15322_s14 + $0xb0] sm:$0xff] }
 0x9c9   :  { %8599 = vmatpush.bf16.msrb.mxu3 %v12647_v11 }
 0x9cd   :  { %8600 = vmatpush.bf16.msrb.mxu3 %v12646_v42 }
 0x9ff   :  { %v7684_v47 = vpop.f32.mrf.mxu1 }
 0xa00   :  { %v7688_v45 = vadd.f32 %v7684_v47, %v7590_v26 }
 0xa02   :  { %v7786_v13 = vadd.f32 %v7782_v8, %v7688_v45  ;;  %v12668_v45 = vld [vmem:[%s15319_s11] ss:$0 sm:$0xff] }
 0xa07   :  { %v7686_v36 = vpop.f32.mrf.mxu1 }
 0xa08   :  { %v12669_v36 = vld [vmem:[%s15320_s12] ss:$0 sm:$0xff] }
 0xa0f   :  { %v7899_v52 = vpop.f32.mrf.mxu1 }
 0xa10   :  { %v7903_v20 = vpack.c.bf16 %v7899_v52, %v7899_v52 }
 0xa12   :  { %7977 = vmatmul.bf16.vlgmr.msrb.gmra.mxu2 %v7903_v20 }
 0xa17   :  { %v7901_v38 = vpop.f32.mrf.mxu1 }
 0xa22   :  { %11808 = vmatmul.msk.bf16.vlgmr.msra.gmra.mxu2 %vm6713_vm6, %v11807_v5  ;;  %v12639_v5 = vld [vmem:[%s15322_s14 + $0x78] sm:$0xff] }
 0xa23   :  { %8441 = vmatpush.bf16.msra.mxu0 %v12639_v5  ;;  %v12661_v5 = vld [vmem:[%s15325_s17 + $0x28] sm:$0xff] }
 0xa27   :  { %8442 = vmatpush.bf16.msra.mxu0 %v12638_v58 }
 0xa2b   :  { %v7880_v39 = vpop.f32.mrf.mxu3 }
 0xa2c   :  { %v7884_v29 = vadd.f32 %v7880_v39, %v7786_v13  ;;  %v12637_v39 = vld [vmem:[%s15322_s14 + $0x68] sm:$0xff] }
 0xa2d   :  { %8443 = vmatpush.bf16.msra.mxu0 %v12637_v39 }
 0xa2f   :  { %v8076_v21 = vpop.f32.mrf.mxu1 }
 0xa33   :  { %v7882_v41 = vpop.f32.mrf.mxu3 }
 0xa34   :  { %v11940_v41 = vld [vmem:[%s15321_s13 + $0x8] sm:$0xf] }
 0xa37   :  { %v8078_v33 = vpop.f32.mrf.mxu1 }
 0xa38   :  { %v12627_v33 = vld [vmem:[%s15322_s14 + $0x18] sm:$0xff] }
 0xa3b   :  { %v8095_v54 = vpop.f32.mrf.mxu3 }
 0xa3c   :  { %v8099_v62 = vpack.c.bf16 %v8095_v54, %v8095_v54  ;;  %v12635_v54 = vld [vmem:[%s15322_s14 + $0x58] sm:$0xff] }
 0xa3e   :  { %8173 = vmatmul.bf16.vlgmr.msrb.gmra.mxu0 %v8099_v62  ;;  %v12634_v62 = vld [vmem:[%s15322_s14 + $0x50] sm:$0xff] }
 0xa43   :  { %v8097_v35 = vpop.f32.mrf.mxu3 }
 0xa44   :  { %v12633_v35 = vld [vmem:[%s15322_s14 + $0x48] sm:$0xff] }
 0xa95   :  { %v7978_v30 = vpop.f32.mrf.mxu2 }
 0xa96   :  { %v7982_v10 = vadd.f32 %v7978_v30, %v7884_v29  ;;  %v12636_v29 = vld [vmem:[%s15322_s14 + $0x60] sm:$0xff]  ;;  %v12626_v30 = vld [vmem:[%s15322_s14 + $0x10] sm:$0xff] }
 0xa97   :  { %8444 = vmatpush.bf16.msra.mxu0 %v12636_v29  ;;  %v12660_v29 = vld [vmem:[%s15325_s17 + $0x20] sm:$0xff] }
 0xa98   :  { %v8080_v17 = vadd.f32 %v8076_v21, %v7982_v10  ;;  %v12631_v21 = vld [vmem:[%s15322_s14 + $0x38] sm:$0xff]  ;;  %v12645_v10 = vld [vmem:[%s15322_s14 + $0xa8] sm:$0xff] }
 0xa99   :  { %8601 = vmatpush.bf16.msrb.mxu3 %v12645_v10 }
 0xa9b   :  { %8445 = vmatpush.bf16.msra.mxu0 %v12635_v54 }
 0xa9d   :  { %v7980_v1 = vpop.f32.mrf.mxu2 }
 0xa9e   :  { %v12632_v1 = vld [vmem:[%s15322_s14 + $0x40] sm:$0xff] }
 0xa9f   :  { %8446 = vmatpush.bf16.msra.mxu0 %v12634_v62  ;;  %v12659_v62 = vld [vmem:[%s15325_s17 + $0x18] sm:$0xff] }
 0xaa3   :  { %8447 = vmatpush.bf16.msra.mxu0 %v12633_v35 }
 0xaa5   :  { %v8193_v18 = vpop.f32.mrf.mxu2 }
 0xaa6   :  { %v8197_v16 = vpack.c.bf16 %v8193_v18, %v8193_v18  ;;  %v12644_v18 = vld [vmem:[%s15322_s14 + $0xa0] sm:$0xff] }
 0xaa7   :  { %8448 = vmatpush.bf16.msra.mxu0 %v12632_v1  ;;  %8602 = vmatpush.bf16.msrb.mxu3 %v12644_v18 }
 0xaa8   :  { %8271 = vmatmul.bf16.vlgmr.msra.gmra.mxu3 %v8197_v16  ;;  %v12624_v16 = vld [vmem:[%s15322_s14] sm:$0xff] }
 0xaad   :  { %v8195_v12 = vpop.f32.mrf.mxu2 }
 0xaae   :  { %v12655_v12 = vld [vmem:[%s15322_s14 + $0xf8] sm:$0xff] }
 0xaaf   :  { %8697 = vmatpush.bf16.msrb.mxu0 %v12655_v12 }
 0xabb   :  { %v8174_v15 = vpop.f32.mrf.mxu0 }
 0xabc   :  { %v8178_v49 = vadd.f32 %v8174_v15, %v8080_v17  ;;  %v12625_v17 = vld [vmem:[%s15322_s14 + $0x8] sm:$0xff]  ;;  %v12643_v15 = vld [vmem:[%s15322_s14 + $0x98] sm:$0xff] }
 0xabd   :  { %8603 = vmatpush.bf16.msrb.mxu3 %v12643_v15 }
 0xac3   :  { %v8176_v24 = vpop.f32.mrf.mxu0 }
 0xac4   :  { %v12642_v24 = vld [vmem:[%s15322_s14 + $0x90] sm:$0xff] }
 0xac5   :  { %8604 = vmatpush.bf16.msrb.mxu3 %v12642_v24  ;;  %v12670_v24 = vld [vmem:[%s15323_s15] ss:$0 sm:$0xff] }
 0xb2b   :  { %v8272_v55 = vpop.f32.mrf.mxu3 }
 0xb2c   :  { %v8276_v44 = vadd.f32 %v8272_v55, %v8178_v49  ;;  %v12654_v49 = vld [vmem:[%s15322_s14 + $0xf0] sm:$0xff]  ;;  %v12653_v55 = vld [vmem:[%s15322_s14 + $0xe8] sm:$0xff] }
 0xb2d   :  { %8698 = vmatpush.bf16.msrb.mxu0 %v12654_v49 }
 0xb2e   :  { %v8277_v25 = vrot.slane %v8276_v44, 4 }
 0xb30   :  { %v8278_v26 = vadd.f32 %v8277_v25, %v8276_v44  ;;  %v12652_v25 = vld [vmem:[%s15322_s14 + $0xe0] sm:$0xff] }
 0xb31   :  { %8699 = vmatpush.bf16.msrb.mxu0 %v12653_v55 }
 0xb32   :  { %v8279_v46 = vrot.slane %v8278_v26, 2 }
 0xb33   :  { %v8274_v59 = vpop.f32.mrf.mxu3 }
 0xb34   :  { %v8280_v48 = vadd.f32 %v8279_v46, %v8278_v26  ;;  %v12640_v26 = vld [vmem:[%s15322_s14 + $0x80] sm:$0xff]  ;;  %v12651_v46 = vld [vmem:[%s15322_s14 + $0xd8] sm:$0xff]  ;;  %v12650_v59 = vld [vmem:[%s15322_s14 + $0xd0] sm:$0xff] }
 0xb35   :  { %8700 = vmatpush.bf16.msrb.mxu0 %v12652_v25 }
 0xb36   :  { %v8281_v14 = vrot.slane %v8280_v48, 1 }
 0xb38   :  { %v8282_v34 = vadd.f32 %v8281_v14, %v8280_v48  ;;  %v12649_v48 = vld [vmem:[%s15322_s14 + $0xc8] sm:$0xff] }
 0xb39   :  { %8701 = vmatpush.bf16.msrb.mxu0 %v12651_v46 }
 0xb3a   :  { %v8283_v43 = vmul.f32 0.125, %v8282_v34 }
 0xb3c   :  { %v8284_v60 = vsub.f32 %v8276_v44, %v8283_v43  ;;  %v12641_v44 = vld [vmem:[%s15322_s14 + $0x88] sm:$0xff]  ;;  %v12648_v43 = vld [vmem:[%s15322_s14 + $0xc0] sm:$0xff] }
 0xb3d   :  { %8605 = vmatpush.bf16.msrb.mxu3 %v12641_v44  ;;  %8702 = vmatpush.bf16.msrb.mxu0 %v12650_v59 }
 0xb3e   :  { %v8285_v8 = vmul.f32 %v8284_v60, %v8284_v60  ;;  %v8297_v2 = vmul.f32 %v12668_v45, %v8284_v60 }
 0xb40   :  { %v8286_v6 = vrot.slane %v8285_v8, 4 }
 0xb41   :  { %8606 = vmatpush.bf16.msrb.mxu3 %v12640_v26  ;;  %8703 = vmatpush.bf16.msrb.mxu0 %v12649_v48  ;;  %v12671_v26 = vld [vmem:[%s15324_s16] ss:$0 sm:$0xff] }
 0xb42   :  { %v8287_v63 = vadd.f32 %v8286_v6, %v8285_v8 }
 0xb44   :  { %v8288_v61 = vrot.slane %v8287_v63, 2 }
 0xb45   :  { %8704 = vmatpush.bf16.msrb.mxu0 %v12648_v43 }
 0xb46   :  { %v8289_v37 = vadd.f32 %v8288_v61, %v8287_v63 }
 0xb48   :  { %v8290_v23 = vrot.slane %v8289_v37, 1 }
 0xb4a   :  { %v8291_v50 = vadd.f32 %v8290_v23, %v8289_v37 }
 0xb4c   :  { %v8292_v40 = vmul.f32 0.125, %v8291_v50 }
 0xb4e   :  { %v8298_v31 = vadd.f32 1e-05, %v8292_v40 }
 0xb50   :  { %12676 = vrsqrt.f32 %v8298_v31  ;;  %vm8305_vm8 = vweird.f32 %v8298_v31 }
 0xb56   :  { %v12677_v56 = vpop.eup %12676 }
 0xb57   :  { %v8300_v51 = vmul.f32 %v12677_v56, %v8298_v31  ;;  %vm8306_vm7 = vweird.f32 %v12677_v56 }
 0xb58   :  { %vm8307_vm9 = vmor %vm8305_vm8, %vm8306_vm7 }
 0xb59   :  { %v8301_v19 = vmul.f32 %v12677_v56, %v8300_v51 }
 0xb5b   :  { %v8302_v47 = vmul.f32 0.5, %v8301_v19 }
 0xb5d   :  { %v8303_v13 = vsub.f32 1.5, %v8302_v47 }
 0xb5f   :  { %v8304_v27 = vmul.f32 %v12677_v56, %v8303_v13 }
 0xb61   :  { %v8308_v22 = vsel %vm8307_vm9, %v12677_v56, %v8304_v27 }
 0xb62   :  { %v8309_v57 = vmul.f32 %v8308_v22, %v8297_v2 }
 0xb64   :  { %v8314_v52 = vadd.f32 %v12669_v36, %v8309_v57  ;;  %v12663_v57 = vld [vmem:[%s15325_s17 + $0x38] sm:$0xff] }
 0xb66   :  { %v8315_v20 = vmul.f32 0.2, %v8314_v52 }
 0xb68   :  { %v8316_v0 = vmax.f32 %v8314_v52, %v8315_v20 }
 0xb6a   :  { %v8317_v53 = vpack.c.bf16 %v8316_v0, %v8316_v0  ;;  %v12662_v0 = vld [vmem:[%s15325_s17 + $0x30] sm:$0xff] }
 0xb6c   :  { %v8325_v38 = vsel %vm8323_vm10, %v8317_v53, 0 }
 0xb6d   :  { %8334 = vmatpush.bf16.msra.mxu1 %v8325_v38  ;;  %8369 = vmatpush.bf16.msrb.mxu2 %v8325_v38 }
 0xb70   :  { %11859 = vmatmul.msk.bf16.vlgmr.msrb.gmra.mxu2 %vm8319_vm11, %v11858_v7  ;;  %11857 = vmatmul.msk.bf16.vlgmr.msra.gmra.mxu1 %vm8319_vm11, %v8318_v28 }
 0xb71   :  { %8527 = vmatpush.bf16.msra.mxu2 %v8325_v38  ;;  %8502 = vmatpush.bf16.msrb.mxu1 %v12631_v21 }
 0xb75   :  { %8625 = vmatpush.bf16.msrb.mxu2 %v8325_v38  ;;  %8503 = vmatpush.bf16.msrb.mxu1 %v12630_v9  ;;  %v8718_v38 = vlaneseq  ;;  %v12658_v9 = vld [vmem:[%s15325_s17 + $0x10] sm:$0xff] }
 0xb77   :  { %v8719_v11 = vshrl.u32 %v8718_v38, 7 }
 0xb79   :  { %8504 = vmatpush.bf16.msrb.mxu1 %v12629_v4  ;;  %vm8720_vm12 = vcmp.lt.s32.totalorder %v8719_v11, 2 }
 0xb7d   :  { %8505 = vmatpush.bf16.msrb.mxu1 %v12628_v3 }
 0xb80   :  { %11941 = vmatmul.msk.bf16.vlgmr.msra.gmra.mxu2 %vm8319_vm11, %v11940_v41 }
 0xb81   :  { %8506 = vmatpush.bf16.msrb.mxu1 %v12627_v33  ;;  %v12657_v33 = vld [vmem:[%s15325_s17 + $0x8] sm:$0xff] }
 0xb85   :  { %8507 = vmatpush.bf16.msrb.mxu1 %v12626_v30  ;;  %v12656_v30 = vld [vmem:[%s15325_s17] sm:$0xff] }
 0xb89   :  { %8508 = vmatpush.bf16.msrb.mxu1 %v12625_v17 }
 0xb8d   :  { %8509 = vmatpush.bf16.msrb.mxu1 %v12624_v16 }
 0xb90   :  { %11991 = vmatmul.msk.bf16.vlgmr.msrb.gmra.mxu2 %vm8319_vm11, %v11990_v32 }
 0xb91   :  { %8820 = vmatpush.bf16.msra.mxu1 %v12663_v57 }
 0xb95   :  { %8821 = vmatpush.bf16.msra.mxu1 %v12662_v0 }
 0xb99   :  { %8822 = vmatpush.bf16.msra.mxu1 %v12661_v5 }
 0xb9d   :  { %8823 = vmatpush.bf16.msra.mxu1 %v12660_v29 }
 0xba1   :  { %8824 = vmatpush.bf16.msra.mxu1 %v12659_v62 }
 0xba5   :  { %8825 = vmatpush.bf16.msra.mxu1 %v12658_v9 }
 0xba9   :  { %8826 = vmatpush.bf16.msra.mxu1 %v12657_v33 }
 0xbad   :  { %8827 = vmatpush.bf16.msra.mxu1 %v12656_v30 }
 0xbed   :  { %v8336_v14 = vpop.f32.mrf.mxu1 }
 0xbee   :  { %v8340_v34 = vpack.c.bf16 %v8336_v14, %v8336_v14 }
 0xbf0   :  { %8510 = vmatmul.bf16.vlgmr.msrb.gmra.mxu1 %v8340_v34 }
 0xbf3   :  { %v8371_v60 = vpop.f32.mrf.mxu2 }
 0xbf4   :  { %v8375_v8 = vpack.c.bf16 %v8371_v60, %v8371_v60 }
 0xbf5   :  { %v8338_v6 = vpop.f32.mrf.mxu1 }
 0xbf6   :  { %8449 = vmatmul.bf16.vlgmr.msra.gmra.mxu0 %v8375_v8 }
 0xbfb   :  { %v8373_v63 = vpop.f32.mrf.mxu2 }
 0xc03   :  { %v8529_v61 = vpop.f32.mrf.mxu2 }
 0xc04   :  { %v8533_v37 = vpack.c.bf16 %v8529_v61, %v8529_v61 }
 0xc06   :  { %8607 = vmatmul.bf16.vlgmr.msrb.gmra.mxu3 %v8533_v37 }
 0xc0b   :  { %v8531_v23 = vpop.f32.mrf.mxu2 }
 0xc13   :  { %v8627_v50 = vpop.f32.mrf.mxu2 }
 0xc14   :  { %v8631_v40 = vpack.c.bf16 %v8627_v50, %v8627_v50 }
 0xc16   :  { %8705 = vmatmul.bf16.vlgmr.msrb.gmra.mxu0 %v8631_v40 }
 0xc1b   :  { %v8629_v31 = vpop.f32.mrf.mxu2 }
 0xc6d   :  { %v8511_v56 = vpop.f32.mrf.mxu1 }
 0xc73   :  { %v8450_v51 = vpop.f32.mrf.mxu0 }
 0xc74   :  { %v8512_v13 = vadd.f32 %v8511_v56, %v8450_v51 }
 0xc75   :  { %v8513_v19 = vpop.f32.mrf.mxu1 }
 0xc7b   :  { %v8452_v47 = vpop.f32.mrf.mxu0 }
 0xc89   :  { %v8608_v45 = vpop.f32.mrf.mxu3 }
 0xc8a   :  { %v8612_v2 = vadd.f32 %v8608_v45, %v8512_v13 }
 0xc91   :  { %v8610_v27 = vpop.f32.mrf.mxu3 }
 0xc93   :  { %v8706_v36 = vpop.f32.mrf.mxu0 }
 0xc94   :  { %v8710_v22 = vadd.f32 %v8706_v36, %v8612_v2 }
 0xc96   :  { %v8711_v52 = vrot.slane %v8710_v22, 4 }
 0xc98   :  { %v8712_v20 = vadd.f32 %v8711_v52, %v8710_v22 }
 0xc9a   :  { %v8713_v53 = vrot.slane %v8712_v20, 2 }
 0xc9b   :  { %v8708_v7 = vpop.f32.mrf.mxu0 }
 0xc9c   :  { %v8714_v28 = vadd.f32 %v8713_v53, %v8712_v20 }
 0xc9e   :  { %v8715_v58 = vrot.slane %v8714_v28, 1 }
 0xca0   :  { %v8716_v39 = vadd.f32 %v8715_v58, %v8714_v28 }
 0xca2   :  { %v8717_v41 = vmul.f32 0.5, %v8716_v39 }
 0xca4   :  { %v8721_v54 = vsub.f32 %v8710_v22, %v8717_v41 }
 0xca6   :  { %v8722_v35 = vsel %vm8720_vm12, %v8721_v54, 0.0  ;;  %v8735_v25 = vmul.f32 %v12670_v24, %v8721_v54 }
 0xca7   :  { %v8723_v32 = vmul.f32 %v8722_v35, %v8722_v35 }
 0xca9   :  { %v8724_v21 = vrot.slane %v8723_v32, 4 }
 0xcab   :  { %v8725_v4 = vadd.f32 %v8724_v21, %v8723_v32 }
 0xcad   :  { %v8726_v3 = vrot.slane %v8725_v4, 2 }
 0xcaf   :  { %v8727_v42 = vadd.f32 %v8726_v3, %v8725_v4 }
 0xcb1   :  { %v8728_v10 = vrot.slane %v8727_v42, 1 }
 0xcb3   :  { %v8729_v17 = vadd.f32 %v8728_v10, %v8727_v42 }
 0xcb5   :  { %v8730_v1 = vmul.f32 0.5, %v8729_v17 }
 0xcb7   :  { %v8736_v18 = vadd.f32 1e-05, %v8730_v1 }
 0xcb9   :  { %12678 = vrsqrt.f32 %v8736_v18  ;;  %vm8743_vm14 = vweird.f32 %v8736_v18 }
 0xcbf   :  { %v12679_v16 = vpop.eup %12678 }
 0xcc0   :  { %v8738_v12 = vmul.f32 %v12679_v16, %v8736_v18  ;;  %vm8744_vm13 = vweird.f32 %v12679_v16 }
 0xcc1   :  { %vm8745_vm15 = vmor %vm8743_vm14, %vm8744_vm13 }
 0xcc2   :  { %v8739_v15 = vmul.f32 %v12679_v16, %v8738_v12 }
 0xcc4   :  { %v8740_v49 = vmul.f32 0.5, %v8739_v15 }
 0xcc6   :  { %v8741_v55 = vsub.f32 1.5, %v8740_v49 }
 0xcc8   :  { %v8742_v44 = vmul.f32 %v12679_v16, %v8741_v55 }
 0xcca   :  { %v8746_v46 = vsel %vm8745_vm15, %v12679_v16, %v8742_v44 }
 0xccb   :  { %v8747_v59 = vmul.f32 %v8746_v46, %v8735_v25 }
 0xccd   :  { %v8752_v48 = vadd.f32 %v12671_v26, %v8747_v59 }
 0xccf   :  { %v8753_v14 = vmul.f32 0.2, %v8752_v48 }
 0xcd1   :  { %v8754_v34 = vmax.f32 %v8752_v48, %v8753_v14 }
 0xcd3   :  { %v8755_v43 = vpack.c.bf16 %v8754_v34, %v8754_v34 }
 0xcd5   :  { %8828 = vmatmul.bf16.vlgmr.msra.gmra.mxu1 %v8755_v43 }
 0xd52   :  { %v8829_v60 = vpop.f32.mrf.mxu1 }
 0xd53   :  { %8833 = vst [vmem:[%s15326_s18] sm:$0xff] %v8829_v60 }
 0xd5a   :  { %v8831_v8 = vpop.f32.mrf.mxu1 }

</bundles_post_ra>
